<compile_context>
chip_gen: v5e
topology: v5e:2x2
jax: 0.10.0
libtpu: 0.0.40
codegen_flags: <defaults>
</compile_context>

<pallas_src>
import functools

import jax
import jax.numpy as jnp
from jax.experimental import pallas as pl
from jax.experimental.pallas import tpu as pltpu

LANE = 128


# ----------------------------------------------------------------------------
# small helpers
# ----------------------------------------------------------------------------
def _rup(x, m):
    return (x + m - 1) // m * m


def _pick_tile(n, cap):
    t = min(cap, n)
    while t > 1 and n % t != 0:
        t //= 2
    return t


def _apply_act(y, act):
    if act == "relu":
        return jnp.maximum(y, 0.0)
    if act == "leaky_relu":
        return jnp.where(y > 0, y, 0.2 * y)
    if act == "tanh":
        return jnp.tanh(y)
    return y


# ----------------------------------------------------------------------------
# Pallas kernels
# ----------------------------------------------------------------------------
def _make_mm_kernel(act, has_bias, use_acc):
    """matmul (+ optional bias) (+ optional activation), f32 accumulation."""

    def kernel(*refs):
        idx = 0
        a_ref = refs[idx]; idx += 1
        b_ref = refs[idx]; idx += 1
        bias_ref = None
        if has_bias:
            bias_ref = refs[idx]; idx += 1
        o_ref = refs[idx]; idx += 1
        acc_ref = refs[idx] if use_acc else None

        def epilogue(y):
            if bias_ref is not None:
                y = y + bias_ref[...]
            o_ref[...] = _apply_act(y, act).astype(o_ref.dtype)

        if not use_acc:
            # nk == 1: no scratch, write output straight from the dot.
            epilogue(jnp.dot(a_ref[...], b_ref[...],
                             preferred_element_type=jnp.float32))
        else:
            k = pl.program_id(2)

            @pl.when(k == 0)
            def _():
                acc_ref[...] = jnp.zeros_like(acc_ref)

            acc_ref[...] += jnp.dot(a_ref[...], b_ref[...],
                                    preferred_element_type=jnp.float32)

            @pl.when(k == pl.num_programs(2) - 1)
            def _():
                epilogue(acc_ref[...])

    return kernel


def _make_stats_kernel(use_acc):
    """matmul that also emits per-tile column sum / sum-of-squares partials."""

    def kernel(a_ref, b_ref, o_ref, sum_ref, sq_ref, *scratch):
        def finalize(x):  # x: f32 [tm, tn]
            o_ref[...] = x.astype(o_ref.dtype)
            tm = x.shape[0]
            nblk = tm // 8
            nacc = min(4, nblk)
            # 4-way interleaved partial accumulators (tree) instead of a
            # serial nblk-deep dependency chain.
            ps = [x[8 * i:8 * i + 8, :] for i in range(nacc)]
            pq = [p * p for p in ps]
            for i in range(nacc, nblk):
                blk = x[8 * i:8 * i + 8, :]
                ps[i % nacc] = ps[i % nacc] + blk
                pq[i % nacc] = pq[i % nacc] + blk * blk
            s, q = ps[0], pq[0]
            for i in range(1, nacc):
                s = s + ps[i]
                q = q + pq[i]
            sum_ref[...] = s
            sq_ref[...] = q

        if not use_acc:
            finalize(jnp.dot(a_ref[...], b_ref[...],
                             preferred_element_type=jnp.float32))
        else:
            acc_ref = scratch[0]
            k = pl.program_id(2)

            @pl.when(k == 0)
            def _():
                acc_ref[...] = jnp.zeros_like(acc_ref)

            acc_ref[...] += jnp.dot(a_ref[...], b_ref[...],
                                    preferred_element_type=jnp.float32)

            @pl.when(k == pl.num_programs(2) - 1)
            def _():
                finalize(acc_ref[...])

    return kernel


def _affine_act_kernel(x_ref, scale_ref, shift_ref, o_ref, *, act):
    # bf16 in, f32 math in-VMEM, bf16 out.
    y = x_ref[...].astype(jnp.float32) * scale_ref[...] + shift_ref[...]
    o_ref[...] = _apply_act(y, act).astype(o_ref.dtype)


# ----------------------------------------------------------------------------
# Pallas wrappers (callers pass pre-padded operands:
# M % 8 == 0, K % 128 == 0, N % 128 == 0)
# ----------------------------------------------------------------------------
def _mm_specs(M, N, K, tm_cap, tn_cap, tk_cap):
    tm = _pick_tile(M, tm_cap)
    tn = _pick_tile(N, tn_cap)
    tk = _pick_tile(K, tk_cap)
    nm, nn, nk = M // tm, N // tn, K // tk
    use_acc = nk > 1
    if use_acc:
        grid = (nm, nn, nk)
        sem = ("parallel", "parallel", "arbitrary")
        a_spec = pl.BlockSpec((tm, tk), lambda i, j, k: (i, k))
        b_spec = pl.BlockSpec((tk, tn), lambda i, j, k: (k, j))
        v_spec = pl.BlockSpec((1, tn), lambda i, j, k: (0, j))
        o_spec = pl.BlockSpec((tm, tn), lambda i, j, k: (i, j))
        s_spec = pl.BlockSpec((8, tn), lambda i, j, k: (i, j))
        scratch = [pltpu.VMEM((tm, tn), jnp.float32)]
    else:
        grid = (nm, nn)
        sem = ("parallel", "parallel")
        a_spec = pl.BlockSpec((tm, tk), lambda i, j: (i, 0))
        b_spec = pl.BlockSpec((tk, tn), lambda i, j: (0, j))
        v_spec = pl.BlockSpec((1, tn), lambda i, j: (0, j))
        o_spec = pl.BlockSpec((tm, tn), lambda i, j: (i, j))
        s_spec = pl.BlockSpec((8, tn), lambda i, j: (i, j))
        scratch = []
    return (tm, tn, tk, nm, nn, nk, use_acc, grid, sem,
            a_spec, b_spec, v_spec, o_spec, s_spec, scratch)


def pallas_matmul(a, b, bias=None, *, act=None, out_dtype=jnp.bfloat16,
                  tm_cap=512, tn_cap=512, tk_cap=1024):
    """act(a @ b (+ bias)); bf16 MXU operands, f32 accumulation/epilogue."""
    a = a.astype(jnp.bfloat16)
    b = b.astype(jnp.bfloat16)
    M, K = a.shape
    K2, N = b.shape
    assert K == K2 and M % 8 == 0 and K % LANE == 0 and N % LANE == 0
    (tm, tn, tk, nm, nn, nk, use_acc, grid, sem,
     a_spec, b_spec, v_spec, o_spec, _s, scratch) = _mm_specs(
         M, N, K, tm_cap, tn_cap, tk_cap)
    has_bias = bias is not None
    kernel = _make_mm_kernel(act=act, has_bias=has_bias, use_acc=use_acc)
    in_specs = [a_spec, b_spec]
    args = [a, b]
    if has_bias:
        in_specs.append(v_spec)
        args.append(bias.reshape(1, N).astype(jnp.float32))
    return pl.pallas_call(
        kernel,
        out_shape=jax.ShapeDtypeStruct((M, N), out_dtype),
        grid=grid,
        in_specs=in_specs,
        out_specs=o_spec,
        scratch_shapes=scratch,
        compiler_params=pltpu.CompilerParams(dimension_semantics=sem),
    )(*args)


def pallas_matmul_stats(a, b, *, out_dtype=jnp.bfloat16,
                        tm_cap=512, tn_cap=512, tk_cap=1024):
    """Returns (a @ b [M,N] bf16, per-tile col sums [8*nm,N] f32, sumsq f32)."""
    a = a.astype(jnp.bfloat16)
    b = b.astype(jnp.bfloat16)
    M, K = a.shape
    K2, N = b.shape
    assert K == K2 and M % 8 == 0 and K % LANE == 0 and N % LANE == 0
    (tm, tn, tk, nm, nn, nk, use_acc, grid, sem,
     a_spec, b_spec, _v, o_spec, s_spec, scratch) = _mm_specs(
         M, N, K, tm_cap, tn_cap, tk_cap)
    kernel = _make_stats_kernel(use_acc=use_acc)
    return pl.pallas_call(
        kernel,
        out_shape=(jax.ShapeDtypeStruct((M, N), out_dtype),
                   jax.ShapeDtypeStruct((8 * nm, N), jnp.float32),
                   jax.ShapeDtypeStruct((8 * nm, N), jnp.float32)),
        grid=grid,
        in_specs=[a_spec, b_spec],
        out_specs=(o_spec, s_spec, s_spec),
        scratch_shapes=scratch,
        compiler_params=pltpu.CompilerParams(dimension_semantics=sem),
    )(a, b)


def pallas_affine_act(x, scale, shift, act, *, out_dtype=jnp.bfloat16,
                      tm_cap=1024):
    """act(x * scale + shift) per column.  x: [M, C] bf16; scale/shift: [C]."""
    M, C = x.shape
    assert M % 8 == 0 and C % LANE == 0
    tm = _pick_tile(M, tm_cap)
    scale = scale.reshape(1, C).astype(jnp.float32)
    shift = shift.reshape(1, C).astype(jnp.float32)
    return pl.pallas_call(
        functools.partial(_affine_act_kernel, act=act),
        out_shape=jax.ShapeDtypeStruct((M, C), out_dtype),
        grid=(M // tm,),
        in_specs=[pl.BlockSpec((tm, C), lambda i: (i, 0)),
                  pl.BlockSpec((1, C), lambda i: (0, 0)),
                  pl.BlockSpec((1, C), lambda i: (0, 0))],
        out_specs=pl.BlockSpec((tm, C), lambda i: (i, 0)),
        compiler_params=pltpu.CompilerParams(
            dimension_semantics=("parallel",)),
    )(x.astype(jnp.bfloat16), scale, shift)


# ----------------------------------------------------------------------------
# layout glue (channels-last, real channel counts, XLA-side)
# ----------------------------------------------------------------------------
def _pad_hw1(x):
    return jnp.pad(x, ((0, 0), (1, 1), (1, 1), (0, 0)))


def _taps_matrix(xp, offs_h, offs_w, ho, wo, stride):
    """Shifted-tap matrix: xp [N,Hp,Wp,C] -> [N*ho*wo, rup(T*C,128)] bf16.
    Columns ordered (oh, ow, c) with the REAL channel count; K padded once."""
    n = xp.shape[0]
    slices = [xp[:, oh:oh + stride * (ho - 1) + 1:stride,
                 ow:ow + stride * (wo - 1) + 1:stride, :]
              for oh in offs_h for ow in offs_w]
    a = jnp.concatenate(slices, axis=-1).reshape(n * ho * wo, -1)
    k = a.shape[1]
    kp = _rup(k, LANE)
    if kp != k:
        a = jnp.pad(a, ((0, 0), (0, kp - k)))
    return a.astype(jnp.bfloat16)


def _pad_weight(w2d):
    """[K, N] -> [rup(K,128), rup(N,128)] bf16, zero padded."""
    k, n = w2d.shape
    kp, npad = _rup(k, LANE), _rup(n, LANE)
    return (jnp.zeros((kp, npad), jnp.bfloat16)
            .at[:k, :n].set(w2d.astype(jnp.bfloat16)))


def _pad_vec(v, to):
    return jnp.zeros((to,), jnp.float32).at[:v.shape[0]].set(
        v.astype(jnp.float32))


def _fold_stats(s, q, group, co):
    """Per-tile partials [8*nm, Np] -> per-real-channel sums [co]."""
    s = jnp.sum(s, axis=0)
    q = jnp.sum(q, axis=0)
    s = jnp.sum(s[:group * co].reshape(group, co), axis=0)
    q = jnp.sum(q[:group * co].reshape(group, co), axis=0)
    return s, q


def _bn_scale_shift(s, q, count, gamma, beta, eps=1e-5):
    # TODO(synk): E[x^2]-E[x]^2 in f32 (biased, PyTorch train mode); subject to
    # cancellation if activations grow very large.
    mean = s / count
    var = jnp.maximum(q / count - mean * mean, 0.0)
    scale = gamma.astype(jnp.float32) * jax.lax.rsqrt(var + eps)
    shift = beta.astype(jnp.float32) - mean * scale
    return scale, shift


def _tile_pad(v, group, npad):
    """Per-channel vector [co] -> per-column vector [npad] (group-major)."""
    v = jnp.tile(v, group)
    return jnp.zeros((npad,), jnp.float32).at[:v.shape[0]].set(v)


def _fused_phase_weight(w):
    """ConvTranspose2d weight [Ci,Co,4,4] (stride 2, pad 1) -> fused 3x3-tap
    weight [9*Ci, 4*Co]: rows ordered (oh,ow,ci), cols ordered (r,c,co);
    taps a phase does not use are zero."""
    ci, co = w.shape[0], w.shape[1]
    wf = jnp.zeros((3, 3, ci, 2, 2, co), jnp.float32)
    for r in (0, 1):
        for c in (0, 1):
            for qh in (0, 1):
                for qw in (0, 1):
                    oh, ow = r + qh, c + qw
                    kh, kw = 3 - r - 2 * qh, 3 - c - 2 * qw
                    wf = wf.at[oh, ow, :, r, c, :].set(w[:, :, kh, kw])
    return wf.reshape(9 * ci, 4 * co)


def _interleave_fused(y, n, h, w, co):
    """Fused phase output [n*h*w, >=4*co] (cols (r,c,co)) -> [n,2h,2w,co]."""
    # TODO(synk): could be absorbed into the next layer's tap slicing (phase-
    # major storage) to save this one transpose pass per upsampling layer.
    y = y[:, :4 * co].reshape(n, h, w, 2, 2, co)
    return y.transpose(0, 1, 3, 2, 4, 5).reshape(n, 2 * h, 2 * w, co)


# ----------------------------------------------------------------------------
# layers
# ----------------------------------------------------------------------------
def gen_first_convt_bn_relu(h, w, gamma, beta, batch):
    """ConvTranspose2d(4,4,s=1,p=0) on 1x1 input == dense matmul + BN + ReLU.
    h: [Mp, Kp] bf16 with rows >= batch exactly zero."""
    mp, kp = h.shape
    ci, co = w.shape[0], w.shape[1]
    npad = _rup(16 * co, LANE)
    w1 = w.transpose(0, 2, 3, 1).reshape(ci, 16 * co)       # (ci) x (kh,kw,co)
    wp = (jnp.zeros((kp, npad), jnp.bfloat16)
          .at[:ci, :16 * co].set(w1.astype(jnp.bfloat16)))
    y, s, q = pallas_matmul_stats(h, wp)                     # [Mp, npad] bf16
    s, q = _fold_stats(s, q, 16, co)
    scale, shift = _bn_scale_shift(s, q, 16.0 * batch, gamma, beta)
    y = pallas_affine_act(y, _tile_pad(scale, 16, npad),
                          _tile_pad(shift, 16, npad), "relu")
    return y[:batch, :16 * co].reshape(batch, 4, 4, co)


def gen_convt_bn_relu(x, w, gamma, beta):
    """ConvTranspose2d(4,4,s=2,p=1,bias=False) + BatchNorm2d(train) + ReLU,
    all four output phases fused into ONE matmul over the 3x3 tap window."""
    n, h, wd, _ = x.shape
    co = w.shape[1]
    a = _taps_matrix(_pad_hw1(x), (0, 1, 2), (0, 1, 2), h, wd, 1)
    wp = _pad_weight(_fused_phase_weight(w))
    y, s, q = pallas_matmul_stats(a, wp)
    s, q = _fold_stats(s, q, 4, co)
    scale, shift = _bn_scale_shift(s, q, 4.0 * n * h * wd, gamma, beta)
    npad = wp.shape[1]
    y = pallas_affine_act(y, _tile_pad(scale, 4, npad),
                          _tile_pad(shift, 4, npad), "relu")
    return _interleave_fused(y, n, h, wd, co)


def gen_convt_tanh(x, w):
    """Final ConvTranspose2d(s=2): fused phases, Tanh in the matmul epilogue."""
    n, h, wd, _ = x.shape
    co = w.shape[1]
    a = _taps_matrix(_pad_hw1(x), (0, 1, 2), (0, 1, 2), h, wd, 1)
    y = pallas_matmul(a, _pad_weight(_fused_phase_weight(w)), act="tanh")
    return _interleave_fused(y, n, h, wd, co)


def dis_conv_lrelu(x, w):
    """Conv2d(4,4,s=2,p=1,bias=False) + LeakyReLU(0.2) fused in the epilogue."""
    n, h, wd, ci = x.shape
    ho, wo = h // 2, wd // 2
    co = w.shape[0]
    a = _taps_matrix(_pad_hw1(x), range(4), range(4), ho, wo, 2)
    wp = _pad_weight(w.transpose(2, 3, 1, 0).reshape(16 * ci, co))
    y = pallas_matmul(a, wp, act="leaky_relu")
    return y[:, :co].reshape(n, ho, wo, co)


def dis_conv_bn_lrelu(x, w, gamma, beta):
    """Conv2d(4,4,s=2,p=1) + BatchNorm2d(train) + LeakyReLU(0.2)."""
    n, h, wd, ci = x.shape
    ho, wo = h // 2, wd // 2
    co = w.shape[0]
    a = _taps_matrix(_pad_hw1(x), range(4), range(4), ho, wo, 2)
    wp = _pad_weight(w.transpose(2, 3, 1, 0).reshape(16 * ci, co))
    y, s, q = pallas_matmul_stats(a, wp)
    s, q = _fold_stats(s, q, 1, co)
    scale, shift = _bn_scale_shift(s, q, float(n * ho * wo), gamma, beta)
    npad = wp.shape[1]
    y = pallas_affine_act(y, _tile_pad(scale, 1, npad),
                          _tile_pad(shift, 1, npad), "leaky_relu")
    return y[:, :co].reshape(n, ho, wo, co)


def dis_conv_final(x, w):
    """Conv2d(4,4,s=1,p=0) on 4x4 input == dense matmul -> [rup(B,8), Np]."""
    n = x.shape[0]
    co = w.shape[0]
    a = x.reshape(n, -1)
    k = a.shape[1]
    kp, mp = _rup(k, LANE), _rup(n, 8)
    ap = jnp.zeros((mp, kp), jnp.bfloat16).at[:n, :k].set(a.astype(jnp.bfloat16))
    wp = _pad_weight(w.transpose(2, 3, 1, 0).reshape(k, co))
    return pallas_matmul(ap, wp)


def generator(h, p, batch):
    x = gen_first_convt_bn_relu(h, p["gen_w"][0], p["gen_bn_g"][0],
                                p["gen_bn_b"][0], batch)
    for i in (1, 2, 3):
        x = gen_convt_bn_relu(x, p["gen_w"][i], p["gen_bn_g"][i],
                              p["gen_bn_b"][i])
    return gen_convt_tanh(x, p["gen_w"][4])       # [B, 64, 64, 3] bf16


def discriminator(img, p):
    x = dis_conv_lrelu(img, p["dis_w"][0])
    for i in (1, 2, 3):
        x = dis_conv_bn_lrelu(x, p["dis_w"][i], p["dis_bn_g"][i - 1],
                              p["dis_bn_b"][i - 1])
    return dis_conv_final(x, p["dis_w"][4])        # [rup(B,8), 128] bf16


def cond_dcgan_forward(noise, labels, p):
    batch = noise.shape[0]
    d_classes = p["fc_classes_w"].shape[0]

    # embedding lookup + concat + fc_hidden (bias fused in the matmul epilogue)
    emb = jnp.take(p["embed"], labels, axis=0)
    x = jnp.concatenate([noise, emb], axis=1)
    d_in = x.shape[1]
    mp, kp = _rup(batch, 8), _rup(d_in, LANE)
    x_p = jnp.zeros((mp, kp), jnp.bfloat16).at[:batch, :d_in].set(
        x.astype(jnp.bfloat16))
    w_fc = _pad_weight(p["fc_hidden_w"].T)
    b_fc = _pad_vec(p["fc_hidden_b"], w_fc.shape[1])
    h = pallas_matmul(x_p, w_fc, bias=b_fc)
    h = h.at[batch:].set(0)        # keep padded batch rows zero (BN stats)

    images = generator(h, p, batch)                # (B, 64, 64, 3) bf16
    feat = discriminator(images, p)                # (rup(B,8), 128) bf16

    # fc_classes + fc_real as one matmul against a concatenated weight
    w_heads = _pad_weight(
        jnp.concatenate([p["fc_classes_w"], p["fc_real_w"]], axis=0).T)
    b_heads = _pad_vec(
        jnp.concatenate([p["fc_classes_b"], p["fc_real_b"]], axis=0),
        w_heads.shape[1])
    out = pallas_matmul(feat, w_heads, bias=b_heads, out_dtype=jnp.float32)
    class_logits = out[:batch, :d_classes]
    real_logits = out[:batch, d_classes]
    return class_logits, real_logits


# ----------------------------------------------------------------------------
# parameter construction (deterministic, PyTorch layouts)
# ----------------------------------------------------------------------------
def init_params(key, d_noise, d_classes, d_embed, d_hidden, d_gen, d_dis,
                d_ch=3):
    ks = iter(jax.random.split(key, 64))
    nrm = lambda shape, std=0.02: std * jax.random.normal(next(ks), shape,
                                                          jnp.float32)
    p = {}
    p["embed"] = nrm((d_classes, d_embed), 1.0)
    p["fc_hidden_w"] = nrm((d_hidden, d_noise + d_embed))
    p["fc_hidden_b"] = jnp.zeros((d_hidden,), jnp.float32)

    # Generator (assumed ImageGenerator64): standard DCGAN 64x64, ConvT layout.
    gch = [d_hidden, d_gen * 8, d_gen * 4, d_gen * 2, d_gen, d_ch]
    p["gen_w"] = [nrm((gch[i], gch[i + 1], 4, 4)) for i in range(5)]
    p["gen_bn_g"] = [1.0 + nrm((gch[i + 1],)) for i in range(4)]
    p["gen_bn_b"] = [jnp.zeros((gch[i + 1],), jnp.float32) for i in range(4)]

    # Discriminator (ImageDiscriminator64(d_dis, d_hidden)), Conv layout.
    dch = [d_ch, d_dis, d_dis * 2, d_dis * 4, d_dis * 8, d_hidden]
    p["dis_w"] = [nrm((dch[i + 1], dch[i], 4, 4)) for i in range(5)]
    p["dis_bn_g"] = [1.0 + nrm((dch[i + 2],)) for i in range(3)]
    p["dis_bn_b"] = [jnp.zeros((dch[i + 2],), jnp.float32) for i in range(3)]

    p["fc_classes_w"] = nrm((d_classes, d_hidden))
    p["fc_classes_b"] = jnp.zeros((d_classes,), jnp.float32)
    p["fc_real_w"] = nrm((1, d_hidden))
    p["fc_real_b"] = jnp.zeros((1,), jnp.float32)
    return p


# ----------------------------------------------------------------------------
if __name__ == "__main__":
    # Small config (image size is fixed at 64x64 by the architecture).
    d_noise, d_classes, d_embed, d_hidden, d_gen, d_dis = 16, 10, 8, 32, 8, 8
    batch = 2

    key = jax.random.PRNGKey(0)
    kparam, kn, kl = jax.random.split(key, 3)
    params = init_params(kparam, d_noise, d_classes, d_embed, d_hidden,
                         d_gen, d_dis)

    noise = jax.random.normal(kn, (batch, d_noise), jnp.float32)
    labels = jax.random.randint(kl, (batch,), 0, d_classes, jnp.int32)

    fwd = jax.jit(cond_dcgan_forward)
    class_logits, real_logits = fwd(noise, labels, params)
    jax.block_until_ready((class_logits, real_logits))

    assert class_logits.shape == (batch, d_classes)
    assert real_logits.shape == (batch,)
    assert bool(jnp.all(jnp.isfinite(class_logits)))
    assert bool(jnp.all(jnp.isfinite(real_logits)))
    print("KERNEL_OK")
</pallas_src>

<mosaic_0001>
module attributes {stable_mosaic.version = 11 : i64} {
  func.func @kernel(%arg0: i32, %arg1: i32, %arg2: memref<8x128xbf16, #tpu.memory_space<vmem>>, %arg3: memref<128x128xbf16, #tpu.memory_space<vmem>>, %arg4: memref<1x128xf32, #tpu.memory_space<vmem>>, %arg5: memref<8x128xbf16, #tpu.memory_space<vmem>>) attributes {dimension_semantics = [#tpu.dimension_semantics<parallel>, #tpu.dimension_semantics<parallel>], iteration_bounds = array<i64: 1, 1>, scalar_prefetch = 0 : i64, scratch_operands = 0 : i64, tpu.core_type = #tpu.core_type<tc>, window_params = [{transform_indices = @transform_0, window_bounds = array<i64: 8, 128>}, {transform_indices = @transform_1, window_bounds = array<i64: 128, 128>}, {transform_indices = @transform_2, window_bounds = array<i64: 1, 128>}, {transform_indices = @transform_3, window_bounds = array<i64: 8, 128>}]} {
    %c0 = arith.constant 0 : index
    %c0_0 = arith.constant 0 : index
    %0 = vector.load %arg2[%c0, %c0_0] : memref<8x128xbf16, #tpu.memory_space<vmem>>, vector<8x128xbf16>
    %c0_1 = arith.constant 0 : index
    %c0_2 = arith.constant 0 : index
    %1 = vector.load %arg3[%c0_1, %c0_2] : memref<128x128xbf16, #tpu.memory_space<vmem>>, vector<128x128xbf16>
    %cst = arith.constant dense<0.000000e+00> : vector<8x128xf32>
    %2 = tpu.matmul %0, %1, %cst {dimension_numbers = #tpu.dot_dimension_numbers<[1], [0], [0], [1], [0, 0, 1, 1], [], []>} : vector<8x128xbf16>, vector<128x128xbf16>, vector<8x128xf32> -> vector<8x128xf32>
    %c0_3 = arith.constant 0 : index
    %c0_4 = arith.constant 0 : index
    %3 = vector.load %arg4[%c0_3, %c0_4] : memref<1x128xf32, #tpu.memory_space<vmem>>, vector<1x128xf32>
    %4 = vector.broadcast %3 : vector<1x128xf32> to vector<8x128xf32>
    %5 = arith.addf %2, %4 : vector<8x128xf32>
    %6 = arith.truncf %5 : vector<8x128xf32> to vector<8x128xbf16>
    %c0_5 = arith.constant 0 : index
    %c0_6 = arith.constant 0 : index
    %7 = vector.load %arg5[%c0_5, %c0_6] : memref<8x128xbf16, #tpu.memory_space<vmem>>, vector<8x128xbf16>
    tpu.vector_store %arg5[%c0_5, %c0_6], %6 {strides = array<i32>} : memref<8x128xbf16, #tpu.memory_space<vmem>>, vector<8x128xbf16>,
    return
  }
  func.func @transform_0(%arg0: i32, %arg1: i32) -> (i32, i32) {
    %c0_i32 = arith.constant 0 : i32
    %c0_i32_0 = arith.constant 0 : i32
    return %arg0, %c0_i32 : i32, i32
  }
  func.func @transform_1(%arg0: i32, %arg1: i32) -> (i32, i32) {
    %c0_i32 = arith.constant 0 : i32
    %c0_i32_0 = arith.constant 0 : i32
    return %c0_i32, %arg1 : i32, i32
  }
  func.func @transform_2(%arg0: i32, %arg1: i32) -> (i32, i32) {
    %c0_i32 = arith.constant 0 : i32
    %c0_i32_0 = arith.constant 0 : i32
    return %c0_i32, %arg1 : i32, i32
  }
  func.func @transform_3(%arg0: i32, %arg1: i32) -> (i32, i32) {
    %c0_i32 = arith.constant 0 : i32
    return %arg0, %arg1 : i32, i32
  }
}

module attributes {stable_mosaic.version = 11 : i64} {
  func.func @kernel(%arg0: i32, %arg1: i32, %arg2: memref<8x128xbf16, #tpu.memory_space<vmem>>, %arg3: memref<128x512xbf16, #tpu.memory_space<vmem>>, %arg4: memref<8x512xbf16, #tpu.memory_space<vmem>>, %arg5: memref<8x512xf32, #tpu.memory_space<vmem>>, %arg6: memref<8x512xf32, #tpu.memory_space<vmem>>) attributes {dimension_semantics = [#tpu.dimension_semantics<parallel>, #tpu.dimension_semantics<parallel>], iteration_bounds = array<i64: 1, 2>, scalar_prefetch = 0 : i64, scratch_operands = 0 : i64, tpu.core_type = #tpu.core_type<tc>, window_params = [{transform_indices = @transform_0, window_bounds = array<i64: 8, 128>}, {transform_indices = @transform_1, window_bounds = array<i64: 128, 512>}, {transform_indices = @transform_2, window_bounds = array<i64: 8, 512>}, {transform_indices = @transform_3, window_bounds = array<i64: 8, 512>}, {transform_indices = @transform_4, window_bounds = array<i64: 8, 512>}]} {
    %c0 = arith.constant 0 : index
    %c0_0 = arith.constant 0 : index
    %0 = vector.load %arg2[%c0, %c0_0] : memref<8x128xbf16, #tpu.memory_space<vmem>>, vector<8x128xbf16>
    %c0_1 = arith.constant 0 : index
    %c0_2 = arith.constant 0 : index
    %1 = vector.load %arg3[%c0_1, %c0_2] : memref<128x512xbf16, #tpu.memory_space<vmem>>, vector<128x512xbf16>
    %cst = arith.constant dense<0.000000e+00> : vector<8x512xf32>
    %2 = tpu.matmul %0, %1, %cst {dimension_numbers = #tpu.dot_dimension_numbers<[1], [0], [0], [1], [0, 0, 1, 1], [], []>} : vector<8x128xbf16>, vector<128x512xbf16>, vector<8x512xf32> -> vector<8x512xf32>
    %3 = arith.truncf %2 : vector<8x512xf32> to vector<8x512xbf16>
    %c0_3 = arith.constant 0 : index
    %c0_4 = arith.constant 0 : index
    %4 = vector.load %arg4[%c0_3, %c0_4] : memref<8x512xbf16, #tpu.memory_space<vmem>>, vector<8x512xbf16>
    tpu.vector_store %arg4[%c0_3, %c0_4], %3 {strides = array<i32>} : memref<8x512xbf16, #tpu.memory_space<vmem>>, vector<8x512xbf16>,
    %5 = arith.mulf %2, %2 : vector<8x512xf32>
    %c0_5 = arith.constant 0 : index
    %c0_6 = arith.constant 0 : index
    %6 = vector.load %arg5[%c0_5, %c0_6] : memref<8x512xf32, #tpu.memory_space<vmem>>, vector<8x512xf32>
    tpu.vector_store %arg5[%c0_5, %c0_6], %2 {strides = array<i32>} : memref<8x512xf32, #tpu.memory_space<vmem>>, vector<8x512xf32>,
    %c0_7 = arith.constant 0 : index
    %c0_8 = arith.constant 0 : index
    %7 = vector.load %arg6[%c0_7, %c0_8] : memref<8x512xf32, #tpu.memory_space<vmem>>, vector<8x512xf32>
    tpu.vector_store %arg6[%c0_7, %c0_8], %5 {strides = array<i32>} : memref<8x512xf32, #tpu.memory_space<vmem>>, vector<8x512xf32>,
    return
  }
  func.func @transform_0(%arg0: i32, %arg1: i32) -> (i32, i32) {
    %c0_i32 = arith.constant 0 : i32
    %c0_i32_0 = arith.constant 0 : i32
    return %arg0, %c0_i32 : i32, i32
  }
  func.func @transform_1(%arg0: i32, %arg1: i32) -> (i32, i32) {
    %c0_i32 = arith.constant 0 : i32
    %c0_i32_0 = arith.constant 0 : i32
    return %c0_i32, %arg1 : i32, i32
  }
  func.func @transform_2(%arg0: i32, %arg1: i32) -> (i32, i32) {
    %c0_i32 = arith.constant 0 : i32
    return %arg0, %arg1 : i32, i32
  }
  func.func @transform_3(%arg0: i32, %arg1: i32) -> (i32, i32) {
    %c0_i32 = arith.constant 0 : i32
    return %arg0, %arg1 : i32, i32
  }
  func.func @transform_4(%arg0: i32, %arg1: i32) -> (i32, i32) {
    %c0_i32 = arith.constant 0 : i32
    return %arg0, %arg1 : i32, i32
  }
}

module attributes {stable_mosaic.version = 11 : i64} {
  func.func @_affine_act_kernel(%arg0: i32, %arg1: memref<8x1024xbf16, #tpu.memory_space<vmem>>, %arg2: memref<1x1024xf32, #tpu.memory_space<vmem>>, %arg3: memref<1x1024xf32, #tpu.memory_space<vmem>>, %arg4: memref<8x1024xbf16, #tpu.memory_space<vmem>>) attributes {dimension_semantics = [#tpu.dimension_semantics<parallel>], iteration_bounds = array<i64: 1>, scalar_prefetch = 0 : i64, scratch_operands = 0 : i64, tpu.core_type = #tpu.core_type<tc>, window_params = [{transform_indices = @transform_0, window_bounds = array<i64: 8, 1024>}, {pipeline_mode = #tpu.pipeline_mode<synchronous>, transform_indices = @transform_1, window_bounds = array<i64: 1, 1024>}, {pipeline_mode = #tpu.pipeline_mode<synchronous>, transform_indices = @transform_2, window_bounds = array<i64: 1, 1024>}, {transform_indices = @transform_3, window_bounds = array<i64: 8, 1024>}]} {
    %c0 = arith.constant 0 : index
    %c0_0 = arith.constant 0 : index
    %0 = vector.load %arg1[%c0, %c0_0] : memref<8x1024xbf16, #tpu.memory_space<vmem>>, vector<8x1024xbf16>
    %1 = arith.extf %0 : vector<8x1024xbf16> to vector<8x1024xf32>
    %c0_1 = arith.constant 0 : index
    %c0_2 = arith.constant 0 : index
    %2 = vector.load %arg2[%c0_1, %c0_2] : memref<1x1024xf32, #tpu.memory_space<vmem>>, vector<1x1024xf32>
    %3 = vector.broadcast %2 : vector<1x1024xf32> to vector<8x1024xf32>
    %4 = arith.mulf %1, %3 : vector<8x1024xf32>
    %c0_3 = arith.constant 0 : index
    %c0_4 = arith.constant 0 : index
    %5 = vector.load %arg3[%c0_3, %c0_4] : memref<1x1024xf32, #tpu.memory_space<vmem>>, vector<1x1024xf32>
    %6 = vector.broadcast %5 : vector<1x1024xf32> to vector<8x1024xf32>
    %7 = arith.addf %4, %6 : vector<8x1024xf32>
    %cst = arith.constant 0.000000e+00 : f32
    %8 = vector.broadcast %cst : f32 to vector<8x1024xf32>
    %9 = arith.maximumf %7, %8 : vector<8x1024xf32>
    %10 = arith.truncf %9 : vector<8x1024xf32> to vector<8x1024xbf16>
    %c0_5 = arith.constant 0 : index
    %c0_6 = arith.constant 0 : index
    %11 = vector.load %arg4[%c0_5, %c0_6] : memref<8x1024xbf16, #tpu.memory_space<vmem>>, vector<8x1024xbf16>
    tpu.vector_store %arg4[%c0_5, %c0_6], %10 {strides = array<i32>} : memref<8x1024xbf16, #tpu.memory_space<vmem>>, vector<8x1024xbf16>,
    return
  }
  func.func @transform_0(%arg0: i32) -> (i32, i32) {
    %c0_i32 = arith.constant 0 : i32
    %c0_i32_0 = arith.constant 0 : i32
    return %arg0, %c0_i32 : i32, i32
  }
  func.func @transform_1(%arg0: i32) -> (i32, i32) {
    %c0_i32 = arith.constant 0 : i32
    %c0_i32_0 = arith.constant 0 : i32
    %c0_i32_1 = arith.constant 0 : i32
    return %c0_i32, %c0_i32_0 : i32, i32
  }
  func.func @transform_2(%arg0: i32) -> (i32, i32) {
    %c0_i32 = arith.constant 0 : i32
    %c0_i32_0 = arith.constant 0 : i32
    %c0_i32_1 = arith.constant 0 : i32
    return %c0_i32, %c0_i32_0 : i32, i32
  }
  func.func @transform_3(%arg0: i32) -> (i32, i32) {
    %c0_i32 = arith.constant 0 : i32
    %c0_i32_0 = arith.constant 0 : i32
    return %arg0, %c0_i32 : i32, i32
  }
}

module attributes {stable_mosaic.version = 11 : i64} {
  func.func @kernel(%arg0: i32, %arg1: i32, %arg2: memref<32x640xbf16, #tpu.memory_space<vmem>>, %arg3: memref<640x128xbf16, #tpu.memory_space<vmem>>, %arg4: memref<32x128xbf16, #tpu.memory_space<vmem>>, %arg5: memref<8x128xf32, #tpu.memory_space<vmem>>, %arg6: memref<8x128xf32, #tpu.memory_space<vmem>>) attributes {dimension_semantics = [#tpu.dimension_semantics<parallel>, #tpu.dimension_semantics<parallel>], iteration_bounds = array<i64: 1, 1>, scalar_prefetch = 0 : i64, scratch_operands = 0 : i64, tpu.core_type = #tpu.core_type<tc>, window_params = [{transform_indices = @transform_0, window_bounds = array<i64: 32, 640>}, {transform_indices = @transform_1, window_bounds = array<i64: 640, 128>}, {transform_indices = @transform_2, window_bounds = array<i64: 32, 128>}, {transform_indices = @transform_3, window_bounds = array<i64: 8, 128>}, {transform_indices = @transform_4, window_bounds = array<i64: 8, 128>}]} {
    %c0 = arith.constant 0 : index
    %c0_0 = arith.constant 0 : index
    %0 = vector.load %arg2[%c0, %c0_0] : memref<32x640xbf16, #tpu.memory_space<vmem>>, vector<32x640xbf16>
    %c0_1 = arith.constant 0 : index
    %c0_2 = arith.constant 0 : index
    %1 = vector.load %arg3[%c0_1, %c0_2] : memref<640x128xbf16, #tpu.memory_space<vmem>>, vector<640x128xbf16>
    %cst = arith.constant dense<0.000000e+00> : vector<32x128xf32>
    %2 = tpu.matmul %0, %1, %cst {dimension_numbers = #tpu.dot_dimension_numbers<[1], [0], [0], [1], [0, 0, 1, 1], [], []>} : vector<32x640xbf16>, vector<640x128xbf16>, vector<32x128xf32> -> vector<32x128xf32>
    %3 = arith.truncf %2 : vector<32x128xf32> to vector<32x128xbf16>
    %c0_3 = arith.constant 0 : index
    %c0_4 = arith.constant 0 : index
    %4 = vector.load %arg4[%c0_3, %c0_4] : memref<32x128xbf16, #tpu.memory_space<vmem>>, vector<32x128xbf16>
    tpu.vector_store %arg4[%c0_3, %c0_4], %3 {strides = array<i32>} : memref<32x128xbf16, #tpu.memory_space<vmem>>, vector<32x128xbf16>,
    %5 = vector.extract_strided_slice %2 {offsets = [0, 0], sizes = [8, 128], strides = [1, 1]} : vector<32x128xf32> to vector<8x128xf32>
    %6 = vector.extract_strided_slice %2 {offsets = [8, 0], sizes = [8, 128], strides = [1, 1]} : vector<32x128xf32> to vector<8x128xf32>
    %7 = vector.extract_strided_slice %2 {offsets = [16, 0], sizes = [8, 128], strides = [1, 1]} : vector<32x128xf32> to vector<8x128xf32>
    %8 = vector.extract_strided_slice %2 {offsets = [24, 0], sizes = [8, 128], strides = [1, 1]} : vector<32x128xf32> to vector<8x128xf32>
    %9 = arith.mulf %5, %5 : vector<8x128xf32>
    %10 = arith.mulf %6, %6 : vector<8x128xf32>
    %11 = arith.mulf %7, %7 : vector<8x128xf32>
    %12 = arith.mulf %8, %8 : vector<8x128xf32>
    %13 = arith.addf %5, %6 : vector<8x128xf32>
    %14 = arith.addf %9, %10 : vector<8x128xf32>
    %15 = arith.addf %13, %7 : vector<8x128xf32>
    %16 = arith.addf %14, %11 : vector<8x128xf32>
    %17 = arith.addf %15, %8 : vector<8x128xf32>
    %18 = arith.addf %16, %12 : vector<8x128xf32>
    %c0_5 = arith.constant 0 : index
    %c0_6 = arith.constant 0 : index
    %19 = vector.load %arg5[%c0_5, %c0_6] : memref<8x128xf32, #tpu.memory_space<vmem>>, vector<8x128xf32>
    tpu.vector_store %arg5[%c0_5, %c0_6], %17 {strides = array<i32>} : memref<8x128xf32, #tpu.memory_space<vmem>>, vector<8x128xf32>,
    %c0_7 = arith.constant 0 : index
    %c0_8 = arith.constant 0 : index
    %20 = vector.load %arg6[%c0_7, %c0_8] : memref<8x128xf32, #tpu.memory_space<vmem>>, vector<8x128xf32>
    tpu.vector_store %arg6[%c0_7, %c0_8], %18 {strides = array<i32>} : memref<8x128xf32, #tpu.memory_space<vmem>>, vector<8x128xf32>,
    return
  }
  func.func @transform_0(%arg0: i32, %arg1: i32) -> (i32, i32) {
    %c0_i32 = arith.constant 0 : i32
    %c0_i32_0 = arith.constant 0 : i32
    return %arg0, %c0_i32 : i32, i32
  }
  func.func @transform_1(%arg0: i32, %arg1: i32) -> (i32, i32) {
    %c0_i32 = arith.constant 0 : i32
    %c0_i32_0 = arith.constant 0 : i32
    return %c0_i32, %arg1 : i32, i32
  }
  func.func @transform_2(%arg0: i32, %arg1: i32) -> (i32, i32) {
    %c0_i32 = arith.constant 0 : i32
    return %arg0, %arg1 : i32, i32
  }
  func.func @transform_3(%arg0: i32, %arg1: i32) -> (i32, i32) {
    %c0_i32 = arith.constant 0 : i32
    return %arg0, %arg1 : i32, i32
  }
  func.func @transform_4(%arg0: i32, %arg1: i32) -> (i32, i32) {
    %c0_i32 = arith.constant 0 : i32
    return %arg0, %arg1 : i32, i32
  }
}

module attributes {stable_mosaic.version = 11 : i64} {
  func.func @_affine_act_kernel(%arg0: i32, %arg1: memref<32x128xbf16, #tpu.memory_space<vmem>>, %arg2: memref<1x128xf32, #tpu.memory_space<vmem>>, %arg3: memref<1x128xf32, #tpu.memory_space<vmem>>, %arg4: memref<32x128xbf16, #tpu.memory_space<vmem>>) attributes {dimension_semantics = [#tpu.dimension_semantics<parallel>], iteration_bounds = array<i64: 1>, scalar_prefetch = 0 : i64, scratch_operands = 0 : i64, tpu.core_type = #tpu.core_type<tc>, window_params = [{transform_indices = @transform_0, window_bounds = array<i64: 32, 128>}, {pipeline_mode = #tpu.pipeline_mode<synchronous>, transform_indices = @transform_1, window_bounds = array<i64: 1, 128>}, {pipeline_mode = #tpu.pipeline_mode<synchronous>, transform_indices = @transform_2, window_bounds = array<i64: 1, 128>}, {transform_indices = @transform_3, window_bounds = array<i64: 32, 128>}]} {
    %c0 = arith.constant 0 : index
    %c0_0 = arith.constant 0 : index
    %0 = vector.load %arg1[%c0, %c0_0] : memref<32x128xbf16, #tpu.memory_space<vmem>>, vector<32x128xbf16>
    %1 = arith.extf %0 : vector<32x128xbf16> to vector<32x128xf32>
    %c0_1 = arith.constant 0 : index
    %c0_2 = arith.constant 0 : index
    %2 = vector.load %arg2[%c0_1, %c0_2] : memref<1x128xf32, #tpu.memory_space<vmem>>, vector<1x128xf32>
    %3 = vector.broadcast %2 : vector<1x128xf32> to vector<32x128xf32>
    %4 = arith.mulf %1, %3 : vector<32x128xf32>
    %c0_3 = arith.constant 0 : index
    %c0_4 = arith.constant 0 : index
    %5 = vector.load %arg3[%c0_3, %c0_4] : memref<1x128xf32, #tpu.memory_space<vmem>>, vector<1x128xf32>
    %6 = vector.broadcast %5 : vector<1x128xf32> to vector<32x128xf32>
    %7 = arith.addf %4, %6 : vector<32x128xf32>
    %cst = arith.constant 0.000000e+00 : f32
    %8 = vector.broadcast %cst : f32 to vector<32x128xf32>
    %9 = arith.maximumf %7, %8 : vector<32x128xf32>
    %10 = arith.truncf %9 : vector<32x128xf32> to vector<32x128xbf16>
    %c0_5 = arith.constant 0 : index
    %c0_6 = arith.constant 0 : index
    %11 = vector.load %arg4[%c0_5, %c0_6] : memref<32x128xbf16, #tpu.memory_space<vmem>>, vector<32x128xbf16>
    tpu.vector_store %arg4[%c0_5, %c0_6], %10 {strides = array<i32>} : memref<32x128xbf16, #tpu.memory_space<vmem>>, vector<32x128xbf16>,
    return
  }
  func.func @transform_0(%arg0: i32) -> (i32, i32) {
    %c0_i32 = arith.constant 0 : i32
    %c0_i32_0 = arith.constant 0 : i32
    return %arg0, %c0_i32 : i32, i32
  }
  func.func @transform_1(%arg0: i32) -> (i32, i32) {
    %c0_i32 = arith.constant 0 : i32
    %c0_i32_0 = arith.constant 0 : i32
    %c0_i32_1 = arith.constant 0 : i32
    return %c0_i32, %c0_i32_0 : i32, i32
  }
  func.func @transform_2(%arg0: i32) -> (i32, i32) {
    %c0_i32 = arith.constant 0 : i32
    %c0_i32_0 = arith.constant 0 : i32
    %c0_i32_1 = arith.constant 0 : i32
    return %c0_i32, %c0_i32_0 : i32, i32
  }
  func.func @transform_3(%arg0: i32) -> (i32, i32) {
    %c0_i32 = arith.constant 0 : i32
    %c0_i32_0 = arith.constant 0 : i32
    return %arg0, %c0_i32 : i32, i32
  }
}

module attributes {stable_mosaic.version = 11 : i64} {
  func.func @kernel(%arg0: i32, %arg1: i32, %arg2: memref<128x384xbf16, #tpu.memory_space<vmem>>, %arg3: memref<384x128xbf16, #tpu.memory_space<vmem>>, %arg4: memref<128x128xbf16, #tpu.memory_space<vmem>>, %arg5: memref<8x128xf32, #tpu.memory_space<vmem>>, %arg6: memref<8x128xf32, #tpu.memory_space<vmem>>) attributes {dimension_semantics = [#tpu.dimension_semantics<parallel>, #tpu.dimension_semantics<parallel>], iteration_bounds = array<i64: 1, 1>, scalar_prefetch = 0 : i64, scratch_operands = 0 : i64, tpu.core_type = #tpu.core_type<tc>, window_params = [{transform_indices = @transform_0, window_bounds = array<i64: 128, 384>}, {transform_indices = @transform_1, window_bounds = array<i64: 384, 128>}, {transform_indices = @transform_2, window_bounds = array<i64: 128, 128>}, {transform_indices = @transform_3, window_bounds = array<i64: 8, 128>}, {transform_indices = @transform_4, window_bounds = array<i64: 8, 128>}]} {
    %c0 = arith.constant 0 : index
    %c0_0 = arith.constant 0 : index
    %0 = vector.load %arg2[%c0, %c0_0] : memref<128x384xbf16, #tpu.memory_space<vmem>>, vector<128x384xbf16>
    %c0_1 = arith.constant 0 : index
    %c0_2 = arith.constant 0 : index
    %1 = vector.load %arg3[%c0_1, %c0_2] : memref<384x128xbf16, #tpu.memory_space<vmem>>, vector<384x128xbf16>
    %cst = arith.constant dense<0.000000e+00> : vector<128x128xf32>
    %2 = tpu.matmul %0, %1, %cst {dimension_numbers = #tpu.dot_dimension_numbers<[1], [0], [0], [1], [0, 0, 1, 1], [], []>} : vector<128x384xbf16>, vector<384x128xbf16>, vector<128x128xf32> -> vector<128x128xf32>
    %3 = arith.truncf %2 : vector<128x128xf32> to vector<128x128xbf16>
    %c0_3 = arith.constant 0 : index
    %c0_4 = arith.constant 0 : index
    %4 = vector.load %arg4[%c0_3, %c0_4] : memref<128x128xbf16, #tpu.memory_space<vmem>>, vector<128x128xbf16>
    tpu.vector_store %arg4[%c0_3, %c0_4], %3 {strides = array<i32>} : memref<128x128xbf16, #tpu.memory_space<vmem>>, vector<128x128xbf16>,
    %5 = vector.extract_strided_slice %2 {offsets = [0, 0], sizes = [8, 128], strides = [1, 1]} : vector<128x128xf32> to vector<8x128xf32>
    %6 = vector.extract_strided_slice %2 {offsets = [8, 0], sizes = [8, 128], strides = [1, 1]} : vector<128x128xf32> to vector<8x128xf32>
    %7 = vector.extract_strided_slice %2 {offsets = [16, 0], sizes = [8, 128], strides = [1, 1]} : vector<128x128xf32> to vector<8x128xf32>
    %8 = vector.extract_strided_slice %2 {offsets = [24, 0], sizes = [8, 128], strides = [1, 1]} : vector<128x128xf32> to vector<8x128xf32>
    %9 = arith.mulf %5, %5 : vector<8x128xf32>
    %10 = arith.mulf %6, %6 : vector<8x128xf32>
    %11 = arith.mulf %7, %7 : vector<8x128xf32>
    %12 = arith.mulf %8, %8 : vector<8x128xf32>
    %13 = vector.extract_strided_slice %2 {offsets = [32, 0], sizes = [8, 128], strides = [1, 1]} : vector<128x128xf32> to vector<8x128xf32>
    %14 = arith.addf %5, %13 : vector<8x128xf32>
    %15 = arith.mulf %13, %13 : vector<8x128xf32>
    %16 = arith.addf %9, %15 : vector<8x128xf32>
    %17 = vector.extract_strided_slice %2 {offsets = [40, 0], sizes = [8, 128], strides = [1, 1]} : vector<128x128xf32> to vector<8x128xf32>
    %18 = arith.addf %6, %17 : vector<8x128xf32>
    %19 = arith.mulf %17, %17 : vector<8x128xf32>
    %20 = arith.addf %10, %19 : vector<8x128xf32>
    %21 = vector.extract_strided_slice %2 {offsets = [48, 0], sizes = [8, 128], strides = [1, 1]} : vector<128x128xf32> to vector<8x128xf32>
    %22 = arith.addf %7, %21 : vector<8x128xf32>
    %23 = arith.mulf %21, %21 : vector<8x128xf32>
    %24 = arith.addf %11, %23 : vector<8x128xf32>
    %25 = vector.extract_strided_slice %2 {offsets = [56, 0], sizes = [8, 128], strides = [1, 1]} : vector<128x128xf32> to vector<8x128xf32>
    %26 = arith.addf %8, %25 : vector<8x128xf32>
    %27 = arith.mulf %25, %25 : vector<8x128xf32>
    %28 = arith.addf %12, %27 : vector<8x128xf32>
    %29 = vector.extract_strided_slice %2 {offsets = [64, 0], sizes = [8, 128], strides = [1, 1]} : vector<128x128xf32> to vector<8x128xf32>
    %30 = arith.addf %14, %29 : vector<8x128xf32>
    %31 = arith.mulf %29, %29 : vector<8x128xf32>
    %32 = arith.addf %16, %31 : vector<8x128xf32>
    %33 = vector.extract_strided_slice %2 {offsets = [72, 0], sizes = [8, 128], strides = [1, 1]} : vector<128x128xf32> to vector<8x128xf32>
    %34 = arith.addf %18, %33 : vector<8x128xf32>
    %35 = arith.mulf %33, %33 : vector<8x128xf32>
    %36 = arith.addf %20, %35 : vector<8x128xf32>
    %37 = vector.extract_strided_slice %2 {offsets = [80, 0], sizes = [8, 128], strides = [1, 1]} : vector<128x128xf32> to vector<8x128xf32>
    %38 = arith.addf %22, %37 : vector<8x128xf32>
    %39 = arith.mulf %37, %37 : vector<8x128xf32>
    %40 = arith.addf %24, %39 : vector<8x128xf32>
    %41 = vector.extract_strided_slice %2 {offsets = [88, 0], sizes = [8, 128], strides = [1, 1]} : vector<128x128xf32> to vector<8x128xf32>
    %42 = arith.addf %26, %41 : vector<8x128xf32>
    %43 = arith.mulf %41, %41 : vector<8x128xf32>
    %44 = arith.addf %28, %43 : vector<8x128xf32>
    %45 = vector.extract_strided_slice %2 {offsets = [96, 0], sizes = [8, 128], strides = [1, 1]} : vector<128x128xf32> to vector<8x128xf32>
    %46 = arith.addf %30, %45 : vector<8x128xf32>
    %47 = arith.mulf %45, %45 : vector<8x128xf32>
    %48 = arith.addf %32, %47 : vector<8x128xf32>
    %49 = vector.extract_strided_slice %2 {offsets = [104, 0], sizes = [8, 128], strides = [1, 1]} : vector<128x128xf32> to vector<8x128xf32>
    %50 = arith.addf %34, %49 : vector<8x128xf32>
    %51 = arith.mulf %49, %49 : vector<8x128xf32>
    %52 = arith.addf %36, %51 : vector<8x128xf32>
    %53 = vector.extract_strided_slice %2 {offsets = [112, 0], sizes = [8, 128], strides = [1, 1]} : vector<128x128xf32> to vector<8x128xf32>
    %54 = arith.addf %38, %53 : vector<8x128xf32>
    %55 = arith.mulf %53, %53 : vector<8x128xf32>
    %56 = arith.addf %40, %55 : vector<8x128xf32>
    %57 = vector.extract_strided_slice %2 {offsets = [120, 0], sizes = [8, 128], strides = [1, 1]} : vector<128x128xf32> to vector<8x128xf32>
    %58 = arith.addf %42, %57 : vector<8x128xf32>
    %59 = arith.mulf %57, %57 : vector<8x128xf32>
    %60 = arith.addf %44, %59 : vector<8x128xf32>
    %61 = arith.addf %46, %50 : vector<8x128xf32>
    %62 = arith.addf %48, %52 : vector<8x128xf32>
    %63 = arith.addf %61, %54 : vector<8x128xf32>
    %64 = arith.addf %62, %56 : vector<8x128xf32>
    %65 = arith.addf %63, %58 : vector<8x128xf32>
    %66 = arith.addf %64, %60 : vector<8x128xf32>
    %c0_5 = arith.constant 0 : index
    %c0_6 = arith.constant 0 : index
    %67 = vector.load %arg5[%c0_5, %c0_6] : memref<8x128xf32, #tpu.memory_space<vmem>>, vector<8x128xf32>
    tpu.vector_store %arg5[%c0_5, %c0_6], %65 {strides = array<i32>} : memref<8x128xf32, #tpu.memory_space<vmem>>, vector<8x128xf32>,
    %c0_7 = arith.constant 0 : index
    %c0_8 = arith.constant 0 : index
    %68 = vector.load %arg6[%c0_7, %c0_8] : memref<8x128xf32, #tpu.memory_space<vmem>>, vector<8x128xf32>
    tpu.vector_store %arg6[%c0_7, %c0_8], %66 {strides = array<i32>} : memref<8x128xf32, #tpu.memory_space<vmem>>, vector<8x128xf32>,
    return
  }
  func.func @transform_0(%arg0: i32, %arg1: i32) -> (i32, i32) {
    %c0_i32 = arith.constant 0 : i32
    %c0_i32_0 = arith.constant 0 : i32
    return %arg0, %c0_i32 : i32, i32
  }
  func.func @transform_1(%arg0: i32, %arg1: i32) -> (i32, i32) {
    %c0_i32 = arith.constant 0 : i32
    %c0_i32_0 = arith.constant 0 : i32
    return %c0_i32, %arg1 : i32, i32
  }
  func.func @transform_2(%arg0: i32, %arg1: i32) -> (i32, i32) {
    %c0_i32 = arith.constant 0 : i32
    return %arg0, %arg1 : i32, i32
  }
  func.func @transform_3(%arg0: i32, %arg1: i32) -> (i32, i32) {
    %c0_i32 = arith.constant 0 : i32
    return %arg0, %arg1 : i32, i32
  }
  func.func @transform_4(%arg0: i32, %arg1: i32) -> (i32, i32) {
    %c0_i32 = arith.constant 0 : i32
    return %arg0, %arg1 : i32, i32
  }
}

module attributes {stable_mosaic.version = 11 : i64} {
  func.func @_affine_act_kernel(%arg0: i32, %arg1: memref<128x128xbf16, #tpu.memory_space<vmem>>, %arg2: memref<1x128xf32, #tpu.memory_space<vmem>>, %arg3: memref<1x128xf32, #tpu.memory_space<vmem>>, %arg4: memref<128x128xbf16, #tpu.memory_space<vmem>>) attributes {dimension_semantics = [#tpu.dimension_semantics<parallel>], iteration_bounds = array<i64: 1>, scalar_prefetch = 0 : i64, scratch_operands = 0 : i64, tpu.core_type = #tpu.core_type<tc>, window_params = [{transform_indices = @transform_0, window_bounds = array<i64: 128, 128>}, {pipeline_mode = #tpu.pipeline_mode<synchronous>, transform_indices = @transform_1, window_bounds = array<i64: 1, 128>}, {pipeline_mode = #tpu.pipeline_mode<synchronous>, transform_indices = @transform_2, window_bounds = array<i64: 1, 128>}, {transform_indices = @transform_3, window_bounds = array<i64: 128, 128>}]} {
    %c0 = arith.constant 0 : index
    %c0_0 = arith.constant 0 : index
    %0 = vector.load %arg1[%c0, %c0_0] : memref<128x128xbf16, #tpu.memory_space<vmem>>, vector<128x128xbf16>
    %1 = arith.extf %0 : vector<128x128xbf16> to vector<128x128xf32>
    %c0_1 = arith.constant 0 : index
    %c0_2 = arith.constant 0 : index
    %2 = vector.load %arg2[%c0_1, %c0_2] : memref<1x128xf32, #tpu.memory_space<vmem>>, vector<1x128xf32>
    %3 = vector.broadcast %2 : vector<1x128xf32> to vector<128x128xf32>
    %4 = arith.mulf %1, %3 : vector<128x128xf32>
    %c0_3 = arith.constant 0 : index
    %c0_4 = arith.constant 0 : index
    %5 = vector.load %arg3[%c0_3, %c0_4] : memref<1x128xf32, #tpu.memory_space<vmem>>, vector<1x128xf32>
    %6 = vector.broadcast %5 : vector<1x128xf32> to vector<128x128xf32>
    %7 = arith.addf %4, %6 : vector<128x128xf32>
    %cst = arith.constant 0.000000e+00 : f32
    %8 = vector.broadcast %cst : f32 to vector<128x128xf32>
    %9 = arith.maximumf %7, %8 : vector<128x128xf32>
    %10 = arith.truncf %9 : vector<128x128xf32> to vector<128x128xbf16>
    %c0_5 = arith.constant 0 : index
    %c0_6 = arith.constant 0 : index
    %11 = vector.load %arg4[%c0_5, %c0_6] : memref<128x128xbf16, #tpu.memory_space<vmem>>, vector<128x128xbf16>
    tpu.vector_store %arg4[%c0_5, %c0_6], %10 {strides = array<i32>} : memref<128x128xbf16, #tpu.memory_space<vmem>>, vector<128x128xbf16>,
    return
  }
  func.func @transform_0(%arg0: i32) -> (i32, i32) {
    %c0_i32 = arith.constant 0 : i32
    %c0_i32_0 = arith.constant 0 : i32
    return %arg0, %c0_i32 : i32, i32
  }
  func.func @transform_1(%arg0: i32) -> (i32, i32) {
    %c0_i32 = arith.constant 0 : i32
    %c0_i32_0 = arith.constant 0 : i32
    %c0_i32_1 = arith.constant 0 : i32
    return %c0_i32, %c0_i32_0 : i32, i32
  }
  func.func @transform_2(%arg0: i32) -> (i32, i32) {
    %c0_i32 = arith.constant 0 : i32
    %c0_i32_0 = arith.constant 0 : i32
    %c0_i32_1 = arith.constant 0 : i32
    return %c0_i32, %c0_i32_0 : i32, i32
  }
  func.func @transform_3(%arg0: i32) -> (i32, i32) {
    %c0_i32 = arith.constant 0 : i32
    %c0_i32_0 = arith.constant 0 : i32
    return %arg0, %c0_i32 : i32, i32
  }
}

module attributes {stable_mosaic.version = 11 : i64} {
  func.func @kernel(%arg0: i32, %arg1: i32, %arg2: memref<512x256xbf16, #tpu.memory_space<vmem>>, %arg3: memref<256x128xbf16, #tpu.memory_space<vmem>>, %arg4: memref<512x128xbf16, #tpu.memory_space<vmem>>, %arg5: memref<8x128xf32, #tpu.memory_space<vmem>>, %arg6: memref<8x128xf32, #tpu.memory_space<vmem>>) attributes {dimension_semantics = [#tpu.dimension_semantics<parallel>, #tpu.dimension_semantics<parallel>], iteration_bounds = array<i64: 1, 1>, scalar_prefetch = 0 : i64, scratch_operands = 0 : i64, tpu.core_type = #tpu.core_type<tc>, window_params = [{transform_indices = @transform_0, window_bounds = array<i64: 512, 256>}, {transform_indices = @transform_1, window_bounds = array<i64: 256, 128>}, {transform_indices = @transform_2, window_bounds = array<i64: 512, 128>}, {transform_indices = @transform_3, window_bounds = array<i64: 8, 128>}, {transform_indices = @transform_4, window_bounds = array<i64: 8, 128>}]} {
    %c0 = arith.constant 0 : index
    %c0_0 = arith.constant 0 : index
    %0 = vector.load %arg2[%c0, %c0_0] : memref<512x256xbf16, #tpu.memory_space<vmem>>, vector<512x256xbf16>
    %c0_1 = arith.constant 0 : index
    %c0_2 = arith.constant 0 : index
    %1 = vector.load %arg3[%c0_1, %c0_2] : memref<256x128xbf16, #tpu.memory_space<vmem>>, vector<256x128xbf16>
    %cst = arith.constant dense<0.000000e+00> : vector<512x128xf32>
    %2 = tpu.matmul %0, %1, %cst {dimension_numbers = #tpu.dot_dimension_numbers<[1], [0], [0], [1], [0, 0, 1, 1], [], []>} : vector<512x256xbf16>, vector<256x128xbf16>, vector<512x128xf32> -> vector<512x128xf32>
    %3 = arith.truncf %2 : vector<512x128xf32> to vector<512x128xbf16>
    %c0_3 = arith.constant 0 : index
    %c0_4 = arith.constant 0 : index
    %4 = vector.load %arg4[%c0_3, %c0_4] : memref<512x128xbf16, #tpu.memory_space<vmem>>, vector<512x128xbf16>
    tpu.vector_store %arg4[%c0_3, %c0_4], %3 {strides = array<i32>} : memref<512x128xbf16, #tpu.memory_space<vmem>>, vector<512x128xbf16>,
    %5 = vector.extract_strided_slice %2 {offsets = [0, 0], sizes = [8, 128], strides = [1, 1]} : vector<512x128xf32> to vector<8x128xf32>
    %6 = vector.extract_strided_slice %2 {offsets = [8, 0], sizes = [8, 128], strides = [1, 1]} : vector<512x128xf32> to vector<8x128xf32>
    %7 = vector.extract_strided_slice %2 {offsets = [16, 0], sizes = [8, 128], strides = [1, 1]} : vector<512x128xf32> to vector<8x128xf32>
    %8 = vector.extract_strided_slice %2 {offsets = [24, 0], sizes = [8, 128], strides = [1, 1]} : vector<512x128xf32> to vector<8x128xf32>
    %9 = arith.mulf %5, %5 : vector<8x128xf32>
    %10 = arith.mulf %6, %6 : vector<8x128xf32>
    %11 = arith.mulf %7, %7 : vector<8x128xf32>
    %12 = arith.mulf %8, %8 : vector<8x128xf32>
    %13 = vector.extract_strided_slice %2 {offsets = [32, 0], sizes = [8, 128], strides = [1, 1]} : vector<512x128xf32> to vector<8x128xf32>
    %14 = arith.addf %5, %13 : vector<8x128xf32>
    %15 = arith.mulf %13, %13 : vector<8x128xf32>
    %16 = arith.addf %9, %15 : vector<8x128xf32>
    %17 = vector.extract_strided_slice %2 {offsets = [40, 0], sizes = [8, 128], strides = [1, 1]} : vector<512x128xf32> to vector<8x128xf32>
    %18 = arith.addf %6, %17 : vector<8x128xf32>
    %19 = arith.mulf %17, %17 : vector<8x128xf32>
    %20 = arith.addf %10, %19 : vector<8x128xf32>
    %21 = vector.extract_strided_slice %2 {offsets = [48, 0], sizes = [8, 128], strides = [1, 1]} : vector<512x128xf32> to vector<8x128xf32>
    %22 = arith.addf %7, %21 : vector<8x128xf32>
    %23 = arith.mulf %21, %21 : vector<8x128xf32>
    %24 = arith.addf %11, %23 : vector<8x128xf32>
    %25 = vector.extract_strided_slice %2 {offsets = [56, 0], sizes = [8, 128], strides = [1, 1]} : vector<512x128xf32> to vector<8x128xf32>
    %26 = arith.addf %8, %25 : vector<8x128xf32>
    %27 = arith.mulf %25, %25 : vector<8x128xf32>
    %28 = arith.addf %12, %27 : vector<8x128xf32>
    %29 = vector.extract_strided_slice %2 {offsets = [64, 0], sizes = [8, 128], strides = [1, 1]} : vector<512x128xf32> to vector<8x128xf32>
    %30 = arith.addf %14, %29 : vector<8x128xf32>
    %31 = arith.mulf %29, %29 : vector<8x128xf32>
    %32 = arith.addf %16, %31 : vector<8x128xf32>
    %33 = vector.extract_strided_slice %2 {offsets = [72, 0], sizes = [8, 128], strides = [1, 1]} : vector<512x128xf32> to vector<8x128xf32>
    %34 = arith.addf %18, %33 : vector<8x128xf32>
    %35 = arith.mulf %33, %33 : vector<8x128xf32>
    %36 = arith.addf %20, %35 : vector<8x128xf32>
    %37 = vector.extract_strided_slice %2 {offsets = [80, 0], sizes = [8, 128], strides = [1, 1]} : vector<512x128xf32> to vector<8x128xf32>
    %38 = arith.addf %22, %37 : vector<8x128xf32>
    %39 = arith.mulf %37, %37 : vector<8x128xf32>
    %40 = arith.addf %24, %39 : vector<8x128xf32>
    %41 = vector.extract_strided_slice %2 {offsets = [88, 0], sizes = [8, 128], strides = [1, 1]} : vector<512x128xf32> to vector<8x128xf32>
    %42 = arith.addf %26, %41 : vector<8x128xf32>
    %43 = arith.mulf %41, %41 : vector<8x128xf32>
    %44 = arith.addf %28, %43 : vector<8x128xf32>
    %45 = vector.extract_strided_slice %2 {offsets = [96, 0], sizes = [8, 128], strides = [1, 1]} : vector<512x128xf32> to vector<8x128xf32>
    %46 = arith.addf %30, %45 : vector<8x128xf32>
    %47 = arith.mulf %45, %45 : vector<8x128xf32>
    %48 = arith.addf %32, %47 : vector<8x128xf32>
    %49 = vector.extract_strided_slice %2 {offsets = [104, 0], sizes = [8, 128], strides = [1, 1]} : vector<512x128xf32> to vector<8x128xf32>
    %50 = arith.addf %34, %49 : vector<8x128xf32>
    %51 = arith.mulf %49, %49 : vector<8x128xf32>
    %52 = arith.addf %36, %51 : vector<8x128xf32>
    %53 = vector.extract_strided_slice %2 {offsets = [112, 0], sizes = [8, 128], strides = [1, 1]} : vector<512x128xf32> to vector<8x128xf32>
    %54 = arith.addf %38, %53 : vector<8x128xf32>
    %55 = arith.mulf %53, %53 : vector<8x128xf32>
    %56 = arith.addf %40, %55 : vector<8x128xf32>
    %57 = vector.extract_strided_slice %2 {offsets = [120, 0], sizes = [8, 128], strides = [1, 1]} : vector<512x128xf32> to vector<8x128xf32>
    %58 = arith.addf %42, %57 : vector<8x128xf32>
    %59 = arith.mulf %57, %57 : vector<8x128xf32>
    %60 = arith.addf %44, %59 : vector<8x128xf32>
    %61 = vector.extract_strided_slice %2 {offsets = [128, 0], sizes = [8, 128], strides = [1, 1]} : vector<512x128xf32> to vector<8x128xf32>
    %62 = arith.addf %46, %61 : vector<8x128xf32>
    %63 = arith.mulf %61, %61 : vector<8x128xf32>
    %64 = arith.addf %48, %63 : vector<8x128xf32>
    %65 = vector.extract_strided_slice %2 {offsets = [136, 0], sizes = [8, 128], strides = [1, 1]} : vector<512x128xf32> to vector<8x128xf32>
    %66 = arith.addf %50, %65 : vector<8x128xf32>
    %67 = arith.mulf %65, %65 : vector<8x128xf32>
    %68 = arith.addf %52, %67 : vector<8x128xf32>
    %69 = vector.extract_strided_slice %2 {offsets = [144, 0], sizes = [8, 128], strides = [1, 1]} : vector<512x128xf32> to vector<8x128xf32>
    %70 = arith.addf %54, %69 : vector<8x128xf32>
    %71 = arith.mulf %69, %69 : vector<8x128xf32>
    %72 = arith.addf %56, %71 : vector<8x128xf32>
    %73 = vector.extract_strided_slice %2 {offsets = [152, 0], sizes = [8, 128], strides = [1, 1]} : vector<512x128xf32> to vector<8x128xf32>
    %74 = arith.addf %58, %73 : vector<8x128xf32>
    %75 = arith.mulf %73, %73 : vector<8x128xf32>
    %76 = arith.addf %60, %75 : vector<8x128xf32>
    %77 = vector.extract_strided_slice %2 {offsets = [160, 0], sizes = [8, 128], strides = [1, 1]} : vector<512x128xf32> to vector<8x128xf32>
    %78 = arith.addf %62, %77 : vector<8x128xf32>
    %79 = arith.mulf %77, %77 : vector<8x128xf32>
    %80 = arith.addf %64, %79 : vector<8x128xf32>
    %81 = vector.extract_strided_slice %2 {offsets = [168, 0], sizes = [8, 128], strides = [1, 1]} : vector<512x128xf32> to vector<8x128xf32>
    %82 = arith.addf %66, %81 : vector<8x128xf32>
    %83 = arith.mulf %81, %81 : vector<8x128xf32>
    %84 = arith.addf %68, %83 : vector<8x128xf32>
    %85 = vector.extract_strided_slice %2 {offsets = [176, 0], sizes = [8, 128], strides = [1, 1]} : vector<512x128xf32> to vector<8x128xf32>
    %86 = arith.addf %70, %85 : vector<8x128xf32>
    %87 = arith.mulf %85, %85 : vector<8x128xf32>
    %88 = arith.addf %72, %87 : vector<8x128xf32>
    %89 = vector.extract_strided_slice %2 {offsets = [184, 0], sizes = [8, 128], strides = [1, 1]} : vector<512x128xf32> to vector<8x128xf32>
    %90 = arith.addf %74, %89 : vector<8x128xf32>
    %91 = arith.mulf %89, %89 : vector<8x128xf32>
    %92 = arith.addf %76, %91 : vector<8x128xf32>
    %93 = vector.extract_strided_slice %2 {offsets = [192, 0], sizes = [8, 128], strides = [1, 1]} : vector<512x128xf32> to vector<8x128xf32>
    %94 = arith.addf %78, %93 : vector<8x128xf32>
    %95 = arith.mulf %93, %93 : vector<8x128xf32>
    %96 = arith.addf %80, %95 : vector<8x128xf32>
    %97 = vector.extract_strided_slice %2 {offsets = [200, 0], sizes = [8, 128], strides = [1, 1]} : vector<512x128xf32> to vector<8x128xf32>
    %98 = arith.addf %82, %97 : vector<8x128xf32>
    %99 = arith.mulf %97, %97 : vector<8x128xf32>
    %100 = arith.addf %84, %99 : vector<8x128xf32>
    %101 = vector.extract_strided_slice %2 {offsets = [208, 0], sizes = [8, 128], strides = [1, 1]} : vector<512x128xf32> to vector<8x128xf32>
    %102 = arith.addf %86, %101 : vector<8x128xf32>
    %103 = arith.mulf %101, %101 : vector<8x128xf32>
    %104 = arith.addf %88, %103 : vector<8x128xf32>
    %105 = vector.extract_strided_slice %2 {offsets = [216, 0], sizes = [8, 128], strides = [1, 1]} : vector<512x128xf32> to vector<8x128xf32>
    %106 = arith.addf %90, %105 : vector<8x128xf32>
    %107 = arith.mulf %105, %105 : vector<8x128xf32>
    %108 = arith.addf %92, %107 : vector<8x128xf32>
    %109 = vector.extract_strided_slice %2 {offsets = [224, 0], sizes = [8, 128], strides = [1, 1]} : vector<512x128xf32> to vector<8x128xf32>
    %110 = arith.addf %94, %109 : vector<8x128xf32>
    %111 = arith.mulf %109, %109 : vector<8x128xf32>
    %112 = arith.addf %96, %111 : vector<8x128xf32>
    %113 = vector.extract_strided_slice %2 {offsets = [232, 0], sizes = [8, 128], strides = [1, 1]} : vector<512x128xf32> to vector<8x128xf32>
    %114 = arith.addf %98, %113 : vector<8x128xf32>
    %115 = arith.mulf %113, %113 : vector<8x128xf32>
    %116 = arith.addf %100, %115 : vector<8x128xf32>
    %117 = vector.extract_strided_slice %2 {offsets = [240, 0], sizes = [8, 128], strides = [1, 1]} : vector<512x128xf32> to vector<8x128xf32>
    %118 = arith.addf %102, %117 : vector<8x128xf32>
    %119 = arith.mulf %117, %117 : vector<8x128xf32>
    %120 = arith.addf %104, %119 : vector<8x128xf32>
    %121 = vector.extract_strided_slice %2 {offsets = [248, 0], sizes = [8, 128], strides = [1, 1]} : vector<512x128xf32> to vector<8x128xf32>
    %122 = arith.addf %106, %121 : vector<8x128xf32>
    %123 = arith.mulf %121, %121 : vector<8x128xf32>
    %124 = arith.addf %108, %123 : vector<8x128xf32>
    %125 = vector.extract_strided_slice %2 {offsets = [256, 0], sizes = [8, 128], strides = [1, 1]} : vector<512x128xf32> to vector<8x128xf32>
    %126 = arith.addf %110, %125 : vector<8x128xf32>
    %127 = arith.mulf %125, %125 : vector<8x128xf32>
    %128 = arith.addf %112, %127 : vector<8x128xf32>
    %129 = vector.extract_strided_slice %2 {offsets = [264, 0], sizes = [8, 128], strides = [1, 1]} : vector<512x128xf32> to vector<8x128xf32>
    %130 = arith.addf %114, %129 : vector<8x128xf32>
    %131 = arith.mulf %129, %129 : vector<8x128xf32>
    %132 = arith.addf %116, %131 : vector<8x128xf32>
    %133 = vector.extract_strided_slice %2 {offsets = [272, 0], sizes = [8, 128], strides = [1, 1]} : vector<512x128xf32> to vector<8x128xf32>
    %134 = arith.addf %118, %133 : vector<8x128xf32>
    %135 = arith.mulf %133, %133 : vector<8x128xf32>
    %136 = arith.addf %120, %135 : vector<8x128xf32>
    %137 = vector.extract_strided_slice %2 {offsets = [280, 0], sizes = [8, 128], strides = [1, 1]} : vector<512x128xf32> to vector<8x128xf32>
    %138 = arith.addf %122, %137 : vector<8x128xf32>
    %139 = arith.mulf %137, %137 : vector<8x128xf32>
    %140 = arith.addf %124, %139 : vector<8x128xf32>
    %141 = vector.extract_strided_slice %2 {offsets = [288, 0], sizes = [8, 128], strides = [1, 1]} : vector<512x128xf32> to vector<8x128xf32>
    %142 = arith.addf %126, %141 : vector<8x128xf32>
    %143 = arith.mulf %141, %141 : vector<8x128xf32>
    %144 = arith.addf %128, %143 : vector<8x128xf32>
    %145 = vector.extract_strided_slice %2 {offsets = [296, 0], sizes = [8, 128], strides = [1, 1]} : vector<512x128xf32> to vector<8x128xf32>
    %146 = arith.addf %130, %145 : vector<8x128xf32>
    %147 = arith.mulf %145, %145 : vector<8x128xf32>
    %148 = arith.addf %132, %147 : vector<8x128xf32>
    %149 = vector.extract_strided_slice %2 {offsets = [304, 0], sizes = [8, 128], strides = [1, 1]} : vector<512x128xf32> to vector<8x128xf32>
    %150 = arith.addf %134, %149 : vector<8x128xf32>
    %151 = arith.mulf %149, %149 : vector<8x128xf32>
    %152 = arith.addf %136, %151 : vector<8x128xf32>
    %153 = vector.extract_strided_slice %2 {offsets = [312, 0], sizes = [8, 128], strides = [1, 1]} : vector<512x128xf32> to vector<8x128xf32>
    %154 = arith.addf %138, %153 : vector<8x128xf32>
    %155 = arith.mulf %153, %153 : vector<8x128xf32>
    %156 = arith.addf %140, %155 : vector<8x128xf32>
    %157 = vector.extract_strided_slice %2 {offsets = [320, 0], sizes = [8, 128], strides = [1, 1]} : vector<512x128xf32> to vector<8x128xf32>
    %158 = arith.addf %142, %157 : vector<8x128xf32>
    %159 = arith.mulf %157, %157 : vector<8x128xf32>
    %160 = arith.addf %144, %159 : vector<8x128xf32>
    %161 = vector.extract_strided_slice %2 {offsets = [328, 0], sizes = [8, 128], strides = [1, 1]} : vector<512x128xf32> to vector<8x128xf32>
    %162 = arith.addf %146, %161 : vector<8x128xf32>
    %163 = arith.mulf %161, %161 : vector<8x128xf32>
    %164 = arith.addf %148, %163 : vector<8x128xf32>
    %165 = vector.extract_strided_slice %2 {offsets = [336, 0], sizes = [8, 128], strides = [1, 1]} : vector<512x128xf32> to vector<8x128xf32>
    %166 = arith.addf %150, %165 : vector<8x128xf32>
    %167 = arith.mulf %165, %165 : vector<8x128xf32>
    %168 = arith.addf %152, %167 : vector<8x128xf32>
    %169 = vector.extract_strided_slice %2 {offsets = [344, 0], sizes = [8, 128], strides = [1, 1]} : vector<512x128xf32> to vector<8x128xf32>
    %170 = arith.addf %154, %169 : vector<8x128xf32>
    %171 = arith.mulf %169, %169 : vector<8x128xf32>
    %172 = arith.addf %156, %171 : vector<8x128xf32>
    %173 = vector.extract_strided_slice %2 {offsets = [352, 0], sizes = [8, 128], strides = [1, 1]} : vector<512x128xf32> to vector<8x128xf32>
    %174 = arith.addf %158, %173 : vector<8x128xf32>
    %175 = arith.mulf %173, %173 : vector<8x128xf32>
    %176 = arith.addf %160, %175 : vector<8x128xf32>
    %177 = vector.extract_strided_slice %2 {offsets = [360, 0], sizes = [8, 128], strides = [1, 1]} : vector<512x128xf32> to vector<8x128xf32>
    %178 = arith.addf %162, %177 : vector<8x128xf32>
    %179 = arith.mulf %177, %177 : vector<8x128xf32>
    %180 = arith.addf %164, %179 : vector<8x128xf32>
    %181 = vector.extract_strided_slice %2 {offsets = [368, 0], sizes = [8, 128], strides = [1, 1]} : vector<512x128xf32> to vector<8x128xf32>
    %182 = arith.addf %166, %181 : vector<8x128xf32>
    %183 = arith.mulf %181, %181 : vector<8x128xf32>
    %184 = arith.addf %168, %183 : vector<8x128xf32>
    %185 = vector.extract_strided_slice %2 {offsets = [376, 0], sizes = [8, 128], strides = [1, 1]} : vector<512x128xf32> to vector<8x128xf32>
    %186 = arith.addf %170, %185 : vector<8x128xf32>
    %187 = arith.mulf %185, %185 : vector<8x128xf32>
    %188 = arith.addf %172, %187 : vector<8x128xf32>
    %189 = vector.extract_strided_slice %2 {offsets = [384, 0], sizes = [8, 128], strides = [1, 1]} : vector<512x128xf32> to vector<8x128xf32>
    %190 = arith.addf %174, %189 : vector<8x128xf32>
    %191 = arith.mulf %189, %189 : vector<8x128xf32>
    %192 = arith.addf %176, %191 : vector<8x128xf32>
    %193 = vector.extract_strided_slice %2 {offsets = [392, 0], sizes = [8, 128], strides = [1, 1]} : vector<512x128xf32> to vector<8x128xf32>
    %194 = arith.addf %178, %193 : vector<8x128xf32>
    %195 = arith.mulf %193, %193 : vector<8x128xf32>
    %196 = arith.addf %180, %195 : vector<8x128xf32>
    %197 = vector.extract_strided_slice %2 {offsets = [400, 0], sizes = [8, 128], strides = [1, 1]} : vector<512x128xf32> to vector<8x128xf32>
    %198 = arith.addf %182, %197 : vector<8x128xf32>
    %199 = arith.mulf %197, %197 : vector<8x128xf32>
    %200 = arith.addf %184, %199 : vector<8x128xf32>
    %201 = vector.extract_strided_slice %2 {offsets = [408, 0], sizes = [8, 128], strides = [1, 1]} : vector<512x128xf32> to vector<8x128xf32>
    %202 = arith.addf %186, %201 : vector<8x128xf32>
    %203 = arith.mulf %201, %201 : vector<8x128xf32>
    %204 = arith.addf %188, %203 : vector<8x128xf32>
    %205 = vector.extract_strided_slice %2 {offsets = [416, 0], sizes = [8, 128], strides = [1, 1]} : vector<512x128xf32> to vector<8x128xf32>
    %206 = arith.addf %190, %205 : vector<8x128xf32>
    %207 = arith.mulf %205, %205 : vector<8x128xf32>
    %208 = arith.addf %192, %207 : vector<8x128xf32>
    %209 = vector.extract_strided_slice %2 {offsets = [424, 0], sizes = [8, 128], strides = [1, 1]} : vector<512x128xf32> to vector<8x128xf32>
    %210 = arith.addf %194, %209 : vector<8x128xf32>
    %211 = arith.mulf %209, %209 : vector<8x128xf32>
    %212 = arith.addf %196, %211 : vector<8x128xf32>
    %213 = vector.extract_strided_slice %2 {offsets = [432, 0], sizes = [8, 128], strides = [1, 1]} : vector<512x128xf32> to vector<8x128xf32>
    %214 = arith.addf %198, %213 : vector<8x128xf32>
    %215 = arith.mulf %213, %213 : vector<8x128xf32>
    %216 = arith.addf %200, %215 : vector<8x128xf32>
    %217 = vector.extract_strided_slice %2 {offsets = [440, 0], sizes = [8, 128], strides = [1, 1]} : vector<512x128xf32> to vector<8x128xf32>
    %218 = arith.addf %202, %217 : vector<8x128xf32>
    %219 = arith.mulf %217, %217 : vector<8x128xf32>
    %220 = arith.addf %204, %219 : vector<8x128xf32>
    %221 = vector.extract_strided_slice %2 {offsets = [448, 0], sizes = [8, 128], strides = [1, 1]} : vector<512x128xf32> to vector<8x128xf32>
    %222 = arith.addf %206, %221 : vector<8x128xf32>
    %223 = arith.mulf %221, %221 : vector<8x128xf32>
    %224 = arith.addf %208, %223 : vector<8x128xf32>
    %225 = vector.extract_strided_slice %2 {offsets = [456, 0], sizes = [8, 128], strides = [1, 1]} : vector<512x128xf32> to vector<8x128xf32>
    %226 = arith.addf %210, %225 : vector<8x128xf32>
    %227 = arith.mulf %225, %225 : vector<8x128xf32>
    %228 = arith.addf %212, %227 : vector<8x128xf32>
    %229 = vector.extract_strided_slice %2 {offsets = [464, 0], sizes = [8, 128], strides = [1, 1]} : vector<512x128xf32> to vector<8x128xf32>
    %230 = arith.addf %214, %229 : vector<8x128xf32>
    %231 = arith.mulf %229, %229 : vector<8x128xf32>
    %232 = arith.addf %216, %231 : vector<8x128xf32>
    %233 = vector.extract_strided_slice %2 {offsets = [472, 0], sizes = [8, 128], strides = [1, 1]} : vector<512x128xf32> to vector<8x128xf32>
    %234 = arith.addf %218, %233 : vector<8x128xf32>
    %235 = arith.mulf %233, %233 : vector<8x128xf32>
    %236 = arith.addf %220, %235 : vector<8x128xf32>
    %237 = vector.extract_strided_slice %2 {offsets = [480, 0], sizes = [8, 128], strides = [1, 1]} : vector<512x128xf32> to vector<8x128xf32>
    %238 = arith.addf %222, %237 : vector<8x128xf32>
    %239 = arith.mulf %237, %237 : vector<8x128xf32>
    %240 = arith.addf %224, %239 : vector<8x128xf32>
    %241 = vector.extract_strided_slice %2 {offsets = [488, 0], sizes = [8, 128], strides = [1, 1]} : vector<512x128xf32> to vector<8x128xf32>
    %242 = arith.addf %226, %241 : vector<8x128xf32>
    %243 = arith.mulf %241, %241 : vector<8x128xf32>
    %244 = arith.addf %228, %243 : vector<8x128xf32>
    %245 = vector.extract_strided_slice %2 {offsets = [496, 0], sizes = [8, 128], strides = [1, 1]} : vector<512x128xf32> to vector<8x128xf32>
    %246 = arith.addf %230, %245 : vector<8x128xf32>
    %247 = arith.mulf %245, %245 : vector<8x128xf32>
    %248 = arith.addf %232, %247 : vector<8x128xf32>
    %249 = vector.extract_strided_slice %2 {offsets = [504, 0], sizes = [8, 128], strides = [1, 1]} : vector<512x128xf32> to vector<8x128xf32>
    %250 = arith.addf %234, %249 : vector<8x128xf32>
    %251 = arith.mulf %249, %249 : vector<8x128xf32>
    %252 = arith.addf %236, %251 : vector<8x128xf32>
    %253 = arith.addf %238, %242 : vector<8x128xf32>
    %254 = arith.addf %240, %244 : vector<8x128xf32>
    %255 = arith.addf %253, %246 : vector<8x128xf32>
    %256 = arith.addf %254, %248 : vector<8x128xf32>
    %257 = arith.addf %255, %250 : vector<8x128xf32>
    %258 = arith.addf %256, %252 : vector<8x128xf32>
    %c0_5 = arith.constant 0 : index
    %c0_6 = arith.constant 0 : index
    %259 = vector.load %arg5[%c0_5, %c0_6] : memref<8x128xf32, #tpu.memory_space<vmem>>, vector<8x128xf32>
    tpu.vector_store %arg5[%c0_5, %c0_6], %257 {strides = array<i32>} : memref<8x128xf32, #tpu.memory_space<vmem>>, vector<8x128xf32>,
    %c0_7 = arith.constant 0 : index
    %c0_8 = arith.constant 0 : index
    %260 = vector.load %arg6[%c0_7, %c0_8] : memref<8x128xf32, #tpu.memory_space<vmem>>, vector<8x128xf32>
    tpu.vector_store %arg6[%c0_7, %c0_8], %258 {strides = array<i32>} : memref<8x128xf32, #tpu.memory_space<vmem>>, vector<8x128xf32>,
    return
  }
  func.func @transform_0(%arg0: i32, %arg1: i32) -> (i32, i32) {
    %c0_i32 = arith.constant 0 : i32
    %c0_i32_0 = arith.constant 0 : i32
    return %arg0, %c0_i32 : i32, i32
  }
  func.func @transform_1(%arg0: i32, %arg1: i32) -> (i32, i32) {
    %c0_i32 = arith.constant 0 : i32
    %c0_i32_0 = arith.constant 0 : i32
    return %c0_i32, %arg1 : i32, i32
  }
  func.func @transform_2(%arg0: i32, %arg1: i32) -> (i32, i32) {
    %c0_i32 = arith.constant 0 : i32
    return %arg0, %arg1 : i32, i32
  }
  func.func @transform_3(%arg0: i32, %arg1: i32) -> (i32, i32) {
    %c0_i32 = arith.constant 0 : i32
    return %arg0, %arg1 : i32, i32
  }
  func.func @transform_4(%arg0: i32, %arg1: i32) -> (i32, i32) {
    %c0_i32 = arith.constant 0 : i32
    return %arg0, %arg1 : i32, i32
  }
}

module attributes {stable_mosaic.version = 11 : i64} {
  func.func @_affine_act_kernel(%arg0: i32, %arg1: memref<512x128xbf16, #tpu.memory_space<vmem>>, %arg2: memref<1x128xf32, #tpu.memory_space<vmem>>, %arg3: memref<1x128xf32, #tpu.memory_space<vmem>>, %arg4: memref<512x128xbf16, #tpu.memory_space<vmem>>) attributes {dimension_semantics = [#tpu.dimension_semantics<parallel>], iteration_bounds = array<i64: 1>, scalar_prefetch = 0 : i64, scratch_operands = 0 : i64, tpu.core_type = #tpu.core_type<tc>, window_params = [{transform_indices = @transform_0, window_bounds = array<i64: 512, 128>}, {pipeline_mode = #tpu.pipeline_mode<synchronous>, transform_indices = @transform_1, window_bounds = array<i64: 1, 128>}, {pipeline_mode = #tpu.pipeline_mode<synchronous>, transform_indices = @transform_2, window_bounds = array<i64: 1, 128>}, {transform_indices = @transform_3, window_bounds = array<i64: 512, 128>}]} {
    %c0 = arith.constant 0 : index
    %c0_0 = arith.constant 0 : index
    %0 = vector.load %arg1[%c0, %c0_0] : memref<512x128xbf16, #tpu.memory_space<vmem>>, vector<512x128xbf16>
    %1 = arith.extf %0 : vector<512x128xbf16> to vector<512x128xf32>
    %c0_1 = arith.constant 0 : index
    %c0_2 = arith.constant 0 : index
    %2 = vector.load %arg2[%c0_1, %c0_2] : memref<1x128xf32, #tpu.memory_space<vmem>>, vector<1x128xf32>
    %3 = vector.broadcast %2 : vector<1x128xf32> to vector<512x128xf32>
    %4 = arith.mulf %1, %3 : vector<512x128xf32>
    %c0_3 = arith.constant 0 : index
    %c0_4 = arith.constant 0 : index
    %5 = vector.load %arg3[%c0_3, %c0_4] : memref<1x128xf32, #tpu.memory_space<vmem>>, vector<1x128xf32>
    %6 = vector.broadcast %5 : vector<1x128xf32> to vector<512x128xf32>
    %7 = arith.addf %4, %6 : vector<512x128xf32>
    %cst = arith.constant 0.000000e+00 : f32
    %8 = vector.broadcast %cst : f32 to vector<512x128xf32>
    %9 = arith.maximumf %7, %8 : vector<512x128xf32>
    %10 = arith.truncf %9 : vector<512x128xf32> to vector<512x128xbf16>
    %c0_5 = arith.constant 0 : index
    %c0_6 = arith.constant 0 : index
    %11 = vector.load %arg4[%c0_5, %c0_6] : memref<512x128xbf16, #tpu.memory_space<vmem>>, vector<512x128xbf16>
    tpu.vector_store %arg4[%c0_5, %c0_6], %10 {strides = array<i32>} : memref<512x128xbf16, #tpu.memory_space<vmem>>, vector<512x128xbf16>,
    return
  }
  func.func @transform_0(%arg0: i32) -> (i32, i32) {
    %c0_i32 = arith.constant 0 : i32
    %c0_i32_0 = arith.constant 0 : i32
    return %arg0, %c0_i32 : i32, i32
  }
  func.func @transform_1(%arg0: i32) -> (i32, i32) {
    %c0_i32 = arith.constant 0 : i32
    %c0_i32_0 = arith.constant 0 : i32
    %c0_i32_1 = arith.constant 0 : i32
    return %c0_i32, %c0_i32_0 : i32, i32
  }
  func.func @transform_2(%arg0: i32) -> (i32, i32) {
    %c0_i32 = arith.constant 0 : i32
    %c0_i32_0 = arith.constant 0 : i32
    %c0_i32_1 = arith.constant 0 : i32
    return %c0_i32, %c0_i32_0 : i32, i32
  }
  func.func @transform_3(%arg0: i32) -> (i32, i32) {
    %c0_i32 = arith.constant 0 : i32
    %c0_i32_0 = arith.constant 0 : i32
    return %arg0, %c0_i32 : i32, i32
  }
}

module attributes {stable_mosaic.version = 11 : i64} {
  func.func @kernel(%arg0: i32, %arg1: i32, %arg2: memref<512x128xbf16, #tpu.memory_space<vmem>>, %arg3: memref<128x128xbf16, #tpu.memory_space<vmem>>, %arg4: memref<512x128xbf16, #tpu.memory_space<vmem>>) attributes {dimension_semantics = [#tpu.dimension_semantics<parallel>, #tpu.dimension_semantics<parallel>], iteration_bounds = array<i64: 4, 1>, scalar_prefetch = 0 : i64, scratch_operands = 0 : i64, tpu.core_type = #tpu.core_type<tc>, window_params = [{transform_indices = @transform_0, window_bounds = array<i64: 512, 128>}, {transform_indices = @transform_1, window_bounds = array<i64: 128, 128>}, {transform_indices = @transform_2, window_bounds = array<i64: 512, 128>}]} {
    %c0 = arith.constant 0 : index
    %c0_0 = arith.constant 0 : index
    %0 = vector.load %arg2[%c0, %c0_0] : memref<512x128xbf16, #tpu.memory_space<vmem>>, vector<512x128xbf16>
    %c0_1 = arith.constant 0 : index
    %c0_2 = arith.constant 0 : index
    %1 = vector.load %arg3[%c0_1, %c0_2] : memref<128x128xbf16, #tpu.memory_space<vmem>>, vector<128x128xbf16>
    %cst = arith.constant dense<0.000000e+00> : vector<512x128xf32>
    %2 = tpu.matmul %0, %1, %cst {dimension_numbers = #tpu.dot_dimension_numbers<[1], [0], [0], [1], [0, 0, 1, 1], [], []>} : vector<512x128xbf16>, vector<128x128xbf16>, vector<512x128xf32> -> vector<512x128xf32>
    %3 = math.tanh %2 : vector<512x128xf32>
    %4 = arith.truncf %3 : vector<512x128xf32> to vector<512x128xbf16>
    %c0_3 = arith.constant 0 : index
    %c0_4 = arith.constant 0 : index
    %5 = vector.load %arg4[%c0_3, %c0_4] : memref<512x128xbf16, #tpu.memory_space<vmem>>, vector<512x128xbf16>
    tpu.vector_store %arg4[%c0_3, %c0_4], %4 {strides = array<i32>} : memref<512x128xbf16, #tpu.memory_space<vmem>>, vector<512x128xbf16>,
    return
  }
  func.func @transform_0(%arg0: i32, %arg1: i32) -> (i32, i32) {
    %c0_i32 = arith.constant 0 : i32
    %c0_i32_0 = arith.constant 0 : i32
    return %arg0, %c0_i32 : i32, i32
  }
  func.func @transform_1(%arg0: i32, %arg1: i32) -> (i32, i32) {
    %c0_i32 = arith.constant 0 : i32
    %c0_i32_0 = arith.constant 0 : i32
    return %c0_i32, %arg1 : i32, i32
  }
  func.func @transform_2(%arg0: i32, %arg1: i32) -> (i32, i32) {
    %c0_i32 = arith.constant 0 : i32
    return %arg0, %arg1 : i32, i32
  }
}

module attributes {stable_mosaic.version = 11 : i64} {
  func.func @kernel(%arg0: i32, %arg1: i32, %arg2: memref<512x128xbf16, #tpu.memory_space<vmem>>, %arg3: memref<128x128xbf16, #tpu.memory_space<vmem>>, %arg4: memref<512x128xbf16, #tpu.memory_space<vmem>>) attributes {dimension_semantics = [#tpu.dimension_semantics<parallel>, #tpu.dimension_semantics<parallel>], iteration_bounds = array<i64: 4, 1>, scalar_prefetch = 0 : i64, scratch_operands = 0 : i64, tpu.core_type = #tpu.core_type<tc>, window_params = [{transform_indices = @transform_0, window_bounds = array<i64: 512, 128>}, {transform_indices = @transform_1, window_bounds = array<i64: 128, 128>}, {transform_indices = @transform_2, window_bounds = array<i64: 512, 128>}]} {
    %c0 = arith.constant 0 : index
    %c0_0 = arith.constant 0 : index
    %0 = vector.load %arg2[%c0, %c0_0] : memref<512x128xbf16, #tpu.memory_space<vmem>>, vector<512x128xbf16>
    %c0_1 = arith.constant 0 : index
    %c0_2 = arith.constant 0 : index
    %1 = vector.load %arg3[%c0_1, %c0_2] : memref<128x128xbf16, #tpu.memory_space<vmem>>, vector<128x128xbf16>
    %cst = arith.constant dense<0.000000e+00> : vector<512x128xf32>
    %2 = tpu.matmul %0, %1, %cst {dimension_numbers = #tpu.dot_dimension_numbers<[1], [0], [0], [1], [0, 0, 1, 1], [], []>} : vector<512x128xbf16>, vector<128x128xbf16>, vector<512x128xf32> -> vector<512x128xf32>
    %cst_3 = arith.constant 0.000000e+00 : f32
    %3 = vector.broadcast %cst_3 : f32 to vector<512x128xf32>
    %4 = arith.cmpf ogt, %2, %3 : vector<512x128xf32>
    %cst_4 = arith.constant 2.000000e-01 : f32
    %5 = vector.broadcast %cst_4 : f32 to vector<512x128xf32>
    %6 = arith.mulf %5, %2 : vector<512x128xf32>
    %7 = arith.select %4, %2, %6 : vector<512x128xi1>, vector<512x128xf32>
    %8 = arith.truncf %7 : vector<512x128xf32> to vector<512x128xbf16>
    %c0_5 = arith.constant 0 : index
    %c0_6 = arith.constant 0 : index
    %9 = vector.load %arg4[%c0_5, %c0_6] : memref<512x128xbf16, #tpu.memory_space<vmem>>, vector<512x128xbf16>
    tpu.vector_store %arg4[%c0_5, %c0_6], %8 {strides = array<i32>} : memref<512x128xbf16, #tpu.memory_space<vmem>>, vector<512x128xbf16>,
    return
  }
  func.func @transform_0(%arg0: i32, %arg1: i32) -> (i32, i32) {
    %c0_i32 = arith.constant 0 : i32
    %c0_i32_0 = arith.constant 0 : i32
    return %arg0, %c0_i32 : i32, i32
  }
  func.func @transform_1(%arg0: i32, %arg1: i32) -> (i32, i32) {
    %c0_i32 = arith.constant 0 : i32
    %c0_i32_0 = arith.constant 0 : i32
    return %c0_i32, %arg1 : i32, i32
  }
  func.func @transform_2(%arg0: i32, %arg1: i32) -> (i32, i32) {
    %c0_i32 = arith.constant 0 : i32
    return %arg0, %arg1 : i32, i32
  }
}

module attributes {stable_mosaic.version = 11 : i64} {
  func.func @kernel(%arg0: i32, %arg1: i32, %arg2: memref<512x128xbf16, #tpu.memory_space<vmem>>, %arg3: memref<128x128xbf16, #tpu.memory_space<vmem>>, %arg4: memref<512x128xbf16, #tpu.memory_space<vmem>>, %arg5: memref<8x128xf32, #tpu.memory_space<vmem>>, %arg6: memref<8x128xf32, #tpu.memory_space<vmem>>) attributes {dimension_semantics = [#tpu.dimension_semantics<parallel>, #tpu.dimension_semantics<parallel>], iteration_bounds = array<i64: 1, 1>, scalar_prefetch = 0 : i64, scratch_operands = 0 : i64, tpu.core_type = #tpu.core_type<tc>, window_params = [{transform_indices = @transform_0, window_bounds = array<i64: 512, 128>}, {transform_indices = @transform_1, window_bounds = array<i64: 128, 128>}, {transform_indices = @transform_2, window_bounds = array<i64: 512, 128>}, {transform_indices = @transform_3, window_bounds = array<i64: 8, 128>}, {transform_indices = @transform_4, window_bounds = array<i64: 8, 128>}]} {
    %c0 = arith.constant 0 : index
    %c0_0 = arith.constant 0 : index
    %0 = vector.load %arg2[%c0, %c0_0] : memref<512x128xbf16, #tpu.memory_space<vmem>>, vector<512x128xbf16>
    %c0_1 = arith.constant 0 : index
    %c0_2 = arith.constant 0 : index
    %1 = vector.load %arg3[%c0_1, %c0_2] : memref<128x128xbf16, #tpu.memory_space<vmem>>, vector<128x128xbf16>
    %cst = arith.constant dense<0.000000e+00> : vector<512x128xf32>
    %2 = tpu.matmul %0, %1, %cst {dimension_numbers = #tpu.dot_dimension_numbers<[1], [0], [0], [1], [0, 0, 1, 1], [], []>} : vector<512x128xbf16>, vector<128x128xbf16>, vector<512x128xf32> -> vector<512x128xf32>
    %3 = arith.truncf %2 : vector<512x128xf32> to vector<512x128xbf16>
    %c0_3 = arith.constant 0 : index
    %c0_4 = arith.constant 0 : index
    %4 = vector.load %arg4[%c0_3, %c0_4] : memref<512x128xbf16, #tpu.memory_space<vmem>>, vector<512x128xbf16>
    tpu.vector_store %arg4[%c0_3, %c0_4], %3 {strides = array<i32>} : memref<512x128xbf16, #tpu.memory_space<vmem>>, vector<512x128xbf16>,
    %5 = vector.extract_strided_slice %2 {offsets = [0, 0], sizes = [8, 128], strides = [1, 1]} : vector<512x128xf32> to vector<8x128xf32>
    %6 = vector.extract_strided_slice %2 {offsets = [8, 0], sizes = [8, 128], strides = [1, 1]} : vector<512x128xf32> to vector<8x128xf32>
    %7 = vector.extract_strided_slice %2 {offsets = [16, 0], sizes = [8, 128], strides = [1, 1]} : vector<512x128xf32> to vector<8x128xf32>
    %8 = vector.extract_strided_slice %2 {offsets = [24, 0], sizes = [8, 128], strides = [1, 1]} : vector<512x128xf32> to vector<8x128xf32>
    %9 = arith.mulf %5, %5 : vector<8x128xf32>
    %10 = arith.mulf %6, %6 : vector<8x128xf32>
    %11 = arith.mulf %7, %7 : vector<8x128xf32>
    %12 = arith.mulf %8, %8 : vector<8x128xf32>
    %13 = vector.extract_strided_slice %2 {offsets = [32, 0], sizes = [8, 128], strides = [1, 1]} : vector<512x128xf32> to vector<8x128xf32>
    %14 = arith.addf %5, %13 : vector<8x128xf32>
    %15 = arith.mulf %13, %13 : vector<8x128xf32>
    %16 = arith.addf %9, %15 : vector<8x128xf32>
    %17 = vector.extract_strided_slice %2 {offsets = [40, 0], sizes = [8, 128], strides = [1, 1]} : vector<512x128xf32> to vector<8x128xf32>
    %18 = arith.addf %6, %17 : vector<8x128xf32>
    %19 = arith.mulf %17, %17 : vector<8x128xf32>
    %20 = arith.addf %10, %19 : vector<8x128xf32>
    %21 = vector.extract_strided_slice %2 {offsets = [48, 0], sizes = [8, 128], strides = [1, 1]} : vector<512x128xf32> to vector<8x128xf32>
    %22 = arith.addf %7, %21 : vector<8x128xf32>
    %23 = arith.mulf %21, %21 : vector<8x128xf32>
    %24 = arith.addf %11, %23 : vector<8x128xf32>
    %25 = vector.extract_strided_slice %2 {offsets = [56, 0], sizes = [8, 128], strides = [1, 1]} : vector<512x128xf32> to vector<8x128xf32>
    %26 = arith.addf %8, %25 : vector<8x128xf32>
    %27 = arith.mulf %25, %25 : vector<8x128xf32>
    %28 = arith.addf %12, %27 : vector<8x128xf32>
    %29 = vector.extract_strided_slice %2 {offsets = [64, 0], sizes = [8, 128], strides = [1, 1]} : vector<512x128xf32> to vector<8x128xf32>
    %30 = arith.addf %14, %29 : vector<8x128xf32>
    %31 = arith.mulf %29, %29 : vector<8x128xf32>
    %32 = arith.addf %16, %31 : vector<8x128xf32>
    %33 = vector.extract_strided_slice %2 {offsets = [72, 0], sizes = [8, 128], strides = [1, 1]} : vector<512x128xf32> to vector<8x128xf32>
    %34 = arith.addf %18, %33 : vector<8x128xf32>
    %35 = arith.mulf %33, %33 : vector<8x128xf32>
    %36 = arith.addf %20, %35 : vector<8x128xf32>
    %37 = vector.extract_strided_slice %2 {offsets = [80, 0], sizes = [8, 128], strides = [1, 1]} : vector<512x128xf32> to vector<8x128xf32>
    %38 = arith.addf %22, %37 : vector<8x128xf32>
    %39 = arith.mulf %37, %37 : vector<8x128xf32>
    %40 = arith.addf %24, %39 : vector<8x128xf32>
    %41 = vector.extract_strided_slice %2 {offsets = [88, 0], sizes = [8, 128], strides = [1, 1]} : vector<512x128xf32> to vector<8x128xf32>
    %42 = arith.addf %26, %41 : vector<8x128xf32>
    %43 = arith.mulf %41, %41 : vector<8x128xf32>
    %44 = arith.addf %28, %43 : vector<8x128xf32>
    %45 = vector.extract_strided_slice %2 {offsets = [96, 0], sizes = [8, 128], strides = [1, 1]} : vector<512x128xf32> to vector<8x128xf32>
    %46 = arith.addf %30, %45 : vector<8x128xf32>
    %47 = arith.mulf %45, %45 : vector<8x128xf32>
    %48 = arith.addf %32, %47 : vector<8x128xf32>
    %49 = vector.extract_strided_slice %2 {offsets = [104, 0], sizes = [8, 128], strides = [1, 1]} : vector<512x128xf32> to vector<8x128xf32>
    %50 = arith.addf %34, %49 : vector<8x128xf32>
    %51 = arith.mulf %49, %49 : vector<8x128xf32>
    %52 = arith.addf %36, %51 : vector<8x128xf32>
    %53 = vector.extract_strided_slice %2 {offsets = [112, 0], sizes = [8, 128], strides = [1, 1]} : vector<512x128xf32> to vector<8x128xf32>
    %54 = arith.addf %38, %53 : vector<8x128xf32>
    %55 = arith.mulf %53, %53 : vector<8x128xf32>
    %56 = arith.addf %40, %55 : vector<8x128xf32>
    %57 = vector.extract_strided_slice %2 {offsets = [120, 0], sizes = [8, 128], strides = [1, 1]} : vector<512x128xf32> to vector<8x128xf32>
    %58 = arith.addf %42, %57 : vector<8x128xf32>
    %59 = arith.mulf %57, %57 : vector<8x128xf32>
    %60 = arith.addf %44, %59 : vector<8x128xf32>
    %61 = vector.extract_strided_slice %2 {offsets = [128, 0], sizes = [8, 128], strides = [1, 1]} : vector<512x128xf32> to vector<8x128xf32>
    %62 = arith.addf %46, %61 : vector<8x128xf32>
    %63 = arith.mulf %61, %61 : vector<8x128xf32>
    %64 = arith.addf %48, %63 : vector<8x128xf32>
    %65 = vector.extract_strided_slice %2 {offsets = [136, 0], sizes = [8, 128], strides = [1, 1]} : vector<512x128xf32> to vector<8x128xf32>
    %66 = arith.addf %50, %65 : vector<8x128xf32>
    %67 = arith.mulf %65, %65 : vector<8x128xf32>
    %68 = arith.addf %52, %67 : vector<8x128xf32>
    %69 = vector.extract_strided_slice %2 {offsets = [144, 0], sizes = [8, 128], strides = [1, 1]} : vector<512x128xf32> to vector<8x128xf32>
    %70 = arith.addf %54, %69 : vector<8x128xf32>
    %71 = arith.mulf %69, %69 : vector<8x128xf32>
    %72 = arith.addf %56, %71 : vector<8x128xf32>
    %73 = vector.extract_strided_slice %2 {offsets = [152, 0], sizes = [8, 128], strides = [1, 1]} : vector<512x128xf32> to vector<8x128xf32>
    %74 = arith.addf %58, %73 : vector<8x128xf32>
    %75 = arith.mulf %73, %73 : vector<8x128xf32>
    %76 = arith.addf %60, %75 : vector<8x128xf32>
    %77 = vector.extract_strided_slice %2 {offsets = [160, 0], sizes = [8, 128], strides = [1, 1]} : vector<512x128xf32> to vector<8x128xf32>
    %78 = arith.addf %62, %77 : vector<8x128xf32>
    %79 = arith.mulf %77, %77 : vector<8x128xf32>
    %80 = arith.addf %64, %79 : vector<8x128xf32>
    %81 = vector.extract_strided_slice %2 {offsets = [168, 0], sizes = [8, 128], strides = [1, 1]} : vector<512x128xf32> to vector<8x128xf32>
    %82 = arith.addf %66, %81 : vector<8x128xf32>
    %83 = arith.mulf %81, %81 : vector<8x128xf32>
    %84 = arith.addf %68, %83 : vector<8x128xf32>
    %85 = vector.extract_strided_slice %2 {offsets = [176, 0], sizes = [8, 128], strides = [1, 1]} : vector<512x128xf32> to vector<8x128xf32>
    %86 = arith.addf %70, %85 : vector<8x128xf32>
    %87 = arith.mulf %85, %85 : vector<8x128xf32>
    %88 = arith.addf %72, %87 : vector<8x128xf32>
    %89 = vector.extract_strided_slice %2 {offsets = [184, 0], sizes = [8, 128], strides = [1, 1]} : vector<512x128xf32> to vector<8x128xf32>
    %90 = arith.addf %74, %89 : vector<8x128xf32>
    %91 = arith.mulf %89, %89 : vector<8x128xf32>
    %92 = arith.addf %76, %91 : vector<8x128xf32>
    %93 = vector.extract_strided_slice %2 {offsets = [192, 0], sizes = [8, 128], strides = [1, 1]} : vector<512x128xf32> to vector<8x128xf32>
    %94 = arith.addf %78, %93 : vector<8x128xf32>
    %95 = arith.mulf %93, %93 : vector<8x128xf32>
    %96 = arith.addf %80, %95 : vector<8x128xf32>
    %97 = vector.extract_strided_slice %2 {offsets = [200, 0], sizes = [8, 128], strides = [1, 1]} : vector<512x128xf32> to vector<8x128xf32>
    %98 = arith.addf %82, %97 : vector<8x128xf32>
    %99 = arith.mulf %97, %97 : vector<8x128xf32>
    %100 = arith.addf %84, %99 : vector<8x128xf32>
    %101 = vector.extract_strided_slice %2 {offsets = [208, 0], sizes = [8, 128], strides = [1, 1]} : vector<512x128xf32> to vector<8x128xf32>
    %102 = arith.addf %86, %101 : vector<8x128xf32>
    %103 = arith.mulf %101, %101 : vector<8x128xf32>
    %104 = arith.addf %88, %103 : vector<8x128xf32>
    %105 = vector.extract_strided_slice %2 {offsets = [216, 0], sizes = [8, 128], strides = [1, 1]} : vector<512x128xf32> to vector<8x128xf32>
    %106 = arith.addf %90, %105 : vector<8x128xf32>
    %107 = arith.mulf %105, %105 : vector<8x128xf32>
    %108 = arith.addf %92, %107 : vector<8x128xf32>
    %109 = vector.extract_strided_slice %2 {offsets = [224, 0], sizes = [8, 128], strides = [1, 1]} : vector<512x128xf32> to vector<8x128xf32>
    %110 = arith.addf %94, %109 : vector<8x128xf32>
    %111 = arith.mulf %109, %109 : vector<8x128xf32>
    %112 = arith.addf %96, %111 : vector<8x128xf32>
    %113 = vector.extract_strided_slice %2 {offsets = [232, 0], sizes = [8, 128], strides = [1, 1]} : vector<512x128xf32> to vector<8x128xf32>
    %114 = arith.addf %98, %113 : vector<8x128xf32>
    %115 = arith.mulf %113, %113 : vector<8x128xf32>
    %116 = arith.addf %100, %115 : vector<8x128xf32>
    %117 = vector.extract_strided_slice %2 {offsets = [240, 0], sizes = [8, 128], strides = [1, 1]} : vector<512x128xf32> to vector<8x128xf32>
    %118 = arith.addf %102, %117 : vector<8x128xf32>
    %119 = arith.mulf %117, %117 : vector<8x128xf32>
    %120 = arith.addf %104, %119 : vector<8x128xf32>
    %121 = vector.extract_strided_slice %2 {offsets = [248, 0], sizes = [8, 128], strides = [1, 1]} : vector<512x128xf32> to vector<8x128xf32>
    %122 = arith.addf %106, %121 : vector<8x128xf32>
    %123 = arith.mulf %121, %121 : vector<8x128xf32>
    %124 = arith.addf %108, %123 : vector<8x128xf32>
    %125 = vector.extract_strided_slice %2 {offsets = [256, 0], sizes = [8, 128], strides = [1, 1]} : vector<512x128xf32> to vector<8x128xf32>
    %126 = arith.addf %110, %125 : vector<8x128xf32>
    %127 = arith.mulf %125, %125 : vector<8x128xf32>
    %128 = arith.addf %112, %127 : vector<8x128xf32>
    %129 = vector.extract_strided_slice %2 {offsets = [264, 0], sizes = [8, 128], strides = [1, 1]} : vector<512x128xf32> to vector<8x128xf32>
    %130 = arith.addf %114, %129 : vector<8x128xf32>
    %131 = arith.mulf %129, %129 : vector<8x128xf32>
    %132 = arith.addf %116, %131 : vector<8x128xf32>
    %133 = vector.extract_strided_slice %2 {offsets = [272, 0], sizes = [8, 128], strides = [1, 1]} : vector<512x128xf32> to vector<8x128xf32>
    %134 = arith.addf %118, %133 : vector<8x128xf32>
    %135 = arith.mulf %133, %133 : vector<8x128xf32>
    %136 = arith.addf %120, %135 : vector<8x128xf32>
    %137 = vector.extract_strided_slice %2 {offsets = [280, 0], sizes = [8, 128], strides = [1, 1]} : vector<512x128xf32> to vector<8x128xf32>
    %138 = arith.addf %122, %137 : vector<8x128xf32>
    %139 = arith.mulf %137, %137 : vector<8x128xf32>
    %140 = arith.addf %124, %139 : vector<8x128xf32>
    %141 = vector.extract_strided_slice %2 {offsets = [288, 0], sizes = [8, 128], strides = [1, 1]} : vector<512x128xf32> to vector<8x128xf32>
    %142 = arith.addf %126, %141 : vector<8x128xf32>
    %143 = arith.mulf %141, %141 : vector<8x128xf32>
    %144 = arith.addf %128, %143 : vector<8x128xf32>
    %145 = vector.extract_strided_slice %2 {offsets = [296, 0], sizes = [8, 128], strides = [1, 1]} : vector<512x128xf32> to vector<8x128xf32>
    %146 = arith.addf %130, %145 : vector<8x128xf32>
    %147 = arith.mulf %145, %145 : vector<8x128xf32>
    %148 = arith.addf %132, %147 : vector<8x128xf32>
    %149 = vector.extract_strided_slice %2 {offsets = [304, 0], sizes = [8, 128], strides = [1, 1]} : vector<512x128xf32> to vector<8x128xf32>
    %150 = arith.addf %134, %149 : vector<8x128xf32>
    %151 = arith.mulf %149, %149 : vector<8x128xf32>
    %152 = arith.addf %136, %151 : vector<8x128xf32>
    %153 = vector.extract_strided_slice %2 {offsets = [312, 0], sizes = [8, 128], strides = [1, 1]} : vector<512x128xf32> to vector<8x128xf32>
    %154 = arith.addf %138, %153 : vector<8x128xf32>
    %155 = arith.mulf %153, %153 : vector<8x128xf32>
    %156 = arith.addf %140, %155 : vector<8x128xf32>
    %157 = vector.extract_strided_slice %2 {offsets = [320, 0], sizes = [8, 128], strides = [1, 1]} : vector<512x128xf32> to vector<8x128xf32>
    %158 = arith.addf %142, %157 : vector<8x128xf32>
    %159 = arith.mulf %157, %157 : vector<8x128xf32>
    %160 = arith.addf %144, %159 : vector<8x128xf32>
    %161 = vector.extract_strided_slice %2 {offsets = [328, 0], sizes = [8, 128], strides = [1, 1]} : vector<512x128xf32> to vector<8x128xf32>
    %162 = arith.addf %146, %161 : vector<8x128xf32>
    %163 = arith.mulf %161, %161 : vector<8x128xf32>
    %164 = arith.addf %148, %163 : vector<8x128xf32>
    %165 = vector.extract_strided_slice %2 {offsets = [336, 0], sizes = [8, 128], strides = [1, 1]} : vector<512x128xf32> to vector<8x128xf32>
    %166 = arith.addf %150, %165 : vector<8x128xf32>
    %167 = arith.mulf %165, %165 : vector<8x128xf32>
    %168 = arith.addf %152, %167 : vector<8x128xf32>
    %169 = vector.extract_strided_slice %2 {offsets = [344, 0], sizes = [8, 128], strides = [1, 1]} : vector<512x128xf32> to vector<8x128xf32>
    %170 = arith.addf %154, %169 : vector<8x128xf32>
    %171 = arith.mulf %169, %169 : vector<8x128xf32>
    %172 = arith.addf %156, %171 : vector<8x128xf32>
    %173 = vector.extract_strided_slice %2 {offsets = [352, 0], sizes = [8, 128], strides = [1, 1]} : vector<512x128xf32> to vector<8x128xf32>
    %174 = arith.addf %158, %173 : vector<8x128xf32>
    %175 = arith.mulf %173, %173 : vector<8x128xf32>
    %176 = arith.addf %160, %175 : vector<8x128xf32>
    %177 = vector.extract_strided_slice %2 {offsets = [360, 0], sizes = [8, 128], strides = [1, 1]} : vector<512x128xf32> to vector<8x128xf32>
    %178 = arith.addf %162, %177 : vector<8x128xf32>
    %179 = arith.mulf %177, %177 : vector<8x128xf32>
    %180 = arith.addf %164, %179 : vector<8x128xf32>
    %181 = vector.extract_strided_slice %2 {offsets = [368, 0], sizes = [8, 128], strides = [1, 1]} : vector<512x128xf32> to vector<8x128xf32>
    %182 = arith.addf %166, %181 : vector<8x128xf32>
    %183 = arith.mulf %181, %181 : vector<8x128xf32>
    %184 = arith.addf %168, %183 : vector<8x128xf32>
    %185 = vector.extract_strided_slice %2 {offsets = [376, 0], sizes = [8, 128], strides = [1, 1]} : vector<512x128xf32> to vector<8x128xf32>
    %186 = arith.addf %170, %185 : vector<8x128xf32>
    %187 = arith.mulf %185, %185 : vector<8x128xf32>
    %188 = arith.addf %172, %187 : vector<8x128xf32>
    %189 = vector.extract_strided_slice %2 {offsets = [384, 0], sizes = [8, 128], strides = [1, 1]} : vector<512x128xf32> to vector<8x128xf32>
    %190 = arith.addf %174, %189 : vector<8x128xf32>
    %191 = arith.mulf %189, %189 : vector<8x128xf32>
    %192 = arith.addf %176, %191 : vector<8x128xf32>
    %193 = vector.extract_strided_slice %2 {offsets = [392, 0], sizes = [8, 128], strides = [1, 1]} : vector<512x128xf32> to vector<8x128xf32>
    %194 = arith.addf %178, %193 : vector<8x128xf32>
    %195 = arith.mulf %193, %193 : vector<8x128xf32>
    %196 = arith.addf %180, %195 : vector<8x128xf32>
    %197 = vector.extract_strided_slice %2 {offsets = [400, 0], sizes = [8, 128], strides = [1, 1]} : vector<512x128xf32> to vector<8x128xf32>
    %198 = arith.addf %182, %197 : vector<8x128xf32>
    %199 = arith.mulf %197, %197 : vector<8x128xf32>
    %200 = arith.addf %184, %199 : vector<8x128xf32>
    %201 = vector.extract_strided_slice %2 {offsets = [408, 0], sizes = [8, 128], strides = [1, 1]} : vector<512x128xf32> to vector<8x128xf32>
    %202 = arith.addf %186, %201 : vector<8x128xf32>
    %203 = arith.mulf %201, %201 : vector<8x128xf32>
    %204 = arith.addf %188, %203 : vector<8x128xf32>
    %205 = vector.extract_strided_slice %2 {offsets = [416, 0], sizes = [8, 128], strides = [1, 1]} : vector<512x128xf32> to vector<8x128xf32>
    %206 = arith.addf %190, %205 : vector<8x128xf32>
    %207 = arith.mulf %205, %205 : vector<8x128xf32>
    %208 = arith.addf %192, %207 : vector<8x128xf32>
    %209 = vector.extract_strided_slice %2 {offsets = [424, 0], sizes = [8, 128], strides = [1, 1]} : vector<512x128xf32> to vector<8x128xf32>
    %210 = arith.addf %194, %209 : vector<8x128xf32>
    %211 = arith.mulf %209, %209 : vector<8x128xf32>
    %212 = arith.addf %196, %211 : vector<8x128xf32>
    %213 = vector.extract_strided_slice %2 {offsets = [432, 0], sizes = [8, 128], strides = [1, 1]} : vector<512x128xf32> to vector<8x128xf32>
    %214 = arith.addf %198, %213 : vector<8x128xf32>
    %215 = arith.mulf %213, %213 : vector<8x128xf32>
    %216 = arith.addf %200, %215 : vector<8x128xf32>
    %217 = vector.extract_strided_slice %2 {offsets = [440, 0], sizes = [8, 128], strides = [1, 1]} : vector<512x128xf32> to vector<8x128xf32>
    %218 = arith.addf %202, %217 : vector<8x128xf32>
    %219 = arith.mulf %217, %217 : vector<8x128xf32>
    %220 = arith.addf %204, %219 : vector<8x128xf32>
    %221 = vector.extract_strided_slice %2 {offsets = [448, 0], sizes = [8, 128], strides = [1, 1]} : vector<512x128xf32> to vector<8x128xf32>
    %222 = arith.addf %206, %221 : vector<8x128xf32>
    %223 = arith.mulf %221, %221 : vector<8x128xf32>
    %224 = arith.addf %208, %223 : vector<8x128xf32>
    %225 = vector.extract_strided_slice %2 {offsets = [456, 0], sizes = [8, 128], strides = [1, 1]} : vector<512x128xf32> to vector<8x128xf32>
    %226 = arith.addf %210, %225 : vector<8x128xf32>
    %227 = arith.mulf %225, %225 : vector<8x128xf32>
    %228 = arith.addf %212, %227 : vector<8x128xf32>
    %229 = vector.extract_strided_slice %2 {offsets = [464, 0], sizes = [8, 128], strides = [1, 1]} : vector<512x128xf32> to vector<8x128xf32>
    %230 = arith.addf %214, %229 : vector<8x128xf32>
    %231 = arith.mulf %229, %229 : vector<8x128xf32>
    %232 = arith.addf %216, %231 : vector<8x128xf32>
    %233 = vector.extract_strided_slice %2 {offsets = [472, 0], sizes = [8, 128], strides = [1, 1]} : vector<512x128xf32> to vector<8x128xf32>
    %234 = arith.addf %218, %233 : vector<8x128xf32>
    %235 = arith.mulf %233, %233 : vector<8x128xf32>
    %236 = arith.addf %220, %235 : vector<8x128xf32>
    %237 = vector.extract_strided_slice %2 {offsets = [480, 0], sizes = [8, 128], strides = [1, 1]} : vector<512x128xf32> to vector<8x128xf32>
    %238 = arith.addf %222, %237 : vector<8x128xf32>
    %239 = arith.mulf %237, %237 : vector<8x128xf32>
    %240 = arith.addf %224, %239 : vector<8x128xf32>
    %241 = vector.extract_strided_slice %2 {offsets = [488, 0], sizes = [8, 128], strides = [1, 1]} : vector<512x128xf32> to vector<8x128xf32>
    %242 = arith.addf %226, %241 : vector<8x128xf32>
    %243 = arith.mulf %241, %241 : vector<8x128xf32>
    %244 = arith.addf %228, %243 : vector<8x128xf32>
    %245 = vector.extract_strided_slice %2 {offsets = [496, 0], sizes = [8, 128], strides = [1, 1]} : vector<512x128xf32> to vector<8x128xf32>
    %246 = arith.addf %230, %245 : vector<8x128xf32>
    %247 = arith.mulf %245, %245 : vector<8x128xf32>
    %248 = arith.addf %232, %247 : vector<8x128xf32>
    %249 = vector.extract_strided_slice %2 {offsets = [504, 0], sizes = [8, 128], strides = [1, 1]} : vector<512x128xf32> to vector<8x128xf32>
    %250 = arith.addf %234, %249 : vector<8x128xf32>
    %251 = arith.mulf %249, %249 : vector<8x128xf32>
    %252 = arith.addf %236, %251 : vector<8x128xf32>
    %253 = arith.addf %238, %242 : vector<8x128xf32>
    %254 = arith.addf %240, %244 : vector<8x128xf32>
    %255 = arith.addf %253, %246 : vector<8x128xf32>
    %256 = arith.addf %254, %248 : vector<8x128xf32>
    %257 = arith.addf %255, %250 : vector<8x128xf32>
    %258 = arith.addf %256, %252 : vector<8x128xf32>
    %c0_5 = arith.constant 0 : index
    %c0_6 = arith.constant 0 : index
    %259 = vector.load %arg5[%c0_5, %c0_6] : memref<8x128xf32, #tpu.memory_space<vmem>>, vector<8x128xf32>
    tpu.vector_store %arg5[%c0_5, %c0_6], %257 {strides = array<i32>} : memref<8x128xf32, #tpu.memory_space<vmem>>, vector<8x128xf32>,
    %c0_7 = arith.constant 0 : index
    %c0_8 = arith.constant 0 : index
    %260 = vector.load %arg6[%c0_7, %c0_8] : memref<8x128xf32, #tpu.memory_space<vmem>>, vector<8x128xf32>
    tpu.vector_store %arg6[%c0_7, %c0_8], %258 {strides = array<i32>} : memref<8x128xf32, #tpu.memory_space<vmem>>, vector<8x128xf32>,
    return
  }
  func.func @transform_0(%arg0: i32, %arg1: i32) -> (i32, i32) {
    %c0_i32 = arith.constant 0 : i32
    %c0_i32_0 = arith.constant 0 : i32
    return %arg0, %c0_i32 : i32, i32
  }
  func.func @transform_1(%arg0: i32, %arg1: i32) -> (i32, i32) {
    %c0_i32 = arith.constant 0 : i32
    %c0_i32_0 = arith.constant 0 : i32
    return %c0_i32, %arg1 : i32, i32
  }
  func.func @transform_2(%arg0: i32, %arg1: i32) -> (i32, i32) {
    %c0_i32 = arith.constant 0 : i32
    return %arg0, %arg1 : i32, i32
  }
  func.func @transform_3(%arg0: i32, %arg1: i32) -> (i32, i32) {
    %c0_i32 = arith.constant 0 : i32
    return %arg0, %arg1 : i32, i32
  }
  func.func @transform_4(%arg0: i32, %arg1: i32) -> (i32, i32) {
    %c0_i32 = arith.constant 0 : i32
    return %arg0, %arg1 : i32, i32
  }
}

module attributes {stable_mosaic.version = 11 : i64} {
  func.func @_affine_act_kernel(%arg0: i32, %arg1: memref<512x128xbf16, #tpu.memory_space<vmem>>, %arg2: memref<1x128xf32, #tpu.memory_space<vmem>>, %arg3: memref<1x128xf32, #tpu.memory_space<vmem>>, %arg4: memref<512x128xbf16, #tpu.memory_space<vmem>>) attributes {dimension_semantics = [#tpu.dimension_semantics<parallel>], iteration_bounds = array<i64: 1>, scalar_prefetch = 0 : i64, scratch_operands = 0 : i64, tpu.core_type = #tpu.core_type<tc>, window_params = [{transform_indices = @transform_0, window_bounds = array<i64: 512, 128>}, {pipeline_mode = #tpu.pipeline_mode<synchronous>, transform_indices = @transform_1, window_bounds = array<i64: 1, 128>}, {pipeline_mode = #tpu.pipeline_mode<synchronous>, transform_indices = @transform_2, window_bounds = array<i64: 1, 128>}, {transform_indices = @transform_3, window_bounds = array<i64: 512, 128>}]} {
    %c0 = arith.constant 0 : index
    %c0_0 = arith.constant 0 : index
    %0 = vector.load %arg1[%c0, %c0_0] : memref<512x128xbf16, #tpu.memory_space<vmem>>, vector<512x128xbf16>
    %1 = arith.extf %0 : vector<512x128xbf16> to vector<512x128xf32>
    %c0_1 = arith.constant 0 : index
    %c0_2 = arith.constant 0 : index
    %2 = vector.load %arg2[%c0_1, %c0_2] : memref<1x128xf32, #tpu.memory_space<vmem>>, vector<1x128xf32>
    %3 = vector.broadcast %2 : vector<1x128xf32> to vector<512x128xf32>
    %4 = arith.mulf %1, %3 : vector<512x128xf32>
    %c0_3 = arith.constant 0 : index
    %c0_4 = arith.constant 0 : index
    %5 = vector.load %arg3[%c0_3, %c0_4] : memref<1x128xf32, #tpu.memory_space<vmem>>, vector<1x128xf32>
    %6 = vector.broadcast %5 : vector<1x128xf32> to vector<512x128xf32>
    %7 = arith.addf %4, %6 : vector<512x128xf32>
    %cst = arith.constant 0.000000e+00 : f32
    %8 = vector.broadcast %cst : f32 to vector<512x128xf32>
    %9 = arith.cmpf ogt, %7, %8 : vector<512x128xf32>
    %cst_5 = arith.constant 2.000000e-01 : f32
    %10 = vector.broadcast %cst_5 : f32 to vector<512x128xf32>
    %11 = arith.mulf %10, %7 : vector<512x128xf32>
    %12 = arith.select %9, %7, %11 : vector<512x128xi1>, vector<512x128xf32>
    %13 = arith.truncf %12 : vector<512x128xf32> to vector<512x128xbf16>
    %c0_6 = arith.constant 0 : index
    %c0_7 = arith.constant 0 : index
    %14 = vector.load %arg4[%c0_6, %c0_7] : memref<512x128xbf16, #tpu.memory_space<vmem>>, vector<512x128xbf16>
    tpu.vector_store %arg4[%c0_6, %c0_7], %13 {strides = array<i32>} : memref<512x128xbf16, #tpu.memory_space<vmem>>, vector<512x128xbf16>,
    return
  }
  func.func @transform_0(%arg0: i32) -> (i32, i32) {
    %c0_i32 = arith.constant 0 : i32
    %c0_i32_0 = arith.constant 0 : i32
    return %arg0, %c0_i32 : i32, i32
  }
  func.func @transform_1(%arg0: i32) -> (i32, i32) {
    %c0_i32 = arith.constant 0 : i32
    %c0_i32_0 = arith.constant 0 : i32
    %c0_i32_1 = arith.constant 0 : i32
    return %c0_i32, %c0_i32_0 : i32, i32
  }
  func.func @transform_2(%arg0: i32) -> (i32, i32) {
    %c0_i32 = arith.constant 0 : i32
    %c0_i32_0 = arith.constant 0 : i32
    %c0_i32_1 = arith.constant 0 : i32
    return %c0_i32, %c0_i32_0 : i32, i32
  }
  func.func @transform_3(%arg0: i32) -> (i32, i32) {
    %c0_i32 = arith.constant 0 : i32
    %c0_i32_0 = arith.constant 0 : i32
    return %arg0, %c0_i32 : i32, i32
  }
}

module attributes {stable_mosaic.version = 11 : i64} {
  func.func @kernel(%arg0: i32, %arg1: i32, %arg2: memref<128x256xbf16, #tpu.memory_space<vmem>>, %arg3: memref<256x128xbf16, #tpu.memory_space<vmem>>, %arg4: memref<128x128xbf16, #tpu.memory_space<vmem>>, %arg5: memref<8x128xf32, #tpu.memory_space<vmem>>, %arg6: memref<8x128xf32, #tpu.memory_space<vmem>>) attributes {dimension_semantics = [#tpu.dimension_semantics<parallel>, #tpu.dimension_semantics<parallel>], iteration_bounds = array<i64: 1, 1>, scalar_prefetch = 0 : i64, scratch_operands = 0 : i64, tpu.core_type = #tpu.core_type<tc>, window_params = [{transform_indices = @transform_0, window_bounds = array<i64: 128, 256>}, {transform_indices = @transform_1, window_bounds = array<i64: 256, 128>}, {transform_indices = @transform_2, window_bounds = array<i64: 128, 128>}, {transform_indices = @transform_3, window_bounds = array<i64: 8, 128>}, {transform_indices = @transform_4, window_bounds = array<i64: 8, 128>}]} {
    %c0 = arith.constant 0 : index
    %c0_0 = arith.constant 0 : index
    %0 = vector.load %arg2[%c0, %c0_0] : memref<128x256xbf16, #tpu.memory_space<vmem>>, vector<128x256xbf16>
    %c0_1 = arith.constant 0 : index
    %c0_2 = arith.constant 0 : index
    %1 = vector.load %arg3[%c0_1, %c0_2] : memref<256x128xbf16, #tpu.memory_space<vmem>>, vector<256x128xbf16>
    %cst = arith.constant dense<0.000000e+00> : vector<128x128xf32>
    %2 = tpu.matmul %0, %1, %cst {dimension_numbers = #tpu.dot_dimension_numbers<[1], [0], [0], [1], [0, 0, 1, 1], [], []>} : vector<128x256xbf16>, vector<256x128xbf16>, vector<128x128xf32> -> vector<128x128xf32>
    %3 = arith.truncf %2 : vector<128x128xf32> to vector<128x128xbf16>
    %c0_3 = arith.constant 0 : index
    %c0_4 = arith.constant 0 : index
    %4 = vector.load %arg4[%c0_3, %c0_4] : memref<128x128xbf16, #tpu.memory_space<vmem>>, vector<128x128xbf16>
    tpu.vector_store %arg4[%c0_3, %c0_4], %3 {strides = array<i32>} : memref<128x128xbf16, #tpu.memory_space<vmem>>, vector<128x128xbf16>,
    %5 = vector.extract_strided_slice %2 {offsets = [0, 0], sizes = [8, 128], strides = [1, 1]} : vector<128x128xf32> to vector<8x128xf32>
    %6 = vector.extract_strided_slice %2 {offsets = [8, 0], sizes = [8, 128], strides = [1, 1]} : vector<128x128xf32> to vector<8x128xf32>
    %7 = vector.extract_strided_slice %2 {offsets = [16, 0], sizes = [8, 128], strides = [1, 1]} : vector<128x128xf32> to vector<8x128xf32>
    %8 = vector.extract_strided_slice %2 {offsets = [24, 0], sizes = [8, 128], strides = [1, 1]} : vector<128x128xf32> to vector<8x128xf32>
    %9 = arith.mulf %5, %5 : vector<8x128xf32>
    %10 = arith.mulf %6, %6 : vector<8x128xf32>
    %11 = arith.mulf %7, %7 : vector<8x128xf32>
    %12 = arith.mulf %8, %8 : vector<8x128xf32>
    %13 = vector.extract_strided_slice %2 {offsets = [32, 0], sizes = [8, 128], strides = [1, 1]} : vector<128x128xf32> to vector<8x128xf32>
    %14 = arith.addf %5, %13 : vector<8x128xf32>
    %15 = arith.mulf %13, %13 : vector<8x128xf32>
    %16 = arith.addf %9, %15 : vector<8x128xf32>
    %17 = vector.extract_strided_slice %2 {offsets = [40, 0], sizes = [8, 128], strides = [1, 1]} : vector<128x128xf32> to vector<8x128xf32>
    %18 = arith.addf %6, %17 : vector<8x128xf32>
    %19 = arith.mulf %17, %17 : vector<8x128xf32>
    %20 = arith.addf %10, %19 : vector<8x128xf32>
    %21 = vector.extract_strided_slice %2 {offsets = [48, 0], sizes = [8, 128], strides = [1, 1]} : vector<128x128xf32> to vector<8x128xf32>
    %22 = arith.addf %7, %21 : vector<8x128xf32>
    %23 = arith.mulf %21, %21 : vector<8x128xf32>
    %24 = arith.addf %11, %23 : vector<8x128xf32>
    %25 = vector.extract_strided_slice %2 {offsets = [56, 0], sizes = [8, 128], strides = [1, 1]} : vector<128x128xf32> to vector<8x128xf32>
    %26 = arith.addf %8, %25 : vector<8x128xf32>
    %27 = arith.mulf %25, %25 : vector<8x128xf32>
    %28 = arith.addf %12, %27 : vector<8x128xf32>
    %29 = vector.extract_strided_slice %2 {offsets = [64, 0], sizes = [8, 128], strides = [1, 1]} : vector<128x128xf32> to vector<8x128xf32>
    %30 = arith.addf %14, %29 : vector<8x128xf32>
    %31 = arith.mulf %29, %29 : vector<8x128xf32>
    %32 = arith.addf %16, %31 : vector<8x128xf32>
    %33 = vector.extract_strided_slice %2 {offsets = [72, 0], sizes = [8, 128], strides = [1, 1]} : vector<128x128xf32> to vector<8x128xf32>
    %34 = arith.addf %18, %33 : vector<8x128xf32>
    %35 = arith.mulf %33, %33 : vector<8x128xf32>
    %36 = arith.addf %20, %35 : vector<8x128xf32>
    %37 = vector.extract_strided_slice %2 {offsets = [80, 0], sizes = [8, 128], strides = [1, 1]} : vector<128x128xf32> to vector<8x128xf32>
    %38 = arith.addf %22, %37 : vector<8x128xf32>
    %39 = arith.mulf %37, %37 : vector<8x128xf32>
    %40 = arith.addf %24, %39 : vector<8x128xf32>
    %41 = vector.extract_strided_slice %2 {offsets = [88, 0], sizes = [8, 128], strides = [1, 1]} : vector<128x128xf32> to vector<8x128xf32>
    %42 = arith.addf %26, %41 : vector<8x128xf32>
    %43 = arith.mulf %41, %41 : vector<8x128xf32>
    %44 = arith.addf %28, %43 : vector<8x128xf32>
    %45 = vector.extract_strided_slice %2 {offsets = [96, 0], sizes = [8, 128], strides = [1, 1]} : vector<128x128xf32> to vector<8x128xf32>
    %46 = arith.addf %30, %45 : vector<8x128xf32>
    %47 = arith.mulf %45, %45 : vector<8x128xf32>
    %48 = arith.addf %32, %47 : vector<8x128xf32>
    %49 = vector.extract_strided_slice %2 {offsets = [104, 0], sizes = [8, 128], strides = [1, 1]} : vector<128x128xf32> to vector<8x128xf32>
    %50 = arith.addf %34, %49 : vector<8x128xf32>
    %51 = arith.mulf %49, %49 : vector<8x128xf32>
    %52 = arith.addf %36, %51 : vector<8x128xf32>
    %53 = vector.extract_strided_slice %2 {offsets = [112, 0], sizes = [8, 128], strides = [1, 1]} : vector<128x128xf32> to vector<8x128xf32>
    %54 = arith.addf %38, %53 : vector<8x128xf32>
    %55 = arith.mulf %53, %53 : vector<8x128xf32>
    %56 = arith.addf %40, %55 : vector<8x128xf32>
    %57 = vector.extract_strided_slice %2 {offsets = [120, 0], sizes = [8, 128], strides = [1, 1]} : vector<128x128xf32> to vector<8x128xf32>
    %58 = arith.addf %42, %57 : vector<8x128xf32>
    %59 = arith.mulf %57, %57 : vector<8x128xf32>
    %60 = arith.addf %44, %59 : vector<8x128xf32>
    %61 = arith.addf %46, %50 : vector<8x128xf32>
    %62 = arith.addf %48, %52 : vector<8x128xf32>
    %63 = arith.addf %61, %54 : vector<8x128xf32>
    %64 = arith.addf %62, %56 : vector<8x128xf32>
    %65 = arith.addf %63, %58 : vector<8x128xf32>
    %66 = arith.addf %64, %60 : vector<8x128xf32>
    %c0_5 = arith.constant 0 : index
    %c0_6 = arith.constant 0 : index
    %67 = vector.load %arg5[%c0_5, %c0_6] : memref<8x128xf32, #tpu.memory_space<vmem>>, vector<8x128xf32>
    tpu.vector_store %arg5[%c0_5, %c0_6], %65 {strides = array<i32>} : memref<8x128xf32, #tpu.memory_space<vmem>>, vector<8x128xf32>,
    %c0_7 = arith.constant 0 : index
    %c0_8 = arith.constant 0 : index
    %68 = vector.load %arg6[%c0_7, %c0_8] : memref<8x128xf32, #tpu.memory_space<vmem>>, vector<8x128xf32>
    tpu.vector_store %arg6[%c0_7, %c0_8], %66 {strides = array<i32>} : memref<8x128xf32, #tpu.memory_space<vmem>>, vector<8x128xf32>,
    return
  }
  func.func @transform_0(%arg0: i32, %arg1: i32) -> (i32, i32) {
    %c0_i32 = arith.constant 0 : i32
    %c0_i32_0 = arith.constant 0 : i32
    return %arg0, %c0_i32 : i32, i32
  }
  func.func @transform_1(%arg0: i32, %arg1: i32) -> (i32, i32) {
    %c0_i32 = arith.constant 0 : i32
    %c0_i32_0 = arith.constant 0 : i32
    return %c0_i32, %arg1 : i32, i32
  }
  func.func @transform_2(%arg0: i32, %arg1: i32) -> (i32, i32) {
    %c0_i32 = arith.constant 0 : i32
    return %arg0, %arg1 : i32, i32
  }
  func.func @transform_3(%arg0: i32, %arg1: i32) -> (i32, i32) {
    %c0_i32 = arith.constant 0 : i32
    return %arg0, %arg1 : i32, i32
  }
  func.func @transform_4(%arg0: i32, %arg1: i32) -> (i32, i32) {
    %c0_i32 = arith.constant 0 : i32
    return %arg0, %arg1 : i32, i32
  }
}

module attributes {stable_mosaic.version = 11 : i64} {
  func.func @_affine_act_kernel(%arg0: i32, %arg1: memref<128x128xbf16, #tpu.memory_space<vmem>>, %arg2: memref<1x128xf32, #tpu.memory_space<vmem>>, %arg3: memref<1x128xf32, #tpu.memory_space<vmem>>, %arg4: memref<128x128xbf16, #tpu.memory_space<vmem>>) attributes {dimension_semantics = [#tpu.dimension_semantics<parallel>], iteration_bounds = array<i64: 1>, scalar_prefetch = 0 : i64, scratch_operands = 0 : i64, tpu.core_type = #tpu.core_type<tc>, window_params = [{transform_indices = @transform_0, window_bounds = array<i64: 128, 128>}, {pipeline_mode = #tpu.pipeline_mode<synchronous>, transform_indices = @transform_1, window_bounds = array<i64: 1, 128>}, {pipeline_mode = #tpu.pipeline_mode<synchronous>, transform_indices = @transform_2, window_bounds = array<i64: 1, 128>}, {transform_indices = @transform_3, window_bounds = array<i64: 128, 128>}]} {
    %c0 = arith.constant 0 : index
    %c0_0 = arith.constant 0 : index
    %0 = vector.load %arg1[%c0, %c0_0] : memref<128x128xbf16, #tpu.memory_space<vmem>>, vector<128x128xbf16>
    %1 = arith.extf %0 : vector<128x128xbf16> to vector<128x128xf32>
    %c0_1 = arith.constant 0 : index
    %c0_2 = arith.constant 0 : index
    %2 = vector.load %arg2[%c0_1, %c0_2] : memref<1x128xf32, #tpu.memory_space<vmem>>, vector<1x128xf32>
    %3 = vector.broadcast %2 : vector<1x128xf32> to vector<128x128xf32>
    %4 = arith.mulf %1, %3 : vector<128x128xf32>
    %c0_3 = arith.constant 0 : index
    %c0_4 = arith.constant 0 : index
    %5 = vector.load %arg3[%c0_3, %c0_4] : memref<1x128xf32, #tpu.memory_space<vmem>>, vector<1x128xf32>
    %6 = vector.broadcast %5 : vector<1x128xf32> to vector<128x128xf32>
    %7 = arith.addf %4, %6 : vector<128x128xf32>
    %cst = arith.constant 0.000000e+00 : f32
    %8 = vector.broadcast %cst : f32 to vector<128x128xf32>
    %9 = arith.cmpf ogt, %7, %8 : vector<128x128xf32>
    %cst_5 = arith.constant 2.000000e-01 : f32
    %10 = vector.broadcast %cst_5 : f32 to vector<128x128xf32>
    %11 = arith.mulf %10, %7 : vector<128x128xf32>
    %12 = arith.select %9, %7, %11 : vector<128x128xi1>, vector<128x128xf32>
    %13 = arith.truncf %12 : vector<128x128xf32> to vector<128x128xbf16>
    %c0_6 = arith.constant 0 : index
    %c0_7 = arith.constant 0 : index
    %14 = vector.load %arg4[%c0_6, %c0_7] : memref<128x128xbf16, #tpu.memory_space<vmem>>, vector<128x128xbf16>
    tpu.vector_store %arg4[%c0_6, %c0_7], %13 {strides = array<i32>} : memref<128x128xbf16, #tpu.memory_space<vmem>>, vector<128x128xbf16>,
    return
  }
  func.func @transform_0(%arg0: i32) -> (i32, i32) {
    %c0_i32 = arith.constant 0 : i32
    %c0_i32_0 = arith.constant 0 : i32
    return %arg0, %c0_i32 : i32, i32
  }
  func.func @transform_1(%arg0: i32) -> (i32, i32) {
    %c0_i32 = arith.constant 0 : i32
    %c0_i32_0 = arith.constant 0 : i32
    %c0_i32_1 = arith.constant 0 : i32
    return %c0_i32, %c0_i32_0 : i32, i32
  }
  func.func @transform_2(%arg0: i32) -> (i32, i32) {
    %c0_i32 = arith.constant 0 : i32
    %c0_i32_0 = arith.constant 0 : i32
    %c0_i32_1 = arith.constant 0 : i32
    return %c0_i32, %c0_i32_0 : i32, i32
  }
  func.func @transform_3(%arg0: i32) -> (i32, i32) {
    %c0_i32 = arith.constant 0 : i32
    %c0_i32_0 = arith.constant 0 : i32
    return %arg0, %c0_i32 : i32, i32
  }
}

module attributes {stable_mosaic.version = 11 : i64} {
  func.func @kernel(%arg0: i32, %arg1: i32, %arg2: memref<32x512xbf16, #tpu.memory_space<vmem>>, %arg3: memref<512x128xbf16, #tpu.memory_space<vmem>>, %arg4: memref<32x128xbf16, #tpu.memory_space<vmem>>, %arg5: memref<8x128xf32, #tpu.memory_space<vmem>>, %arg6: memref<8x128xf32, #tpu.memory_space<vmem>>) attributes {dimension_semantics = [#tpu.dimension_semantics<parallel>, #tpu.dimension_semantics<parallel>], iteration_bounds = array<i64: 1, 1>, scalar_prefetch = 0 : i64, scratch_operands = 0 : i64, tpu.core_type = #tpu.core_type<tc>, window_params = [{transform_indices = @transform_0, window_bounds = array<i64: 32, 512>}, {transform_indices = @transform_1, window_bounds = array<i64: 512, 128>}, {transform_indices = @transform_2, window_bounds = array<i64: 32, 128>}, {transform_indices = @transform_3, window_bounds = array<i64: 8, 128>}, {transform_indices = @transform_4, window_bounds = array<i64: 8, 128>}]} {
    %c0 = arith.constant 0 : index
    %c0_0 = arith.constant 0 : index
    %0 = vector.load %arg2[%c0, %c0_0] : memref<32x512xbf16, #tpu.memory_space<vmem>>, vector<32x512xbf16>
    %c0_1 = arith.constant 0 : index
    %c0_2 = arith.constant 0 : index
    %1 = vector.load %arg3[%c0_1, %c0_2] : memref<512x128xbf16, #tpu.memory_space<vmem>>, vector<512x128xbf16>
    %cst = arith.constant dense<0.000000e+00> : vector<32x128xf32>
    %2 = tpu.matmul %0, %1, %cst {dimension_numbers = #tpu.dot_dimension_numbers<[1], [0], [0], [1], [0, 0, 1, 1], [], []>} : vector<32x512xbf16>, vector<512x128xbf16>, vector<32x128xf32> -> vector<32x128xf32>
    %3 = arith.truncf %2 : vector<32x128xf32> to vector<32x128xbf16>
    %c0_3 = arith.constant 0 : index
    %c0_4 = arith.constant 0 : index
    %4 = vector.load %arg4[%c0_3, %c0_4] : memref<32x128xbf16, #tpu.memory_space<vmem>>, vector<32x128xbf16>
    tpu.vector_store %arg4[%c0_3, %c0_4], %3 {strides = array<i32>} : memref<32x128xbf16, #tpu.memory_space<vmem>>, vector<32x128xbf16>,
    %5 = vector.extract_strided_slice %2 {offsets = [0, 0], sizes = [8, 128], strides = [1, 1]} : vector<32x128xf32> to vector<8x128xf32>
    %6 = vector.extract_strided_slice %2 {offsets = [8, 0], sizes = [8, 128], strides = [1, 1]} : vector<32x128xf32> to vector<8x128xf32>
    %7 = vector.extract_strided_slice %2 {offsets = [16, 0], sizes = [8, 128], strides = [1, 1]} : vector<32x128xf32> to vector<8x128xf32>
    %8 = vector.extract_strided_slice %2 {offsets = [24, 0], sizes = [8, 128], strides = [1, 1]} : vector<32x128xf32> to vector<8x128xf32>
    %9 = arith.mulf %5, %5 : vector<8x128xf32>
    %10 = arith.mulf %6, %6 : vector<8x128xf32>
    %11 = arith.mulf %7, %7 : vector<8x128xf32>
    %12 = arith.mulf %8, %8 : vector<8x128xf32>
    %13 = arith.addf %5, %6 : vector<8x128xf32>
    %14 = arith.addf %9, %10 : vector<8x128xf32>
    %15 = arith.addf %13, %7 : vector<8x128xf32>
    %16 = arith.addf %14, %11 : vector<8x128xf32>
    %17 = arith.addf %15, %8 : vector<8x128xf32>
    %18 = arith.addf %16, %12 : vector<8x128xf32>
    %c0_5 = arith.constant 0 : index
    %c0_6 = arith.constant 0 : index
    %19 = vector.load %arg5[%c0_5, %c0_6] : memref<8x128xf32, #tpu.memory_space<vmem>>, vector<8x128xf32>
    tpu.vector_store %arg5[%c0_5, %c0_6], %17 {strides = array<i32>} : memref<8x128xf32, #tpu.memory_space<vmem>>, vector<8x128xf32>,
    %c0_7 = arith.constant 0 : index
    %c0_8 = arith.constant 0 : index
    %20 = vector.load %arg6[%c0_7, %c0_8] : memref<8x128xf32, #tpu.memory_space<vmem>>, vector<8x128xf32>
    tpu.vector_store %arg6[%c0_7, %c0_8], %18 {strides = array<i32>} : memref<8x128xf32, #tpu.memory_space<vmem>>, vector<8x128xf32>,
    return
  }
  func.func @transform_0(%arg0: i32, %arg1: i32) -> (i32, i32) {
    %c0_i32 = arith.constant 0 : i32
    %c0_i32_0 = arith.constant 0 : i32
    return %arg0, %c0_i32 : i32, i32
  }
  func.func @transform_1(%arg0: i32, %arg1: i32) -> (i32, i32) {
    %c0_i32 = arith.constant 0 : i32
    %c0_i32_0 = arith.constant 0 : i32
    return %c0_i32, %arg1 : i32, i32
  }
  func.func @transform_2(%arg0: i32, %arg1: i32) -> (i32, i32) {
    %c0_i32 = arith.constant 0 : i32
    return %arg0, %arg1 : i32, i32
  }
  func.func @transform_3(%arg0: i32, %arg1: i32) -> (i32, i32) {
    %c0_i32 = arith.constant 0 : i32
    return %arg0, %arg1 : i32, i32
  }
  func.func @transform_4(%arg0: i32, %arg1: i32) -> (i32, i32) {
    %c0_i32 = arith.constant 0 : i32
    return %arg0, %arg1 : i32, i32
  }
}

module attributes {stable_mosaic.version = 11 : i64} {
  func.func @_affine_act_kernel(%arg0: i32, %arg1: memref<32x128xbf16, #tpu.memory_space<vmem>>, %arg2: memref<1x128xf32, #tpu.memory_space<vmem>>, %arg3: memref<1x128xf32, #tpu.memory_space<vmem>>, %arg4: memref<32x128xbf16, #tpu.memory_space<vmem>>) attributes {dimension_semantics = [#tpu.dimension_semantics<parallel>], iteration_bounds = array<i64: 1>, scalar_prefetch = 0 : i64, scratch_operands = 0 : i64, tpu.core_type = #tpu.core_type<tc>, window_params = [{transform_indices = @transform_0, window_bounds = array<i64: 32, 128>}, {pipeline_mode = #tpu.pipeline_mode<synchronous>, transform_indices = @transform_1, window_bounds = array<i64: 1, 128>}, {pipeline_mode = #tpu.pipeline_mode<synchronous>, transform_indices = @transform_2, window_bounds = array<i64: 1, 128>}, {transform_indices = @transform_3, window_bounds = array<i64: 32, 128>}]} {
    %c0 = arith.constant 0 : index
    %c0_0 = arith.constant 0 : index
    %0 = vector.load %arg1[%c0, %c0_0] : memref<32x128xbf16, #tpu.memory_space<vmem>>, vector<32x128xbf16>
    %1 = arith.extf %0 : vector<32x128xbf16> to vector<32x128xf32>
    %c0_1 = arith.constant 0 : index
    %c0_2 = arith.constant 0 : index
    %2 = vector.load %arg2[%c0_1, %c0_2] : memref<1x128xf32, #tpu.memory_space<vmem>>, vector<1x128xf32>
    %3 = vector.broadcast %2 : vector<1x128xf32> to vector<32x128xf32>
    %4 = arith.mulf %1, %3 : vector<32x128xf32>
    %c0_3 = arith.constant 0 : index
    %c0_4 = arith.constant 0 : index
    %5 = vector.load %arg3[%c0_3, %c0_4] : memref<1x128xf32, #tpu.memory_space<vmem>>, vector<1x128xf32>
    %6 = vector.broadcast %5 : vector<1x128xf32> to vector<32x128xf32>
    %7 = arith.addf %4, %6 : vector<32x128xf32>
    %cst = arith.constant 0.000000e+00 : f32
    %8 = vector.broadcast %cst : f32 to vector<32x128xf32>
    %9 = arith.cmpf ogt, %7, %8 : vector<32x128xf32>
    %cst_5 = arith.constant 2.000000e-01 : f32
    %10 = vector.broadcast %cst_5 : f32 to vector<32x128xf32>
    %11 = arith.mulf %10, %7 : vector<32x128xf32>
    %12 = arith.select %9, %7, %11 : vector<32x128xi1>, vector<32x128xf32>
    %13 = arith.truncf %12 : vector<32x128xf32> to vector<32x128xbf16>
    %c0_6 = arith.constant 0 : index
    %c0_7 = arith.constant 0 : index
    %14 = vector.load %arg4[%c0_6, %c0_7] : memref<32x128xbf16, #tpu.memory_space<vmem>>, vector<32x128xbf16>
    tpu.vector_store %arg4[%c0_6, %c0_7], %13 {strides = array<i32>} : memref<32x128xbf16, #tpu.memory_space<vmem>>, vector<32x128xbf16>,
    return
  }
  func.func @transform_0(%arg0: i32) -> (i32, i32) {
    %c0_i32 = arith.constant 0 : i32
    %c0_i32_0 = arith.constant 0 : i32
    return %arg0, %c0_i32 : i32, i32
  }
  func.func @transform_1(%arg0: i32) -> (i32, i32) {
    %c0_i32 = arith.constant 0 : i32
    %c0_i32_0 = arith.constant 0 : i32
    %c0_i32_1 = arith.constant 0 : i32
    return %c0_i32, %c0_i32_0 : i32, i32
  }
  func.func @transform_2(%arg0: i32) -> (i32, i32) {
    %c0_i32 = arith.constant 0 : i32
    %c0_i32_0 = arith.constant 0 : i32
    %c0_i32_1 = arith.constant 0 : i32
    return %c0_i32, %c0_i32_0 : i32, i32
  }
  func.func @transform_3(%arg0: i32) -> (i32, i32) {
    %c0_i32 = arith.constant 0 : i32
    %c0_i32_0 = arith.constant 0 : i32
    return %arg0, %c0_i32 : i32, i32
  }
}

module attributes {stable_mosaic.version = 11 : i64} {
  func.func @kernel(%arg0: i32, %arg1: i32, %arg2: memref<8x1024xbf16, #tpu.memory_space<vmem>>, %arg3: memref<1024x128xbf16, #tpu.memory_space<vmem>>, %arg4: memref<8x128xbf16, #tpu.memory_space<vmem>>) attributes {dimension_semantics = [#tpu.dimension_semantics<parallel>, #tpu.dimension_semantics<parallel>], iteration_bounds = array<i64: 1, 1>, scalar_prefetch = 0 : i64, scratch_operands = 0 : i64, tpu.core_type = #tpu.core_type<tc>, window_params = [{transform_indices = @transform_0, window_bounds = array<i64: 8, 1024>}, {transform_indices = @transform_1, window_bounds = array<i64: 1024, 128>}, {transform_indices = @transform_2, window_bounds = array<i64: 8, 128>}]} {
    %c0 = arith.constant 0 : index
    %c0_0 = arith.constant 0 : index
    %0 = vector.load %arg2[%c0, %c0_0] : memref<8x1024xbf16, #tpu.memory_space<vmem>>, vector<8x1024xbf16>
    %c0_1 = arith.constant 0 : index
    %c0_2 = arith.constant 0 : index
    %1 = vector.load %arg3[%c0_1, %c0_2] : memref<1024x128xbf16, #tpu.memory_space<vmem>>, vector<1024x128xbf16>
    %cst = arith.constant dense<0.000000e+00> : vector<8x128xf32>
    %2 = tpu.matmul %0, %1, %cst {dimension_numbers = #tpu.dot_dimension_numbers<[1], [0], [0], [1], [0, 0, 1, 1], [], []>} : vector<8x1024xbf16>, vector<1024x128xbf16>, vector<8x128xf32> -> vector<8x128xf32>
    %3 = arith.truncf %2 : vector<8x128xf32> to vector<8x128xbf16>
    %c0_3 = arith.constant 0 : index
    %c0_4 = arith.constant 0 : index
    %4 = vector.load %arg4[%c0_3, %c0_4] : memref<8x128xbf16, #tpu.memory_space<vmem>>, vector<8x128xbf16>
    tpu.vector_store %arg4[%c0_3, %c0_4], %3 {strides = array<i32>} : memref<8x128xbf16, #tpu.memory_space<vmem>>, vector<8x128xbf16>,
    return
  }
  func.func @transform_0(%arg0: i32, %arg1: i32) -> (i32, i32) {
    %c0_i32 = arith.constant 0 : i32
    %c0_i32_0 = arith.constant 0 : i32
    return %arg0, %c0_i32 : i32, i32
  }
  func.func @transform_1(%arg0: i32, %arg1: i32) -> (i32, i32) {
    %c0_i32 = arith.constant 0 : i32
    %c0_i32_0 = arith.constant 0 : i32
    return %c0_i32, %arg1 : i32, i32
  }
  func.func @transform_2(%arg0: i32, %arg1: i32) -> (i32, i32) {
    %c0_i32 = arith.constant 0 : i32
    return %arg0, %arg1 : i32, i32
  }
}

module attributes {stable_mosaic.version = 11 : i64} {
  func.func @kernel(%arg0: i32, %arg1: i32, %arg2: memref<8x128xbf16, #tpu.memory_space<vmem>>, %arg3: memref<128x128xbf16, #tpu.memory_space<vmem>>, %arg4: memref<1x128xf32, #tpu.memory_space<vmem>>, %arg5: memref<8x128xf32, #tpu.memory_space<vmem>>) attributes {dimension_semantics = [#tpu.dimension_semantics<parallel>, #tpu.dimension_semantics<parallel>], iteration_bounds = array<i64: 1, 1>, scalar_prefetch = 0 : i64, scratch_operands = 0 : i64, tpu.core_type = #tpu.core_type<tc>, window_params = [{transform_indices = @transform_0, window_bounds = array<i64: 8, 128>}, {transform_indices = @transform_1, window_bounds = array<i64: 128, 128>}, {transform_indices = @transform_2, window_bounds = array<i64: 1, 128>}, {transform_indices = @transform_3, window_bounds = array<i64: 8, 128>}]} {
    %c0 = arith.constant 0 : index
    %c0_0 = arith.constant 0 : index
    %0 = vector.load %arg2[%c0, %c0_0] : memref<8x128xbf16, #tpu.memory_space<vmem>>, vector<8x128xbf16>
    %c0_1 = arith.constant 0 : index
    %c0_2 = arith.constant 0 : index
    %1 = vector.load %arg3[%c0_1, %c0_2] : memref<128x128xbf16, #tpu.memory_space<vmem>>, vector<128x128xbf16>
    %cst = arith.constant dense<0.000000e+00> : vector<8x128xf32>
    %2 = tpu.matmul %0, %1, %cst {dimension_numbers = #tpu.dot_dimension_numbers<[1], [0], [0], [1], [0, 0, 1, 1], [], []>} : vector<8x128xbf16>, vector<128x128xbf16>, vector<8x128xf32> -> vector<8x128xf32>
    %c0_3 = arith.constant 0 : index
    %c0_4 = arith.constant 0 : index
    %3 = vector.load %arg4[%c0_3, %c0_4] : memref<1x128xf32, #tpu.memory_space<vmem>>, vector<1x128xf32>
    %4 = vector.broadcast %3 : vector<1x128xf32> to vector<8x128xf32>
    %5 = arith.addf %2, %4 : vector<8x128xf32>
    %c0_5 = arith.constant 0 : index
    %c0_6 = arith.constant 0 : index
    %6 = vector.load %arg5[%c0_5, %c0_6] : memref<8x128xf32, #tpu.memory_space<vmem>>, vector<8x128xf32>
    tpu.vector_store %arg5[%c0_5, %c0_6], %5 {strides = array<i32>} : memref<8x128xf32, #tpu.memory_space<vmem>>, vector<8x128xf32>,
    return
  }
  func.func @transform_0(%arg0: i32, %arg1: i32) -> (i32, i32) {
    %c0_i32 = arith.constant 0 : i32
    %c0_i32_0 = arith.constant 0 : i32
    return %arg0, %c0_i32 : i32, i32
  }
  func.func @transform_1(%arg0: i32, %arg1: i32) -> (i32, i32) {
    %c0_i32 = arith.constant 0 : i32
    %c0_i32_0 = arith.constant 0 : i32
    return %c0_i32, %arg1 : i32, i32
  }
  func.func @transform_2(%arg0: i32, %arg1: i32) -> (i32, i32) {
    %c0_i32 = arith.constant 0 : i32
    %c0_i32_0 = arith.constant 0 : i32
    return %c0_i32, %arg1 : i32, i32
  }
  func.func @transform_3(%arg0: i32, %arg1: i32) -> (i32, i32) {
    %c0_i32 = arith.constant 0 : i32
    return %arg0, %arg1 : i32, i32
  }
}

</mosaic_0001>

<bundles_post_ra>
// kernel: tile.43
= control target key start
LH: loop header
LB: loop body
LE: loop exit
PB: predicated region body
PF: predicated region fallthrough
CT: control target
= control target key end

     0   :  { %s28_s0 = inlined_call_operand.vmem [shape: f32[64], index: 0, kind: input, shape index: {}]   ;;  %s29_s1 = inlined_call_operand.vmem [shape: f32[16,64], index: 1, kind: output, shape index: {}]  }
   0x1   :  { %v4_v0 = vld [vmem:[%s28_s0] ss:$0 sm:$0xff] }
   0x2   :  { %5 = vst [vmem:[%s29_s1] sm:$0xff] %v4_v0 }
   0x3   :  { %8 = vst [vmem:[%s29_s1 + $0x8] sm:$0xff] %v4_v0 }

// kernel: cond_dcgan_forward.19
= control target key start
LH: loop header
LB: loop body
LE: loop exit
PB: predicated region body
PF: predicated region fallthrough
CT: control target
= control target key end

     0   :  { %s196_s1 = inlined_call_operand.vmem [shape: bf16[128,128], index: 1, kind: input, shape index: {}]   ;;  %s197_s2 = inlined_call_operand.vmem [shape: f32[1,128], index: 2, kind: input, shape index: {}]   ;;  %s198_s0 = inlined_call_operand.vmem [shape: bf16[8,128], index: 0, kind: input, shape index: {}]   ;;  %s199_s3 = inlined_call_operand.vmem [shape: bf16[8,128], index: 3, kind: output, shape index: {}]  }
   0x1   :  { %v141_v0 = vld [vmem:[%s196_s1 + $0x38] sm:$0xff]  ;;  %v140_v1 = vld [vmem:[%s196_s1 + $0x30] sm:$0xff]  ;;  %v139_v2 = vld [vmem:[%s196_s1 + $0x28] sm:$0xff] }
   0x2   :  { %83 = vmatpush.bf16.msra.mxu0 %v141_v0  ;;  %v138_v3 = vld [vmem:[%s196_s1 + $0x20] sm:$0xff]  ;;  %v137_v4 = vld [vmem:[%s196_s1 + $0x18] sm:$0xff]  ;;  %v136_v5 = vld [vmem:[%s196_s1 + $0x10] sm:$0xff] }
   0x3   :  { %v135_v6 = vld [vmem:[%s196_s1 + $0x8] sm:$0xff]  ;;  %v134_v7 = vld [vmem:[%s196_s1] sm:$0xff] }
   0x4   :  { %v14_v8 = vld [vmem:[%s198_s0] sm:$0xf] }
   0x5   :  { %v142_v9 = vld [vmem:[%s197_s2] ss:$0 sm:$0xff] }
   0x6   :  { %84 = vmatpush.bf16.msra.mxu0 %v140_v1 }
   0xa   :  { %85 = vmatpush.bf16.msra.mxu0 %v139_v2 }
   0xe   :  { %86 = vmatpush.bf16.msra.mxu0 %v138_v3 }
  0x12   :  { %87 = vmatpush.bf16.msra.mxu0 %v137_v4 }
  0x16   :  { %88 = vmatpush.bf16.msra.mxu0 %v136_v5 }
  0x1a   :  { %89 = vmatpush.bf16.msra.mxu0 %v135_v6 }
  0x1e   :  { %90 = vmatpush.bf16.msra.mxu0 %v134_v7 }
  0x21   :  { %91 = vmatmul.bf16.vlgmr.msra.gmra.mxu0 %v14_v8 }
  0x9e   :  { %v92_v10 = vpop.f32.mrf.mxu0 }
  0x9f   :  { %v93_v11 = vadd.f32 %v142_v9, %v92_v10 }
  0xa1   :  { %v96_v12 = vpack.c.bf16 %v93_v11, %v93_v11 }
  0xa3   :  { %97 = vst [vmem:[%s199_s3] sm:$0xf] %v96_v12 }
  0xa6   :  { %v94_v13 = vpop.f32.mrf.mxu0 }

// kernel: cond_dcgan_forward.20
= control target key start
LH: loop header
LB: loop body
LE: loop exit
PB: predicated region body
PF: predicated region fallthrough
CT: control target
= control target key end

     0   :  { %s1115_s15 = smov 0   ;;  %s1117_s16 = smov 0   ;;  %s1323_s0 = inlined_call_operand.vmem [shape: bf16[8,128], index: 0, kind: input, shape index: {}]   ;;  %s1324_s1 = inlined_call_operand.vmem [shape: bf16[128,1024], index: 1, kind: input, shape index: {}]   ;;  %s1325_s2 = inlined_call_operand.vmem [shape: bf16[8,1024], index: 2, kind: output, shape index: {0}]   ;;  %s1326_s3 = inlined_call_operand.vmem [shape: f32[8,1024], index: 3, kind: output, shape index: {1}]   ;;  %s1327_s4 = inlined_call_operand.vmem [shape: f32[8,1024], index: 4, kind: output, shape index: {2}]  }
   0x1   :  { %s1119_s17 = smov 0   ;;  %s1121_s18 = smov 0  }
   0x2   :  { %s1123_s19 = smov 0  }
   0x3 LB: > { %s24_s20 = sadd.s32 1, %s1084_s18  ;;  %p67_p1 = scmp.ne.s32.totalorder %s1076_s16, %s1072_s15  ;;  %s1088_s19 = sphi %s1123_s19, %s15_s19   ;;  %s1084_s18 = sphi %s1121_s18, %s1331_s18   ;;  %s1080_s17 = sphi %s1119_s17, %s1330_s17   ;;  %s1076_s16 = sphi %s1117_s16, %s1329_s16   ;;  %s1072_s15 = sphi %s1115_s15, %s1328_s15  }
   0x4   : > { %p25_p0 = scmp.ge.s32.totalorder %s24_s20, 2  ;;  %p68_p2 = scmp.eq.s32.totalorder %s1088_s19, 0 }
   0x5   : > { %s60_s22 = sadd.s32 1, %s1076_s16  ;;  %p835_p5 = scmp.ge.s32.totalorder %s1088_s19, 2 }
   0x6   : > { %s1333_s20 = smov (%p25_p0, %s24_s20), 0  ;;  %p69_p3 = por %p68_p2, %p67_p1 }
   0x7   : > { %s57_s21 = ssub.s32 %s1084_s18, %s1333_s20  ;;  %184 = sbr.rel (%p835_p5) target bundleno = 48 (0x30), region = 20 }
   0x8   : > { %p58_p4 = scmp.eq.s32.totalorder %s57_s21, 0 }
   0xa   : > { %s1150_s23 = scalar_select %p58_p4, %s1076_s16, %s60_s22  }
   0xc   : > { %187 = sbr.rel (!%p69_p3) target bundleno = 48 (0x30), region = 24  ;;  %s189_s24 = sand.u32 (%p69_p3), 1, %s1076_s16  }
   0xd   : > { %s977_s25 = sshll.u32 (%p69_p3), %s1084_s18, 4  ;;  %s836_s26 = sshll.u32 (%p69_p3), %s189_s24, 8 }
   0xe   : > { %s1158_s29 = scalar_lea.vmem (%p69_p3), %s1324_s1, %s977_s25  ;;  %s1163_s30 = scalar_lea.vmem (%p69_p3), [#allocation2], %s836_s26 }
   0xf   : > { %v207_v0 = vld [vmem:[%s1158_s29] sm:$0xff] (%p69_p3)  ;;  %v209_v1 = vld [vmem:[%s1158_s29 + $0x8] sm:$0xff] (%p69_p3) }
  0x10   : > { %v211_v2 = vld [vmem:[%s1158_s29 + $0x20] sm:$0xff] (%p69_p3)  ;;  %208 = vst [vmem:[%s1163_s30] sm:$0xff] (%p69_p3), %v207_v0  ;;  %v213_v3 = vld [vmem:[%s1158_s29 + $0x28] sm:$0xff] (%p69_p3) }
  0x11   : > { %210 = vst [vmem:[%s1163_s30 + $0x8] sm:$0xff] %v209_v1  ;;  %v215_v4 = vld [vmem:[%s1158_s29 + $0x40] sm:$0xff]  ;;  %v217_v5 = vld [vmem:[%s1158_s29 + $0x48] sm:$0xff] }
  0x12   : > { %212 = vst [vmem:[%s1163_s30 + $0x10] sm:$0xff] %v211_v2  ;;  %v219_v6 = vld [vmem:[%s1158_s29 + $0x60] sm:$0xff]  ;;  %v221_v7 = vld [vmem:[%s1158_s29 + $0x68] sm:$0xff] }
  0x13   : > { %214 = vst [vmem:[%s1163_s30 + $0x18] sm:$0xff] %v213_v3  ;;  %v223_v8 = vld [vmem:[%s1158_s29 + $0x80] sm:$0xff]  ;;  %v225_v9 = vld [vmem:[%s1158_s29 + $0x88] sm:$0xff] }
  0x14   : > { %216 = vst [vmem:[%s1163_s30 + $0x20] sm:$0xff] %v215_v4  ;;  %v227_v10 = vld [vmem:[%s1158_s29 + $0xa0] sm:$0xff]  ;;  %v229_v11 = vld [vmem:[%s1158_s29 + $0xa8] sm:$0xff] }
  0x15   : > { %218 = vst [vmem:[%s1163_s30 + $0x28] sm:$0xff] %v217_v5  ;;  %v231_v12 = vld [vmem:[%s1158_s29 + $0xc0] sm:$0xff]  ;;  %v233_v13 = vld [vmem:[%s1158_s29 + $0xc8] sm:$0xff] }
  0x16   : > { %220 = vst [vmem:[%s1163_s30 + $0x30] sm:$0xff] %v219_v6  ;;  %v235_v14 = vld [vmem:[%s1158_s29 + $0xe0] sm:$0xff]  ;;  %v237_v15 = vld [vmem:[%s1158_s29 + $0xe8] sm:$0xff] }
  0x17   : > { %222 = vst [vmem:[%s1163_s30 + $0x38] sm:$0xff] %v221_v7  ;;  %v239_v16 = vld [vmem:[%s1158_s29 + $0x100] sm:$0xff]  ;;  %v241_v17 = vld [vmem:[%s1158_s29 + $0x108] sm:$0xff] }
  0x18   : > { %224 = vst [vmem:[%s1163_s30 + $0x40] sm:$0xff] %v223_v8  ;;  %v243_v18 = vld [vmem:[%s1158_s29 + $0x120] sm:$0xff]  ;;  %v245_v19 = vld [vmem:[%s1158_s29 + $0x128] sm:$0xff] }
  0x19   : > { %226 = vst [vmem:[%s1163_s30 + $0x48] sm:$0xff] %v225_v9  ;;  %v247_v20 = vld [vmem:[%s1158_s29 + $0x140] sm:$0xff]  ;;  %v249_v21 = vld [vmem:[%s1158_s29 + $0x148] sm:$0xff] }
  0x1a   : > { %228 = vst [vmem:[%s1163_s30 + $0x50] sm:$0xff] %v227_v10  ;;  %v251_v22 = vld [vmem:[%s1158_s29 + $0x160] sm:$0xff]  ;;  %v253_v23 = vld [vmem:[%s1158_s29 + $0x168] sm:$0xff] }
  0x1b   : > { %230 = vst [vmem:[%s1163_s30 + $0x58] sm:$0xff] %v229_v11  ;;  %v255_v24 = vld [vmem:[%s1158_s29 + $0x180] sm:$0xff]  ;;  %v257_v25 = vld [vmem:[%s1158_s29 + $0x188] sm:$0xff] }
  0x1c   : > { %232 = vst [vmem:[%s1163_s30 + $0x60] sm:$0xff] %v231_v12  ;;  %v259_v26 = vld [vmem:[%s1158_s29 + $0x1a0] sm:$0xff]  ;;  %v261_v27 = vld [vmem:[%s1158_s29 + $0x1a8] sm:$0xff] }
  0x1d   : > { %234 = vst [vmem:[%s1163_s30 + $0x68] sm:$0xff] %v233_v13  ;;  %v263_v28 = vld [vmem:[%s1158_s29 + $0x1c0] sm:$0xff]  ;;  %v265_v29 = vld [vmem:[%s1158_s29 + $0x1c8] sm:$0xff] }
  0x1e   : > { %236 = vst [vmem:[%s1163_s30 + $0x70] sm:$0xff] %v235_v14  ;;  %v267_v30 = vld [vmem:[%s1158_s29 + $0x1e0] sm:$0xff]  ;;  %v269_v31 = vld [vmem:[%s1158_s29 + $0x1e8] sm:$0xff] }
  0x1f   : > { %238 = vst [vmem:[%s1163_s30 + $0x78] sm:$0xff] %v237_v15 }
  0x20   : > { %240 = vst [vmem:[%s1163_s30 + $0x80] sm:$0xff] %v239_v16 }
  0x21   : > { %242 = vst [vmem:[%s1163_s30 + $0x88] sm:$0xff] %v241_v17 }
  0x22   : > { %244 = vst [vmem:[%s1163_s30 + $0x90] sm:$0xff] %v243_v18 }
  0x23   : > { %246 = vst [vmem:[%s1163_s30 + $0x98] sm:$0xff] %v245_v19 }
  0x24   : > { %248 = vst [vmem:[%s1163_s30 + $0xa0] sm:$0xff] %v247_v20 }
  0x25   : > { %250 = vst [vmem:[%s1163_s30 + $0xa8] sm:$0xff] %v249_v21 }
  0x26   : > { %252 = vst [vmem:[%s1163_s30 + $0xb0] sm:$0xff] %v251_v22 }
  0x27   : > { %254 = vst [vmem:[%s1163_s30 + $0xb8] sm:$0xff] %v253_v23 }
  0x28   : > { %256 = vst [vmem:[%s1163_s30 + $0xc0] sm:$0xff] %v255_v24 }
  0x29   : > { %258 = vst [vmem:[%s1163_s30 + $0xc8] sm:$0xff] %v257_v25 }
  0x2a   : > { %260 = vst [vmem:[%s1163_s30 + $0xd0] sm:$0xff] %v259_v26 }
  0x2b   : > { %262 = vst [vmem:[%s1163_s30 + $0xd8] sm:$0xff] %v261_v27 }
  0x2c   : > { %264 = vst [vmem:[%s1163_s30 + $0xe0] sm:$0xff] %v263_v28 }
  0x2d   : > { %266 = vst [vmem:[%s1163_s30 + $0xe8] sm:$0xff] %v265_v29 }
  0x2e   : > { %268 = vst [vmem:[%s1163_s30 + $0xf0] sm:$0xff] %v267_v30 }
  0x2f   : > { %270 = vst [vmem:[%s1163_s30 + $0xf8] sm:$0xff] %v269_v31 }
  0x30 PF: > { %p839_p6 = scmp.ge.s32.totalorder %s1088_s19, 1  ;;  %p275_p7 = scmp.lt.s32.totalorder %s1088_s19, 3 }
  0x32   : > { %p276_p8 = pnand %p839_p6, %p275_p7 }
  0x33   : > { %s282_s5 = sand.u32 (!%p276_p8), 1, %s1072_s15   ;;  %s841_s10 = sshll.u32 (!%p276_p8), %s1080_s17, 2 }
  0x34   : > { %279 = sbr.rel (%p276_p8) target bundleno = 233 (0xe9), region = 47  ;;  %s840_s6 = sshll.u32 (!%p276_p8), %s282_s5, 8 }
  0x35   : > { %s1229_s7 = scalar_lea.vmem (!%p276_p8), [#allocation2], %s840_s6  ;;  %p341_p9 = scmp.lt.s32.totalorder (!%p276_p8), %s841_s10, 7 }
  0x39   : > { %v961_v32 = vld [vmem:[%s1229_s7 + $0xe0] sm:$0xf]  ;;  %v1008_v33 = vld [vmem:[%s1229_s7 + $0xec] sm:$0xf0]  ;;  %v1006_v34 = vld [vmem:[%s1229_s7 + $0xe4] sm:$0xf] }
  0x3a   : > { %v962_v35 = vor.u32 %v1008_v33, %v961_v32  ;;  %v963_v36 = vld [vmem:[%s1229_s7 + $0xf0] sm:$0xf0]  ;;  %v969_v37 = vld [vmem:[%s1229_s7 + $0xe8] sm:$0xf]  ;;  %v1009_v38 = vld [vmem:[%s1229_s7 + $0xf4] sm:$0xf0] }
  0x3b   : > { %v966_v39 = vor.u32 %v1006_v34, %v963_v36  ;;  %v970_v40 = vor.u32 %v1009_v38, %v969_v37  ;;  %v1007_v41 = vld [vmem:[%s1229_s7 + $0xec] sm:$0xf]  ;;  %v971_v42 = vld [vmem:[%s1229_s7 + $0xf8] sm:$0xf0]  ;;  %v945_v43 = vld [vmem:[%s1229_s7 + $0xc0] sm:$0xf] }
  0x3c   : > { %561 = vmatpush.bf16.msra.mxu0 %v962_v35  ;;  %v974_v44 = vor.u32 %v1007_v41, %v971_v42  ;;  %v1004_v45 = vld [vmem:[%s1229_s7 + $0xcc] sm:$0xf0]  ;;  %v1002_v46 = vld [vmem:[%s1229_s7 + $0xc4] sm:$0xf]  ;;  %v947_v47 = vld [vmem:[%s1229_s7 + $0xd0] sm:$0xf0] }
  0x3d   : > { %574 = vmatpush.bf16.msra.mxu1 %v966_v39  ;;  %587 = vmatpush.bf16.msra.mxu2 %v970_v40  ;;  %v946_v48 = vor.u32 %v1004_v45, %v945_v43  ;;  %v950_v49 = vor.u32 %v1002_v46, %v947_v47  ;;  %v953_v50 = vld [vmem:[%s1229_s7 + $0xc8] sm:$0xf]  ;;  %v1005_v51 = vld [vmem:[%s1229_s7 + $0xd4] sm:$0xf0]  ;;  %v1003_v52 = vld [vmem:[%s1229_s7 + $0xcc] sm:$0xf] }
  0x3e   : > { %600 = vmatpush.bf16.msra.mxu3 %v974_v44  ;;  %v954_v53 = vor.u32 %v1005_v51, %v953_v50  ;;  %v955_v54 = vld [vmem:[%s1229_s7 + $0xd8] sm:$0xf0]  ;;  %v929_v55 = vld [vmem:[%s1229_s7 + $0xa0] sm:$0xf]  ;;  %v1000_v56 = vld [vmem:[%s1229_s7 + $0xac] sm:$0xf0] }
  0x3f   : > { %v958_v57 = vor.u32 %v1003_v52, %v955_v54  ;;  %v998_v58 = vld [vmem:[%s1229_s7 + $0xa4] sm:$0xf]  ;;  %v931_v59 = vld [vmem:[%s1229_s7 + $0xb0] sm:$0xf0]  ;;  %v937_v60 = vld [vmem:[%s1229_s7 + $0xa8] sm:$0xf]  ;;  %v930_v61 = vor.u32 %v1000_v56, %v929_v55 }
  0x40   : > { %562 = vmatpush.bf16.msra.mxu0 %v946_v48  ;;  %v1001_v62 = vld [vmem:[%s1229_s7 + $0xb4] sm:$0xf0]  ;;  %v999_v63 = vld [vmem:[%s1229_s7 + $0xac] sm:$0xf]  ;;  %v939_v0 = vld [vmem:[%s1229_s7 + $0xb8] sm:$0xf0]  ;;  %v934_v1 = vor.u32 %v998_v58, %v931_v59 }
  0x41   : > { %575 = vmatpush.bf16.msra.mxu1 %v950_v49  ;;  %588 = vmatpush.bf16.msra.mxu2 %v954_v53  ;;  %v938_v2 = vor.u32 %v1001_v62, %v937_v60  ;;  %v913_v3 = vld [vmem:[%s1229_s7 + $0x80] sm:$0xf]  ;;  %v996_v4 = vld [vmem:[%s1229_s7 + $0x8c] sm:$0xf0]  ;;  %v994_v5 = vld [vmem:[%s1229_s7 + $0x84] sm:$0xf]  ;;  %v942_v6 = vor.u32 %v999_v63, %v939_v0 }
  0x42   : > { %601 = vmatpush.bf16.msra.mxu3 %v958_v57  ;;  %v915_v7 = vld [vmem:[%s1229_s7 + $0x90] sm:$0xf0]  ;;  %v921_v8 = vld [vmem:[%s1229_s7 + $0x88] sm:$0xf]  ;;  %v997_v9 = vld [vmem:[%s1229_s7 + $0x94] sm:$0xf0]  ;;  %v914_v12 = vor.u32 %v996_v4, %v913_v3 }
  0x43   : > { %v995_v10 = vld [vmem:[%s1229_s7 + $0x8c] sm:$0xf]  ;;  %v923_v11 = vld [vmem:[%s1229_s7 + $0x98] sm:$0xf0]  ;;  %v918_v13 = vor.u32 %v994_v5, %v915_v7  ;;  %v922_v14 = vor.u32 %v997_v9, %v921_v8  ;;  %v897_v15 = vld [vmem:[%s1229_s7 + $0x60] sm:$0xf] }
  0x44   : > { %563 = vmatpush.bf16.msra.mxu0 %v930_v61  ;;  %v992_v16 = vld [vmem:[%s1229_s7 + $0x6c] sm:$0xf0]  ;;  %v990_v17 = vld [vmem:[%s1229_s7 + $0x64] sm:$0xf]  ;;  %v926_v18 = vor.u32 %v995_v10, %v923_v11  ;;  %v899_v19 = vld [vmem:[%s1229_s7 + $0x70] sm:$0xf0] }
  0x45   : > { %576 = vmatpush.bf16.msra.mxu1 %v934_v1  ;;  %589 = vmatpush.bf16.msra.mxu2 %v938_v2  ;;  %v905_v20 = vld [vmem:[%s1229_s7 + $0x68] sm:$0xf]  ;;  %v993_v21 = vld [vmem:[%s1229_s7 + $0x74] sm:$0xf0]  ;;  %v991_v22 = vld [vmem:[%s1229_s7 + $0x6c] sm:$0xf]  ;;  %v898_v24 = vor.u32 %v992_v16, %v897_v15  ;;  %v902_v25 = vor.u32 %v990_v17, %v899_v19 }
  0x46   : > { %602 = vmatpush.bf16.msra.mxu3 %v942_v6  ;;  %v907_v23 = vld [vmem:[%s1229_s7 + $0x78] sm:$0xf0]  ;;  %v906_v26 = vor.u32 %v993_v21, %v905_v20  ;;  %v881_v27 = vld [vmem:[%s1229_s7 + $0x40] sm:$0xf]  ;;  %v988_v28 = vld [vmem:[%s1229_s7 + $0x4c] sm:$0xf0] }
  0x47   : > { %v986_v29 = vld [vmem:[%s1229_s7 + $0x44] sm:$0xf]  ;;  %v910_v30 = vor.u32 %v991_v22, %v907_v23  ;;  %v883_v31 = vld [vmem:[%s1229_s7 + $0x50] sm:$0xf0]  ;;  %v889_v32 = vld [vmem:[%s1229_s7 + $0x48] sm:$0xf]  ;;  %v882_v36 = vor.u32 %v988_v28, %v881_v27 }
  0x48   : > { %564 = vmatpush.bf16.msra.mxu0 %v914_v12  ;;  %v989_v33 = vld [vmem:[%s1229_s7 + $0x54] sm:$0xf0]  ;;  %v987_v34 = vld [vmem:[%s1229_s7 + $0x4c] sm:$0xf]  ;;  %v891_v35 = vld [vmem:[%s1229_s7 + $0x58] sm:$0xf0]  ;;  %v886_v37 = vor.u32 %v986_v29, %v883_v31 }
  0x49   : > { %577 = vmatpush.bf16.msra.mxu1 %v918_v13  ;;  %590 = vmatpush.bf16.msra.mxu2 %v922_v14  ;;  %v890_v38 = vor.u32 %v989_v33, %v889_v32  ;;  %v865_v39 = vld [vmem:[%s1229_s7 + $0x20] sm:$0xf]  ;;  %v984_v40 = vld [vmem:[%s1229_s7 + $0x2c] sm:$0xf0]  ;;  %v982_v41 = vld [vmem:[%s1229_s7 + $0x24] sm:$0xf]  ;;  %v894_v42 = vor.u32 %v987_v34, %v891_v35 }
  0x4a   : > { %603 = vmatpush.bf16.msra.mxu3 %v926_v18  ;;  %v867_v43 = vld [vmem:[%s1229_s7 + $0x30] sm:$0xf0]  ;;  %v873_v44 = vld [vmem:[%s1229_s7 + $0x28] sm:$0xf]  ;;  %v985_v45 = vld [vmem:[%s1229_s7 + $0x34] sm:$0xf0]  ;;  %v866_v48 = vor.u32 %v984_v40, %v865_v39 }
  0x4b   : > { %v983_v46 = vld [vmem:[%s1229_s7 + $0x2c] sm:$0xf]  ;;  %v875_v47 = vld [vmem:[%s1229_s7 + $0x38] sm:$0xf0]  ;;  %v870_v49 = vor.u32 %v982_v41, %v867_v43  ;;  %v874_v50 = vor.u32 %v985_v45, %v873_v44  ;;  %v849_v51 = vld [vmem:[%s1229_s7] sm:$0xf] }
  0x4c   : > { %565 = vmatpush.bf16.msra.mxu0 %v898_v24  ;;  %v980_v52 = vld [vmem:[%s1229_s7 + $0xc] sm:$0xf0]  ;;  %v978_v53 = vld [vmem:[%s1229_s7 + $0x4] sm:$0xf]  ;;  %v878_v54 = vor.u32 %v983_v46, %v875_v47  ;;  %v851_v55 = vld [vmem:[%s1229_s7 + $0x10] sm:$0xf0] }
  0x4d   : > { %578 = vmatpush.bf16.msra.mxu1 %v902_v25  ;;  %591 = vmatpush.bf16.msra.mxu2 %v906_v26  ;;  %v857_v56 = vld [vmem:[%s1229_s7 + $0x8] sm:$0xf]  ;;  %v981_v57 = vld [vmem:[%s1229_s7 + $0x14] sm:$0xf0]  ;;  %v979_v58 = vld [vmem:[%s1229_s7 + $0xc] sm:$0xf]  ;;  %v850_v60 = vor.u32 %v980_v52, %v849_v51  ;;  %v854_v61 = vor.u32 %v978_v53, %v851_v55 }
  0x4e   : > { %604 = vmatpush.bf16.msra.mxu3 %v910_v30  ;;  %v859_v59 = vld [vmem:[%s1229_s7 + $0x18] sm:$0xf0]  ;;  %v858_v62 = vor.u32 %v981_v57, %v857_v56  ;;  %v368_v0 = vld [vmem:[%s1323_s0] sm:$0xf]  ;;  %s1335_s10 = smov (!%p341_p9, %s841_s10), 7 }
  0x4f   : > { %v862_v63 = vor.u32 %v979_v58, %v859_v59  ;;  %s844_s11 = sshll.u32 %s1335_s10, 3  ;;  %s842_s15 = sshll.u32 %s1335_s10, 2 }
  0x50   : > { %566 = vmatpush.bf16.msra.mxu0 %v882_v36  ;;  %s356_s14 = scalar_lea.vmem %s1326_s3, %s844_s11  ;;  %s366_s24 = scalar_lea.vmem %s1327_s4, %s844_s11 }
  0x51   : > { %579 = vmatpush.bf16.msra.mxu1 %v886_v37  ;;  %592 = vmatpush.bf16.msra.mxu2 %v890_v38  ;;  %s346_s27 = scalar_lea.vmem %s1325_s2, %s842_s15 }
  0x52   : > { %605 = vmatpush.bf16.msra.mxu3 %v894_v42 }
  0x54   : > { %567 = vmatpush.bf16.msra.mxu0 %v866_v48 }
  0x55   : > { %580 = vmatpush.bf16.msra.mxu1 %v870_v49  ;;  %593 = vmatpush.bf16.msra.mxu2 %v874_v50 }
  0x56   : > { %606 = vmatpush.bf16.msra.mxu3 %v878_v54 }
  0x58   : > { %568 = vmatpush.bf16.msra.mxu0 %v850_v60 }
  0x59   : > { %581 = vmatpush.bf16.msra.mxu1 %v854_v61  ;;  %594 = vmatpush.bf16.msra.mxu2 %v858_v62 }
  0x5a   : > { %607 = vmatpush.bf16.msra.mxu3 %v862_v63 }
  0x5b   : > { %569 = vmatmul.bf16.vlgmr.msra.gmra.mxu0 %v368_v0 }
  0x5c   : > { %582 = vmatmul.bf16.vlgmr.msra.gmra.mxu1 %v368_v0  ;;  %595 = vmatmul.bf16.vlgmr.msra.gmra.mxu2 %v368_v0 }
  0x5d   : > { %608 = vmatmul.bf16.vlgmr.msra.gmra.mxu3 %v368_v0 }
  0xd8   : > { %v570_v1 = vpop.f32.mrf.mxu0 }
  0xd9   : > { %v617_v2 = vmul.f32 %v570_v1, %v570_v1  ;;  %621 = vst [vmem:[%s356_s14] sm:$0xff] %v570_v1  ;;  %v583_v3 = vpop.f32.mrf.mxu1 }
  0xda   : > { %v613_v4 = vpack.c.bf16 %v583_v3, %v570_v1  ;;  %v618_v5 = vmul.f32 %v583_v3, %v583_v3  ;;  %622 = vst [vmem:[%s356_s14 + $0x8] sm:$0xff] %v583_v3 }
  0xdb   : > { %625 = vst [vmem:[%s366_s24] sm:$0xff] %v617_v2 }
  0xdc   : > { %615 = vst [vmem:[%s346_s27] sm:$0xff] %v613_v4 }
  0xdd   : > { %626 = vst [vmem:[%s366_s24 + $0x8] sm:$0xff] %v618_v5 }
  0xdf   : > { %v596_v6 = vpop.f32.mrf.mxu2 }
  0xe0   : > { %v619_v7 = vmul.f32 %v596_v6, %v596_v6  ;;  %623 = vst [vmem:[%s356_s14 + $0x10] sm:$0xff] %v596_v6  ;;  %v609_v8 = vpop.f32.mrf.mxu3  ;;  %v572_v9 = vpop.f32.mrf.mxu0 }
  0xe1   : > { %v614_v10 = vpack.c.bf16 %v609_v8, %v596_v6  ;;  %v620_v11 = vmul.f32 %v609_v8, %v609_v8  ;;  %624 = vst [vmem:[%s356_s14 + $0x18] sm:$0xff] %v609_v8  ;;  %v585_v12 = vpop.f32.mrf.mxu1 }
  0xe2   : > { %627 = vst [vmem:[%s366_s24 + $0x10] sm:$0xff] %v619_v7 }
  0xe3   : > { %616 = vst [vmem:[%s346_s27 + $0x8] sm:$0xff] %v614_v10 }
  0xe4   : > { %628 = vst [vmem:[%s366_s24 + $0x18] sm:$0xff] %v620_v11 }
  0xe7   : > { %v598_v13 = vpop.f32.mrf.mxu2 }
  0xe8   : > { %v611_v14 = vpop.f32.mrf.mxu3 }
  0xe9 PF: > { %s15_s19 = sadd.s32 1, %s1088_s19   ;;  %s1328_s15 = smov %s1076_s16 }
  0xea   : > { %p12_p10 = scmp.ge.s32.totalorder %s15_s19, 4   ;;  %s1329_s16 = smov %s1150_s23 }
  0xeb   : > { %s1330_s17 = smov %s1084_s18  ;;  %s1331_s18 = smov %s1333_s20 }
  0xec   :  { %14 = sbr.rel (!%p12_p10) target bundleno = 3 (0x3), region = 113 }

// kernel: cond_dcgan_forward.21
= control target key start
LH: loop header
LB: loop body
LE: loop exit
PB: predicated region body
PF: predicated region fallthrough
CT: control target
= control target key end

     0   :  { %s148_s0 = inlined_call_operand.vmem [shape: bf16[8,1024], index: 0, kind: input, shape index: {}]   ;;  %s149_s1 = inlined_call_operand.vmem [shape: f32[1,1024], index: 1, kind: input, shape index: {}]   ;;  %s150_s2 = inlined_call_operand.vmem [shape: f32[1,1024], index: 2, kind: input, shape index: {}]   ;;  %s151_s3 = inlined_call_operand.vmem [shape: bf16[8,1024], index: 3, kind: output, shape index: {}]  }
   0x1   :  { %v14_v0 = vld [vmem:[%s148_s0] sm:$0xff]  ;;  %v15_v7 = vld [vmem:[%s148_s0 + $0x8] sm:$0xff]  ;;  %v16_v8 = vld [vmem:[%s148_s0 + $0x10] sm:$0xff] }
   0x2   :  { %v26_v1 = vld [vmem:[%s149_s1] sm:$0xff]  ;;  %v18_v3 = vunpack.c.l.bf16 %v14_v0  ;;  %v19_v4 = vunpack.c.h.bf16 %v14_v0  ;;  %v20_v11 = vunpack.c.l.bf16 %v15_v7  ;;  %v21_v12 = vunpack.c.h.bf16 %v15_v7  ;;  %v17_v25 = vld [vmem:[%s148_s0 + $0x18] sm:$0xff] }
   0x3   :  { %v52_v2 = vld [vmem:[%s150_s2] sm:$0xff]  ;;  %v28_v5 = vperm.slane %v26_v1, 0  ;;  %v29_v6 = vperm.slane %v26_v1, 1  ;;  %v30_v15 = vperm.slane %v26_v1, 2  ;;  %v31_v16 = vperm.slane %v26_v1, 3 }
   0x4   :  { %v54_v9 = vperm.slane %v52_v2, 0  ;;  %v55_v10 = vperm.slane %v52_v2, 1  ;;  %v56_v17 = vperm.slane %v52_v2, 2  ;;  %v57_v18 = vperm.slane %v52_v2, 3 }
   0x5   :  { %v44_v13 = vmul.f32 %v28_v5, %v18_v3  ;;  %v45_v14 = vmul.f32 %v29_v6, %v19_v4  ;;  %v22_v19 = vunpack.c.l.bf16 %v16_v8  ;;  %v23_v20 = vunpack.c.h.bf16 %v16_v8 }
   0x6   :  { %v46_v23 = vmul.f32 %v30_v15, %v20_v11  ;;  %v47_v24 = vmul.f32 %v31_v16, %v21_v12  ;;  %v32_v26 = vperm.slane %v26_v1, 4  ;;  %v33_v27 = vperm.slane %v26_v1, 5 }
   0x7   :  { %v70_v21 = vadd.f32 %v54_v9, %v44_v13  ;;  %v71_v22 = vadd.f32 %v55_v10, %v45_v14  ;;  %v58_v28 = vperm.slane %v52_v2, 4  ;;  %v59_v29 = vperm.slane %v52_v2, 5 }
   0x8   :  { %v72_v32 = vadd.f32 %v56_v17, %v46_v23  ;;  %v73_v33 = vadd.f32 %v57_v18, %v47_v24  ;;  %v48_v34 = vmul.f32 %v32_v26, %v22_v19  ;;  %v49_v35 = vmul.f32 %v33_v27, %v23_v20 }
   0x9   :  { %v78_v30 = vmax.f32 %v70_v21, 0.0  ;;  %v79_v31 = vmax.f32 %v71_v22, 0.0  ;;  %v24_v36 = vunpack.c.l.bf16 %v17_v25  ;;  %v25_v37 = vunpack.c.h.bf16 %v17_v25 }
   0xa   :  { %v80_v39 = vmax.f32 %v72_v32, 0.0  ;;  %v81_v40 = vmax.f32 %v73_v33, 0.0  ;;  %v34_v41 = vperm.slane %v26_v1, 6  ;;  %v74_v42 = vadd.f32 %v58_v28, %v48_v34 }
   0xb   :  { %v86_v38 = vpack.c.bf16 %v79_v31, %v78_v30  ;;  %v75_v43 = vadd.f32 %v59_v29, %v49_v35  ;;  %v35_v44 = vperm.slane %v26_v1, 7  ;;  %v60_v45 = vperm.slane %v52_v2, 6 }
   0xc   :  { %v87_v46 = vpack.c.bf16 %v81_v40, %v80_v39  ;;  %v50_v47 = vmul.f32 %v34_v41, %v24_v36  ;;  %v61_v48 = vperm.slane %v52_v2, 7  ;;  %v82_v49 = vmax.f32 %v74_v42, 0.0 }
   0xd   :  { %90 = vst [vmem:[%s151_s3] sm:$0xff] %v86_v38  ;;  %v83_v50 = vmax.f32 %v75_v43, 0.0  ;;  %v51_v51 = vmul.f32 %v35_v44, %v25_v37 }
   0xe   :  { %91 = vst [vmem:[%s151_s3 + $0x8] sm:$0xff] %v87_v46  ;;  %v76_v52 = vadd.f32 %v60_v45, %v50_v47 }
   0xf   :  { %v88_v53 = vpack.c.bf16 %v83_v50, %v82_v49  ;;  %v77_v54 = vadd.f32 %v61_v48, %v51_v51 }
  0x10   :  { %v84_v55 = vmax.f32 %v76_v52, 0.0 }
  0x11   :  { %92 = vst [vmem:[%s151_s3 + $0x10] sm:$0xff] %v88_v53  ;;  %v85_v56 = vmax.f32 %v77_v54, 0.0 }
  0x13   :  { %v89_v57 = vpack.c.bf16 %v85_v56, %v84_v55 }
  0x15   :  { %93 = vst [vmem:[%s151_s3 + $0x18] sm:$0xff] %v89_v57 }

// kernel: tile.53
= control target key start
LH: loop header
LB: loop body
LE: loop exit
PB: predicated region body
PF: predicated region fallthrough
CT: control target
= control target key end

     0   :  { %s22_s0 = inlined_call_operand.vmem [shape: f32[32], index: 0, kind: input, shape index: {}]   ;;  %s23_s1 = inlined_call_operand.vmem [shape: f32[4,32], index: 1, kind: output, shape index: {}]  }
   0x1   :  { %v4_v0 = vld [vmem:[%s22_s0] ss:$0 sm:$0xff] }
   0x2   :  { %5 = vst [vmem:[%s23_s1] sm:$0xf] %v4_v0 }

// kernel: cond_dcgan_forward.23
= control target key start
LH: loop header
LB: loop body
LE: loop exit
PB: predicated region body
PF: predicated region fallthrough
CT: control target
= control target key end

     0   :  { %s114_s0 = inlined_call_operand.vmem [shape: bf16[32,128], index: 0, kind: input, shape index: {}]   ;;  %s115_s1 = inlined_call_operand.vmem [shape: f32[1,128], index: 1, kind: input, shape index: {}]   ;;  %s116_s2 = inlined_call_operand.vmem [shape: f32[1,128], index: 2, kind: input, shape index: {}]   ;;  %s117_s3 = inlined_call_operand.vmem [shape: bf16[32,128], index: 3, kind: output, shape index: {}]  }
   0x1   :  { %v55_v0 = vld [vmem:[%s114_s0] sm:$0xff]   ;;  %v72_v5 = vld [vmem:[%s114_s0 + $0x8] sm:$0xff]  }
   0x2   :  { %v74_v1 = vld [vmem:[%s115_s1] ss:$0 sm:$0xff]  ;;  %v56_v2 = vunpack.c.l.bf16 %v55_v0  ;;  %v57_v3 = vunpack.c.h.bf16 %v55_v0  ;;  %v60_v6 = vunpack.c.l.bf16 %v72_v5  ;;  %v61_v7 = vunpack.c.h.bf16 %v72_v5 }
   0x3   :  { %v75_v4 = vld [vmem:[%s116_s2] ss:$0 sm:$0xff] }
   0x4   :  { %v26_v8 = vmul.f32 %v74_v1, %v56_v2  ;;  %v27_v9 = vmul.f32 %v74_v1, %v57_v3  ;;  %v28_v10 = vmul.f32 %v74_v1, %v60_v6  ;;  %v29_v11 = vmul.f32 %v74_v1, %v61_v7 }
   0x6   :  { %v34_v12 = vadd.f32 %v75_v4, %v26_v8  ;;  %v35_v13 = vadd.f32 %v75_v4, %v27_v9  ;;  %v36_v14 = vadd.f32 %v75_v4, %v28_v10  ;;  %v37_v15 = vadd.f32 %v75_v4, %v29_v11 }
   0x8   :  { %v38_v16 = vmax.f32 %v34_v12, 0.0  ;;  %v39_v17 = vmax.f32 %v35_v13, 0.0  ;;  %v40_v18 = vmax.f32 %v36_v14, 0.0  ;;  %v41_v19 = vmax.f32 %v37_v15, 0.0 }
   0xa   :  { %v65_v20 = vpack.c.bf16 %v39_v17, %v38_v16  ;;  %v70_v21 = vpack.c.bf16 %v41_v19, %v40_v18 }
   0xc   :  { %66 = vst [vmem:[%s117_s3] sm:$0xff] %v65_v20  }
   0xd   :  { %73 = vst [vmem:[%s117_s3 + $0x8] sm:$0xff] %v70_v21  }

// kernel: cond_dcgan_forward.22
= control target key start
LH: loop header
LB: loop body
LE: loop exit
PB: predicated region body
PF: predicated region fallthrough
CT: control target
= control target key end

     0   :  { %s1011_s1 = inlined_call_operand.vmem [shape: bf16[640,128], index: 1, kind: input, shape index: {}]   ;;  %s1012_s0 = inlined_call_operand.vmem [shape: bf16[32,640], index: 0, kind: input, shape index: {}]   ;;  %s1013_s2 = inlined_call_operand.vmem [shape: bf16[32,128], index: 2, kind: output, shape index: {0}]   ;;  %s1014_s3 = inlined_call_operand.vmem [shape: f32[8,128], index: 3, kind: output, shape index: {1}]   ;;  %s1015_s4 = inlined_call_operand.vmem [shape: f32[8,128], index: 4, kind: output, shape index: {2}]  }
   0x1   :  { %v742_v0 = vld [vmem:[%s1011_s1 + $0x38] sm:$0xff]  ;;  %v741_v4 = vld [vmem:[%s1011_s1 + $0x30] sm:$0xff]  ;;  %v740_v8 = vld [vmem:[%s1011_s1 + $0x28] sm:$0xff] }
   0x2   :  { %v750_v1 = vld [vmem:[%s1011_s1 + $0x78] sm:$0xff]  ;;  %398 = vmatpush.bf16.msra.mxu0 %v742_v0  ;;  %v749_v5 = vld [vmem:[%s1011_s1 + $0x70] sm:$0xff]  ;;  %v748_v9 = vld [vmem:[%s1011_s1 + $0x68] sm:$0xff] }
   0x3   :  { %v758_v2 = vld [vmem:[%s1011_s1 + $0xb8] sm:$0xff]  ;;  %417 = vmatpush.bf16.msra.mxu1 %v750_v1  ;;  %v757_v6 = vld [vmem:[%s1011_s1 + $0xb0] sm:$0xff]  ;;  %v756_v10 = vld [vmem:[%s1011_s1 + $0xa8] sm:$0xff] }
   0x4   :  { %v766_v3 = vld [vmem:[%s1011_s1 + $0xf8] sm:$0xff]  ;;  %436 = vmatpush.bf16.msra.mxu2 %v758_v2  ;;  %v765_v7 = vld [vmem:[%s1011_s1 + $0xf0] sm:$0xff]  ;;  %v764_v11 = vld [vmem:[%s1011_s1 + $0xe8] sm:$0xff] }
   0x5   :  { %455 = vmatpush.bf16.msra.mxu3 %v766_v3  ;;  %v739_v12 = vld [vmem:[%s1011_s1 + $0x20] sm:$0xff]  ;;  %v738_v16 = vld [vmem:[%s1011_s1 + $0x18] sm:$0xff]  ;;  %v737_v20 = vld [vmem:[%s1011_s1 + $0x10] sm:$0xff] }
   0x6   :  { %399 = vmatpush.bf16.msra.mxu0 %v741_v4  ;;  %v747_v13 = vld [vmem:[%s1011_s1 + $0x60] sm:$0xff]  ;;  %v746_v17 = vld [vmem:[%s1011_s1 + $0x58] sm:$0xff]  ;;  %v745_v21 = vld [vmem:[%s1011_s1 + $0x50] sm:$0xff] }
   0x7   :  { %418 = vmatpush.bf16.msra.mxu1 %v749_v5  ;;  %v755_v14 = vld [vmem:[%s1011_s1 + $0xa0] sm:$0xff]  ;;  %v754_v18 = vld [vmem:[%s1011_s1 + $0x98] sm:$0xff]  ;;  %v753_v22 = vld [vmem:[%s1011_s1 + $0x90] sm:$0xff] }
   0x8   :  { %437 = vmatpush.bf16.msra.mxu2 %v757_v6  ;;  %v763_v15 = vld [vmem:[%s1011_s1 + $0xe0] sm:$0xff]  ;;  %v762_v19 = vld [vmem:[%s1011_s1 + $0xd8] sm:$0xff]  ;;  %v761_v23 = vld [vmem:[%s1011_s1 + $0xd0] sm:$0xff] }
   0x9   :  { %456 = vmatpush.bf16.msra.mxu3 %v765_v7  ;;  %v736_v24 = vld [vmem:[%s1011_s1 + $0x8] sm:$0xff]  ;;  %v735_v28 = vld [vmem:[%s1011_s1] sm:$0xff]  ;;  %v727_v33 = vld [vmem:[%s1012_s0 + $0x10] sm:$0xf0] }
   0xa   :  { %400 = vmatpush.bf16.msra.mxu0 %v740_v8  ;;  %v744_v25 = vld [vmem:[%s1011_s1 + $0x48] sm:$0xff]  ;;  %v743_v29 = vld [vmem:[%s1011_s1 + $0x40] sm:$0xff]  ;;  %v529_v35 = vld [vmem:[%s1012_s0 + $0x14] sm:$0xf0] }
   0xb   :  { %419 = vmatpush.bf16.msra.mxu1 %v748_v9  ;;  %v752_v26 = vld [vmem:[%s1011_s1 + $0x88] sm:$0xff]  ;;  %v751_v30 = vld [vmem:[%s1011_s1 + $0x80] sm:$0xff]  ;;  %v728_v37 = vld [vmem:[%s1012_s0 + $0x18] sm:$0xf0] }
   0xc   :  { %438 = vmatpush.bf16.msra.mxu2 %v756_v10  ;;  %v760_v27 = vld [vmem:[%s1011_s1 + $0xc8] sm:$0xff]  ;;  %v759_v31 = vld [vmem:[%s1011_s1 + $0xc0] sm:$0xff]  ;;  %v774_v40 = vld [vmem:[%s1011_s1 + $0x138] sm:$0xff] }
   0xd   :  { %457 = vmatpush.bf16.msra.mxu3 %v764_v11  ;;  %v527_v32 = vld [vmem:[%s1012_s0] sm:$0xf]  ;;  %v725_v34 = vld [vmem:[%s1012_s0 + $0x4] sm:$0xf]  ;;  %v535_v36 = vld [vmem:[%s1012_s0 + $0x8] sm:$0xf] }
   0xe   :  { %401 = vmatpush.bf16.msra.mxu0 %v739_v12  ;;  %v726_v38 = vld [vmem:[%s1012_s0 + $0xc] sm:$0xf]  ;;  %v537_v39 = vld [vmem:[%s1012_s0 + $0x1c] sm:$0xf0]  ;;  %v528_v41 = vor.u32 %v727_v33, %v527_v32  ;;  %v532_v42 = vor.u32 %v725_v34, %v529_v35  ;;  %v536_v43 = vor.u32 %v728_v37, %v535_v36  ;;  %v773_v45 = vld [vmem:[%s1011_s1 + $0x130] sm:$0xff] }
   0xf   :  { %420 = vmatpush.bf16.msra.mxu1 %v747_v13  ;;  %v540_v44 = vor.u32 %v726_v38, %v537_v39  ;;  %v772_v46 = vld [vmem:[%s1011_s1 + $0x128] sm:$0xff]  ;;  %v771_v47 = vld [vmem:[%s1011_s1 + $0x120] sm:$0xff]  ;;  %v732_v49 = vld [vmem:[%s1012_s0 + $0x38] sm:$0xf0] }
  0x10   :  { %439 = vmatpush.bf16.msra.mxu2 %v755_v14  ;;  %v547_v48 = vld [vmem:[%s1012_s0 + $0x28] sm:$0xf]  ;;  %v730_v50 = vld [vmem:[%s1012_s0 + $0x2c] sm:$0xf]  ;;  %v549_v51 = vld [vmem:[%s1012_s0 + $0x3c] sm:$0xf0] }
  0x11   :  { %458 = vmatpush.bf16.msra.mxu3 %v763_v15  ;;  %v555_v52 = vld [vmem:[%s1012_s0 + $0x30] sm:$0xf]  ;;  %v733_v53 = vld [vmem:[%s1012_s0 + $0x40] sm:$0xf0]  ;;  %v731_v54 = vld [vmem:[%s1012_s0 + $0x34] sm:$0xf]  ;;  %v548_v57 = vor.u32 %v732_v49, %v547_v48  ;;  %v552_v58 = vor.u32 %v730_v50, %v549_v51 }
  0x12   :  { %402 = vmatpush.bf16.msra.mxu0 %v738_v16  ;;  %v557_v55 = vld [vmem:[%s1012_s0 + $0x44] sm:$0xf0]  ;;  %v770_v56 = vld [vmem:[%s1011_s1 + $0x118] sm:$0xff]  ;;  %v556_v59 = vor.u32 %v733_v53, %v555_v52  ;;  %v769_v61 = vld [vmem:[%s1011_s1 + $0x110] sm:$0xff] }
  0x13   :  { %421 = vmatpush.bf16.msra.mxu1 %v746_v17  ;;  %v560_v60 = vor.u32 %v731_v54, %v557_v55  ;;  %v768_v62 = vld [vmem:[%s1011_s1 + $0x108] sm:$0xff]  ;;  %v767_v63 = vld [vmem:[%s1011_s1 + $0x100] sm:$0xff]  ;;  %v543_v0 = vld [vmem:[%s1012_s0 + $0x10] sm:$0xf] }
  0x14   :  { %440 = vmatpush.bf16.msra.mxu2 %v754_v18  ;;  %v729_v1 = vld [vmem:[%s1012_s0 + $0x20] sm:$0xf0]  ;;  %v563_v2 = vld [vmem:[%s1012_s0 + $0x38] sm:$0xf]  ;;  %v734_v3 = vld [vmem:[%s1012_s0 + $0x48] sm:$0xf0] }
  0x15   :  { %459 = vmatpush.bf16.msra.mxu3 %v762_v19  ;;  %v544_v4 = vor.u32 %v729_v1, %v543_v0  ;;  %v564_v5 = vor.u32 %v734_v3, %v563_v2 }
  0x16   :  { %403 = vmatpush.bf16.msra.mxu0 %v737_v20 }
  0x17   :  { %422 = vmatpush.bf16.msra.mxu1 %v745_v21 }
  0x18   :  { %441 = vmatpush.bf16.msra.mxu2 %v753_v22 }
  0x19   :  { %460 = vmatpush.bf16.msra.mxu3 %v761_v23 }
  0x1a   :  { %404 = vmatpush.bf16.msra.mxu0 %v736_v24 }
  0x1b   :  { %423 = vmatpush.bf16.msra.mxu1 %v744_v25 }
  0x1c   :  { %442 = vmatpush.bf16.msra.mxu2 %v752_v26 }
  0x1d   :  { %461 = vmatpush.bf16.msra.mxu3 %v760_v27 }
  0x1e   :  { %405 = vmatpush.bf16.msra.mxu0 %v735_v28 }
  0x1f   :  { %424 = vmatpush.bf16.msra.mxu1 %v743_v29 }
  0x20   :  { %443 = vmatpush.bf16.msra.mxu2 %v751_v30 }
  0x21   :  { %462 = vmatpush.bf16.msra.mxu3 %v759_v31  ;;  %406 = vmatmul.bf16.vlgmr.msra.gmra.mxu0 %v528_v41 }
  0x22   :  { %474 = vmatpush.bf16.msrb.mxu0 %v774_v40  ;;  %425 = vmatmul.bf16.vlgmr.msra.gmra.mxu1 %v532_v42 }
  0x23   :  { %786 = vmatpush.bf16.msrb.mxu1 %v774_v40  ;;  %444 = vmatmul.bf16.vlgmr.msra.gmra.mxu2 %v536_v43 }
  0x24   :  { %463 = vmatmul.bf16.vlgmr.msra.gmra.mxu3 %v540_v44 }
  0x26   :  { %475 = vmatpush.bf16.msrb.mxu0 %v773_v45 }
  0x27   :  { %787 = vmatpush.bf16.msrb.mxu1 %v773_v45 }
  0x2a   :  { %476 = vmatpush.bf16.msrb.mxu0 %v772_v46 }
  0x2b   :  { %788 = vmatpush.bf16.msrb.mxu1 %v772_v46 }
  0x2e   :  { %477 = vmatpush.bf16.msrb.mxu0 %v771_v47 }
  0x2f   :  { %789 = vmatpush.bf16.msrb.mxu1 %v771_v47 }
  0x31   :  { %411 = vmatmul.bf16.gmra.mxu0 %v548_v57 }
  0x32   :  { %478 = vmatpush.bf16.msrb.mxu0 %v770_v56  ;;  %430 = vmatmul.bf16.gmra.mxu1 %v552_v58 }
  0x33   :  { %790 = vmatpush.bf16.msrb.mxu1 %v770_v56  ;;  %449 = vmatmul.bf16.gmra.mxu2 %v556_v59 }
  0x34   :  { %468 = vmatmul.bf16.gmra.mxu3 %v560_v60 }
  0x36   :  { %479 = vmatpush.bf16.msrb.mxu0 %v769_v61 }
  0x37   :  { %791 = vmatpush.bf16.msrb.mxu1 %v769_v61 }
  0x3a   :  { %480 = vmatpush.bf16.msrb.mxu0 %v768_v62 }
  0x3b   :  { %792 = vmatpush.bf16.msrb.mxu1 %v768_v62 }
  0x3e   :  { %481 = vmatpush.bf16.msrb.mxu0 %v767_v63 }
  0x3f   :  { %793 = vmatpush.bf16.msrb.mxu1 %v767_v63 }
  0x41   :  { %482 = vmatmul.bf16.vlgmr.msrb.gmra.mxu0 %v544_v4 }
  0x42   :  { %487 = vmatmul.bf16.vlgmr.msrb.gmra.mxu1 %v564_v5 }
  0x9e   :  { %v407_v6 = vpop.f32.mrf.mxu0 }
  0x9f   :  { %v426_v7 = vpop.f32.mrf.mxu1 }
  0xa0   :  { %v427_v20 = vadd.f32 %v426_v7, %v407_v6 }
  0xa6   :  { %v445_v8 = vpop.f32.mrf.mxu2  ;;  %v409_v10 = vpop.f32.mrf.mxu0 }
  0xa7   :  { %v464_v9 = vpop.f32.mrf.mxu3  ;;  %v428_v11 = vpop.f32.mrf.mxu1  ;;  %v446_v22 = vadd.f32 %v445_v8, %v427_v20 }
  0xa8   :  { %v429_v25 = vadd.f32 %v428_v11, %v409_v10 }
  0xa9   :  { %v465_v31 = vadd.f32 %v464_v9, %v446_v22 }
  0xae   :  { %v447_v12 = vpop.f32.mrf.mxu2  ;;  %v412_v14 = vpop.f32.mrf.mxu0 }
  0xaf   :  { %v466_v13 = vpop.f32.mrf.mxu3  ;;  %v431_v15 = vpop.f32.mrf.mxu1  ;;  %v448_v28 = vadd.f32 %v447_v12, %v429_v25 }
  0xb0   :  { %v432_v26 = vadd.f32 %v431_v15, %v412_v14 }
  0xb1   :  { %v467_v34 = vadd.f32 %v466_v13, %v448_v28 }
  0xb6   :  { %v450_v16 = vpop.f32.mrf.mxu2  ;;  %v414_v17 = vpop.f32.mrf.mxu0 }
  0xb7   :  { %v433_v18 = vpop.f32.mrf.mxu1  ;;  %v469_v19 = vpop.f32.mrf.mxu3  ;;  %v451_v29 = vadd.f32 %v450_v16, %v432_v26 }
  0xb8   :  { %v434_v27 = vadd.f32 %v433_v18, %v414_v17 }
  0xb9   :  { %v470_v35 = vadd.f32 %v469_v19, %v451_v29 }
  0xbe   :  { %v452_v21 = vpop.f32.mrf.mxu2  ;;  %v483_v23 = vpop.f32.mrf.mxu0 }
  0xbf   :  { %v488_v24 = vpop.f32.mrf.mxu1  ;;  %v453_v30 = vadd.f32 %v452_v21, %v434_v27  ;;  %v471_v32 = vpop.f32.mrf.mxu3  ;;  %v484_v33 = vadd.f32 %v483_v23, %v465_v31 }
  0xc0   :  { %v489_v39 = vadd.f32 %v488_v24, %v470_v35 }
  0xc1   :  { %v472_v36 = vadd.f32 %v471_v32, %v453_v30  ;;  %v501_v42 = vmul.f32 %v484_v33, %v484_v33 }
  0xc2   :  { %v503_v47 = vmul.f32 %v489_v39, %v489_v39 }
  0xc6   :  { %v485_v37 = vpop.f32.mrf.mxu0 }
  0xc7   :  { %v490_v38 = vpop.f32.mrf.mxu1  ;;  %v486_v40 = vadd.f32 %v485_v37, %v467_v34 }
  0xc8   :  { %v491_v41 = vadd.f32 %v490_v38, %v472_v36 }
  0xc9   :  { %v778_v43 = vpack.c.bf16 %v486_v40, %v484_v33  ;;  %v502_v44 = vmul.f32 %v486_v40, %v486_v40  ;;  %v505_v45 = vadd.f32 %v486_v40, %v484_v33 }
  0xca   :  { %v783_v46 = vpack.c.bf16 %v491_v41, %v489_v39  ;;  %v504_v50 = vmul.f32 %v491_v41, %v491_v41 }
  0xcb   :  { %779 = vst [vmem:[%s1013_s2] sm:$0xff] %v778_v43   ;;  %v506_v48 = vadd.f32 %v502_v44, %v501_v42  ;;  %v507_v49 = vadd.f32 %v505_v45, %v489_v39 }
  0xcc   :  { %785 = vst [vmem:[%s1013_s2 + $0x8] sm:$0xff] %v783_v46  }
  0xcd   :  { %v508_v51 = vadd.f32 %v506_v48, %v503_v47  ;;  %v509_v52 = vadd.f32 %v507_v49, %v491_v41 }
  0xcf   :  { %v510_v53 = vadd.f32 %v508_v51, %v504_v50  ;;  %511 = vst [vmem:[%s1014_s3] sm:$0xff] %v509_v52 }
  0xd1   :  { %512 = vst [vmem:[%s1015_s4] sm:$0xff] %v510_v53 }

// kernel: tile.63
= control target key start
LH: loop header
LB: loop body
LE: loop exit
PB: predicated region body
PF: predicated region fallthrough
CT: control target
= control target key end

     0   :  { %s22_s0 = inlined_call_operand.vmem [shape: f32[16], index: 0, kind: input, shape index: {}]   ;;  %s23_s1 = inlined_call_operand.vmem [shape: f32[4,16], index: 1, kind: output, shape index: {}]  }
   0x1   :  { %v4_v0 = vld [vmem:[%s22_s0] ss:$0 sm:$0xff] }
   0x2   :  { %5 = vst [vmem:[%s23_s1] sm:$0xf] %v4_v0 }

// kernel: cond_dcgan_forward.24
= control target key start
LH: loop header
LB: loop body
LE: loop exit
PB: predicated region body
PF: predicated region fallthrough
CT: control target
= control target key end

     0   :  { %s1263_s1 = inlined_call_operand.vmem [shape: bf16[384,128], index: 1, kind: input, shape index: {}]   ;;  %s1264_s0 = inlined_call_operand.vmem [shape: bf16[128,384], index: 0, kind: input, shape index: {}]   ;;  %s1265_s2 = inlined_call_operand.vmem [shape: bf16[128,128], index: 2, kind: output, shape index: {0}]   ;;  %s1266_s3 = inlined_call_operand.vmem [shape: f32[8,128], index: 3, kind: output, shape index: {1}]   ;;  %s1267_s4 = inlined_call_operand.vmem [shape: f32[8,128], index: 4, kind: output, shape index: {2}]  }
   0x1   :  { %v828_v0 = vld [vmem:[%s1263_s1 + $0x38] sm:$0xff]  ;;  %v827_v3 = vld [vmem:[%s1263_s1 + $0x30] sm:$0xff]  ;;  %v826_v6 = vld [vmem:[%s1263_s1 + $0x28] sm:$0xff] }
   0x2   :  { %v947_v1 = vld [vmem:[%s1263_s1 + $0x78] sm:$0xff]  ;;  %366 = vmatpush.bf16.msra.mxu0 %v828_v0  ;;  %892 = vmatpush.bf16.msra.mxu3 %v828_v0  ;;  %v962_v4 = vld [vmem:[%s1263_s1 + $0x70] sm:$0xff]  ;;  %v834_v7 = vld [vmem:[%s1263_s1 + $0x68] sm:$0xff] }
   0x3   :  { %v952_v2 = vld [vmem:[%s1263_s1 + $0xb8] sm:$0xff]  ;;  %415 = vmatpush.bf16.msra.mxu1 %v947_v1  ;;  %v967_v5 = vld [vmem:[%s1263_s1 + $0xb0] sm:$0xff]  ;;  %v980_v8 = vld [vmem:[%s1263_s1 + $0xa8] sm:$0xff] }
   0x4   :  { %464 = vmatpush.bf16.msra.mxu2 %v952_v2  ;;  %v825_v9 = vld [vmem:[%s1263_s1 + $0x20] sm:$0xff]  ;;  %v824_v12 = vld [vmem:[%s1263_s1 + $0x18] sm:$0xff]  ;;  %v823_v15 = vld [vmem:[%s1263_s1 + $0x10] sm:$0xff] }
   0x5   :  { %v833_v10 = vld [vmem:[%s1263_s1 + $0x60] sm:$0xff]  ;;  %v832_v13 = vld [vmem:[%s1263_s1 + $0x58] sm:$0xff]  ;;  %v831_v16 = vld [vmem:[%s1263_s1 + $0x50] sm:$0xff] }
   0x6   :  { %367 = vmatpush.bf16.msra.mxu0 %v827_v3  ;;  %893 = vmatpush.bf16.msra.mxu3 %v827_v3  ;;  %v992_v11 = vld [vmem:[%s1263_s1 + $0xa0] sm:$0xff]  ;;  %v1004_v14 = vld [vmem:[%s1263_s1 + $0x98] sm:$0xff]  ;;  %v1016_v17 = vld [vmem:[%s1263_s1 + $0x90] sm:$0xff] }
   0x7   :  { %416 = vmatpush.bf16.msra.mxu1 %v962_v4  ;;  %v822_v18 = vld [vmem:[%s1263_s1 + $0x8] sm:$0xff]  ;;  %v821_v21 = vld [vmem:[%s1263_s1] sm:$0xff]  ;;  %v679_v26 = vld [vmem:[%s1264_s0 + $0x90] sm:$0xf] }
   0x8   :  { %465 = vmatpush.bf16.msra.mxu2 %v967_v5  ;;  %v830_v19 = vld [vmem:[%s1263_s1 + $0x48] sm:$0xff]  ;;  %v829_v22 = vld [vmem:[%s1263_s1 + $0x40] sm:$0xff]  ;;  %v816_v27 = vld [vmem:[%s1264_s0 + $0x98] sm:$0xf0] }
   0x9   :  { %v1028_v20 = vld [vmem:[%s1263_s1 + $0x88] sm:$0xff]  ;;  %v1039_v23 = vld [vmem:[%s1263_s1 + $0x80] sm:$0xff]  ;;  %v609_v29 = vld [vmem:[%s1264_s0 + $0xc] sm:$0xf0]  ;;  %v680_v33 = vor.u32 %v816_v27, %v679_v26 }
   0xa   :  { %368 = vmatpush.bf16.msra.mxu0 %v826_v6  ;;  %894 = vmatpush.bf16.msra.mxu3 %v826_v6  ;;  %v607_v24 = vld [vmem:[%s1264_s0] sm:$0xf]  ;;  %v798_v25 = vld [vmem:[%s1264_s0 + $0x8] sm:$0xf0]  ;;  %v797_v28 = vld [vmem:[%s1264_s0 + $0x4] sm:$0xf] }
   0xb   :  { %417 = vmatpush.bf16.msra.mxu1 %v834_v7  ;;  %v615_v30 = vld [vmem:[%s1264_s0 + $0x8] sm:$0xf]  ;;  %v799_v31 = vld [vmem:[%s1264_s0 + $0x10] sm:$0xf0]  ;;  %v608_v32 = vor.u32 %v798_v25, %v607_v24  ;;  %v612_v34 = vor.u32 %v797_v28, %v609_v29  ;;  %v619_v36 = vld [vmem:[%s1264_s0 + $0x18] sm:$0xf] }
   0xc   :  { %466 = vmatpush.bf16.msra.mxu2 %v980_v8  ;;  %v616_v35 = vor.u32 %v799_v31, %v615_v30  ;;  %v801_v37 = vld [vmem:[%s1264_s0 + $0x20] sm:$0xf0]  ;;  %v691_v38 = vld [vmem:[%s1264_s0 + $0xa8] sm:$0xf]  ;;  %v819_v39 = vld [vmem:[%s1264_s0 + $0xb0] sm:$0xf0] }
   0xd   :  { %v800_v40 = vld [vmem:[%s1264_s0 + $0x1c] sm:$0xf]  ;;  %v621_v41 = vld [vmem:[%s1264_s0 + $0x24] sm:$0xf0]  ;;  %v627_v42 = vld [vmem:[%s1264_s0 + $0x20] sm:$0xf]  ;;  %v620_v44 = vor.u32 %v801_v37, %v619_v36  ;;  %v692_v45 = vor.u32 %v819_v39, %v691_v38 }
   0xe   :  { %369 = vmatpush.bf16.msra.mxu0 %v825_v9  ;;  %895 = vmatpush.bf16.msra.mxu3 %v825_v9  ;;  %v802_v43 = vld [vmem:[%s1264_s0 + $0x28] sm:$0xf0]  ;;  %v624_v46 = vor.u32 %v800_v40, %v621_v41  ;;  %v631_v48 = vld [vmem:[%s1264_s0 + $0x30] sm:$0xf]  ;;  %v804_v49 = vld [vmem:[%s1264_s0 + $0x38] sm:$0xf0] }
   0xf   :  { %418 = vmatpush.bf16.msra.mxu1 %v833_v10  ;;  %v628_v47 = vor.u32 %v802_v43, %v627_v42  ;;  %v803_v50 = vld [vmem:[%s1264_s0 + $0x34] sm:$0xf]  ;;  %v681_v52 = vld [vmem:[%s1264_s0 + $0x9c] sm:$0xf0]  ;;  %v639_v54 = vld [vmem:[%s1264_s0 + $0x38] sm:$0xf]  ;;  %v632_v56 = vor.u32 %v804_v49, %v631_v48 }
  0x10   :  { %467 = vmatpush.bf16.msra.mxu2 %v992_v11  ;;  %v815_v51 = vld [vmem:[%s1264_s0 + $0x94] sm:$0xf]  ;;  %v633_v53 = vld [vmem:[%s1264_s0 + $0x3c] sm:$0xf0]  ;;  %v805_v55 = vld [vmem:[%s1264_s0 + $0x40] sm:$0xf0] }
  0x11   :  { %v684_v57 = vor.u32 %v815_v51, %v681_v52  ;;  %v636_v58 = vor.u32 %v803_v50, %v633_v53  ;;  %v640_v59 = vor.u32 %v805_v55, %v639_v54  ;;  %v643_v60 = vld [vmem:[%s1264_s0 + $0x48] sm:$0xf]  ;;  %v807_v61 = vld [vmem:[%s1264_s0 + $0x50] sm:$0xf0]  ;;  %v806_v62 = vld [vmem:[%s1264_s0 + $0x4c] sm:$0xf] }
  0x12   :  { %370 = vmatpush.bf16.msra.mxu0 %v824_v12  ;;  %896 = vmatpush.bf16.msra.mxu3 %v824_v12  ;;  %v818_v63 = vld [vmem:[%s1264_s0 + $0xac] sm:$0xf]  ;;  %v693_v0 = vld [vmem:[%s1264_s0 + $0xb4] sm:$0xf0]  ;;  %v808_v3 = vld [vmem:[%s1264_s0 + $0x58] sm:$0xf0] }
  0x13   :  { %419 = vmatpush.bf16.msra.mxu1 %v832_v13  ;;  %v810_v9 = vld [vmem:[%s1264_s0 + $0x68] sm:$0xf0]  ;;  %v817_v12 = vld [vmem:[%s1264_s0 + $0xa0] sm:$0xf0]  ;;  %v820_v24 = vld [vmem:[%s1264_s0 + $0xb8] sm:$0xf0] }
  0x14   :  { %468 = vmatpush.bf16.msra.mxu2 %v1004_v14  ;;  %v669_v25 = vld [vmem:[%s1264_s0 + $0x84] sm:$0xf0]  ;;  %v675_v26 = vld [vmem:[%s1264_s0 + $0x80] sm:$0xf]  ;;  %v814_v27 = vld [vmem:[%s1264_s0 + $0x88] sm:$0xf0] }
  0x15   :  { %v676_v31 = vor.u32 %v814_v27, %v675_v26 }
  0x16   :  { %371 = vmatpush.bf16.msra.mxu0 %v823_v15  ;;  %897 = vmatpush.bf16.msra.mxu3 %v823_v15  ;;  %v811_v15 = vld [vmem:[%s1264_s0 + $0x70] sm:$0xf0] }
  0x17   :  { %420 = vmatpush.bf16.msra.mxu1 %v831_v16 }
  0x18   :  { %469 = vmatpush.bf16.msra.mxu2 %v1016_v17 }
  0x1a   :  { %372 = vmatpush.bf16.msra.mxu0 %v822_v18  ;;  %898 = vmatpush.bf16.msra.mxu3 %v822_v18 }
  0x1b   :  { %421 = vmatpush.bf16.msra.mxu1 %v830_v19 }
  0x1c   :  { %470 = vmatpush.bf16.msra.mxu2 %v1028_v20 }
  0x1e   :  { %373 = vmatpush.bf16.msra.mxu0 %v821_v21  ;;  %899 = vmatpush.bf16.msra.mxu3 %v821_v21  ;;  %v813_v21 = vld [vmem:[%s1264_s0 + $0x80] sm:$0xf0] }
  0x1f   :  { %422 = vmatpush.bf16.msra.mxu1 %v829_v22 }
  0x20   :  { %471 = vmatpush.bf16.msra.mxu2 %v1039_v23 }
  0x21   :  { %374 = vmatmul.bf16.vlgmr.msra.gmra.mxu0 %v608_v32  ;;  %404 = vmatmul.bf16.vlgmr.msra.gmra.mxu3 %v680_v33 }
  0x22   :  { %900 = vmatpush.bf16.msrb.mxu3 %v947_v1  ;;  %423 = vmatmul.bf16.vlgmr.msra.gmra.mxu1 %v612_v34  ;;  %v645_v1 = vld [vmem:[%s1264_s0 + $0x54] sm:$0xf0] }
  0x23   :  { %472 = vmatmul.bf16.vlgmr.msra.gmra.mxu2 %v616_v35  ;;  %v648_v6 = vor.u32 %v806_v62, %v645_v1 }
  0x26   :  { %901 = vmatpush.bf16.msrb.mxu3 %v962_v4  ;;  %v644_v4 = vor.u32 %v807_v61, %v643_v60 }
  0x2a   :  { %902 = vmatpush.bf16.msrb.mxu3 %v834_v7 }
  0x2e   :  { %903 = vmatpush.bf16.msrb.mxu3 %v833_v10  ;;  %v809_v10 = vld [vmem:[%s1264_s0 + $0x64] sm:$0xf] }
  0x31   :  { %379 = vmatmul.bf16.gmra.mxu0 %v620_v44  ;;  %409 = vmatmul.bf16.gmra.mxu3 %v692_v45 }
  0x32   :  { %904 = vmatpush.bf16.msrb.mxu3 %v832_v13  ;;  %428 = vmatmul.bf16.gmra.mxu1 %v624_v46  ;;  %v657_v13 = vld [vmem:[%s1264_s0 + $0x6c] sm:$0xf0] }
  0x33   :  { %477 = vmatmul.bf16.gmra.mxu2 %v628_v47  ;;  %v660_v18 = vor.u32 %v809_v10, %v657_v13 }
  0x36   :  { %905 = vmatpush.bf16.msrb.mxu3 %v831_v16 }
  0x3a   :  { %906 = vmatpush.bf16.msrb.mxu3 %v830_v19 }
  0x3e   :  { %907 = vmatpush.bf16.msrb.mxu3 %v829_v22  ;;  %v812_v22 = vld [vmem:[%s1264_s0 + $0x7c] sm:$0xf] }
  0x3f   :  { %v672_v30 = vor.u32 %v812_v22, %v669_v25 }
  0x41   :  { %384 = vmatmul.bf16.gmra.mxu0 %v632_v56  ;;  %453 = vmatmul.bf16.vlgmr.msrb.gmra.mxu3 %v684_v57 }
  0x42   :  { %908 = vmatpush.bf16.msra.mxu3 %v952_v2  ;;  %433 = vmatmul.bf16.gmra.mxu1 %v636_v58  ;;  %v651_v2 = vld [vmem:[%s1264_s0 + $0x50] sm:$0xf] }
  0x43   :  { %482 = vmatmul.bf16.gmra.mxu2 %v640_v59  ;;  %v652_v7 = vor.u32 %v808_v3, %v651_v2 }
  0x46   :  { %909 = vmatpush.bf16.msra.mxu3 %v967_v5  ;;  %v696_v5 = vor.u32 %v818_v63, %v693_v0 }
  0x4a   :  { %910 = vmatpush.bf16.msra.mxu3 %v980_v8  ;;  %v655_v8 = vld [vmem:[%s1264_s0 + $0x60] sm:$0xf] }
  0x4b   :  { %v656_v16 = vor.u32 %v810_v9, %v655_v8 }
  0x4e   :  { %911 = vmatpush.bf16.msra.mxu3 %v992_v11  ;;  %v687_v11 = vld [vmem:[%s1264_s0 + $0x98] sm:$0xf] }
  0x51   :  { %389 = vmatmul.bf16.gmra.mxu0 %v644_v4  ;;  %458 = vmatmul.bf16.gmra.mxu3 %v696_v5 }
  0x52   :  { %912 = vmatpush.bf16.msra.mxu3 %v1004_v14  ;;  %438 = vmatmul.bf16.gmra.mxu1 %v648_v6  ;;  %v663_v14 = vld [vmem:[%s1264_s0 + $0x68] sm:$0xf] }
  0x53   :  { %487 = vmatmul.bf16.gmra.mxu2 %v652_v7  ;;  %v664_v19 = vor.u32 %v811_v15, %v663_v14 }
  0x56   :  { %913 = vmatpush.bf16.msra.mxu3 %v1016_v17  ;;  %v688_v17 = vor.u32 %v817_v12, %v687_v11 }
  0x5a   :  { %914 = vmatpush.bf16.msra.mxu3 %v1028_v20  ;;  %v667_v20 = vld [vmem:[%s1264_s0 + $0x78] sm:$0xf] }
  0x5b   :  { %v668_v28 = vor.u32 %v813_v21, %v667_v20 }
  0x5e   :  { %915 = vmatpush.bf16.msra.mxu3 %v1039_v23  ;;  %v699_v23 = vld [vmem:[%s1264_s0 + $0xb0] sm:$0xf] }
  0x5f   :  { %v700_v29 = vor.u32 %v820_v24, %v699_v23 }
  0x61   :  { %394 = vmatmul.bf16.gmra.mxu0 %v656_v16  ;;  %502 = vmatmul.bf16.vlgmr.msra.gmra.mxu3 %v688_v17 }
  0x62   :  { %443 = vmatmul.bf16.gmra.mxu1 %v660_v18 }
  0x63   :  { %492 = vmatmul.bf16.gmra.mxu2 %v664_v19 }
  0x71   :  { %399 = vmatmul.bf16.gmra.mxu0 %v668_v28  ;;  %507 = vmatmul.bf16.gmra.mxu3 %v700_v29 }
  0x72   :  { %448 = vmatmul.bf16.gmra.mxu1 %v672_v30 }
  0x73   :  { %497 = vmatmul.bf16.gmra.mxu2 %v676_v31 }
  0x9e   :  { %v375_v32 = vpop.f32.mrf.mxu0 }
  0x9f   :  { %v424_v33 = vpop.f32.mrf.mxu1 }
  0xa0   :  { %v425_v38 = vadd.f32 %v424_v33, %v375_v32 }
  0xa4   :  { %v405_v34 = vpop.f32.mrf.mxu3 }
  0xa6   :  { %v473_v35 = vpop.f32.mrf.mxu2  ;;  %v377_v36 = vpop.f32.mrf.mxu0 }
  0xa7   :  { %v426_v37 = vpop.f32.mrf.mxu1  ;;  %v474_v42 = vadd.f32 %v473_v35, %v425_v38 }
  0xa8   :  { %v427_v39 = vadd.f32 %v426_v37, %v377_v36 }
  0xa9   :  { %v545_v27 = vmul.f32 %v474_v42, %v474_v42 }
  0xac   :  { %v1197_v40 = vpop.f32.mrf.mxu3 }
  0xae   :  { %v475_v41 = vpop.f32.mrf.mxu2  ;;  %v380_v44 = vpop.f32.mrf.mxu0 }
  0xaf   :  { %v1199_v43 = vadd.f32 %v475_v41, %v427_v39  ;;  %v429_v45 = vpop.f32.mrf.mxu1 }
  0xb0   :  { %v430_v51 = vadd.f32 %v429_v45, %v380_v44 }
  0xb1   :  { %v848_v46 = vpack.c.bf16 %v1199_v43, %v474_v42 }
  0xb3   :  { %849 = vst [vmem:[%s1265_s2] sm:$0xff] %v848_v46  }
  0xb4   :  { %v1205_v47 = vpop.f32.mrf.mxu3 }
  0xb6   :  { %v478_v48 = vpop.f32.mrf.mxu2  ;;  %v382_v49 = vpop.f32.mrf.mxu0 }
  0xb7   :  { %v431_v50 = vpop.f32.mrf.mxu1  ;;  %v1209_v55 = vadd.f32 %v478_v48, %v430_v51 }
  0xb8   :  { %v432_v52 = vadd.f32 %v431_v50, %v382_v49 }
  0xbc   :  { %v1207_v53 = vpop.f32.mrf.mxu3 }
  0xbe   :  { %v480_v54 = vpop.f32.mrf.mxu2  ;;  %v385_v57 = vpop.f32.mrf.mxu0 }
  0xbf   :  { %v1211_v56 = vadd.f32 %v480_v54, %v432_v52  ;;  %v434_v58 = vpop.f32.mrf.mxu1 }
  0xc0   :  { %v435_v0 = vadd.f32 %v434_v58, %v385_v57 }
  0xc1   :  { %v853_v59 = vpack.c.bf16 %v1211_v56, %v1209_v55 }
  0xc3   :  { %885 = vst [vmem:[%s1265_s2 + $0x8] sm:$0xff] %v853_v59  }
  0xc4   :  { %v454_v60 = vpop.f32.mrf.mxu3 }
  0xc5   :  { %v455_v23 = vadd.f32 %v454_v60, %v405_v34 }
  0xc6   :  { %v483_v61 = vpop.f32.mrf.mxu2  ;;  %v387_v62 = vpop.f32.mrf.mxu0 }
  0xc7   :  { %v436_v63 = vpop.f32.mrf.mxu1  ;;  %v484_v4 = vadd.f32 %v483_v61, %v435_v0 }
  0xc8   :  { %v437_v1 = vadd.f32 %v436_v63, %v387_v62 }
  0xc9   :  { %v550_v24 = vmul.f32 %v484_v4, %v484_v4  ;;  %v549_v28 = vadd.f32 %v484_v4, %v474_v42  ;;  %v546_v42 = vmul.f32 %v1199_v43, %v1199_v43 }
  0xcb   :  { %v551_v33 = vadd.f32 %v550_v24, %v545_v27  ;;  %v548_v27 = vmul.f32 %v1211_v56, %v1211_v56 }
  0xcc   :  { %v456_v2 = vpop.f32.mrf.mxu3 }
  0xcd   :  { %v457_v41 = vadd.f32 %v456_v2, %v1197_v40 }
  0xce   :  { %v485_v3 = vpop.f32.mrf.mxu2  ;;  %v390_v6 = vpop.f32.mrf.mxu0 }
  0xcf   :  { %v486_v5 = vadd.f32 %v485_v3, %v437_v1  ;;  %v439_v7 = vpop.f32.mrf.mxu1 }
  0xd0   :  { %v440_v13 = vadd.f32 %v439_v7, %v390_v6 }
  0xd1   :  { %v858_v8 = vpack.c.bf16 %v486_v5, %v484_v4  ;;  %v553_v44 = vmul.f32 %v486_v5, %v486_v5  ;;  %v552_v50 = vadd.f32 %v486_v5, %v1199_v43  ;;  %v547_v5 = vmul.f32 %v1209_v55, %v1209_v55 }
  0xd3   :  { %886 = vst [vmem:[%s1265_s2 + $0x10] sm:$0xff] %v858_v8   ;;  %v554_v58 = vadd.f32 %v553_v44, %v546_v42 }
  0xd4   :  { %v459_v9 = vpop.f32.mrf.mxu3 }
  0xd5   :  { %v460_v0 = vadd.f32 %v459_v9, %v1205_v47 }
  0xd6   :  { %v488_v10 = vpop.f32.mrf.mxu2  ;;  %v392_v11 = vpop.f32.mrf.mxu0 }
  0xd7   :  { %v441_v12 = vpop.f32.mrf.mxu1  ;;  %v489_v17 = vadd.f32 %v488_v10, %v440_v13 }
  0xd8   :  { %v442_v14 = vadd.f32 %v441_v12, %v392_v11 }
  0xd9   :  { %v556_v1 = vmul.f32 %v489_v17, %v489_v17  ;;  %v555_v7 = vadd.f32 %v489_v17, %v1209_v55 }
  0xdb   :  { %v557_v12 = vadd.f32 %v556_v1, %v547_v5 }
  0xdc   :  { %v1221_v15 = vpop.f32.mrf.mxu3 }
  0xde   :  { %v490_v16 = vpop.f32.mrf.mxu2  ;;  %v395_v19 = vpop.f32.mrf.mxu0 }
  0xdf   :  { %v1223_v18 = vadd.f32 %v490_v16, %v442_v14  ;;  %v444_v20 = vpop.f32.mrf.mxu1 }
  0xe0   :  { %v445_v22 = vadd.f32 %v444_v20, %v395_v19 }
  0xe1   :  { %v863_v21 = vpack.c.bf16 %v1223_v18, %v489_v17 }
  0xe3   :  { %887 = vst [vmem:[%s1265_s2 + $0x18] sm:$0xff] %v863_v21   ;;  %v462_v21 = vadd.f32 %v1221_v15, %v1207_v53 }
  0xe4   :  { %v503_v25 = vpop.f32.mrf.mxu3 }
  0xe5   :  { %v504_v30 = vadd.f32 %v503_v25, %v455_v23 }
  0xe6   :  { %v493_v26 = vpop.f32.mrf.mxu2  ;;  %v397_v31 = vpop.f32.mrf.mxu0 }
  0xe7   :  { %v494_v29 = vadd.f32 %v493_v26, %v445_v22  ;;  %v446_v32 = vpop.f32.mrf.mxu1  ;;  %v574_v39 = vmul.f32 %v504_v30, %v504_v30  ;;  %v559_v22 = vmul.f32 %v1223_v18, %v1223_v18 }
  0xe8   :  { %v447_v34 = vadd.f32 %v446_v32, %v397_v31 }
  0xe9   :  { %v561_v35 = vadd.f32 %v549_v28, %v494_v29  ;;  %v562_v36 = vmul.f32 %v494_v29, %v494_v29  ;;  %v558_v28 = vadd.f32 %v1223_v18, %v1211_v56  ;;  %v560_v32 = vadd.f32 %v559_v22, %v548_v27 }
  0xeb   :  { %v563_v37 = vadd.f32 %v562_v36, %v551_v33  ;;  %v573_v38 = vadd.f32 %v561_v35, %v504_v30 }
  0xec   :  { %v505_v46 = vpop.f32.mrf.mxu3 }
  0xed   :  { %v575_v45 = vadd.f32 %v574_v39, %v563_v37  ;;  %v506_v49 = vadd.f32 %v505_v46, %v457_v41 }
  0xee   :  { %v495_v48 = vpop.f32.mrf.mxu2  ;;  %v400_v54 = vpop.f32.mrf.mxu0 }
  0xef   :  { %v496_v51 = vadd.f32 %v495_v48, %v447_v34  ;;  %v878_v52 = vpack.c.bf16 %v506_v49, %v504_v30  ;;  %v449_v57 = vpop.f32.mrf.mxu1  ;;  %v577_v63 = vmul.f32 %v506_v49, %v506_v49 }
  0xf0   :  { %v450_v43 = vadd.f32 %v449_v57, %v400_v54 }
  0xf1   :  { %v868_v59 = vpack.c.bf16 %v496_v51, %v494_v29  ;;  %v564_v60 = vadd.f32 %v552_v50, %v496_v51  ;;  %v565_v61 = vmul.f32 %v496_v51, %v496_v51  ;;  %890 = vst [vmem:[%s1265_s2 + $0x30] sm:$0xff] %v878_v52  }
  0xf3   :  { %888 = vst [vmem:[%s1265_s2 + $0x20] sm:$0xff] %v868_v59   ;;  %v566_v40 = vadd.f32 %v565_v61, %v554_v58  ;;  %v576_v62 = vadd.f32 %v564_v60, %v506_v49 }
  0xf4   :  { %v508_v4 = vpop.f32.mrf.mxu3 }
  0xf5   :  { %v578_v2 = vadd.f32 %v577_v63, %v566_v40  ;;  %v585_v3 = vadd.f32 %v576_v62, %v573_v38  ;;  %v509_v11 = vadd.f32 %v508_v4, %v460_v0 }
  0xf6   :  { %v498_v6 = vpop.f32.mrf.mxu2  ;;  %v402_v16 = vpop.f32.mrf.mxu0 }
  0xf7   :  { %v586_v8 = vadd.f32 %v578_v2, %v575_v45  ;;  %v499_v10 = vadd.f32 %v498_v6, %v450_v43  ;;  %v451_v19 = vpop.f32.mrf.mxu1  ;;  %v580_v9 = vmul.f32 %v509_v11, %v509_v11 }
  0xf8   :  { %v452_v55 = vadd.f32 %v451_v19, %v402_v16 }
  0xf9   :  { %v567_v13 = vadd.f32 %v555_v7, %v499_v10  ;;  %v568_v14 = vmul.f32 %v499_v10, %v499_v10 }
  0xfb   :  { %v569_v20 = vadd.f32 %v568_v14, %v557_v12  ;;  %v579_v47 = vadd.f32 %v567_v13, %v509_v11 }
  0xfc   :  { %v510_v17 = vpop.f32.mrf.mxu3 }
  0xfd   :  { %v581_v23 = vadd.f32 %v580_v9, %v569_v20  ;;  %v587_v24 = vadd.f32 %v585_v3, %v579_v47  ;;  %v511_v26 = vadd.f32 %v510_v17, %v462_v21 }
  0xfe   :  { %v500_v25 = vpop.f32.mrf.mxu2 }
  0xff   :  { %v588_v29 = vadd.f32 %v586_v8, %v581_v23  ;;  %v501_v30 = vadd.f32 %v500_v25, %v452_v55  ;;  %v883_v31 = vpack.c.bf16 %v511_v26, %v509_v11  ;;  %v583_v37 = vmul.f32 %v511_v26, %v511_v26 }
 0x101   :  { %v873_v53 = vpack.c.bf16 %v501_v30, %v499_v10  ;;  %v570_v15 = vadd.f32 %v558_v28, %v501_v30  ;;  %v571_v33 = vmul.f32 %v501_v30, %v501_v30  ;;  %891 = vst [vmem:[%s1265_s2 + $0x38] sm:$0xff] %v883_v31  }
 0x103   :  { %889 = vst [vmem:[%s1265_s2 + $0x28] sm:$0xff] %v873_v53   ;;  %v572_v35 = vadd.f32 %v571_v33, %v560_v32  ;;  %v582_v36 = vadd.f32 %v570_v15, %v511_v26 }
 0x105   :  { %v584_v38 = vadd.f32 %v583_v37, %v572_v35  ;;  %v589_v56 = vadd.f32 %v587_v24, %v582_v36 }
 0x107   :  { %v590_v18 = vadd.f32 %v588_v29, %v584_v38  ;;  %591 = vst [vmem:[%s1266_s3] sm:$0xff] %v589_v56 }
 0x109   :  { %592 = vst [vmem:[%s1267_s4] sm:$0xff] %v590_v18 }

// kernel: cond_dcgan_forward.25
= control target key start
LH: loop header
LB: loop body
LE: loop exit
PB: predicated region body
PF: predicated region fallthrough
CT: control target
= control target key end

     0   :  { %s336_s0 = inlined_call_operand.vmem [shape: bf16[128,128], index: 0, kind: input, shape index: {}]   ;;  %s337_s1 = inlined_call_operand.vmem [shape: f32[1,128], index: 1, kind: input, shape index: {}]   ;;  %s338_s2 = inlined_call_operand.vmem [shape: f32[1,128], index: 2, kind: input, shape index: {}]   ;;  %s339_s3 = inlined_call_operand.vmem [shape: bf16[128,128], index: 3, kind: output, shape index: {}]  }
   0x1   :  { %v139_v0 = vld [vmem:[%s336_s0] sm:$0xff]   ;;  %v210_v5 = vld [vmem:[%s336_s0 + $0x8] sm:$0xff]   ;;  %v211_v8 = vld [vmem:[%s336_s0 + $0x10] sm:$0xff]  }
   0x2   :  { %v252_v1 = vld [vmem:[%s337_s1] ss:$0 sm:$0xff]  ;;  %v140_v2 = vunpack.c.l.bf16 %v139_v0  ;;  %v141_v3 = vunpack.c.h.bf16 %v139_v0  ;;  %v144_v6 = vunpack.c.l.bf16 %v210_v5  ;;  %v145_v7 = vunpack.c.h.bf16 %v210_v5  ;;  %v212_v9 = vld [vmem:[%s336_s0 + $0x18] sm:$0xff]   ;;  %v214_v35 = vld [vmem:[%s336_s0 + $0x28] sm:$0xff]  }
   0x3   :  { %v257_v4 = vld [vmem:[%s338_s2] ss:$0 sm:$0xff]  ;;  %v148_v12 = vunpack.c.l.bf16 %v211_v8  ;;  %v149_v13 = vunpack.c.h.bf16 %v211_v8  ;;  %v152_v16 = vunpack.c.l.bf16 %v212_v9  ;;  %v153_v17 = vunpack.c.h.bf16 %v212_v9  ;;  %v215_v40 = vld [vmem:[%s336_s0 + $0x30] sm:$0xff]   ;;  %v216_v45 = vld [vmem:[%s336_s0 + $0x38] sm:$0xff]  }
   0x4   :  { %v50_v10 = vmul.f32 %v252_v1, %v140_v2  ;;  %v51_v11 = vmul.f32 %v252_v1, %v141_v3  ;;  %v52_v14 = vmul.f32 %v252_v1, %v144_v6  ;;  %v53_v15 = vmul.f32 %v252_v1, %v145_v7  ;;  %v213_v26 = vld [vmem:[%s336_s0 + $0x20] sm:$0xff]  }
   0x5   :  { %v54_v20 = vmul.f32 %v252_v1, %v148_v12  ;;  %v55_v21 = vmul.f32 %v252_v1, %v149_v13  ;;  %v56_v24 = vmul.f32 %v252_v1, %v152_v16  ;;  %v57_v25 = vmul.f32 %v252_v1, %v153_v17 }
   0x6   :  { %v70_v18 = vadd.f32 %v257_v4, %v50_v10  ;;  %v71_v19 = vadd.f32 %v257_v4, %v51_v11  ;;  %v72_v22 = vadd.f32 %v257_v4, %v52_v14  ;;  %v73_v23 = vadd.f32 %v257_v4, %v53_v15 }
   0x7   :  { %v74_v29 = vadd.f32 %v257_v4, %v54_v20  ;;  %v75_v30 = vadd.f32 %v257_v4, %v55_v21  ;;  %v76_v33 = vadd.f32 %v257_v4, %v56_v24  ;;  %v77_v34 = vadd.f32 %v257_v4, %v57_v25 }
   0x8   :  { %v86_v27 = vmax.f32 %v70_v18, 0.0  ;;  %v87_v28 = vmax.f32 %v71_v19, 0.0  ;;  %v88_v31 = vmax.f32 %v72_v22, 0.0  ;;  %v89_v32 = vmax.f32 %v73_v23, 0.0 }
   0x9   :  { %v90_v37 = vmax.f32 %v74_v29, 0.0  ;;  %v91_v38 = vmax.f32 %v75_v30, 0.0  ;;  %v156_v39 = vunpack.c.l.bf16 %v213_v26  ;;  %v92_v42 = vmax.f32 %v76_v33, 0.0 }
   0xa   :  { %v173_v36 = vpack.c.bf16 %v87_v28, %v86_v27  ;;  %v178_v41 = vpack.c.bf16 %v89_v32, %v88_v31  ;;  %v93_v43 = vmax.f32 %v77_v34, 0.0  ;;  %v157_v44 = vunpack.c.h.bf16 %v213_v26 }
   0xb   :  { %v183_v46 = vpack.c.bf16 %v91_v38, %v90_v37  ;;  %v58_v47 = vmul.f32 %v252_v1, %v156_v39  ;;  %v160_v48 = vunpack.c.l.bf16 %v214_v35  ;;  %v161_v49 = vunpack.c.h.bf16 %v214_v35 }
   0xc   :  { %174 = vst [vmem:[%s339_s3] sm:$0xff] %v173_v36   ;;  %v188_v50 = vpack.c.bf16 %v93_v43, %v92_v42  ;;  %v59_v51 = vmul.f32 %v252_v1, %v157_v44  ;;  %v164_v52 = vunpack.c.l.bf16 %v215_v40  ;;  %v165_v53 = vunpack.c.h.bf16 %v215_v40 }
   0xd   :  { %217 = vst [vmem:[%s339_s3 + $0x8] sm:$0xff] %v178_v41   ;;  %v78_v54 = vadd.f32 %v257_v4, %v58_v47  ;;  %v60_v55 = vmul.f32 %v252_v1, %v160_v48  ;;  %v61_v56 = vmul.f32 %v252_v1, %v161_v49  ;;  %v168_v57 = vunpack.c.l.bf16 %v216_v45 }
   0xe   :  { %218 = vst [vmem:[%s339_s3 + $0x10] sm:$0xff] %v183_v46   ;;  %v79_v58 = vadd.f32 %v257_v4, %v59_v51  ;;  %v62_v59 = vmul.f32 %v252_v1, %v164_v52  ;;  %v63_v60 = vmul.f32 %v252_v1, %v165_v53  ;;  %v169_v61 = vunpack.c.h.bf16 %v216_v45 }
   0xf   :  { %219 = vst [vmem:[%s339_s3 + $0x18] sm:$0xff] %v188_v50   ;;  %v94_v62 = vmax.f32 %v78_v54, 0.0  ;;  %v80_v63 = vadd.f32 %v257_v4, %v60_v55  ;;  %v81_v0 = vadd.f32 %v257_v4, %v61_v56  ;;  %v64_v2 = vmul.f32 %v252_v1, %v168_v57 }
  0x10   :  { %v95_v3 = vmax.f32 %v79_v58, 0.0  ;;  %v82_v5 = vadd.f32 %v257_v4, %v62_v59  ;;  %v83_v6 = vadd.f32 %v257_v4, %v63_v60  ;;  %v65_v7 = vmul.f32 %v252_v1, %v169_v61 }
  0x11   :  { %v96_v8 = vmax.f32 %v80_v63, 0.0  ;;  %v97_v9 = vmax.f32 %v81_v0, 0.0  ;;  %v84_v10 = vadd.f32 %v257_v4, %v64_v2 }
  0x12   :  { %v193_v11 = vpack.c.bf16 %v95_v3, %v94_v62  ;;  %v98_v12 = vmax.f32 %v82_v5, 0.0  ;;  %v99_v13 = vmax.f32 %v83_v6, 0.0  ;;  %v85_v14 = vadd.f32 %v257_v4, %v65_v7 }
  0x13   :  { %v198_v15 = vpack.c.bf16 %v97_v9, %v96_v8  ;;  %v100_v16 = vmax.f32 %v84_v10, 0.0 }
  0x14   :  { %220 = vst [vmem:[%s339_s3 + $0x20] sm:$0xff] %v193_v11   ;;  %v203_v17 = vpack.c.bf16 %v99_v13, %v98_v12  ;;  %v101_v18 = vmax.f32 %v85_v14, 0.0 }
  0x15   :  { %221 = vst [vmem:[%s339_s3 + $0x28] sm:$0xff] %v198_v15  }
  0x16   :  { %222 = vst [vmem:[%s339_s3 + $0x30] sm:$0xff] %v203_v17   ;;  %v208_v1 = vpack.c.bf16 %v101_v18, %v100_v16 }
  0x18   :  { %223 = vst [vmem:[%s339_s3 + $0x38] sm:$0xff] %v208_v1  }

// kernel: tile.73
= control target key start
LH: loop header
LB: loop body
LE: loop exit
PB: predicated region body
PF: predicated region fallthrough
CT: control target
= control target key end

     0   :  { %s22_s0 = inlined_call_operand.vmem [shape: f32[8], index: 0, kind: input, shape index: {}]   ;;  %s23_s1 = inlined_call_operand.vmem [shape: f32[4,8], index: 1, kind: output, shape index: {}]  }
   0x1   :  { %v4_v0 = vld [vmem:[%s22_s0] ss:$0 sm:$0xff] }
   0x2   :  { %5 = vst [vmem:[%s23_s1] sm:$0xf] %v4_v0 }

// kernel: cond_dcgan_forward.26
= control target key start
LH: loop header
LB: loop body
LE: loop exit
PB: predicated region body
PF: predicated region fallthrough
CT: control target
= control target key end

     0   :  { %s2659_s1 = inlined_call_operand.vmem [shape: bf16[256,128], index: 1, kind: input, shape index: {}]   ;;  %s2660_s0 = inlined_call_operand.vmem [shape: bf16[512,256], index: 0, kind: input, shape index: {}]   ;;  %s2661_s2 = inlined_call_operand.vmem [shape: bf16[512,128], index: 2, kind: output, shape index: {0}]   ;;  %s2662_s3 = inlined_call_operand.vmem [shape: f32[8,128], index: 3, kind: output, shape index: {1}]   ;;  %s2663_s4 = inlined_call_operand.vmem [shape: f32[8,128], index: 4, kind: output, shape index: {2}]  }
   0x1   :  { %v1587_v0 = vld [vmem:[%s2659_s1 + $0x38] sm:$0xff]  ;;  %v1586_v2 = vld [vmem:[%s2659_s1 + $0x30] sm:$0xff]  ;;  %v1585_v4 = vld [vmem:[%s2659_s1 + $0x28] sm:$0xff] }
   0x2   :  { %v1595_v1 = vld [vmem:[%s2659_s1 + $0x78] sm:$0xff]  ;;  %526 = vmatpush.bf16.msra.mxu0 %v1587_v0  ;;  %v1594_v3 = vld [vmem:[%s2659_s1 + $0x70] sm:$0xff]  ;;  %1787 = vmatpush.bf16.msra.mxu2 %v1587_v0  ;;  %v1593_v5 = vld [vmem:[%s2659_s1 + $0x68] sm:$0xff] }
   0x3   :  { %695 = vmatpush.bf16.msra.mxu1 %v1595_v1  ;;  %1795 = vmatpush.bf16.msra.mxu3 %v1595_v1  ;;  %v1584_v6 = vld [vmem:[%s2659_s1 + $0x20] sm:$0xff]  ;;  %v1583_v8 = vld [vmem:[%s2659_s1 + $0x18] sm:$0xff]  ;;  %v1582_v10 = vld [vmem:[%s2659_s1 + $0x10] sm:$0xff] }
   0x4   :  { %v1592_v7 = vld [vmem:[%s2659_s1 + $0x60] sm:$0xff]  ;;  %v1591_v9 = vld [vmem:[%s2659_s1 + $0x58] sm:$0xff]  ;;  %v1590_v11 = vld [vmem:[%s2659_s1 + $0x50] sm:$0xff] }
   0x5   :  { %v1581_v12 = vld [vmem:[%s2659_s1 + $0x8] sm:$0xff]  ;;  %v1580_v14 = vld [vmem:[%s2659_s1] sm:$0xff]  ;;  %v1206_v28 = vld [vmem:[%s2660_s0 + $0x10] sm:$0xf] }
   0x6   :  { %527 = vmatpush.bf16.msra.mxu0 %v1586_v2  ;;  %1788 = vmatpush.bf16.msra.mxu2 %v1586_v2  ;;  %v1589_v13 = vld [vmem:[%s2659_s1 + $0x48] sm:$0xff]  ;;  %v1588_v15 = vld [vmem:[%s2659_s1 + $0x40] sm:$0xff]  ;;  %v1519_v29 = vld [vmem:[%s2660_s0 + $0x14] sm:$0xf0] }
   0x7   :  { %696 = vmatpush.bf16.msra.mxu1 %v1594_v3  ;;  %1796 = vmatpush.bf16.msra.mxu3 %v1594_v3  ;;  %v1198_v16 = vld [vmem:[%s2660_s0] sm:$0xf]  ;;  %v1517_v17 = vld [vmem:[%s2660_s0 + $0x4] sm:$0xf0]  ;;  %v1516_v18 = vld [vmem:[%s2660_s0 + $0x4] sm:$0xf]  ;;  %v1207_v36 = vor.u32 %v1519_v29, %v1206_v28 }
   0x8   :  { %v1200_v19 = vld [vmem:[%s2660_s0 + $0x8] sm:$0xf0]  ;;  %v1326_v20 = vld [vmem:[%s2660_s0 + $0x100] sm:$0xf]  ;;  %v1549_v21 = vld [vmem:[%s2660_s0 + $0x104] sm:$0xf0]  ;;  %v1199_v24 = vor.u32 %v1517_v17, %v1198_v16 }
   0x9   :  { %v1548_v22 = vld [vmem:[%s2660_s0 + $0x104] sm:$0xf]  ;;  %v1328_v23 = vld [vmem:[%s2660_s0 + $0x108] sm:$0xf0]  ;;  %v1203_v25 = vor.u32 %v1516_v18, %v1200_v19  ;;  %v1327_v26 = vor.u32 %v1549_v21, %v1326_v20  ;;  %v1518_v30 = vld [vmem:[%s2660_s0 + $0x14] sm:$0xf] }
   0xa   :  { %528 = vmatpush.bf16.msra.mxu0 %v1585_v4  ;;  %1789 = vmatpush.bf16.msra.mxu2 %v1585_v4  ;;  %v1331_v27 = vor.u32 %v1548_v22, %v1328_v23  ;;  %v1208_v31 = vld [vmem:[%s2660_s0 + $0x18] sm:$0xf0]  ;;  %v1334_v32 = vld [vmem:[%s2660_s0 + $0x110] sm:$0xf]  ;;  %v1551_v33 = vld [vmem:[%s2660_s0 + $0x114] sm:$0xf0] }
   0xb   :  { %697 = vmatpush.bf16.msra.mxu1 %v1593_v5  ;;  %1797 = vmatpush.bf16.msra.mxu3 %v1593_v5  ;;  %v1550_v34 = vld [vmem:[%s2660_s0 + $0x114] sm:$0xf]  ;;  %v1336_v35 = vld [vmem:[%s2660_s0 + $0x118] sm:$0xf0]  ;;  %v1211_v37 = vor.u32 %v1518_v30, %v1208_v31  ;;  %v1335_v38 = vor.u32 %v1551_v33, %v1334_v32  ;;  %v1214_v40 = vld [vmem:[%s2660_s0 + $0x20] sm:$0xf] }
   0xc   :  { %v1339_v39 = vor.u32 %v1550_v34, %v1336_v35  ;;  %v1521_v41 = vld [vmem:[%s2660_s0 + $0x24] sm:$0xf0]  ;;  %v1520_v42 = vld [vmem:[%s2660_s0 + $0x24] sm:$0xf]  ;;  %v1216_v43 = vld [vmem:[%s2660_s0 + $0x28] sm:$0xf0] }
   0xd   :  { %v1342_v44 = vld [vmem:[%s2660_s0 + $0x120] sm:$0xf]  ;;  %v1553_v45 = vld [vmem:[%s2660_s0 + $0x124] sm:$0xf0]  ;;  %v1552_v46 = vld [vmem:[%s2660_s0 + $0x124] sm:$0xf]  ;;  %v1215_v48 = vor.u32 %v1521_v41, %v1214_v40  ;;  %v1219_v49 = vor.u32 %v1520_v42, %v1216_v43 }
   0xe   :  { %529 = vmatpush.bf16.msra.mxu0 %v1584_v6  ;;  %1790 = vmatpush.bf16.msra.mxu2 %v1584_v6  ;;  %v1344_v47 = vld [vmem:[%s2660_s0 + $0x128] sm:$0xf0]  ;;  %v1343_v50 = vor.u32 %v1553_v45, %v1342_v44  ;;  %v1222_v52 = vld [vmem:[%s2660_s0 + $0x30] sm:$0xf]  ;;  %v1523_v53 = vld [vmem:[%s2660_s0 + $0x34] sm:$0xf0] }
   0xf   :  { %698 = vmatpush.bf16.msra.mxu1 %v1592_v7  ;;  %1798 = vmatpush.bf16.msra.mxu3 %v1592_v7  ;;  %v1347_v51 = vor.u32 %v1552_v46, %v1344_v47  ;;  %v1522_v54 = vld [vmem:[%s2660_s0 + $0x34] sm:$0xf]  ;;  %v1224_v55 = vld [vmem:[%s2660_s0 + $0x38] sm:$0xf0]  ;;  %v1350_v56 = vld [vmem:[%s2660_s0 + $0x130] sm:$0xf]  ;;  %v1223_v60 = vor.u32 %v1523_v53, %v1222_v52 }
  0x10   :  { %v1555_v57 = vld [vmem:[%s2660_s0 + $0x134] sm:$0xf0]  ;;  %v1554_v58 = vld [vmem:[%s2660_s0 + $0x134] sm:$0xf]  ;;  %v1352_v59 = vld [vmem:[%s2660_s0 + $0x138] sm:$0xf0]  ;;  %v1227_v61 = vor.u32 %v1522_v54, %v1224_v55 }
  0x11   :  { %v1351_v62 = vor.u32 %v1555_v57, %v1350_v56  ;;  %v1355_v63 = vor.u32 %v1554_v58, %v1352_v59  ;;  %v1230_v0 = vld [vmem:[%s2660_s0 + $0x40] sm:$0xf]  ;;  %v1525_v1 = vld [vmem:[%s2660_s0 + $0x44] sm:$0xf0]  ;;  %v1524_v2 = vld [vmem:[%s2660_s0 + $0x44] sm:$0xf] }
  0x12   :  { %530 = vmatpush.bf16.msra.mxu0 %v1583_v8  ;;  %1791 = vmatpush.bf16.msra.mxu2 %v1583_v8  ;;  %v1232_v3 = vld [vmem:[%s2660_s0 + $0x48] sm:$0xf0]  ;;  %v1358_v4 = vld [vmem:[%s2660_s0 + $0x140] sm:$0xf]  ;;  %v1557_v5 = vld [vmem:[%s2660_s0 + $0x144] sm:$0xf0]  ;;  %v1231_v8 = vor.u32 %v1525_v1, %v1230_v0 }
  0x13   :  { %699 = vmatpush.bf16.msra.mxu1 %v1591_v9  ;;  %1799 = vmatpush.bf16.msra.mxu3 %v1591_v9  ;;  %v1556_v6 = vld [vmem:[%s2660_s0 + $0x144] sm:$0xf]  ;;  %v1360_v7 = vld [vmem:[%s2660_s0 + $0x148] sm:$0xf0]  ;;  %v1235_v9 = vor.u32 %v1524_v2, %v1232_v3  ;;  %v1366_v16 = vld [vmem:[%s2660_s0 + $0x150] sm:$0xf] }
  0x14   :  { %v1559_v17 = vld [vmem:[%s2660_s0 + $0x154] sm:$0xf0]  ;;  %v1558_v18 = vld [vmem:[%s2660_s0 + $0x154] sm:$0xf]  ;;  %v1368_v19 = vld [vmem:[%s2660_s0 + $0x158] sm:$0xf0] }
  0x15   :  { %v1367_v22 = vor.u32 %v1559_v17, %v1366_v16  ;;  %v1371_v23 = vor.u32 %v1558_v18, %v1368_v19  ;;  %v1374_v28 = vld [vmem:[%s2660_s0 + $0x160] sm:$0xf]  ;;  %v1561_v29 = vld [vmem:[%s2660_s0 + $0x164] sm:$0xf0]  ;;  %v1560_v30 = vld [vmem:[%s2660_s0 + $0x164] sm:$0xf] }
  0x16   :  { %531 = vmatpush.bf16.msra.mxu0 %v1582_v10  ;;  %1792 = vmatpush.bf16.msra.mxu2 %v1582_v10  ;;  %v1359_v10 = vor.u32 %v1557_v5, %v1358_v4  ;;  %v1376_v31 = vld [vmem:[%s2660_s0 + $0x168] sm:$0xf0]  ;;  %v1375_v34 = vor.u32 %v1561_v29, %v1374_v28  ;;  %v1382_v40 = vld [vmem:[%s2660_s0 + $0x170] sm:$0xf]  ;;  %v1563_v41 = vld [vmem:[%s2660_s0 + $0x174] sm:$0xf0] }
  0x17   :  { %700 = vmatpush.bf16.msra.mxu1 %v1590_v11  ;;  %1800 = vmatpush.bf16.msra.mxu3 %v1590_v11  ;;  %v1363_v11 = vor.u32 %v1556_v6, %v1360_v7  ;;  %v1379_v35 = vor.u32 %v1560_v30, %v1376_v31  ;;  %v1562_v42 = vld [vmem:[%s2660_s0 + $0x174] sm:$0xf]  ;;  %v1384_v43 = vld [vmem:[%s2660_s0 + $0x178] sm:$0xf0]  ;;  %v1383_v46 = vor.u32 %v1563_v41, %v1382_v40  ;;  %v1390_v52 = vld [vmem:[%s2660_s0 + $0x180] sm:$0xf] }
  0x18   :  { %v1387_v47 = vor.u32 %v1562_v42, %v1384_v43  ;;  %v1565_v53 = vld [vmem:[%s2660_s0 + $0x184] sm:$0xf0]  ;;  %v1564_v54 = vld [vmem:[%s2660_s0 + $0x184] sm:$0xf]  ;;  %v1392_v55 = vld [vmem:[%s2660_s0 + $0x188] sm:$0xf0] }
  0x19   :  { %v1270_v5 = vld [vmem:[%s2660_s0 + $0x90] sm:$0xf]  ;;  %v1535_v6 = vld [vmem:[%s2660_s0 + $0x94] sm:$0xf0]  ;;  %v1534_v7 = vld [vmem:[%s2660_s0 + $0x94] sm:$0xf] }
  0x1a   :  { %532 = vmatpush.bf16.msra.mxu0 %v1581_v12  ;;  %1793 = vmatpush.bf16.msra.mxu2 %v1581_v12  ;;  %v1238_v12 = vld [vmem:[%s2660_s0 + $0x50] sm:$0xf]  ;;  %v1271_v16 = vor.u32 %v1535_v6, %v1270_v5  ;;  %v1278_v31 = vld [vmem:[%s2660_s0 + $0xa0] sm:$0xf]  ;;  %v1571_v5 = vld [vmem:[%s2660_s0 + $0x1b4] sm:$0xf0] }
  0x1b   :  { %701 = vmatpush.bf16.msra.mxu1 %v1589_v13  ;;  %1801 = vmatpush.bf16.msra.mxu3 %v1589_v13  ;;  %v1527_v13 = vld [vmem:[%s2660_s0 + $0x54] sm:$0xf0] }
  0x1c   :  { %v1239_v20 = vor.u32 %v1527_v13, %v1238_v12  ;;  %v1400_v12 = vld [vmem:[%s2660_s0 + $0x198] sm:$0xf0] }
  0x1e   :  { %533 = vmatpush.bf16.msra.mxu0 %v1580_v14  ;;  %1794 = vmatpush.bf16.msra.mxu2 %v1580_v14  ;;  %v1526_v14 = vld [vmem:[%s2660_s0 + $0x54] sm:$0xf] }
  0x1f   :  { %702 = vmatpush.bf16.msra.mxu1 %v1588_v15  ;;  %1802 = vmatpush.bf16.msra.mxu3 %v1588_v15  ;;  %v1240_v15 = vld [vmem:[%s2660_s0 + $0x58] sm:$0xf0] }
  0x20   :  { %v1243_v21 = vor.u32 %v1526_v14, %v1240_v15 }
  0x21   :  { %534 = vmatmul.bf16.vlgmr.msra.gmra.mxu0 %v1199_v24  ;;  %614 = vmatmul.bf16.vlgmr.msra.gmra.mxu2 %v1327_v26  ;;  %v1246_v24 = vld [vmem:[%s2660_s0 + $0x60] sm:$0xf]  ;;  %v1528_v26 = vld [vmem:[%s2660_s0 + $0x64] sm:$0xf] }
  0x22   :  { %703 = vmatmul.bf16.vlgmr.msra.gmra.mxu1 %v1203_v25  ;;  %783 = vmatmul.bf16.vlgmr.msra.gmra.mxu3 %v1331_v27  ;;  %v1529_v25 = vld [vmem:[%s2660_s0 + $0x64] sm:$0xf0]  ;;  %v1248_v27 = vld [vmem:[%s2660_s0 + $0x68] sm:$0xf0] }
  0x23   :  { %v1247_v32 = vor.u32 %v1529_v25, %v1246_v24  ;;  %v1251_v33 = vor.u32 %v1528_v26, %v1248_v27 }
  0x31   :  { %539 = vmatmul.bf16.gmra.mxu0 %v1207_v36  ;;  %619 = vmatmul.bf16.gmra.mxu2 %v1335_v38  ;;  %v1254_v36 = vld [vmem:[%s2660_s0 + $0x70] sm:$0xf]  ;;  %v1530_v38 = vld [vmem:[%s2660_s0 + $0x74] sm:$0xf] }
  0x32   :  { %708 = vmatmul.bf16.gmra.mxu1 %v1211_v37  ;;  %788 = vmatmul.bf16.gmra.mxu3 %v1339_v39  ;;  %v1531_v37 = vld [vmem:[%s2660_s0 + $0x74] sm:$0xf0]  ;;  %v1256_v39 = vld [vmem:[%s2660_s0 + $0x78] sm:$0xf0] }
  0x33   :  { %v1255_v44 = vor.u32 %v1531_v37, %v1254_v36  ;;  %v1259_v45 = vor.u32 %v1530_v38, %v1256_v39  ;;  %v1569_v36 = vld [vmem:[%s2660_s0 + $0x1a4] sm:$0xf0]  ;;  %v1568_v37 = vld [vmem:[%s2660_s0 + $0x1a4] sm:$0xf]  ;;  %v1408_v38 = vld [vmem:[%s2660_s0 + $0x1a8] sm:$0xf0] }
  0x41   :  { %544 = vmatmul.bf16.gmra.mxu0 %v1215_v48  ;;  %624 = vmatmul.bf16.gmra.mxu2 %v1343_v50  ;;  %v1262_v48 = vld [vmem:[%s2660_s0 + $0x80] sm:$0xf]  ;;  %v1532_v50 = vld [vmem:[%s2660_s0 + $0x84] sm:$0xf] }
  0x42   :  { %713 = vmatmul.bf16.gmra.mxu1 %v1219_v49  ;;  %793 = vmatmul.bf16.gmra.mxu3 %v1347_v51  ;;  %v1533_v49 = vld [vmem:[%s2660_s0 + $0x84] sm:$0xf0]  ;;  %v1264_v51 = vld [vmem:[%s2660_s0 + $0x88] sm:$0xf0] }
  0x43   :  { %v1263_v56 = vor.u32 %v1533_v49, %v1262_v48  ;;  %v1267_v57 = vor.u32 %v1532_v50, %v1264_v51  ;;  %v1411_v48 = vor.u32 %v1568_v37, %v1408_v38  ;;  %v1294_v37 = vld [vmem:[%s2660_s0 + $0xc0] sm:$0xf]  ;;  %v1541_v38 = vld [vmem:[%s2660_s0 + $0xc4] sm:$0xf0] }
  0x51   :  { %549 = vmatmul.bf16.gmra.mxu0 %v1223_v60  ;;  %629 = vmatmul.bf16.gmra.mxu2 %v1351_v62  ;;  %v1391_v60 = vor.u32 %v1565_v53, %v1390_v52 }
  0x52   :  { %718 = vmatmul.bf16.gmra.mxu1 %v1227_v61  ;;  %798 = vmatmul.bf16.gmra.mxu3 %v1355_v63  ;;  %v1395_v61 = vor.u32 %v1564_v54, %v1392_v55 }
  0x61   :  { %554 = vmatmul.bf16.gmra.mxu0 %v1231_v8  ;;  %634 = vmatmul.bf16.gmra.mxu2 %v1359_v10  ;;  %v1272_v8 = vld [vmem:[%s2660_s0 + $0x98] sm:$0xf0]  ;;  %v1567_v10 = vld [vmem:[%s2660_s0 + $0x194] sm:$0xf0] }
  0x62   :  { %723 = vmatmul.bf16.gmra.mxu1 %v1235_v9  ;;  %803 = vmatmul.bf16.gmra.mxu3 %v1363_v11  ;;  %v1398_v9 = vld [vmem:[%s2660_s0 + $0x190] sm:$0xf]  ;;  %v1566_v11 = vld [vmem:[%s2660_s0 + $0x194] sm:$0xf]  ;;  %v1275_v17 = vor.u32 %v1534_v7, %v1272_v8  ;;  %v1416_v8 = vld [vmem:[%s2660_s0 + $0x1b8] sm:$0xf0] }
  0x63   :  { %v1570_v7 = vld [vmem:[%s2660_s0 + $0x1b4] sm:$0xf] }
  0x71   :  { %559 = vmatmul.bf16.gmra.mxu0 %v1239_v20  ;;  %639 = vmatmul.bf16.gmra.mxu2 %v1367_v22  ;;  %v1403_v22 = vor.u32 %v1566_v11, %v1400_v12 }
  0x72   :  { %728 = vmatmul.bf16.gmra.mxu1 %v1243_v21  ;;  %808 = vmatmul.bf16.gmra.mxu3 %v1371_v23  ;;  %v1399_v21 = vor.u32 %v1567_v10, %v1398_v9 }
  0x81   :  { %564 = vmatmul.bf16.gmra.mxu0 %v1247_v32  ;;  %644 = vmatmul.bf16.gmra.mxu2 %v1375_v34  ;;  %v1537_v32 = vld [vmem:[%s2660_s0 + $0xa4] sm:$0xf0]  ;;  %v1280_v34 = vld [vmem:[%s2660_s0 + $0xa8] sm:$0xf0] }
  0x82   :  { %733 = vmatmul.bf16.gmra.mxu1 %v1251_v33  ;;  %813 = vmatmul.bf16.gmra.mxu3 %v1379_v35  ;;  %v1536_v33 = vld [vmem:[%s2660_s0 + $0xa4] sm:$0xf]  ;;  %v1406_v35 = vld [vmem:[%s2660_s0 + $0x1a0] sm:$0xf]  ;;  %v1279_v42 = vor.u32 %v1537_v32, %v1278_v31 }
  0x83   :  { %v1283_v43 = vor.u32 %v1536_v33, %v1280_v34 }
  0x91   :  { %569 = vmatmul.bf16.gmra.mxu0 %v1255_v44  ;;  %649 = vmatmul.bf16.gmra.mxu2 %v1383_v46 }
  0x92   :  { %738 = vmatmul.bf16.gmra.mxu1 %v1259_v45  ;;  %818 = vmatmul.bf16.gmra.mxu3 %v1387_v47  ;;  %v1407_v47 = vor.u32 %v1569_v36, %v1406_v35 }
  0x9e   :  { %v535_v58 = vpop.f32.mrf.mxu0 }
  0x9f   :  { %v704_v59 = vpop.f32.mrf.mxu1 }
  0xa0   :  { %v705_v2 = vadd.f32 %v704_v59, %v535_v58 }
  0xa1   :  { %574 = vmatmul.bf16.gmra.mxu0 %v1263_v56  ;;  %654 = vmatmul.bf16.gmra.mxu2 %v1391_v60 }
  0xa2   :  { %743 = vmatmul.bf16.gmra.mxu1 %v1267_v57  ;;  %823 = vmatmul.bf16.gmra.mxu3 %v1395_v61  ;;  %v992_v51 = vmul.f32 %v705_v2, %v705_v2 }
  0xa4   :  { %v615_v62 = vpop.f32.mrf.mxu2 }
  0xa5   :  { %v784_v63 = vpop.f32.mrf.mxu3 }
  0xa6   :  { %v537_v0 = vpop.f32.mrf.mxu0  ;;  %v2122_v13 = vadd.f32 %v784_v63, %v615_v62 }
  0xa7   :  { %v706_v1 = vpop.f32.mrf.mxu1 }
  0xa8   :  { %v2092_v3 = vadd.f32 %v706_v1, %v537_v0  ;;  %v1286_v0 = vld [vmem:[%s2660_s0 + $0xb0] sm:$0xf]  ;;  %v1539_v1 = vld [vmem:[%s2660_s0 + $0xb4] sm:$0xf0] }
  0xa9   :  { %v1287_v12 = vor.u32 %v1539_v1, %v1286_v0 }
  0xaa   :  { %v1599_v4 = vpack.c.bf16 %v2092_v3, %v705_v2  ;;  %v993_v60 = vmul.f32 %v2092_v3, %v2092_v3 }
  0xac   :  { %1600 = vst [vmem:[%s2661_s2] sm:$0xff] %v1599_v4   ;;  %v617_v14 = vpop.f32.mrf.mxu2  ;;  %v1288_v4 = vld [vmem:[%s2660_s0 + $0xb8] sm:$0xf0] }
  0xad   :  { %v786_v15 = vpop.f32.mrf.mxu3 }
  0xae   :  { %v540_v18 = vpop.f32.mrf.mxu0  ;;  %v2124_v20 = vadd.f32 %v786_v15, %v617_v14 }
  0xaf   :  { %v709_v19 = vpop.f32.mrf.mxu1 }
  0xb0   :  { %v1679_v23 = vpack.c.bf16 %v2124_v20, %v2122_v13  ;;  %v2131_v28 = vadd.f32 %v709_v19, %v540_v18  ;;  %v1419_v19 = vor.u32 %v1570_v7, %v1416_v8 }
  0xb1   :  { %579 = vmatmul.bf16.gmra.mxu0 %v1271_v16  ;;  %659 = vmatmul.bf16.gmra.mxu2 %v1399_v21 }
  0xb2   :  { %748 = vmatmul.bf16.gmra.mxu1 %v1275_v17  ;;  %1771 = vst [vmem:[%s2661_s2 + $0x80] sm:$0xff] %v1679_v23   ;;  %828 = vmatmul.bf16.gmra.mxu3 %v1403_v22  ;;  %v994_v23 = vmul.f32 %v2131_v28, %v2131_v28 }
  0xb4   :  { %v620_v24 = vpop.f32.mrf.mxu2 }
  0xb5   :  { %v789_v25 = vpop.f32.mrf.mxu3 }
  0xb6   :  { %v542_v26 = vpop.f32.mrf.mxu0  ;;  %v2164_v39 = vadd.f32 %v789_v25, %v620_v24 }
  0xb7   :  { %v711_v27 = vpop.f32.mrf.mxu1 }
  0xb8   :  { %v2133_v29 = vadd.f32 %v711_v27, %v542_v26 }
  0xba   :  { %v1604_v30 = vpack.c.bf16 %v2133_v29, %v2131_v28 }
  0xbc   :  { %1756 = vst [vmem:[%s2661_s2 + $0x8] sm:$0xff] %v1604_v30   ;;  %v622_v40 = vpop.f32.mrf.mxu2 }
  0xbd   :  { %v791_v41 = vpop.f32.mrf.mxu3 }
  0xbe   :  { %v545_v44 = vpop.f32.mrf.mxu0  ;;  %v2166_v46 = vadd.f32 %v791_v41, %v622_v40  ;;  %v1540_v40 = vld [vmem:[%s2660_s0 + $0xc4] sm:$0xf]  ;;  %v1296_v41 = vld [vmem:[%s2660_s0 + $0xc8] sm:$0xf0] }
  0xbf   :  { %v714_v45 = vpop.f32.mrf.mxu1 }
  0xc0   :  { %v715_v49 = vadd.f32 %v714_v45, %v545_v44  ;;  %v1684_v50 = vpack.c.bf16 %v2166_v46, %v2164_v39  ;;  %v1572_v44 = vld [vmem:[%s2660_s0 + $0x1c4] sm:$0xf]  ;;  %v1424_v45 = vld [vmem:[%s2660_s0 + $0x1c8] sm:$0xf0] }
  0xc1   :  { %584 = vmatmul.bf16.gmra.mxu0 %v1279_v42  ;;  %664 = vmatmul.bf16.gmra.mxu2 %v1407_v47  ;;  %v1573_v42 = vld [vmem:[%s2660_s0 + $0x1c4] sm:$0xf0] }
  0xc2   :  { %v2170_v52 = vadd.f32 %v715_v49, %v705_v2  ;;  %v997_v53 = vmul.f32 %v715_v49, %v715_v49  ;;  %753 = vmatmul.bf16.gmra.mxu1 %v1283_v43  ;;  %1772 = vst [vmem:[%s2661_s2 + $0x88] sm:$0xff] %v1684_v50   ;;  %833 = vmatmul.bf16.gmra.mxu3 %v1411_v48  ;;  %v1538_v2 = vld [vmem:[%s2660_s0 + $0xb4] sm:$0xf] }
  0xc3   :  { %v1291_v14 = vor.u32 %v1538_v2, %v1288_v4  ;;  %v1295_v50 = vor.u32 %v1541_v38, %v1294_v37 }
  0xc4   :  { %v2175_v54 = vadd.f32 %v997_v53, %v992_v51  ;;  %v625_v55 = vpop.f32.mrf.mxu2  ;;  %v1299_v51 = vor.u32 %v1540_v40, %v1296_v41 }
  0xc5   :  { %v794_v56 = vpop.f32.mrf.mxu3 }
  0xc6   :  { %v547_v57 = vpop.f32.mrf.mxu0  ;;  %v2211_v9 = vadd.f32 %v794_v56, %v625_v55 }
  0xc7   :  { %v716_v58 = vpop.f32.mrf.mxu1 }
  0xc8   :  { %v717_v59 = vadd.f32 %v716_v58, %v547_v57  ;;  %v1427_v58 = vor.u32 %v1572_v44, %v1424_v45 }
  0xca   :  { %v1609_v61 = vpack.c.bf16 %v717_v59, %v715_v49  ;;  %v2180_v62 = vadd.f32 %v717_v59, %v2092_v3  ;;  %v1000_v63 = vmul.f32 %v717_v59, %v717_v59  ;;  %v1414_v3 = vld [vmem:[%s2660_s0 + $0x1b0] sm:$0xf] }
  0xcb   :  { %v1415_v18 = vor.u32 %v1571_v5, %v1414_v3 }
  0xcc   :  { %1757 = vst [vmem:[%s2661_s2 + $0x10] sm:$0xff] %v1609_v61   ;;  %v2203_v6 = vadd.f32 %v1000_v63, %v993_v60  ;;  %v627_v10 = vpop.f32.mrf.mxu2 }
  0xcd   :  { %v796_v11 = vpop.f32.mrf.mxu3 }
  0xce   :  { %v550_v15 = vpop.f32.mrf.mxu0  ;;  %v2213_v17 = vadd.f32 %v796_v11, %v627_v10  ;;  %v1302_v10 = vld [vmem:[%s2660_s0 + $0xd0] sm:$0xf]  ;;  %v1543_v11 = vld [vmem:[%s2660_s0 + $0xd4] sm:$0xf0] }
  0xcf   :  { %v719_v16 = vpop.f32.mrf.mxu1 }
  0xd0   :  { %v720_v21 = vadd.f32 %v719_v16, %v550_v15  ;;  %v1689_v22 = vpack.c.bf16 %v2213_v17, %v2211_v9  ;;  %v1574_v16 = vld [vmem:[%s2660_s0 + $0x1d4] sm:$0xf] }
  0xd1   :  { %589 = vmatmul.bf16.gmra.mxu0 %v1287_v12  ;;  %669 = vmatmul.bf16.gmra.mxu2 %v1415_v18  ;;  %v1304_v12 = vld [vmem:[%s2660_s0 + $0xd8] sm:$0xf0] }
  0xd2   :  { %v2220_v24 = vadd.f32 %v720_v21, %v2131_v28  ;;  %v1003_v25 = vmul.f32 %v720_v21, %v720_v21  ;;  %758 = vmatmul.bf16.gmra.mxu1 %v1291_v14  ;;  %1773 = vst [vmem:[%s2661_s2 + $0x90] sm:$0xff] %v1689_v22   ;;  %838 = vmatmul.bf16.gmra.mxu3 %v1419_v19  ;;  %v1575_v14 = vld [vmem:[%s2660_s0 + $0x1d4] sm:$0xf0]  ;;  %v1432_v18 = vld [vmem:[%s2660_s0 + $0x1d8] sm:$0xf0] }
  0xd3   :  { %v995_v28 = vmul.f32 %v2133_v29, %v2133_v29 }
  0xd4   :  { %v2225_v26 = vadd.f32 %v1003_v25, %v994_v23  ;;  %v630_v27 = vpop.f32.mrf.mxu2  ;;  %v1303_v23 = vor.u32 %v1543_v11, %v1302_v10 }
  0xd5   :  { %v799_v30 = vpop.f32.mrf.mxu3 }
  0xd6   :  { %v552_v31 = vpop.f32.mrf.mxu0  ;;  %v2261_v47 = vadd.f32 %v799_v30, %v630_v27 }
  0xd7   :  { %v721_v32 = vpop.f32.mrf.mxu1 }
  0xd8   :  { %v722_v33 = vadd.f32 %v721_v32, %v552_v31  ;;  %v1435_v32 = vor.u32 %v1574_v16, %v1432_v18 }
  0xda   :  { %v1614_v34 = vpack.c.bf16 %v722_v33, %v720_v21  ;;  %v2230_v35 = vadd.f32 %v722_v33, %v2133_v29  ;;  %v1006_v36 = vmul.f32 %v722_v33, %v722_v33  ;;  %v1422_v29 = vld [vmem:[%s2660_s0 + $0x1c0] sm:$0xf] }
  0xdb   :  { %v1423_v57 = vor.u32 %v1573_v42, %v1422_v29 }
  0xdc   :  { %1758 = vst [vmem:[%s2661_s2 + $0x18] sm:$0xff] %v1614_v34   ;;  %v2253_v43 = vadd.f32 %v1006_v36, %v995_v28  ;;  %v632_v48 = vpop.f32.mrf.mxu2 }
  0xdd   :  { %v801_v49 = vpop.f32.mrf.mxu3 }
  0xde   :  { %v555_v53 = vpop.f32.mrf.mxu0  ;;  %v2263_v56 = vadd.f32 %v801_v49, %v632_v48  ;;  %v1310_v48 = vld [vmem:[%s2660_s0 + $0xe0] sm:$0xf]  ;;  %v1545_v49 = vld [vmem:[%s2660_s0 + $0xe4] sm:$0xf0] }
  0xdf   :  { %v724_v55 = vpop.f32.mrf.mxu1 }
  0xe0   :  { %v725_v59 = vadd.f32 %v724_v55, %v555_v53  ;;  %v1694_v60 = vpack.c.bf16 %v2263_v56, %v2261_v47  ;;  %v1576_v55 = vld [vmem:[%s2660_s0 + $0x1e4] sm:$0xf] }
  0xe1   :  { %594 = vmatmul.bf16.gmra.mxu0 %v1295_v50  ;;  %674 = vmatmul.bf16.gmra.mxu2 %v1423_v57  ;;  %v1312_v50 = vld [vmem:[%s2660_s0 + $0xe8] sm:$0xf0] }
  0xe2   :  { %v2268_v61 = vadd.f32 %v2170_v52, %v725_v59  ;;  %v1009_v63 = vmul.f32 %v725_v59, %v725_v59  ;;  %763 = vmatmul.bf16.gmra.mxu1 %v1299_v51  ;;  %1774 = vst [vmem:[%s2661_s2 + $0x98] sm:$0xff] %v1694_v60   ;;  %843 = vmatmul.bf16.gmra.mxu3 %v1427_v58  ;;  %v1577_v51 = vld [vmem:[%s2660_s0 + $0x1e4] sm:$0xf0]  ;;  %v1440_v57 = vld [vmem:[%s2660_s0 + $0x1e8] sm:$0xf0] }
  0xe4   :  { %v2274_v0 = vadd.f32 %v1009_v63, %v2175_v54  ;;  %v635_v1 = vpop.f32.mrf.mxu2  ;;  %v1542_v54 = vld [vmem:[%s2660_s0 + $0xd4] sm:$0xf]  ;;  %v1311_v63 = vor.u32 %v1545_v49, %v1310_v48 }
  0xe5   :  { %v804_v2 = vpop.f32.mrf.mxu3  ;;  %v1307_v25 = vor.u32 %v1542_v54, %v1304_v12 }
  0xe6   :  { %v557_v4 = vpop.f32.mrf.mxu0  ;;  %v2309_v19 = vadd.f32 %v804_v2, %v635_v1 }
  0xe7   :  { %v726_v3 = vpop.f32.mrf.mxu1 }
  0xe8   :  { %v727_v5 = vadd.f32 %v726_v3, %v557_v4 }
  0xea   :  { %v1619_v7 = vpack.c.bf16 %v727_v5, %v725_v59  ;;  %v2277_v52 = vadd.f32 %v2180_v62, %v727_v5  ;;  %v1012_v8 = vmul.f32 %v727_v5, %v727_v5  ;;  %v1430_v62 = vld [vmem:[%s2660_s0 + $0x1d0] sm:$0xf]  ;;  %v1443_v5 = vor.u32 %v1576_v55, %v1440_v57 }
  0xec   :  { %1759 = vst [vmem:[%s2661_s2 + $0x20] sm:$0xff] %v1619_v7   ;;  %v2301_v15 = vadd.f32 %v1012_v8, %v2203_v6  ;;  %v637_v21 = vpop.f32.mrf.mxu2  ;;  %v1431_v6 = vor.u32 %v1575_v14, %v1430_v62 }
  0xed   :  { %v806_v22 = vpop.f32.mrf.mxu3 }
  0xee   :  { %v560_v27 = vpop.f32.mrf.mxu0  ;;  %v2311_v31 = vadd.f32 %v806_v22, %v637_v21 }
  0xef   :  { %v729_v30 = vpop.f32.mrf.mxu1 }
  0xf0   :  { %v730_v33 = vadd.f32 %v729_v30, %v560_v27  ;;  %v1699_v28 = vpack.c.bf16 %v2311_v31, %v2309_v19  ;;  %v1320_v27 = vld [vmem:[%s2660_s0 + $0xf8] sm:$0xf0]  ;;  %v1579_v30 = vld [vmem:[%s2660_s0 + $0x1f4] sm:$0xf0] }
  0xf1   :  { %599 = vmatmul.bf16.gmra.mxu0 %v1303_v23  ;;  %679 = vmatmul.bf16.gmra.mxu2 %v1431_v6  ;;  %v1318_v23 = vld [vmem:[%s2660_s0 + $0xf0] sm:$0xf] }
  0xf2   :  { %v2316_v34 = vadd.f32 %v2220_v24, %v730_v33  ;;  %v1015_v36 = vmul.f32 %v730_v33, %v730_v33  ;;  %768 = vmatmul.bf16.gmra.mxu1 %v1307_v25  ;;  %1775 = vst [vmem:[%s2661_s2 + $0xa0] sm:$0xff] %v1699_v28   ;;  %848 = vmatmul.bf16.gmra.mxu3 %v1435_v32  ;;  %v1547_v25 = vld [vmem:[%s2660_s0 + $0xf4] sm:$0xf0]  ;;  %v1578_v32 = vld [vmem:[%s2660_s0 + $0x1f4] sm:$0xf] }
  0xf4   :  { %v2322_v37 = vadd.f32 %v1015_v36, %v2225_v26  ;;  %v640_v38 = vpop.f32.mrf.mxu2  ;;  %v1544_v26 = vld [vmem:[%s2660_s0 + $0xe4] sm:$0xf] }
  0xf5   :  { %v809_v40 = vpop.f32.mrf.mxu3  ;;  %v1315_v1 = vor.u32 %v1544_v26, %v1312_v50 }
  0xf6   :  { %v562_v41 = vpop.f32.mrf.mxu0  ;;  %v2357_v58 = vadd.f32 %v809_v40, %v640_v38  ;;  %v1319_v40 = vor.u32 %v1547_v25, %v1318_v23 }
  0xf7   :  { %v731_v29 = vpop.f32.mrf.mxu1 }
  0xf8   :  { %v732_v42 = vadd.f32 %v731_v29, %v562_v41 }
  0xfa   :  { %v1624_v44 = vpack.c.bf16 %v732_v42, %v730_v33  ;;  %v2325_v24 = vadd.f32 %v2230_v35, %v732_v42  ;;  %v1018_v45 = vmul.f32 %v732_v42, %v732_v42  ;;  %v1438_v35 = vld [vmem:[%s2660_s0 + $0x1e0] sm:$0xf]  ;;  %v1448_v33 = vld [vmem:[%s2660_s0 + $0x1f8] sm:$0xf0] }
  0xfc   :  { %1760 = vst [vmem:[%s2661_s2 + $0x28] sm:$0xff] %v1624_v44   ;;  %v2349_v53 = vadd.f32 %v1018_v45, %v2253_v43  ;;  %v642_v59 = vpop.f32.mrf.mxu2  ;;  %v1439_v43 = vor.u32 %v1577_v51, %v1438_v35 }
  0xfd   :  { %v811_v60 = vpop.f32.mrf.mxu3 }
  0xfe   :  { %v565_v2 = vpop.f32.mrf.mxu0  ;;  %v2359_v3 = vadd.f32 %v811_v60, %v642_v59 }
  0xff   :  { %v734_v4 = vpop.f32.mrf.mxu1 }
 0x100   :  { %v735_v7 = vadd.f32 %v734_v4, %v565_v2  ;;  %v1704_v8 = vpack.c.bf16 %v2359_v3, %v2357_v58 }
 0x101   :  { %604 = vmatmul.bf16.gmra.mxu0 %v1311_v63  ;;  %684 = vmatmul.bf16.gmra.mxu2 %v1439_v43 }
 0x102   :  { %v2364_v10 = vadd.f32 %v2268_v61, %v735_v7  ;;  %v1021_v11 = vmul.f32 %v735_v7, %v735_v7  ;;  %773 = vmatmul.bf16.gmra.mxu1 %v1315_v1  ;;  %1776 = vst [vmem:[%s2661_s2 + $0xa8] sm:$0xff] %v1704_v8   ;;  %853 = vmatmul.bf16.gmra.mxu3 %v1443_v5 }
 0x104   :  { %v1022_v54 = vadd.f32 %v1021_v11, %v2274_v0  ;;  %v645_v12 = vpop.f32.mrf.mxu2  ;;  %v1546_v0 = vld [vmem:[%s2660_s0 + $0xf4] sm:$0xf] }
 0x105   :  { %v814_v62 = vpop.f32.mrf.mxu3  ;;  %v1323_v41 = vor.u32 %v1546_v0, %v1320_v27 }
 0x106   :  { %v567_v14 = vpop.f32.mrf.mxu0  ;;  %v2399_v28 = vadd.f32 %v814_v62, %v645_v12 }
 0x107   :  { %v736_v16 = vpop.f32.mrf.mxu1 }
 0x108   :  { %v737_v18 = vadd.f32 %v736_v16, %v567_v14 }
 0x10a   :  { %v1629_v21 = vpack.c.bf16 %v737_v18, %v735_v7  ;;  %v1023_v61 = vadd.f32 %v2277_v52, %v737_v18  ;;  %v1024_v22 = vmul.f32 %v737_v18, %v737_v18  ;;  %v1446_v52 = vld [vmem:[%s2660_s0 + $0x1f0] sm:$0xf] }
 0x10b   :  { %v1447_v45 = vor.u32 %v1579_v30, %v1446_v52 }
 0x10c   :  { %1761 = vst [vmem:[%s2661_s2 + $0x30] sm:$0xff] %v1629_v21   ;;  %v1025_v6 = vadd.f32 %v1024_v22, %v2301_v15  ;;  %v647_v36 = vpop.f32.mrf.mxu2  ;;  %v1451_v15 = vor.u32 %v1578_v32, %v1448_v33 }
 0x10d   :  { %v816_v38 = vpop.f32.mrf.mxu3 }
 0x10e   :  { %v570_v29 = vpop.f32.mrf.mxu0  ;;  %v2401_v44 = vadd.f32 %v816_v38, %v647_v36 }
 0x10f   :  { %v739_v42 = vpop.f32.mrf.mxu1 }
 0x110   :  { %v740_v48 = vadd.f32 %v739_v42, %v570_v29  ;;  %v1709_v49 = vpack.c.bf16 %v2401_v44, %v2399_v28 }
 0x111   :  { %609 = vmatmul.bf16.gmra.mxu0 %v1319_v40  ;;  %689 = vmatmul.bf16.gmra.mxu2 %v1447_v45 }
 0x112   :  { %v1026_v26 = vadd.f32 %v2316_v34, %v740_v48  ;;  %v1027_v50 = vmul.f32 %v740_v48, %v740_v48  ;;  %778 = vmatmul.bf16.gmra.mxu1 %v1323_v41  ;;  %1777 = vst [vmem:[%s2661_s2 + $0xb0] sm:$0xff] %v1709_v49   ;;  %858 = vmatmul.bf16.gmra.mxu3 %v1451_v15 }
 0x114   :  { %v1028_v35 = vadd.f32 %v1027_v50, %v2322_v37  ;;  %v650_v51 = vpop.f32.mrf.mxu2 }
 0x115   :  { %v819_v55 = vpop.f32.mrf.mxu3 }
 0x116   :  { %v572_v57 = vpop.f32.mrf.mxu0  ;;  %v2415_v4 = vadd.f32 %v819_v55, %v650_v51 }
 0x117   :  { %v741_v59 = vpop.f32.mrf.mxu1 }
 0x118   :  { %v742_v60 = vadd.f32 %v741_v59, %v572_v57 }
 0x11a   :  { %v1634_v63 = vpack.c.bf16 %v742_v60, %v740_v48  ;;  %v1029_v1 = vadd.f32 %v2325_v24, %v742_v60  ;;  %v1030_v34 = vmul.f32 %v742_v60, %v742_v60 }
 0x11c   :  { %1762 = vst [vmem:[%s2661_s2 + $0x38] sm:$0xff] %v1634_v63   ;;  %v1031_v2 = vadd.f32 %v1030_v34, %v2349_v53  ;;  %v652_v43 = vpop.f32.mrf.mxu2 }
 0x11d   :  { %v821_v5 = vpop.f32.mrf.mxu3 }
 0x11e   :  { %v575_v37 = vpop.f32.mrf.mxu0  ;;  %v2417_v8 = vadd.f32 %v821_v5, %v652_v43 }
 0x11f   :  { %v744_v7 = vpop.f32.mrf.mxu1 }
 0x120   :  { %v745_v11 = vadd.f32 %v744_v7, %v575_v37  ;;  %v1714_v12 = vpack.c.bf16 %v2417_v8, %v2415_v4 }
 0x122   :  { %v1032_v24 = vadd.f32 %v2364_v10, %v745_v11  ;;  %v1033_v62 = vmul.f32 %v745_v11, %v745_v11  ;;  %1778 = vst [vmem:[%s2661_s2 + $0xb8] sm:$0xff] %v1714_v12  }
 0x124   :  { %v1034_v53 = vadd.f32 %v1033_v62, %v1022_v54  ;;  %v655_v14 = vpop.f32.mrf.mxu2 }
 0x125   :  { %v824_v16 = vpop.f32.mrf.mxu3 }
 0x126   :  { %v577_v18 = vpop.f32.mrf.mxu0  ;;  %v2428_v10 = vadd.f32 %v824_v16, %v655_v14 }
 0x127   :  { %v746_v21 = vpop.f32.mrf.mxu1 }
 0x128   :  { %v747_v22 = vadd.f32 %v746_v21, %v577_v18 }
 0x12a   :  { %v1639_v23 = vpack.c.bf16 %v747_v22, %v745_v11  ;;  %v1035_v25 = vadd.f32 %v1023_v61, %v747_v22  ;;  %v1036_v0 = vmul.f32 %v747_v22, %v747_v22 }
 0x12c   :  { %1763 = vst [vmem:[%s2661_s2 + $0x40] sm:$0xff] %v1639_v23   ;;  %v1037_v27 = vadd.f32 %v1036_v0, %v1025_v6  ;;  %v657_v52 = vpop.f32.mrf.mxu2 }
 0x12d   :  { %v826_v30 = vpop.f32.mrf.mxu3 }
 0x12e   :  { %v580_v32 = vpop.f32.mrf.mxu0  ;;  %v2430_v54 = vadd.f32 %v826_v30, %v657_v52 }
 0x12f   :  { %v749_v33 = vpop.f32.mrf.mxu1 }
 0x130   :  { %v750_v36 = vadd.f32 %v749_v33, %v580_v32  ;;  %v1719_v38 = vpack.c.bf16 %v2430_v54, %v2428_v10 }
 0x132   :  { %v2434_v40 = vadd.f32 %v1026_v26, %v750_v36  ;;  %v1039_v61 = vmul.f32 %v750_v36, %v750_v36  ;;  %1779 = vst [vmem:[%s2661_s2 + $0xc0] sm:$0xff] %v1719_v38  }
 0x134   :  { %v2439_v6 = vadd.f32 %v1039_v61, %v1028_v35  ;;  %v660_v41 = vpop.f32.mrf.mxu2 }
 0x135   :  { %v829_v29 = vpop.f32.mrf.mxu3 }
 0x136   :  { %v582_v42 = vpop.f32.mrf.mxu0  ;;  %v2448_v51 = vadd.f32 %v829_v29, %v660_v41 }
 0x137   :  { %v751_v45 = vpop.f32.mrf.mxu1 }
 0x138   :  { %v752_v15 = vadd.f32 %v751_v45, %v582_v42 }
 0x13a   :  { %v1644_v48 = vpack.c.bf16 %v752_v15, %v750_v36  ;;  %v2441_v49 = vadd.f32 %v1029_v1, %v752_v15  ;;  %v1042_v50 = vmul.f32 %v752_v15, %v752_v15 }
 0x13c   :  { %1764 = vst [vmem:[%s2661_s2 + $0x48] sm:$0xff] %v1644_v48   ;;  %v2446_v26 = vadd.f32 %v1042_v50, %v1031_v2  ;;  %v662_v55 = vpop.f32.mrf.mxu2 }
 0x13d   :  { %v831_v35 = vpop.f32.mrf.mxu3 }
 0x13e   :  { %v585_v57 = vpop.f32.mrf.mxu0  ;;  %v2450_v60 = vadd.f32 %v831_v35, %v662_v55 }
 0x13f   :  { %v754_v59 = vpop.f32.mrf.mxu1 }
 0x140   :  { %v755_v63 = vadd.f32 %v754_v59, %v585_v57  ;;  %v1724_v1 = vpack.c.bf16 %v2450_v60, %v2448_v51 }
 0x142   :  { %v2454_v34 = vadd.f32 %v1032_v24, %v755_v63  ;;  %v1045_v43 = vmul.f32 %v755_v63, %v755_v63  ;;  %1780 = vst [vmem:[%s2661_s2 + $0xc8] sm:$0xff] %v1724_v1  }
 0x144   :  { %v2459_v2 = vadd.f32 %v1045_v43, %v1034_v53  ;;  %v665_v5 = vpop.f32.mrf.mxu2 }
 0x145   :  { %v834_v37 = vpop.f32.mrf.mxu3 }
 0x146   :  { %v587_v7 = vpop.f32.mrf.mxu0  ;;  %v2468_v18 = vadd.f32 %v834_v37, %v665_v5 }
 0x147   :  { %v756_v11 = vpop.f32.mrf.mxu1 }
 0x148   :  { %v757_v12 = vadd.f32 %v756_v11, %v587_v7 }
 0x14a   :  { %v1649_v62 = vpack.c.bf16 %v757_v12, %v755_v63  ;;  %v2461_v14 = vadd.f32 %v1035_v25, %v757_v12  ;;  %v1048_v16 = vmul.f32 %v757_v12, %v757_v12 }
 0x14c   :  { %1765 = vst [vmem:[%s2661_s2 + $0x50] sm:$0xff] %v1649_v62   ;;  %v2466_v24 = vadd.f32 %v1048_v16, %v1037_v27  ;;  %v667_v21 = vpop.f32.mrf.mxu2 }
 0x14d   :  { %v836_v53 = vpop.f32.mrf.mxu3 }
 0x14e   :  { %v590_v22 = vpop.f32.mrf.mxu0  ;;  %v2470_v0 = vadd.f32 %v836_v53, %v667_v21 }
 0x14f   :  { %v759_v23 = vpop.f32.mrf.mxu1 }
 0x150   :  { %v1729_v52 = vpack.c.bf16 %v2470_v0, %v2468_v18  ;;  %v2477_v33 = vadd.f32 %v759_v23, %v590_v22 }
 0x152   :  { %1781 = vst [vmem:[%s2661_s2 + $0xd0] sm:$0xff] %v1729_v52  }
 0x154   :  { %v670_v25 = vpop.f32.mrf.mxu2 }
 0x155   :  { %v839_v30 = vpop.f32.mrf.mxu3 }
 0x156   :  { %v592_v32 = vpop.f32.mrf.mxu0  ;;  %v2486_v61 = vadd.f32 %v839_v30, %v670_v25 }
 0x157   :  { %v761_v27 = vpop.f32.mrf.mxu1 }
 0x158   :  { %v2479_v36 = vadd.f32 %v761_v27, %v592_v32 }
 0x15a   :  { %v1654_v38 = vpack.c.bf16 %v2479_v36, %v2477_v33 }
 0x15c   :  { %1766 = vst [vmem:[%s2661_s2 + $0x58] sm:$0xff] %v1654_v38   ;;  %v672_v41 = vpop.f32.mrf.mxu2 }
 0x15d   :  { %v841_v29 = vpop.f32.mrf.mxu3 }
 0x15e   :  { %v595_v42 = vpop.f32.mrf.mxu0  ;;  %v2488_v15 = vadd.f32 %v841_v29, %v672_v41 }
 0x15f   :  { %v764_v45 = vpop.f32.mrf.mxu1 }
 0x160   :  { %v1734_v48 = vpack.c.bf16 %v2488_v15, %v2486_v61  ;;  %v765_v59 = vadd.f32 %v764_v45, %v595_v42 }
 0x162   :  { %1782 = vst [vmem:[%s2661_s2 + $0xd8] sm:$0xff] %v1734_v48   ;;  %v1057_v32 = vmul.f32 %v765_v59, %v765_v59  ;;  %v1056_v45 = vadd.f32 %v2454_v34, %v765_v59  ;;  %v1093_v34 = vmul.f32 %v2211_v9, %v2211_v9 }
 0x164   :  { %v675_v50 = vpop.f32.mrf.mxu2 }
 0x165   :  { %v844_v55 = vpop.f32.mrf.mxu3 }
 0x166   :  { %v597_v35 = vpop.f32.mrf.mxu0  ;;  %v2498_v43 = vadd.f32 %v844_v55, %v675_v50  ;;  %v1058_v55 = vadd.f32 %v1057_v32, %v2459_v2 }
 0x167   :  { %v766_v57 = vpop.f32.mrf.mxu1 }
 0x168   :  { %v767_v63 = vadd.f32 %v766_v57, %v597_v35 }
 0x16a   :  { %v1659_v1 = vpack.c.bf16 %v767_v63, %v765_v59  ;;  %v1059_v32 = vadd.f32 %v2461_v14, %v767_v63 }
 0x16c   :  { %1767 = vst [vmem:[%s2661_s2 + $0x60] sm:$0xff] %v1659_v1   ;;  %v677_v5 = vpop.f32.mrf.mxu2  ;;  %v1081_v1 = vmul.f32 %v2122_v13, %v2122_v13 }
 0x16d   :  { %v846_v37 = vpop.f32.mrf.mxu3 }
 0x16e   :  { %v600_v7 = vpop.f32.mrf.mxu0  ;;  %v2500_v12 = vadd.f32 %v846_v37, %v677_v5 }
 0x16f   :  { %v769_v11 = vpop.f32.mrf.mxu1 }
 0x170   :  { %v1739_v62 = vpack.c.bf16 %v2500_v12, %v2498_v43  ;;  %v2507_v23 = vadd.f32 %v769_v11, %v600_v7  ;;  %v1060_v7 = vmul.f32 %v767_v63, %v767_v63  ;;  %v1120_v63 = vmul.f32 %v2401_v44, %v2401_v44 }
 0x172   :  { %1783 = vst [vmem:[%s2661_s2 + $0xe0] sm:$0xff] %v1739_v62  }
 0x174   :  { %v680_v16 = vpop.f32.mrf.mxu2 }
 0x175   :  { %v849_v21 = vpop.f32.mrf.mxu3 }
 0x176   :  { %v602_v53 = vpop.f32.mrf.mxu0  ;;  %v2516_v30 = vadd.f32 %v849_v21, %v680_v16  ;;  %v1084_v16 = vmul.f32 %v2124_v20, %v2124_v20  ;;  %v2537_v21 = vmul.f32 %v2164_v39, %v2164_v39 }
 0x177   :  { %v771_v22 = vpop.f32.mrf.mxu1 }
 0x178   :  { %v2509_v52 = vadd.f32 %v771_v22, %v602_v53  ;;  %v1096_v53 = vmul.f32 %v2213_v17, %v2213_v17 }
 0x17a   :  { %v1664_v25 = vpack.c.bf16 %v2509_v52, %v2507_v23 }
 0x17c   :  { %1768 = vst [vmem:[%s2661_s2 + $0x68] sm:$0xff] %v1664_v25   ;;  %v682_v27 = vpop.f32.mrf.mxu2 }
 0x17d   :  { %v851_v38 = vpop.f32.mrf.mxu3 }
 0x17e   :  { %v605_v41 = vpop.f32.mrf.mxu0  ;;  %v2518_v42 = vadd.f32 %v851_v38, %v682_v27 }
 0x17f   :  { %v774_v29 = vpop.f32.mrf.mxu1 }
 0x180   :  { %v775_v48 = vadd.f32 %v774_v29, %v605_v41  ;;  %v1744_v50 = vpack.c.bf16 %v2518_v42, %v2516_v30  ;;  %v2547_v41 = vmul.f32 %v2261_v47, %v2261_v47  ;;  %v1108_v29 = vmul.f32 %v2311_v31, %v2311_v31 }
 0x182   :  { %v1068_v35 = vadd.f32 %v1056_v45, %v775_v48  ;;  %v1069_v57 = vmul.f32 %v775_v48, %v775_v48  ;;  %1784 = vst [vmem:[%s2661_s2 + $0xe8] sm:$0xff] %v1744_v50   ;;  %v1117_v45 = vmul.f32 %v2399_v28, %v2399_v28  ;;  %v1061_v50 = vadd.f32 %v1060_v7, %v2466_v24 }
 0x184   :  { %v1070_v5 = vadd.f32 %v1069_v57, %v1058_v55  ;;  %v1080_v37 = vadd.f32 %v1068_v35, %v2122_v13  ;;  %v685_v2 = vpop.f32.mrf.mxu2  ;;  %v1105_v13 = vmul.f32 %v2309_v19, %v2309_v19 }
 0x185   :  { %v854_v62 = vpop.f32.mrf.mxu3 }
 0x186   :  { %v1082_v59 = vadd.f32 %v1081_v1, %v1070_v5  ;;  %v1092_v11 = vadd.f32 %v1080_v37, %v2211_v9  ;;  %v607_v22 = vpop.f32.mrf.mxu0  ;;  %v1051_v1 = vmul.f32 %v2477_v33, %v2477_v33  ;;  %v2565_v37 = vmul.f32 %v2415_v4, %v2415_v4 }
 0x187   :  { %v776_v25 = vpop.f32.mrf.mxu1 }
 0x188   :  { %v1094_v9 = vadd.f32 %v1093_v34, %v1082_v59  ;;  %v1104_v27 = vadd.f32 %v1092_v11, %v2309_v19  ;;  %v777_v38 = vadd.f32 %v776_v25, %v607_v22  ;;  %v2556_v19 = vmul.f32 %v2357_v58, %v2357_v58 }
 0x189   :  { %v1129_v34 = vmul.f32 %v2428_v10, %v2428_v10  ;;  %v1132_v59 = vmul.f32 %v2430_v54, %v2430_v54  ;;  %v855_v11 = vadd.f32 %v854_v62, %v685_v2  ;;  %v1063_v22 = vmul.f32 %v2507_v23, %v2507_v23 }
 0x18a   :  { %v1106_v55 = vadd.f32 %v1105_v13, %v1094_v9  ;;  %v1669_v35 = vpack.c.bf16 %v777_v38, %v775_v48  ;;  %v1071_v57 = vadd.f32 %v1059_v32, %v777_v38  ;;  %v1072_v14 = vmul.f32 %v777_v38, %v777_v38 }
 0x18b   :  { %v1116_v5 = vadd.f32 %v1104_v27, %v2399_v28  ;;  %v1050_v13 = vadd.f32 %v2434_v40, %v2477_v33  ;;  %v1052_v27 = vadd.f32 %v1051_v1, %v2439_v6  ;;  %v1054_v38 = vmul.f32 %v2479_v36, %v2479_v36 }
 0x18c   :  { %1769 = vst [vmem:[%s2661_s2 + $0x70] sm:$0xff] %v1669_v35   ;;  %v1073_v24 = vadd.f32 %v1072_v14, %v1061_v50  ;;  %v1083_v48 = vadd.f32 %v1071_v57, %v2124_v20  ;;  %v1118_v7 = vadd.f32 %v1117_v45, %v1106_v55  ;;  %v687_v20 = vpop.f32.mrf.mxu2 }
 0x18d   :  { %v1128_v28 = vadd.f32 %v1116_v5, %v2428_v10  ;;  %v856_v9 = vpop.f32.mrf.mxu3  ;;  %v1062_v50 = vadd.f32 %v1050_v13, %v2507_v23  ;;  %v1064_v57 = vadd.f32 %v1063_v22, %v1052_v27  ;;  %v1144_v23 = vmul.f32 %v2470_v0, %v2470_v0 }
 0x18e   :  { %v1085_v25 = vadd.f32 %v1084_v16, %v1073_v24  ;;  %v1095_v32 = vadd.f32 %v1083_v48, %v2213_v17  ;;  %v1130_v45 = vadd.f32 %v1129_v34, %v1118_v7  ;;  %v610_v2 = vpop.f32.mrf.mxu0  ;;  %v857_v10 = vadd.f32 %v856_v9, %v687_v20 }
 0x18f   :  { %v779_v62 = vpop.f32.mrf.mxu1  ;;  %v1135_v17 = vmul.f32 %v2448_v51, %v2448_v51  ;;  %v1141_v16 = vmul.f32 %v2468_v18, %v2468_v18  ;;  %v1140_v6 = vadd.f32 %v1128_v28, %v2468_v18  ;;  %v1055_v18 = vadd.f32 %v1054_v38, %v2446_v26 }
 0x190   :  { %v1097_v40 = vadd.f32 %v1096_v53, %v1085_v25  ;;  %v1107_v33 = vadd.f32 %v1095_v32, %v2311_v31  ;;  %v780_v55 = vadd.f32 %v779_v62, %v610_v2  ;;  %v1749_v35 = vpack.c.bf16 %v857_v10, %v855_v11 }
 0x191   :  { %v1053_v31 = vadd.f32 %v2441_v49, %v2479_v36  ;;  %v1142_v53 = vadd.f32 %v1141_v16, %v1130_v45  ;;  %v1153_v34 = vmul.f32 %v2498_v43, %v2498_v43  ;;  %v1066_v28 = vmul.f32 %v2509_v52, %v2509_v52 }
 0x192   :  { %v1109_v14 = vadd.f32 %v1108_v29, %v1097_v40  ;;  %v1074_v1 = vadd.f32 %v1062_v50, %v780_v55  ;;  %v1075_v5 = vmul.f32 %v780_v55, %v780_v55  ;;  %1785 = vst [vmem:[%s2661_s2 + $0xf0] sm:$0xff] %v1749_v35   ;;  %v1119_v24 = vadd.f32 %v1107_v33, %v2401_v44 }
 0x193   :  { %v1152_v49 = vadd.f32 %v1140_v6, %v2498_v43  ;;  %v1156_v13 = vmul.f32 %v2500_v12, %v2500_v12  ;;  %v1065_v25 = vadd.f32 %v1053_v31, %v2509_v52  ;;  %v1154_v32 = vadd.f32 %v1153_v34, %v1142_v53 }
 0x194   :  { %v1076_v48 = vadd.f32 %v1075_v5, %v1064_v57  ;;  %v1086_v29 = vadd.f32 %v1074_v1, %v2164_v39  ;;  %v1121_v7 = vadd.f32 %v1120_v63, %v1109_v14  ;;  %v1131_v36 = vadd.f32 %v1119_v24, %v2430_v54  ;;  %v690_v39 = vpop.f32.mrf.mxu2 }
 0x195   :  { %v859_v63 = vpop.f32.mrf.mxu3  ;;  %v1165_v20 = vmul.f32 %v855_v11, %v855_v11  ;;  %v1164_v62 = vadd.f32 %v1152_v49, %v855_v11  ;;  %v1102_v53 = vmul.f32 %v2263_v56, %v2263_v56 }
 0x196   :  { %v1088_v44 = vadd.f32 %v2537_v21, %v1076_v48  ;;  %v1098_v26 = vadd.f32 %v1086_v29, %v2261_v47  ;;  %v1133_v22 = vadd.f32 %v1132_v59, %v1121_v7  ;;  %v1143_v9 = vadd.f32 %v1131_v36, %v2470_v0  ;;  %v612_v27 = vpop.f32.mrf.mxu0 }
 0x197   :  { %v781_v43 = vpop.f32.mrf.mxu1  ;;  %v1067_v21 = vadd.f32 %v1066_v28, %v1055_v18  ;;  %v1168_v59 = vmul.f32 %v857_v10, %v857_v10  ;;  %v1166_v16 = vadd.f32 %v1165_v20, %v1154_v32  ;;  %v860_v11 = vadd.f32 %v859_v63, %v690_v39 }
 0x198   :  { %v1100_v54 = vadd.f32 %v2547_v41, %v1088_v44  ;;  %v1110_v38 = vadd.f32 %v1098_v26, %v2357_v58  ;;  %v1145_v45 = vadd.f32 %v1144_v23, %v1133_v22  ;;  %v782_v2 = vadd.f32 %v781_v43, %v612_v27 }
 0x199   :  { %v1155_v47 = vadd.f32 %v1143_v9, %v2500_v12  ;;  %v1159_v18 = vmul.f32 %v2516_v30, %v2516_v30  ;;  %v1171_v29 = vmul.f32 %v860_v11, %v860_v11  ;;  %v1114_v7 = vmul.f32 %v2359_v3, %v2359_v3 }
 0x19a   :  { %v1112_v50 = vadd.f32 %v2556_v19, %v1100_v54  ;;  %v1157_v52 = vadd.f32 %v1156_v13, %v1145_v45  ;;  %v1674_v40 = vpack.c.bf16 %v782_v2, %v780_v55  ;;  %v1077_v33 = vadd.f32 %v1065_v25, %v782_v2 }
 0x19b   :  { %v1167_v0 = vadd.f32 %v1155_v47, %v857_v10  ;;  %v1078_v6 = vmul.f32 %v782_v2, %v782_v2  ;;  %v1122_v35 = vadd.f32 %v1110_v38, %v2415_v4  ;;  %v1090_v19 = vmul.f32 %v2166_v46, %v2166_v46 }
 0x19c   :  { %v1169_v41 = vadd.f32 %v1168_v59, %v1157_v52  ;;  %1770 = vst [vmem:[%s2661_s2 + $0x78] sm:$0xff] %v1674_v40   ;;  %v1089_v58 = vadd.f32 %v1077_v33, %v2166_v46  ;;  %v1124_v12 = vadd.f32 %v2565_v37, %v1112_v50  ;;  %v1147_v4 = vmul.f32 %v2486_v61, %v2486_v61  ;;  %v692_v23 = vpop.f32.mrf.mxu2 }
 0x19d   :  { %v1176_v55 = vadd.f32 %v1167_v0, %v1164_v62  ;;  %v1079_v57 = vadd.f32 %v1078_v6, %v1067_v21  ;;  %v1134_v10 = vadd.f32 %v1122_v35, %v2448_v51  ;;  %v861_v31 = vpop.f32.mrf.mxu3  ;;  %v1162_v20 = vmul.f32 %v2518_v42, %v2518_v42 }
 0x19e   :  { %v1177_v14 = vadd.f32 %v1169_v41, %v1166_v16  ;;  %v1101_v1 = vadd.f32 %v1089_v58, %v2263_v56  ;;  %v1136_v5 = vadd.f32 %v1135_v17, %v1124_v12  ;;  %v862_v46 = vadd.f32 %v861_v31, %v692_v23 }
 0x19f   :  { %v1091_v37 = vadd.f32 %v1090_v19, %v1079_v57  ;;  %v1146_v24 = vadd.f32 %v1134_v10, %v2486_v61  ;;  %v1126_v61 = vmul.f32 %v2417_v8, %v2417_v8 }
 0x1a0   :  { %v1113_v51 = vadd.f32 %v1101_v1, %v2359_v3  ;;  %v1148_v48 = vadd.f32 %v1147_v4, %v1136_v5  ;;  %v1754_v28 = vpack.c.bf16 %v862_v46, %v860_v11  ;;  %v1138_v3 = vmul.f32 %v2450_v60, %v2450_v60 }
 0x1a1   :  { %v1103_v17 = vadd.f32 %v1102_v53, %v1091_v37  ;;  %v1158_v34 = vadd.f32 %v1146_v24, %v2516_v30  ;;  %v1174_v54 = vmul.f32 %v862_v46, %v862_v46 }
 0x1a2   :  { %v1160_v49 = vadd.f32 %v1159_v18, %v1148_v48  ;;  %v1125_v56 = vadd.f32 %v1113_v51, %v2417_v8  ;;  %1786 = vst [vmem:[%s2661_s2 + $0xf8] sm:$0xff] %v1754_v28   ;;  %v1150_v8 = vmul.f32 %v2488_v15, %v2488_v15 }
 0x1a3   :  { %v1115_v36 = vadd.f32 %v1114_v7, %v1103_v17  ;;  %v1170_v13 = vadd.f32 %v1158_v34, %v860_v11 }
 0x1a4   :  { %v1172_v44 = vadd.f32 %v1171_v29, %v1160_v49  ;;  %v1137_v26 = vadd.f32 %v1125_v56, %v2450_v60 }
 0x1a5   :  { %v1178_v30 = vadd.f32 %v1176_v55, %v1170_v13  ;;  %v1127_v22 = vadd.f32 %v1126_v61, %v1115_v36 }
 0x1a6   :  { %v1179_v39 = vadd.f32 %v1177_v14, %v1172_v44  ;;  %v1149_v63 = vadd.f32 %v1137_v26, %v2488_v15 }
 0x1a7   :  { %v1139_v25 = vadd.f32 %v1138_v3, %v1127_v22 }
 0x1a8   :  { %v1161_v32 = vadd.f32 %v1149_v63, %v2518_v42 }
 0x1a9   :  { %v1151_v9 = vadd.f32 %v1150_v8, %v1139_v25 }
 0x1aa   :  { %v1173_v27 = vadd.f32 %v1161_v32, %v862_v46 }
 0x1ab   :  { %v1163_v43 = vadd.f32 %v1162_v20, %v1151_v9 }
 0x1ac   :  { %v1180_v38 = vadd.f32 %v1178_v30, %v1173_v27 }
 0x1ad   :  { %v1175_v60 = vadd.f32 %v1174_v54, %v1163_v43 }
 0x1ae   :  { %1182 = vst [vmem:[%s2662_s3] sm:$0xff] %v1180_v38 }
 0x1af   :  { %v1181_v45 = vadd.f32 %v1179_v39, %v1175_v60 }
 0x1b1   :  { %1183 = vst [vmem:[%s2663_s4] sm:$0xff] %v1181_v45 }

// kernel: cond_dcgan_forward.27
= control target key start
LH: loop header
LB: loop body
LE: loop exit
PB: predicated region body
PF: predicated region fallthrough
CT: control target
= control target key end

     0   :  { %s1176_s0 = inlined_call_operand.vmem [shape: bf16[512,128], index: 0, kind: input, shape index: {}]   ;;  %s1177_s1 = inlined_call_operand.vmem [shape: f32[1,128], index: 1, kind: input, shape index: {}]   ;;  %s1178_s2 = inlined_call_operand.vmem [shape: f32[1,128], index: 2, kind: input, shape index: {}]   ;;  %s1179_s3 = inlined_call_operand.vmem [shape: bf16[512,128], index: 3, kind: output, shape index: {}]  }
   0x1   :  { %v475_v0 = vld [vmem:[%s1176_s0] sm:$0xff]   ;;  %v762_v5 = vld [vmem:[%s1176_s0 + $0x8] sm:$0xff]   ;;  %v763_v8 = vld [vmem:[%s1176_s0 + $0x10] sm:$0xff]  }
   0x2   :  { %v852_v1 = vld [vmem:[%s1177_s1] ss:$0 sm:$0xff]  ;;  %v476_v2 = vunpack.c.l.bf16 %v475_v0  ;;  %v477_v3 = vunpack.c.h.bf16 %v475_v0  ;;  %v480_v6 = vunpack.c.l.bf16 %v762_v5  ;;  %v481_v7 = vunpack.c.h.bf16 %v762_v5  ;;  %v764_v9 = vld [vmem:[%s1176_s0 + $0x18] sm:$0xff]   ;;  %v766_v35 = vld [vmem:[%s1176_s0 + $0x28] sm:$0xff]  }
   0x3   :  { %v857_v4 = vld [vmem:[%s1178_s2] ss:$0 sm:$0xff]  ;;  %v484_v12 = vunpack.c.l.bf16 %v763_v8  ;;  %v485_v13 = vunpack.c.h.bf16 %v763_v8  ;;  %v488_v16 = vunpack.c.l.bf16 %v764_v9  ;;  %v489_v17 = vunpack.c.h.bf16 %v764_v9  ;;  %v767_v40 = vld [vmem:[%s1176_s0 + $0x30] sm:$0xff]   ;;  %v768_v45 = vld [vmem:[%s1176_s0 + $0x38] sm:$0xff]  }
   0x4   :  { %v146_v10 = vmul.f32 %v852_v1, %v476_v2  ;;  %v147_v11 = vmul.f32 %v852_v1, %v477_v3  ;;  %v148_v14 = vmul.f32 %v852_v1, %v480_v6  ;;  %v149_v15 = vmul.f32 %v852_v1, %v481_v7  ;;  %v765_v26 = vld [vmem:[%s1176_s0 + $0x20] sm:$0xff]  }
   0x5   :  { %v150_v20 = vmul.f32 %v852_v1, %v484_v12  ;;  %v151_v21 = vmul.f32 %v852_v1, %v485_v13  ;;  %v152_v24 = vmul.f32 %v852_v1, %v488_v16  ;;  %v153_v25 = vmul.f32 %v852_v1, %v489_v17  ;;  %v769_v62 = vld [vmem:[%s1176_s0 + $0x40] sm:$0xff]   ;;  %v770_v13 = vld [vmem:[%s1176_s0 + $0x48] sm:$0xff]  }
   0x6   :  { %v214_v18 = vadd.f32 %v857_v4, %v146_v10  ;;  %v215_v19 = vadd.f32 %v857_v4, %v147_v11  ;;  %v216_v22 = vadd.f32 %v857_v4, %v148_v14  ;;  %v217_v23 = vadd.f32 %v857_v4, %v149_v15 }
   0x7   :  { %v218_v29 = vadd.f32 %v857_v4, %v150_v20  ;;  %v219_v30 = vadd.f32 %v857_v4, %v151_v21  ;;  %v220_v33 = vadd.f32 %v857_v4, %v152_v24  ;;  %v221_v34 = vadd.f32 %v857_v4, %v153_v25 }
   0x8   :  { %v278_v27 = vmax.f32 %v214_v18, 0.0  ;;  %v279_v28 = vmax.f32 %v215_v19, 0.0  ;;  %v280_v31 = vmax.f32 %v216_v22, 0.0  ;;  %v281_v32 = vmax.f32 %v217_v23, 0.0  ;;  %v771_v18 = vld [vmem:[%s1176_s0 + $0x50] sm:$0xff]   ;;  %v772_v23 = vld [vmem:[%s1176_s0 + $0x58] sm:$0xff]  }
   0x9   :  { %v282_v37 = vmax.f32 %v218_v29, 0.0  ;;  %v283_v38 = vmax.f32 %v219_v30, 0.0  ;;  %v492_v39 = vunpack.c.l.bf16 %v765_v26  ;;  %v284_v42 = vmax.f32 %v220_v33, 0.0 }
   0xa   :  { %v605_v36 = vpack.c.bf16 %v279_v28, %v278_v27  ;;  %v610_v41 = vpack.c.bf16 %v281_v32, %v280_v31  ;;  %v285_v43 = vmax.f32 %v221_v34, 0.0  ;;  %v493_v44 = vunpack.c.h.bf16 %v765_v26 }
   0xb   :  { %v615_v46 = vpack.c.bf16 %v283_v38, %v282_v37  ;;  %v154_v47 = vmul.f32 %v852_v1, %v492_v39  ;;  %v496_v48 = vunpack.c.l.bf16 %v766_v35  ;;  %v497_v49 = vunpack.c.h.bf16 %v766_v35 }
   0xc   :  { %606 = vst [vmem:[%s1179_s3] sm:$0xff] %v605_v36   ;;  %v620_v50 = vpack.c.bf16 %v285_v43, %v284_v42  ;;  %v155_v51 = vmul.f32 %v852_v1, %v493_v44  ;;  %v500_v52 = vunpack.c.l.bf16 %v767_v40  ;;  %v501_v53 = vunpack.c.h.bf16 %v767_v40  ;;  %v773_v36 = vld [vmem:[%s1176_s0 + $0x60] sm:$0xff]  }
   0xd   :  { %793 = vst [vmem:[%s1179_s3 + $0x8] sm:$0xff] %v610_v41   ;;  %v222_v54 = vadd.f32 %v857_v4, %v154_v47  ;;  %v156_v55 = vmul.f32 %v852_v1, %v496_v48  ;;  %v157_v56 = vmul.f32 %v852_v1, %v497_v49  ;;  %v504_v57 = vunpack.c.l.bf16 %v768_v45 }
   0xe   :  { %794 = vst [vmem:[%s1179_s3 + $0x10] sm:$0xff] %v615_v46   ;;  %v223_v58 = vadd.f32 %v857_v4, %v155_v51  ;;  %v158_v59 = vmul.f32 %v852_v1, %v500_v52  ;;  %v159_v60 = vmul.f32 %v852_v1, %v501_v53  ;;  %v505_v61 = vunpack.c.h.bf16 %v768_v45  ;;  %v774_v53 = vld [vmem:[%s1176_s0 + $0x68] sm:$0xff]  }
   0xf   :  { %795 = vst [vmem:[%s1179_s3 + $0x18] sm:$0xff] %v620_v50   ;;  %v286_v63 = vmax.f32 %v222_v54, 0.0  ;;  %v224_v0 = vadd.f32 %v857_v4, %v156_v55  ;;  %v225_v2 = vadd.f32 %v857_v4, %v157_v56  ;;  %v160_v3 = vmul.f32 %v852_v1, %v504_v57 }
  0x10   :  { %v287_v5 = vmax.f32 %v223_v58, 0.0  ;;  %v226_v6 = vadd.f32 %v857_v4, %v158_v59  ;;  %v227_v7 = vadd.f32 %v857_v4, %v159_v60  ;;  %v161_v8 = vmul.f32 %v852_v1, %v505_v61  ;;  %v775_v58 = vld [vmem:[%s1176_s0 + $0x70] sm:$0xff]  }
  0x11   :  { %v288_v9 = vmax.f32 %v224_v0, 0.0  ;;  %v289_v10 = vmax.f32 %v225_v2, 0.0  ;;  %v228_v11 = vadd.f32 %v857_v4, %v160_v3  ;;  %v508_v12 = vunpack.c.l.bf16 %v769_v62 }
  0x12   :  { %v625_v14 = vpack.c.bf16 %v287_v5, %v286_v63  ;;  %v290_v15 = vmax.f32 %v226_v6, 0.0  ;;  %v291_v16 = vmax.f32 %v227_v7, 0.0  ;;  %v229_v17 = vadd.f32 %v857_v4, %v161_v8  ;;  %v776_v63 = vld [vmem:[%s1176_s0 + $0x78] sm:$0xff]  }
  0x13   :  { %v630_v19 = vpack.c.bf16 %v289_v10, %v288_v9  ;;  %v292_v20 = vmax.f32 %v228_v11, 0.0  ;;  %v509_v21 = vunpack.c.h.bf16 %v769_v62  ;;  %v162_v22 = vmul.f32 %v852_v1, %v508_v12 }
  0x14   :  { %796 = vst [vmem:[%s1179_s3 + $0x20] sm:$0xff] %v625_v14   ;;  %v635_v24 = vpack.c.bf16 %v291_v16, %v290_v15  ;;  %v293_v25 = vmax.f32 %v229_v17, 0.0  ;;  %v512_v26 = vunpack.c.l.bf16 %v770_v13  ;;  %v513_v27 = vunpack.c.h.bf16 %v770_v13  ;;  %v777_v14 = vld [vmem:[%s1176_s0 + $0x80] sm:$0xff]  }
  0x15   :  { %797 = vst [vmem:[%s1179_s3 + $0x28] sm:$0xff] %v630_v19   ;;  %v163_v28 = vmul.f32 %v852_v1, %v509_v21  ;;  %v230_v29 = vadd.f32 %v857_v4, %v162_v22  ;;  %v516_v30 = vunpack.c.l.bf16 %v771_v18  ;;  %v517_v31 = vunpack.c.h.bf16 %v771_v18 }
  0x16   :  { %798 = vst [vmem:[%s1179_s3 + $0x30] sm:$0xff] %v635_v24   ;;  %v640_v32 = vpack.c.bf16 %v293_v25, %v292_v20  ;;  %v164_v33 = vmul.f32 %v852_v1, %v512_v26  ;;  %v165_v34 = vmul.f32 %v852_v1, %v513_v27  ;;  %v520_v35 = vunpack.c.l.bf16 %v772_v23  ;;  %v778_v27 = vld [vmem:[%s1176_s0 + $0x88] sm:$0xff]  }
  0x17   :  { %v231_v37 = vadd.f32 %v857_v4, %v163_v28  ;;  %v294_v38 = vmax.f32 %v230_v29, 0.0  ;;  %v166_v39 = vmul.f32 %v852_v1, %v516_v30  ;;  %v167_v40 = vmul.f32 %v852_v1, %v517_v31 }
  0x18   :  { %799 = vst [vmem:[%s1179_s3 + $0x38] sm:$0xff] %v640_v32   ;;  %v232_v41 = vadd.f32 %v857_v4, %v164_v33  ;;  %v233_v42 = vadd.f32 %v857_v4, %v165_v34  ;;  %v521_v43 = vunpack.c.h.bf16 %v772_v23  ;;  %v168_v44 = vmul.f32 %v852_v1, %v520_v35 }
  0x19   :  { %v295_v45 = vmax.f32 %v231_v37, 0.0  ;;  %v234_v46 = vadd.f32 %v857_v4, %v166_v39  ;;  %v235_v47 = vadd.f32 %v857_v4, %v167_v40  ;;  %v524_v48 = vunpack.c.l.bf16 %v773_v36 }
  0x1a   :  { %v296_v49 = vmax.f32 %v232_v41, 0.0  ;;  %v297_v50 = vmax.f32 %v233_v42, 0.0  ;;  %v169_v51 = vmul.f32 %v852_v1, %v521_v43  ;;  %v236_v52 = vadd.f32 %v857_v4, %v168_v44  ;;  %v780_v41 = vld [vmem:[%s1176_s0 + $0x98] sm:$0xff]  }
  0x1b   :  { %v645_v54 = vpack.c.bf16 %v295_v45, %v294_v38  ;;  %v298_v55 = vmax.f32 %v234_v46, 0.0  ;;  %v299_v56 = vmax.f32 %v235_v47, 0.0  ;;  %v525_v57 = vunpack.c.h.bf16 %v773_v36  ;;  %v779_v36 = vld [vmem:[%s1176_s0 + $0x90] sm:$0xff]  }
  0x1c   :  { %v650_v59 = vpack.c.bf16 %v297_v50, %v296_v49  ;;  %v237_v60 = vadd.f32 %v857_v4, %v169_v51  ;;  %v300_v61 = vmax.f32 %v236_v52, 0.0  ;;  %v170_v62 = vmul.f32 %v852_v1, %v524_v48 }
  0x1d   :  { %800 = vst [vmem:[%s1179_s3 + $0x40] sm:$0xff] %v645_v54   ;;  %v655_v0 = vpack.c.bf16 %v299_v56, %v298_v55  ;;  %v171_v2 = vmul.f32 %v852_v1, %v525_v57  ;;  %v528_v3 = vunpack.c.l.bf16 %v774_v53  ;;  %v529_v5 = vunpack.c.h.bf16 %v774_v53  ;;  %v781_v54 = vld [vmem:[%s1176_s0 + $0xa0] sm:$0xff]  }
  0x1e   :  { %801 = vst [vmem:[%s1179_s3 + $0x48] sm:$0xff] %v650_v59   ;;  %v301_v6 = vmax.f32 %v237_v60, 0.0  ;;  %v238_v7 = vadd.f32 %v857_v4, %v170_v62  ;;  %v532_v8 = vunpack.c.l.bf16 %v775_v58  ;;  %v533_v9 = vunpack.c.h.bf16 %v775_v58 }
  0x1f   :  { %802 = vst [vmem:[%s1179_s3 + $0x50] sm:$0xff] %v655_v0   ;;  %v239_v10 = vadd.f32 %v857_v4, %v171_v2  ;;  %v172_v11 = vmul.f32 %v852_v1, %v528_v3  ;;  %v173_v12 = vmul.f32 %v852_v1, %v529_v5  ;;  %v536_v13 = vunpack.c.l.bf16 %v776_v63  ;;  %v782_v5 = vld [vmem:[%s1176_s0 + $0xa8] sm:$0xff]  }
  0x20   :  { %v660_v15 = vpack.c.bf16 %v301_v6, %v300_v61  ;;  %v302_v16 = vmax.f32 %v238_v7, 0.0  ;;  %v174_v17 = vmul.f32 %v852_v1, %v532_v8  ;;  %v175_v18 = vmul.f32 %v852_v1, %v533_v9 }
  0x21   :  { %v303_v19 = vmax.f32 %v239_v10, 0.0  ;;  %v240_v20 = vadd.f32 %v857_v4, %v172_v11  ;;  %v241_v21 = vadd.f32 %v857_v4, %v173_v12  ;;  %v537_v22 = vunpack.c.h.bf16 %v776_v63 }
  0x22   :  { %803 = vst [vmem:[%s1179_s3 + $0x58] sm:$0xff] %v660_v15   ;;  %v242_v23 = vadd.f32 %v857_v4, %v174_v17  ;;  %v243_v24 = vadd.f32 %v857_v4, %v175_v18  ;;  %v176_v25 = vmul.f32 %v852_v1, %v536_v13  ;;  %v540_v26 = vunpack.c.l.bf16 %v777_v14 }
  0x23   :  { %v665_v28 = vpack.c.bf16 %v303_v19, %v302_v16  ;;  %v304_v29 = vmax.f32 %v240_v20, 0.0  ;;  %v305_v30 = vmax.f32 %v241_v21, 0.0  ;;  %v177_v31 = vmul.f32 %v852_v1, %v537_v22 }
  0x24   :  { %v306_v32 = vmax.f32 %v242_v23, 0.0  ;;  %v307_v33 = vmax.f32 %v243_v24, 0.0  ;;  %v244_v34 = vadd.f32 %v857_v4, %v176_v25  ;;  %v541_v35 = vunpack.c.h.bf16 %v777_v14  ;;  %v783_v14 = vld [vmem:[%s1176_s0 + $0xb0] sm:$0xff]   ;;  %v784_v23 = vld [vmem:[%s1176_s0 + $0xb8] sm:$0xff]  }
  0x25   :  { %804 = vst [vmem:[%s1179_s3 + $0x60] sm:$0xff] %v665_v28   ;;  %v670_v37 = vpack.c.bf16 %v305_v30, %v304_v29  ;;  %v245_v38 = vadd.f32 %v857_v4, %v177_v31  ;;  %v178_v39 = vmul.f32 %v852_v1, %v540_v26  ;;  %v544_v40 = vunpack.c.l.bf16 %v778_v27 }
  0x26   :  { %v675_v42 = vpack.c.bf16 %v307_v33, %v306_v32  ;;  %v308_v43 = vmax.f32 %v244_v34, 0.0  ;;  %v179_v44 = vmul.f32 %v852_v1, %v541_v35  ;;  %v545_v45 = vunpack.c.h.bf16 %v778_v27  ;;  %v785_v32 = vld [vmem:[%s1176_s0 + $0xc0] sm:$0xff]  }
  0x27   :  { %805 = vst [vmem:[%s1179_s3 + $0x68] sm:$0xff] %v670_v37   ;;  %v309_v46 = vmax.f32 %v245_v38, 0.0  ;;  %v246_v47 = vadd.f32 %v857_v4, %v178_v39  ;;  %v180_v48 = vmul.f32 %v852_v1, %v544_v40  ;;  %v548_v49 = vunpack.c.l.bf16 %v779_v36 }
  0x28   :  { %806 = vst [vmem:[%s1179_s3 + $0x70] sm:$0xff] %v675_v42   ;;  %v247_v50 = vadd.f32 %v857_v4, %v179_v44  ;;  %v181_v51 = vmul.f32 %v852_v1, %v545_v45  ;;  %v549_v52 = vunpack.c.h.bf16 %v779_v36  ;;  %v552_v53 = vunpack.c.l.bf16 %v780_v41  ;;  %v786_v45 = vld [vmem:[%s1176_s0 + $0xc8] sm:$0xff]  }
  0x29   :  { %v680_v55 = vpack.c.bf16 %v309_v46, %v308_v43  ;;  %v310_v56 = vmax.f32 %v246_v47, 0.0  ;;  %v248_v57 = vadd.f32 %v857_v4, %v180_v48  ;;  %v182_v58 = vmul.f32 %v852_v1, %v548_v49 }
  0x2a   :  { %v311_v59 = vmax.f32 %v247_v50, 0.0  ;;  %v249_v60 = vadd.f32 %v857_v4, %v181_v51  ;;  %v183_v61 = vmul.f32 %v852_v1, %v549_v52  ;;  %v553_v62 = vunpack.c.h.bf16 %v780_v41 }
  0x2b   :  { %807 = vst [vmem:[%s1179_s3 + $0x78] sm:$0xff] %v680_v55   ;;  %v312_v63 = vmax.f32 %v248_v57, 0.0  ;;  %v250_v0 = vadd.f32 %v857_v4, %v182_v58  ;;  %v184_v2 = vmul.f32 %v852_v1, %v552_v53  ;;  %v556_v3 = vunpack.c.l.bf16 %v781_v54 }
  0x2c   :  { %v685_v6 = vpack.c.bf16 %v311_v59, %v310_v56  ;;  %v313_v7 = vmax.f32 %v249_v60, 0.0  ;;  %v251_v8 = vadd.f32 %v857_v4, %v183_v61  ;;  %v185_v9 = vmul.f32 %v852_v1, %v553_v62 }
  0x2d   :  { %v314_v10 = vmax.f32 %v250_v0, 0.0  ;;  %v252_v11 = vadd.f32 %v857_v4, %v184_v2  ;;  %v557_v12 = vunpack.c.h.bf16 %v781_v54  ;;  %v186_v13 = vmul.f32 %v852_v1, %v556_v3  ;;  %v787_v54 = vld [vmem:[%s1176_s0 + $0xd0] sm:$0xff]  }
  0x2e   :  { %808 = vst [vmem:[%s1179_s3 + $0x80] sm:$0xff] %v685_v6   ;;  %v690_v15 = vpack.c.bf16 %v313_v7, %v312_v63  ;;  %v315_v16 = vmax.f32 %v251_v8, 0.0  ;;  %v253_v17 = vadd.f32 %v857_v4, %v185_v9  ;;  %v560_v18 = vunpack.c.l.bf16 %v782_v5  ;;  %v788_v63 = vld [vmem:[%s1176_s0 + $0xd8] sm:$0xff]  }
  0x2f   :  { %v316_v19 = vmax.f32 %v252_v11, 0.0  ;;  %v187_v20 = vmul.f32 %v852_v1, %v557_v12  ;;  %v254_v21 = vadd.f32 %v857_v4, %v186_v13  ;;  %v561_v22 = vunpack.c.h.bf16 %v782_v5 }
  0x30   :  { %809 = vst [vmem:[%s1179_s3 + $0x88] sm:$0xff] %v690_v15   ;;  %v695_v24 = vpack.c.bf16 %v315_v16, %v314_v10  ;;  %v317_v25 = vmax.f32 %v253_v17, 0.0  ;;  %v188_v26 = vmul.f32 %v852_v1, %v560_v18  ;;  %v564_v27 = vunpack.c.l.bf16 %v783_v14  ;;  %v789_v10 = vld [vmem:[%s1176_s0 + $0xe0] sm:$0xff]  }
  0x31   :  { %v255_v28 = vadd.f32 %v857_v4, %v187_v20  ;;  %v318_v29 = vmax.f32 %v254_v21, 0.0  ;;  %v189_v30 = vmul.f32 %v852_v1, %v561_v22  ;;  %v565_v31 = vunpack.c.h.bf16 %v783_v14 }
  0x32   :  { %810 = vst [vmem:[%s1179_s3 + $0x90] sm:$0xff] %v695_v24   ;;  %v700_v33 = vpack.c.bf16 %v317_v25, %v316_v19  ;;  %v256_v34 = vadd.f32 %v857_v4, %v188_v26  ;;  %v190_v35 = vmul.f32 %v852_v1, %v564_v27  ;;  %v568_v36 = vunpack.c.l.bf16 %v784_v23 }
  0x33   :  { %v319_v37 = vmax.f32 %v255_v28, 0.0  ;;  %v257_v38 = vadd.f32 %v857_v4, %v189_v30  ;;  %v191_v39 = vmul.f32 %v852_v1, %v565_v31  ;;  %v569_v40 = vunpack.c.h.bf16 %v784_v23  ;;  %v790_v23 = vld [vmem:[%s1176_s0 + $0xe8] sm:$0xff]  }
  0x34   :  { %811 = vst [vmem:[%s1179_s3 + $0x98] sm:$0xff] %v700_v33   ;;  %v320_v41 = vmax.f32 %v256_v34, 0.0  ;;  %v258_v42 = vadd.f32 %v857_v4, %v190_v35  ;;  %v192_v43 = vmul.f32 %v852_v1, %v568_v36  ;;  %v572_v44 = vunpack.c.l.bf16 %v785_v32 }
  0x35   :  { %v705_v46 = vpack.c.bf16 %v319_v37, %v318_v29  ;;  %v321_v47 = vmax.f32 %v257_v38, 0.0  ;;  %v259_v48 = vadd.f32 %v857_v4, %v191_v39  ;;  %v193_v49 = vmul.f32 %v852_v1, %v569_v40 }
  0x36   :  { %v322_v50 = vmax.f32 %v258_v42, 0.0  ;;  %v260_v51 = vadd.f32 %v857_v4, %v192_v43  ;;  %v573_v52 = vunpack.c.h.bf16 %v785_v32  ;;  %v194_v53 = vmul.f32 %v852_v1, %v572_v44  ;;  %v791_v32 = vld [vmem:[%s1176_s0 + $0xf0] sm:$0xff]  }
  0x37   :  { %812 = vst [vmem:[%s1179_s3 + $0xa0] sm:$0xff] %v705_v46   ;;  %v710_v55 = vpack.c.bf16 %v321_v47, %v320_v41  ;;  %v323_v56 = vmax.f32 %v259_v48, 0.0  ;;  %v261_v57 = vadd.f32 %v857_v4, %v193_v49  ;;  %v576_v58 = vunpack.c.l.bf16 %v786_v45  ;;  %v792_v41 = vld [vmem:[%s1176_s0 + $0xf8] sm:$0xff]  }
  0x38   :  { %v324_v59 = vmax.f32 %v260_v51, 0.0  ;;  %v195_v60 = vmul.f32 %v852_v1, %v573_v52  ;;  %v262_v61 = vadd.f32 %v857_v4, %v194_v53  ;;  %v577_v62 = vunpack.c.h.bf16 %v786_v45 }
  0x39   :  { %813 = vst [vmem:[%s1179_s3 + $0xa8] sm:$0xff] %v710_v55   ;;  %v715_v0 = vpack.c.bf16 %v323_v56, %v322_v50  ;;  %v325_v2 = vmax.f32 %v261_v57, 0.0  ;;  %v196_v3 = vmul.f32 %v852_v1, %v576_v58  ;;  %v580_v5 = vunpack.c.l.bf16 %v787_v54 }
  0x3a   :  { %v263_v6 = vadd.f32 %v857_v4, %v195_v60  ;;  %v326_v7 = vmax.f32 %v262_v61, 0.0  ;;  %v197_v8 = vmul.f32 %v852_v1, %v577_v62  ;;  %v581_v9 = vunpack.c.h.bf16 %v787_v54 }
  0x3b   :  { %814 = vst [vmem:[%s1179_s3 + $0xb0] sm:$0xff] %v715_v0   ;;  %v720_v11 = vpack.c.bf16 %v325_v2, %v324_v59  ;;  %v264_v12 = vadd.f32 %v857_v4, %v196_v3  ;;  %v198_v13 = vmul.f32 %v852_v1, %v580_v5  ;;  %v584_v14 = vunpack.c.l.bf16 %v788_v63 }
  0x3c   :  { %v327_v15 = vmax.f32 %v263_v6, 0.0  ;;  %v265_v16 = vadd.f32 %v857_v4, %v197_v8  ;;  %v199_v17 = vmul.f32 %v852_v1, %v581_v9  ;;  %v585_v18 = vunpack.c.h.bf16 %v788_v63 }
  0x3d   :  { %815 = vst [vmem:[%s1179_s3 + $0xb8] sm:$0xff] %v720_v11   ;;  %v328_v19 = vmax.f32 %v264_v12, 0.0  ;;  %v266_v20 = vadd.f32 %v857_v4, %v198_v13  ;;  %v200_v21 = vmul.f32 %v852_v1, %v584_v14  ;;  %v588_v22 = vunpack.c.l.bf16 %v789_v10 }
  0x3e   :  { %v725_v24 = vpack.c.bf16 %v327_v15, %v326_v7  ;;  %v329_v25 = vmax.f32 %v265_v16, 0.0  ;;  %v267_v26 = vadd.f32 %v857_v4, %v199_v17  ;;  %v201_v27 = vmul.f32 %v852_v1, %v585_v18 }
  0x3f   :  { %v330_v28 = vmax.f32 %v266_v20, 0.0  ;;  %v268_v29 = vadd.f32 %v857_v4, %v200_v21  ;;  %v589_v30 = vunpack.c.h.bf16 %v789_v10  ;;  %v202_v31 = vmul.f32 %v852_v1, %v588_v22 }
  0x40   :  { %816 = vst [vmem:[%s1179_s3 + $0xc0] sm:$0xff] %v725_v24   ;;  %v730_v33 = vpack.c.bf16 %v329_v25, %v328_v19  ;;  %v331_v34 = vmax.f32 %v267_v26, 0.0  ;;  %v269_v35 = vadd.f32 %v857_v4, %v201_v27  ;;  %v592_v36 = vunpack.c.l.bf16 %v790_v23 }
  0x41   :  { %v332_v37 = vmax.f32 %v268_v29, 0.0  ;;  %v203_v38 = vmul.f32 %v852_v1, %v589_v30  ;;  %v270_v39 = vadd.f32 %v857_v4, %v202_v31  ;;  %v593_v40 = vunpack.c.h.bf16 %v790_v23 }
  0x42   :  { %817 = vst [vmem:[%s1179_s3 + $0xc8] sm:$0xff] %v730_v33   ;;  %v735_v42 = vpack.c.bf16 %v331_v34, %v330_v28  ;;  %v333_v43 = vmax.f32 %v269_v35, 0.0  ;;  %v204_v44 = vmul.f32 %v852_v1, %v592_v36  ;;  %v596_v45 = vunpack.c.l.bf16 %v791_v32 }
  0x43   :  { %v271_v46 = vadd.f32 %v857_v4, %v203_v38  ;;  %v334_v47 = vmax.f32 %v270_v39, 0.0  ;;  %v205_v48 = vmul.f32 %v852_v1, %v593_v40  ;;  %v597_v49 = vunpack.c.h.bf16 %v791_v32 }
  0x44   :  { %818 = vst [vmem:[%s1179_s3 + $0xd0] sm:$0xff] %v735_v42   ;;  %v740_v50 = vpack.c.bf16 %v333_v43, %v332_v37  ;;  %v272_v51 = vadd.f32 %v857_v4, %v204_v44  ;;  %v206_v52 = vmul.f32 %v852_v1, %v596_v45  ;;  %v600_v53 = vunpack.c.l.bf16 %v792_v41 }
  0x45   :  { %v335_v54 = vmax.f32 %v271_v46, 0.0  ;;  %v273_v55 = vadd.f32 %v857_v4, %v205_v48  ;;  %v207_v56 = vmul.f32 %v852_v1, %v597_v49  ;;  %v601_v57 = vunpack.c.h.bf16 %v792_v41 }
  0x46   :  { %819 = vst [vmem:[%s1179_s3 + $0xd8] sm:$0xff] %v740_v50   ;;  %v336_v58 = vmax.f32 %v272_v51, 0.0  ;;  %v274_v59 = vadd.f32 %v857_v4, %v206_v52  ;;  %v208_v60 = vmul.f32 %v852_v1, %v600_v53 }
  0x47   :  { %v745_v61 = vpack.c.bf16 %v335_v54, %v334_v47  ;;  %v337_v62 = vmax.f32 %v273_v55, 0.0  ;;  %v275_v63 = vadd.f32 %v857_v4, %v207_v56  ;;  %v209_v0 = vmul.f32 %v852_v1, %v601_v57 }
  0x48   :  { %v338_v2 = vmax.f32 %v274_v59, 0.0  ;;  %v276_v3 = vadd.f32 %v857_v4, %v208_v60 }
  0x49   :  { %820 = vst [vmem:[%s1179_s3 + $0xe0] sm:$0xff] %v745_v61   ;;  %v750_v5 = vpack.c.bf16 %v337_v62, %v336_v58  ;;  %v339_v6 = vmax.f32 %v275_v63, 0.0  ;;  %v277_v7 = vadd.f32 %v857_v4, %v209_v0 }
  0x4a   :  { %v340_v8 = vmax.f32 %v276_v3, 0.0 }
  0x4b   :  { %821 = vst [vmem:[%s1179_s3 + $0xe8] sm:$0xff] %v750_v5   ;;  %v755_v9 = vpack.c.bf16 %v339_v6, %v338_v2  ;;  %v341_v10 = vmax.f32 %v277_v7, 0.0 }
  0x4d   :  { %822 = vst [vmem:[%s1179_s3 + $0xf0] sm:$0xff] %v755_v9   ;;  %v760_v1 = vpack.c.bf16 %v341_v10, %v340_v8 }
  0x4f   :  { %823 = vst [vmem:[%s1179_s3 + $0xf8] sm:$0xff] %v760_v1  }

// kernel: cond_dcgan_forward.28
= control target key start
LH: loop header
LB: loop body
LE: loop exit
PB: predicated region body
PF: predicated region fallthrough
CT: control target
= control target key end

     0   :  { %s1573_s9 = smov 0   ;;  %s1575_s10 = smov 0   ;;  %s1708_s0 = inlined_call_operand.vmem [shape: bf16[2048,128], index: 0, kind: input, shape index: {}]   ;;  %s1709_s1 = inlined_call_operand.vmem [shape: bf16[128,128], index: 1, kind: input, shape index: {}]   ;;  %s1710_s2 = inlined_call_operand.vmem [shape: bf16[2048,128], index: 2, kind: output, shape index: {}]  }
   0x1   :  { %s1577_s11 = smov 0  }
   0x2 LB: > { %s24_s12 = sadd.s32 1, %s1552_s10  ;;  %p960_p0 = scmp.ge.s32.totalorder %s1556_s11, 1  ;;  %s1556_s11 = sphi %s1577_s11, %s12_s11   ;;  %s1552_s10 = sphi %s1575_s10, %s1712_s10   ;;  %s1548_s9 = sphi %s1573_s9, %s1711_s9  }
   0x3   : > { %p26_p1 = scmp.ge.s32.totalorder %s24_s12, 4  ;;  %p136_p2 = scmp.lt.s32.totalorder %s1556_s11, 5 }
   0x5   : > { %s1714_s12 = smov (%p26_p1, %s24_s12), 0  ;;  %p137_p3 = pnand %p960_p0, %p136_p2 }
   0x6   : > { %s961_s21 = sshll.u32 (!%p137_p3), %s1548_s9, 6 }
   0x7   : > { %140 = sbr.rel (%p137_p3) target bundleno = 308 (0x134), region = 28  ;;  %p166_p4 = scmp.lt.s32.totalorder (!%p137_p3), %s961_s21, 255 }
   0xc   : > { %v1166_v0 = vld [vmem:[%s1709_s1 + $0x38] sm:$0xff]  ;;  %v1165_v1 = vld [vmem:[%s1709_s1 + $0x30] sm:$0xff]  ;;  %v1164_v2 = vld [vmem:[%s1709_s1 + $0x28] sm:$0xff]  ;;  %s1716_s21 = smov (!%p166_p4, %s961_s21), 255 }
   0xd   : > { %504 = vmatpush.bf16.msra.mxu0 %v1166_v0  ;;  %1358 = vmatpush.bf16.msra.mxu1 %v1166_v0  ;;  %v1163_v3 = vld [vmem:[%s1709_s1 + $0x20] sm:$0xff]  ;;  %v1162_v4 = vld [vmem:[%s1709_s1 + $0x18] sm:$0xff]  ;;  %v1161_v5 = vld [vmem:[%s1709_s1 + $0x10] sm:$0xff]  ;;  %s962_s28 = sshll.u32 %s1716_s21, 2 }
   0xe   : > { %1359 = vmatpush.bf16.msra.mxu2 %v1166_v0  ;;  %1360 = vmatpush.bf16.msra.mxu3 %v1166_v0  ;;  %v1160_v6 = vld [vmem:[%s1709_s1 + $0x8] sm:$0xff]  ;;  %v1159_v7 = vld [vmem:[%s1709_s1] sm:$0xff]  ;;  %s1626_s5 = scalar_lea.vmem %s1708_s0, %s962_s28  ;;  %s1665_s8 = scalar_lea.vmem %s1710_s2, %s962_s28 }
   0xf   : > { %v1127_v8 = vld [vmem:[%s1626_s5] sm:$0xff]  ;;  %v1128_v12 = vld [vmem:[%s1626_s5 + $0x8] sm:$0xff]  ;;  %v1129_v16 = vld [vmem:[%s1626_s5 + $0x10] sm:$0xff] }
  0x10   : > { %v1135_v9 = vld [vmem:[%s1626_s5 + $0x40] sm:$0xff]  ;;  %v1136_v13 = vld [vmem:[%s1626_s5 + $0x48] sm:$0xff]  ;;  %v1137_v17 = vld [vmem:[%s1626_s5 + $0x50] sm:$0xff] }
  0x11   : > { %505 = vmatpush.bf16.msra.mxu0 %v1165_v1  ;;  %1361 = vmatpush.bf16.msra.mxu1 %v1165_v1  ;;  %v1143_v10 = vld [vmem:[%s1626_s5 + $0x80] sm:$0xff]  ;;  %v1144_v14 = vld [vmem:[%s1626_s5 + $0x88] sm:$0xff]  ;;  %v1145_v18 = vld [vmem:[%s1626_s5 + $0x90] sm:$0xff] }
  0x12   : > { %1362 = vmatpush.bf16.msra.mxu2 %v1165_v1  ;;  %1363 = vmatpush.bf16.msra.mxu3 %v1165_v1  ;;  %v1151_v11 = vld [vmem:[%s1626_s5 + $0xc0] sm:$0xff]  ;;  %v1152_v15 = vld [vmem:[%s1626_s5 + $0xc8] sm:$0xff]  ;;  %v1153_v19 = vld [vmem:[%s1626_s5 + $0xd0] sm:$0xff] }
  0x13   : > { %v1130_v20 = vld [vmem:[%s1626_s5 + $0x18] sm:$0xff]  ;;  %v1131_v24 = vld [vmem:[%s1626_s5 + $0x20] sm:$0xff]  ;;  %v1132_v28 = vld [vmem:[%s1626_s5 + $0x28] sm:$0xff] }
  0x14   : > { %v1138_v21 = vld [vmem:[%s1626_s5 + $0x58] sm:$0xff]  ;;  %v1139_v25 = vld [vmem:[%s1626_s5 + $0x60] sm:$0xff]  ;;  %v1140_v29 = vld [vmem:[%s1626_s5 + $0x68] sm:$0xff] }
  0x15   : > { %506 = vmatpush.bf16.msra.mxu0 %v1164_v2  ;;  %1364 = vmatpush.bf16.msra.mxu1 %v1164_v2  ;;  %v1146_v22 = vld [vmem:[%s1626_s5 + $0x98] sm:$0xff]  ;;  %v1147_v26 = vld [vmem:[%s1626_s5 + $0xa0] sm:$0xff]  ;;  %v1148_v30 = vld [vmem:[%s1626_s5 + $0xa8] sm:$0xff] }
  0x16   : > { %1365 = vmatpush.bf16.msra.mxu2 %v1164_v2  ;;  %1366 = vmatpush.bf16.msra.mxu3 %v1164_v2  ;;  %v1154_v23 = vld [vmem:[%s1626_s5 + $0xd8] sm:$0xff]  ;;  %v1155_v27 = vld [vmem:[%s1626_s5 + $0xe0] sm:$0xff]  ;;  %v1156_v31 = vld [vmem:[%s1626_s5 + $0xe8] sm:$0xff] }
  0x17   : > { %v1133_v32 = vld [vmem:[%s1626_s5 + $0x30] sm:$0xff]  ;;  %v1134_v36 = vld [vmem:[%s1626_s5 + $0x38] sm:$0xff] }
  0x18   : > { %v1141_v33 = vld [vmem:[%s1626_s5 + $0x70] sm:$0xff]  ;;  %v1142_v37 = vld [vmem:[%s1626_s5 + $0x78] sm:$0xff] }
  0x19   : > { %507 = vmatpush.bf16.msra.mxu0 %v1163_v3  ;;  %1367 = vmatpush.bf16.msra.mxu1 %v1163_v3  ;;  %v1149_v34 = vld [vmem:[%s1626_s5 + $0xb0] sm:$0xff]  ;;  %v1150_v38 = vld [vmem:[%s1626_s5 + $0xb8] sm:$0xff] }
  0x1a   : > { %1368 = vmatpush.bf16.msra.mxu2 %v1163_v3  ;;  %1369 = vmatpush.bf16.msra.mxu3 %v1163_v3  ;;  %v1157_v35 = vld [vmem:[%s1626_s5 + $0xf0] sm:$0xff]  ;;  %v1158_v39 = vld [vmem:[%s1626_s5 + $0xf8] sm:$0xff] }
  0x1d   : > { %508 = vmatpush.bf16.msra.mxu0 %v1162_v4  ;;  %1370 = vmatpush.bf16.msra.mxu1 %v1162_v4 }
  0x1e   : > { %1371 = vmatpush.bf16.msra.mxu2 %v1162_v4  ;;  %1372 = vmatpush.bf16.msra.mxu3 %v1162_v4 }
  0x21   : > { %509 = vmatpush.bf16.msra.mxu0 %v1161_v5  ;;  %1373 = vmatpush.bf16.msra.mxu1 %v1161_v5 }
  0x22   : > { %1374 = vmatpush.bf16.msra.mxu2 %v1161_v5  ;;  %1375 = vmatpush.bf16.msra.mxu3 %v1161_v5 }
  0x25   : > { %510 = vmatpush.bf16.msra.mxu0 %v1160_v6  ;;  %1376 = vmatpush.bf16.msra.mxu1 %v1160_v6 }
  0x26   : > { %1377 = vmatpush.bf16.msra.mxu2 %v1160_v6  ;;  %1378 = vmatpush.bf16.msra.mxu3 %v1160_v6 }
  0x29   : > { %511 = vmatpush.bf16.msra.mxu0 %v1159_v7  ;;  %1379 = vmatpush.bf16.msra.mxu1 %v1159_v7 }
  0x2a   : > { %1380 = vmatpush.bf16.msra.mxu2 %v1159_v7  ;;  %1381 = vmatpush.bf16.msra.mxu3 %v1159_v7 }
  0x2c   : > { %512 = vmatmul.bf16.vlgmr.msra.gmra.mxu0 %v1127_v8  ;;  %552 = vmatmul.bf16.vlgmr.msra.gmra.mxu1 %v1135_v9 }
  0x2d   : > { %592 = vmatmul.bf16.vlgmr.msra.gmra.mxu2 %v1143_v10  ;;  %632 = vmatmul.bf16.vlgmr.msra.gmra.mxu3 %v1151_v11 }
  0x3c   : > { %517 = vmatmul.bf16.gmra.mxu0 %v1128_v12  ;;  %557 = vmatmul.bf16.gmra.mxu1 %v1136_v13 }
  0x3d   : > { %597 = vmatmul.bf16.gmra.mxu2 %v1144_v14  ;;  %637 = vmatmul.bf16.gmra.mxu3 %v1152_v15 }
  0x4c   : > { %522 = vmatmul.bf16.gmra.mxu0 %v1129_v16  ;;  %562 = vmatmul.bf16.gmra.mxu1 %v1137_v17 }
  0x4d   : > { %602 = vmatmul.bf16.gmra.mxu2 %v1145_v18  ;;  %642 = vmatmul.bf16.gmra.mxu3 %v1153_v19 }
  0x5c   : > { %527 = vmatmul.bf16.gmra.mxu0 %v1130_v20  ;;  %567 = vmatmul.bf16.gmra.mxu1 %v1138_v21 }
  0x5d   : > { %607 = vmatmul.bf16.gmra.mxu2 %v1146_v22  ;;  %647 = vmatmul.bf16.gmra.mxu3 %v1154_v23 }
  0x6c   : > { %532 = vmatmul.bf16.gmra.mxu0 %v1131_v24  ;;  %572 = vmatmul.bf16.gmra.mxu1 %v1139_v25 }
  0x6d   : > { %612 = vmatmul.bf16.gmra.mxu2 %v1147_v26  ;;  %652 = vmatmul.bf16.gmra.mxu3 %v1155_v27 }
  0x7c   : > { %537 = vmatmul.bf16.gmra.mxu0 %v1132_v28  ;;  %577 = vmatmul.bf16.gmra.mxu1 %v1140_v29 }
  0x7d   : > { %617 = vmatmul.bf16.gmra.mxu2 %v1148_v30  ;;  %657 = vmatmul.bf16.gmra.mxu3 %v1156_v31 }
  0x8c   : > { %542 = vmatmul.bf16.gmra.mxu0 %v1133_v32  ;;  %582 = vmatmul.bf16.gmra.mxu1 %v1141_v33 }
  0x8d   : > { %622 = vmatmul.bf16.gmra.mxu2 %v1149_v34  ;;  %662 = vmatmul.bf16.gmra.mxu3 %v1157_v35 }
  0x9c   : > { %547 = vmatmul.bf16.gmra.mxu0 %v1134_v36  ;;  %587 = vmatmul.bf16.gmra.mxu1 %v1142_v37 }
  0x9d   : > { %627 = vmatmul.bf16.gmra.mxu2 %v1150_v38  ;;  %667 = vmatmul.bf16.gmra.mxu3 %v1158_v39 }
  0xa9   : > { %v513_v40 = vpop.f32.mrf.mxu0  ;;  %v553_v41 = vpop.f32.mrf.mxu1 }
  0xaa   : > { %1406 = vtanh.f32 %v513_v40 }
  0xab   : > { %1408 = vtanh.f32 %v553_v41 }
  0xb0   : > { %v593_v42 = vpop.f32.mrf.mxu2  ;;  %v633_v43 = vpop.f32.mrf.mxu3 }
  0xb1   : > { %v515_v44 = vpop.f32.mrf.mxu0  ;;  %v555_v45 = vpop.f32.mrf.mxu1 }
  0xb2   : > { %1410 = vtanh.f32 %v515_v44  ;;  %v1407_v46 = vpop.eup %1406 }
  0xb3   : > { %1412 = vtanh.f32 %v555_v45  ;;  %v1409_v47 = vpop.eup %1408 }
  0xb4   : > { %1414 = vtanh.f32 %v593_v42 }
  0xb5   : > { %1416 = vtanh.f32 %v633_v43 }
  0xb8   : > { %v595_v48 = vpop.f32.mrf.mxu2  ;;  %v635_v49 = vpop.f32.mrf.mxu3 }
  0xb9   : > { %v1411_v50 = vpop.eup %1410  ;;  %1418 = vtanh.f32 %v595_v48  ;;  %v518_v51 = vpop.f32.mrf.mxu0 }
  0xba   : > { %v558_v52 = vpop.f32.mrf.mxu1  ;;  %v1413_v53 = vpop.eup %1412  ;;  %v1170_v54 = vpack.c.bf16 %v1411_v50, %v1407_v46  ;;  %1420 = vtanh.f32 %v635_v49 }
  0xbb   : > { %v1210_v55 = vpack.c.bf16 %v1413_v53, %v1409_v47  ;;  %v1415_v56 = vpop.eup %1414  ;;  %1422 = vtanh.f32 %v518_v51 }
  0xbc   : > { %1171 = vst [vmem:[%s1665_s8] sm:$0xff] %v1170_v54   ;;  %v1417_v57 = vpop.eup %1416  ;;  %1424 = vtanh.f32 %v558_v52 }
  0xbd   : > { %1334 = vst [vmem:[%s1665_s8 + $0x40] sm:$0xff] %v1210_v55  }
  0xbf   : > { %v1419_v58 = vpop.eup %1418 }
  0xc0   : > { %v1421_v59 = vpop.eup %1420  ;;  %v1250_v60 = vpack.c.bf16 %v1419_v58, %v1415_v56  ;;  %v598_v61 = vpop.f32.mrf.mxu2 }
  0xc1   : > { %v638_v62 = vpop.f32.mrf.mxu3  ;;  %v1290_v63 = vpack.c.bf16 %v1421_v59, %v1417_v57  ;;  %v520_v0 = vpop.f32.mrf.mxu0 }
  0xc2   : > { %v560_v1 = vpop.f32.mrf.mxu1  ;;  %1342 = vst [vmem:[%s1665_s8 + $0x80] sm:$0xff] %v1250_v60   ;;  %1426 = vtanh.f32 %v520_v0  ;;  %v1423_v2 = vpop.eup %1422 }
  0xc3   : > { %1350 = vst [vmem:[%s1665_s8 + $0xc0] sm:$0xff] %v1290_v63   ;;  %1428 = vtanh.f32 %v560_v1  ;;  %v1425_v3 = vpop.eup %1424 }
  0xc4   : > { %1430 = vtanh.f32 %v598_v61 }
  0xc5   : > { %1432 = vtanh.f32 %v638_v62 }
  0xc8   : > { %v600_v4 = vpop.f32.mrf.mxu2  ;;  %v1427_v6 = vpop.eup %1426 }
  0xc9   : > { %v640_v5 = vpop.f32.mrf.mxu3  ;;  %1434 = vtanh.f32 %v600_v4  ;;  %v523_v7 = vpop.f32.mrf.mxu0  ;;  %v1175_v10 = vpack.c.bf16 %v1427_v6, %v1423_v2 }
  0xca   : > { %v563_v8 = vpop.f32.mrf.mxu1  ;;  %v1429_v9 = vpop.eup %1428  ;;  %1436 = vtanh.f32 %v640_v5 }
  0xcb   : > { %v1215_v11 = vpack.c.bf16 %v1429_v9, %v1425_v3  ;;  %1327 = vst [vmem:[%s1665_s8 + $0x8] sm:$0xff] %v1175_v10   ;;  %v1431_v12 = vpop.eup %1430  ;;  %1438 = vtanh.f32 %v523_v7 }
  0xcc   : > { %v1433_v13 = vpop.eup %1432  ;;  %1440 = vtanh.f32 %v563_v8 }
  0xcd   : > { %1335 = vst [vmem:[%s1665_s8 + $0x48] sm:$0xff] %v1215_v11  }
  0xcf   : > { %v1435_v14 = vpop.eup %1434 }
  0xd0   : > { %v1437_v15 = vpop.eup %1436  ;;  %v1255_v16 = vpack.c.bf16 %v1435_v14, %v1431_v12  ;;  %v603_v17 = vpop.f32.mrf.mxu2 }
  0xd1   : > { %v643_v18 = vpop.f32.mrf.mxu3  ;;  %v1295_v19 = vpack.c.bf16 %v1437_v15, %v1433_v13  ;;  %v525_v20 = vpop.f32.mrf.mxu0 }
  0xd2   : > { %v565_v21 = vpop.f32.mrf.mxu1  ;;  %1343 = vst [vmem:[%s1665_s8 + $0x88] sm:$0xff] %v1255_v16   ;;  %1442 = vtanh.f32 %v525_v20  ;;  %v1439_v22 = vpop.eup %1438 }
  0xd3   : > { %1351 = vst [vmem:[%s1665_s8 + $0xc8] sm:$0xff] %v1295_v19   ;;  %1444 = vtanh.f32 %v565_v21  ;;  %v1441_v23 = vpop.eup %1440 }
  0xd4   : > { %1446 = vtanh.f32 %v603_v17 }
  0xd5   : > { %1448 = vtanh.f32 %v643_v18 }
  0xd8   : > { %v605_v24 = vpop.f32.mrf.mxu2  ;;  %v1443_v26 = vpop.eup %1442 }
  0xd9   : > { %v645_v25 = vpop.f32.mrf.mxu3  ;;  %1450 = vtanh.f32 %v605_v24  ;;  %v528_v27 = vpop.f32.mrf.mxu0  ;;  %v1180_v30 = vpack.c.bf16 %v1443_v26, %v1439_v22 }
  0xda   : > { %v568_v28 = vpop.f32.mrf.mxu1  ;;  %v1445_v29 = vpop.eup %1444  ;;  %1452 = vtanh.f32 %v645_v25 }
  0xdb   : > { %v1220_v31 = vpack.c.bf16 %v1445_v29, %v1441_v23  ;;  %1328 = vst [vmem:[%s1665_s8 + $0x10] sm:$0xff] %v1180_v30   ;;  %v1447_v32 = vpop.eup %1446  ;;  %1454 = vtanh.f32 %v528_v27 }
  0xdc   : > { %v1449_v33 = vpop.eup %1448  ;;  %1456 = vtanh.f32 %v568_v28 }
  0xdd   : > { %1336 = vst [vmem:[%s1665_s8 + $0x50] sm:$0xff] %v1220_v31  }
  0xdf   : > { %v1451_v34 = vpop.eup %1450 }
  0xe0   : > { %v1453_v35 = vpop.eup %1452  ;;  %v1260_v36 = vpack.c.bf16 %v1451_v34, %v1447_v32  ;;  %v608_v37 = vpop.f32.mrf.mxu2 }
  0xe1   : > { %v648_v38 = vpop.f32.mrf.mxu3  ;;  %v1300_v39 = vpack.c.bf16 %v1453_v35, %v1449_v33  ;;  %v530_v40 = vpop.f32.mrf.mxu0 }
  0xe2   : > { %v570_v41 = vpop.f32.mrf.mxu1  ;;  %1344 = vst [vmem:[%s1665_s8 + $0x90] sm:$0xff] %v1260_v36   ;;  %1458 = vtanh.f32 %v530_v40  ;;  %v1455_v42 = vpop.eup %1454 }
  0xe3   : > { %1352 = vst [vmem:[%s1665_s8 + $0xd0] sm:$0xff] %v1300_v39   ;;  %1460 = vtanh.f32 %v570_v41  ;;  %v1457_v43 = vpop.eup %1456 }
  0xe4   : > { %1462 = vtanh.f32 %v608_v37 }
  0xe5   : > { %1464 = vtanh.f32 %v648_v38 }
  0xe8   : > { %v610_v44 = vpop.f32.mrf.mxu2  ;;  %v1459_v46 = vpop.eup %1458 }
  0xe9   : > { %v650_v45 = vpop.f32.mrf.mxu3  ;;  %1466 = vtanh.f32 %v610_v44  ;;  %v533_v47 = vpop.f32.mrf.mxu0  ;;  %v1185_v50 = vpack.c.bf16 %v1459_v46, %v1455_v42 }
  0xea   : > { %v573_v48 = vpop.f32.mrf.mxu1  ;;  %v1461_v49 = vpop.eup %1460  ;;  %1468 = vtanh.f32 %v650_v45 }
  0xeb   : > { %v1225_v51 = vpack.c.bf16 %v1461_v49, %v1457_v43  ;;  %1329 = vst [vmem:[%s1665_s8 + $0x18] sm:$0xff] %v1185_v50   ;;  %v1463_v52 = vpop.eup %1462  ;;  %1470 = vtanh.f32 %v533_v47 }
  0xec   : > { %v1465_v53 = vpop.eup %1464  ;;  %1472 = vtanh.f32 %v573_v48 }
  0xed   : > { %1337 = vst [vmem:[%s1665_s8 + $0x58] sm:$0xff] %v1225_v51  }
  0xef   : > { %v1467_v54 = vpop.eup %1466 }
  0xf0   : > { %v1469_v55 = vpop.eup %1468  ;;  %v1265_v56 = vpack.c.bf16 %v1467_v54, %v1463_v52  ;;  %v613_v57 = vpop.f32.mrf.mxu2 }
  0xf1   : > { %v653_v58 = vpop.f32.mrf.mxu3  ;;  %v1305_v59 = vpack.c.bf16 %v1469_v55, %v1465_v53  ;;  %v535_v60 = vpop.f32.mrf.mxu0 }
  0xf2   : > { %v575_v61 = vpop.f32.mrf.mxu1  ;;  %1345 = vst [vmem:[%s1665_s8 + $0x98] sm:$0xff] %v1265_v56   ;;  %1474 = vtanh.f32 %v535_v60  ;;  %v1471_v62 = vpop.eup %1470 }
  0xf3   : > { %1353 = vst [vmem:[%s1665_s8 + $0xd8] sm:$0xff] %v1305_v59   ;;  %1476 = vtanh.f32 %v575_v61  ;;  %v1473_v63 = vpop.eup %1472 }
  0xf4   : > { %1478 = vtanh.f32 %v613_v57 }
  0xf5   : > { %1480 = vtanh.f32 %v653_v58 }
  0xf8   : > { %v615_v0 = vpop.f32.mrf.mxu2  ;;  %v1475_v2 = vpop.eup %1474 }
  0xf9   : > { %v655_v1 = vpop.f32.mrf.mxu3  ;;  %1482 = vtanh.f32 %v615_v0  ;;  %v538_v3 = vpop.f32.mrf.mxu0  ;;  %v1190_v6 = vpack.c.bf16 %v1475_v2, %v1471_v62 }
  0xfa   : > { %v578_v4 = vpop.f32.mrf.mxu1  ;;  %v1477_v5 = vpop.eup %1476  ;;  %1484 = vtanh.f32 %v655_v1 }
  0xfb   : > { %v1230_v7 = vpack.c.bf16 %v1477_v5, %v1473_v63  ;;  %1330 = vst [vmem:[%s1665_s8 + $0x20] sm:$0xff] %v1190_v6   ;;  %v1479_v8 = vpop.eup %1478  ;;  %1486 = vtanh.f32 %v538_v3 }
  0xfc   : > { %v1481_v9 = vpop.eup %1480  ;;  %1488 = vtanh.f32 %v578_v4 }
  0xfd   : > { %1338 = vst [vmem:[%s1665_s8 + $0x60] sm:$0xff] %v1230_v7  }
  0xff   : > { %v1483_v10 = vpop.eup %1482 }
 0x100   : > { %v1485_v11 = vpop.eup %1484  ;;  %v1270_v12 = vpack.c.bf16 %v1483_v10, %v1479_v8  ;;  %v618_v13 = vpop.f32.mrf.mxu2 }
 0x101   : > { %v658_v14 = vpop.f32.mrf.mxu3  ;;  %v1310_v15 = vpack.c.bf16 %v1485_v11, %v1481_v9  ;;  %v540_v16 = vpop.f32.mrf.mxu0 }
 0x102   : > { %v580_v17 = vpop.f32.mrf.mxu1  ;;  %1346 = vst [vmem:[%s1665_s8 + $0xa0] sm:$0xff] %v1270_v12   ;;  %1490 = vtanh.f32 %v540_v16  ;;  %v1487_v18 = vpop.eup %1486 }
 0x103   : > { %1354 = vst [vmem:[%s1665_s8 + $0xe0] sm:$0xff] %v1310_v15   ;;  %1492 = vtanh.f32 %v580_v17  ;;  %v1489_v19 = vpop.eup %1488 }
 0x104   : > { %1494 = vtanh.f32 %v618_v13 }
 0x105   : > { %1496 = vtanh.f32 %v658_v14 }
 0x108   : > { %v620_v20 = vpop.f32.mrf.mxu2  ;;  %v1491_v22 = vpop.eup %1490 }
 0x109   : > { %v660_v21 = vpop.f32.mrf.mxu3  ;;  %1498 = vtanh.f32 %v620_v20  ;;  %v543_v23 = vpop.f32.mrf.mxu0  ;;  %v1195_v26 = vpack.c.bf16 %v1491_v22, %v1487_v18 }
 0x10a   : > { %v583_v24 = vpop.f32.mrf.mxu1  ;;  %v1493_v25 = vpop.eup %1492  ;;  %1500 = vtanh.f32 %v660_v21 }
 0x10b   : > { %v1235_v27 = vpack.c.bf16 %v1493_v25, %v1489_v19  ;;  %1331 = vst [vmem:[%s1665_s8 + $0x28] sm:$0xff] %v1195_v26   ;;  %v1495_v28 = vpop.eup %1494  ;;  %1502 = vtanh.f32 %v543_v23 }
 0x10c   : > { %v1497_v29 = vpop.eup %1496  ;;  %1504 = vtanh.f32 %v583_v24 }
 0x10d   : > { %1339 = vst [vmem:[%s1665_s8 + $0x68] sm:$0xff] %v1235_v27  }
 0x10f   : > { %v1499_v30 = vpop.eup %1498 }
 0x110   : > { %v1501_v31 = vpop.eup %1500  ;;  %v1275_v32 = vpack.c.bf16 %v1499_v30, %v1495_v28  ;;  %v623_v33 = vpop.f32.mrf.mxu2 }
 0x111   : > { %v663_v34 = vpop.f32.mrf.mxu3  ;;  %v1315_v35 = vpack.c.bf16 %v1501_v31, %v1497_v29  ;;  %v545_v36 = vpop.f32.mrf.mxu0 }
 0x112   : > { %v585_v37 = vpop.f32.mrf.mxu1  ;;  %1347 = vst [vmem:[%s1665_s8 + $0xa8] sm:$0xff] %v1275_v32   ;;  %1506 = vtanh.f32 %v545_v36  ;;  %v1503_v38 = vpop.eup %1502 }
 0x113   : > { %1355 = vst [vmem:[%s1665_s8 + $0xe8] sm:$0xff] %v1315_v35   ;;  %1508 = vtanh.f32 %v585_v37  ;;  %v1505_v39 = vpop.eup %1504 }
 0x114   : > { %1510 = vtanh.f32 %v623_v33 }
 0x115   : > { %1512 = vtanh.f32 %v663_v34 }
 0x118   : > { %v625_v40 = vpop.f32.mrf.mxu2  ;;  %v1507_v42 = vpop.eup %1506 }
 0x119   : > { %v665_v41 = vpop.f32.mrf.mxu3  ;;  %1514 = vtanh.f32 %v625_v40  ;;  %v548_v43 = vpop.f32.mrf.mxu0  ;;  %v1200_v46 = vpack.c.bf16 %v1507_v42, %v1503_v38 }
 0x11a   : > { %v588_v44 = vpop.f32.mrf.mxu1  ;;  %v1509_v45 = vpop.eup %1508  ;;  %1516 = vtanh.f32 %v665_v41 }
 0x11b   : > { %v1240_v47 = vpack.c.bf16 %v1509_v45, %v1505_v39  ;;  %1332 = vst [vmem:[%s1665_s8 + $0x30] sm:$0xff] %v1200_v46   ;;  %v1511_v48 = vpop.eup %1510  ;;  %1518 = vtanh.f32 %v548_v43 }
 0x11c   : > { %v1513_v49 = vpop.eup %1512  ;;  %1520 = vtanh.f32 %v588_v44 }
 0x11d   : > { %1340 = vst [vmem:[%s1665_s8 + $0x70] sm:$0xff] %v1240_v47  }
 0x11f   : > { %v1515_v50 = vpop.eup %1514 }
 0x120   : > { %v1517_v51 = vpop.eup %1516  ;;  %v1280_v52 = vpack.c.bf16 %v1515_v50, %v1511_v48  ;;  %v628_v53 = vpop.f32.mrf.mxu2 }
 0x121   : > { %v668_v54 = vpop.f32.mrf.mxu3  ;;  %v1320_v55 = vpack.c.bf16 %v1517_v51, %v1513_v49  ;;  %v550_v56 = vpop.f32.mrf.mxu0 }
 0x122   : > { %v590_v57 = vpop.f32.mrf.mxu1  ;;  %1348 = vst [vmem:[%s1665_s8 + $0xb0] sm:$0xff] %v1280_v52   ;;  %1522 = vtanh.f32 %v550_v56  ;;  %v1519_v58 = vpop.eup %1518 }
 0x123   : > { %1356 = vst [vmem:[%s1665_s8 + $0xf0] sm:$0xff] %v1320_v55   ;;  %1524 = vtanh.f32 %v590_v57  ;;  %v1521_v59 = vpop.eup %1520 }
 0x124   : > { %1526 = vtanh.f32 %v628_v53 }
 0x125   : > { %1528 = vtanh.f32 %v668_v54 }
 0x128   : > { %v630_v60 = vpop.f32.mrf.mxu2  ;;  %v1523_v62 = vpop.eup %1522 }
 0x129   : > { %v670_v61 = vpop.f32.mrf.mxu3  ;;  %1530 = vtanh.f32 %v630_v60  ;;  %v1525_v63 = vpop.eup %1524  ;;  %v1205_v0 = vpack.c.bf16 %v1523_v62, %v1519_v58 }
 0x12a   : > { %1532 = vtanh.f32 %v670_v61  ;;  %v1245_v1 = vpack.c.bf16 %v1525_v63, %v1521_v59  ;;  %v1527_v2 = vpop.eup %1526 }
 0x12b   : > { %1333 = vst [vmem:[%s1665_s8 + $0x38] sm:$0xff] %v1205_v0   ;;  %v1529_v3 = vpop.eup %1528 }
 0x12c   : > { %1341 = vst [vmem:[%s1665_s8 + $0x78] sm:$0xff] %v1245_v1  }
 0x12f   : > { %v1531_v4 = vpop.eup %1530 }
 0x130   : > { %v1533_v5 = vpop.eup %1532  ;;  %v1285_v6 = vpack.c.bf16 %v1531_v4, %v1527_v2 }
 0x131   : > { %v1325_v7 = vpack.c.bf16 %v1533_v5, %v1529_v3 }
 0x132   : > { %1349 = vst [vmem:[%s1665_s8 + $0xb8] sm:$0xff] %v1285_v6  }
 0x133   : > { %1357 = vst [vmem:[%s1665_s8 + $0xf8] sm:$0xff] %v1325_v7  }
 0x134 PF: > { %s12_s11 = sadd.s32 1, %s1556_s11   ;;  %s1711_s9 = smov %s1552_s10 }
 0x135   : > { %p9_p5 = scmp.ge.s32.totalorder %s12_s11, 6   ;;  %s1712_s10 = smov %s1714_s12 }
 0x137   :  { %11 = sbr.rel (!%p9_p5) target bundleno = 2 (0x2), region = 61 }

// kernel: cond_dcgan_forward.29
= control target key start
LH: loop header
LB: loop body
LE: loop exit
PB: predicated region body
PF: predicated region fallthrough
CT: control target
= control target key end

     0   :  { %s1573_s9 = smov 0   ;;  %s1575_s10 = smov 0   ;;  %s1708_s0 = inlined_call_operand.vmem [shape: bf16[2048,128], index: 0, kind: input, shape index: {}]   ;;  %s1709_s1 = inlined_call_operand.vmem [shape: bf16[128,128], index: 1, kind: input, shape index: {}]   ;;  %s1710_s2 = inlined_call_operand.vmem [shape: bf16[2048,128], index: 2, kind: output, shape index: {}]  }
   0x1   :  { %s1577_s11 = smov 0  }
   0x2 LB: > { %s24_s12 = sadd.s32 1, %s1552_s10  ;;  %p1088_p0 = scmp.ge.s32.totalorder %s1556_s11, 1  ;;  %s1556_s11 = sphi %s1577_s11, %s12_s11   ;;  %s1552_s10 = sphi %s1575_s10, %s1712_s10   ;;  %s1548_s9 = sphi %s1573_s9, %s1711_s9  }
   0x3   : > { %p26_p1 = scmp.ge.s32.totalorder %s24_s12, 4  ;;  %p136_p2 = scmp.lt.s32.totalorder %s1556_s11, 5 }
   0x5   : > { %s1714_s12 = smov (%p26_p1, %s24_s12), 0  ;;  %p137_p3 = pnand %p1088_p0, %p136_p2 }
   0x6   : > { %s1089_s21 = sshll.u32 (!%p137_p3), %s1548_s9, 6 }
   0x7   : > { %140 = sbr.rel (%p137_p3) target bundleno = 304 (0x130), region = 28  ;;  %p166_p4 = scmp.lt.s32.totalorder (!%p137_p3), %s1089_s21, 255 }
   0xc   : > { %v1294_v0 = vld [vmem:[%s1709_s1 + $0x38] sm:$0xff]  ;;  %v1293_v1 = vld [vmem:[%s1709_s1 + $0x30] sm:$0xff]  ;;  %v1292_v2 = vld [vmem:[%s1709_s1 + $0x28] sm:$0xff]  ;;  %s1716_s21 = smov (!%p166_p4, %s1089_s21), 255 }
   0xd   : > { %504 = vmatpush.bf16.msra.mxu0 %v1294_v0  ;;  %1486 = vmatpush.bf16.msra.mxu1 %v1294_v0  ;;  %v1291_v3 = vld [vmem:[%s1709_s1 + $0x20] sm:$0xff]  ;;  %v1290_v4 = vld [vmem:[%s1709_s1 + $0x18] sm:$0xff]  ;;  %v1289_v5 = vld [vmem:[%s1709_s1 + $0x10] sm:$0xff]  ;;  %s1090_s28 = sshll.u32 %s1716_s21, 2 }
   0xe   : > { %1487 = vmatpush.bf16.msra.mxu2 %v1294_v0  ;;  %1488 = vmatpush.bf16.msra.mxu3 %v1294_v0  ;;  %v1288_v6 = vld [vmem:[%s1709_s1 + $0x8] sm:$0xff]  ;;  %v1287_v7 = vld [vmem:[%s1709_s1] sm:$0xff]  ;;  %s1626_s5 = scalar_lea.vmem %s1708_s0, %s1090_s28  ;;  %s1665_s8 = scalar_lea.vmem %s1710_s2, %s1090_s28 }
   0xf   : > { %v1255_v8 = vld [vmem:[%s1626_s5] sm:$0xff]  ;;  %v1256_v12 = vld [vmem:[%s1626_s5 + $0x8] sm:$0xff]  ;;  %v1257_v16 = vld [vmem:[%s1626_s5 + $0x10] sm:$0xff] }
  0x10   : > { %v1263_v9 = vld [vmem:[%s1626_s5 + $0x40] sm:$0xff]  ;;  %v1264_v13 = vld [vmem:[%s1626_s5 + $0x48] sm:$0xff]  ;;  %v1265_v17 = vld [vmem:[%s1626_s5 + $0x50] sm:$0xff] }
  0x11   : > { %505 = vmatpush.bf16.msra.mxu0 %v1293_v1  ;;  %1489 = vmatpush.bf16.msra.mxu1 %v1293_v1  ;;  %v1271_v10 = vld [vmem:[%s1626_s5 + $0x80] sm:$0xff]  ;;  %v1272_v14 = vld [vmem:[%s1626_s5 + $0x88] sm:$0xff]  ;;  %v1273_v18 = vld [vmem:[%s1626_s5 + $0x90] sm:$0xff] }
  0x12   : > { %1490 = vmatpush.bf16.msra.mxu2 %v1293_v1  ;;  %1491 = vmatpush.bf16.msra.mxu3 %v1293_v1  ;;  %v1279_v11 = vld [vmem:[%s1626_s5 + $0xc0] sm:$0xff]  ;;  %v1280_v15 = vld [vmem:[%s1626_s5 + $0xc8] sm:$0xff]  ;;  %v1281_v19 = vld [vmem:[%s1626_s5 + $0xd0] sm:$0xff] }
  0x13   : > { %v1258_v20 = vld [vmem:[%s1626_s5 + $0x18] sm:$0xff]  ;;  %v1259_v24 = vld [vmem:[%s1626_s5 + $0x20] sm:$0xff]  ;;  %v1260_v28 = vld [vmem:[%s1626_s5 + $0x28] sm:$0xff] }
  0x14   : > { %v1266_v21 = vld [vmem:[%s1626_s5 + $0x58] sm:$0xff]  ;;  %v1267_v25 = vld [vmem:[%s1626_s5 + $0x60] sm:$0xff]  ;;  %v1268_v29 = vld [vmem:[%s1626_s5 + $0x68] sm:$0xff] }
  0x15   : > { %506 = vmatpush.bf16.msra.mxu0 %v1292_v2  ;;  %1492 = vmatpush.bf16.msra.mxu1 %v1292_v2  ;;  %v1274_v22 = vld [vmem:[%s1626_s5 + $0x98] sm:$0xff]  ;;  %v1275_v26 = vld [vmem:[%s1626_s5 + $0xa0] sm:$0xff]  ;;  %v1276_v30 = vld [vmem:[%s1626_s5 + $0xa8] sm:$0xff] }
  0x16   : > { %1493 = vmatpush.bf16.msra.mxu2 %v1292_v2  ;;  %1494 = vmatpush.bf16.msra.mxu3 %v1292_v2  ;;  %v1282_v23 = vld [vmem:[%s1626_s5 + $0xd8] sm:$0xff]  ;;  %v1283_v27 = vld [vmem:[%s1626_s5 + $0xe0] sm:$0xff]  ;;  %v1284_v31 = vld [vmem:[%s1626_s5 + $0xe8] sm:$0xff] }
  0x17   : > { %v1261_v32 = vld [vmem:[%s1626_s5 + $0x30] sm:$0xff]  ;;  %v1262_v36 = vld [vmem:[%s1626_s5 + $0x38] sm:$0xff] }
  0x18   : > { %v1269_v33 = vld [vmem:[%s1626_s5 + $0x70] sm:$0xff]  ;;  %v1270_v37 = vld [vmem:[%s1626_s5 + $0x78] sm:$0xff] }
  0x19   : > { %507 = vmatpush.bf16.msra.mxu0 %v1291_v3  ;;  %1495 = vmatpush.bf16.msra.mxu1 %v1291_v3  ;;  %v1277_v34 = vld [vmem:[%s1626_s5 + $0xb0] sm:$0xff]  ;;  %v1278_v38 = vld [vmem:[%s1626_s5 + $0xb8] sm:$0xff] }
  0x1a   : > { %1496 = vmatpush.bf16.msra.mxu2 %v1291_v3  ;;  %1497 = vmatpush.bf16.msra.mxu3 %v1291_v3  ;;  %v1285_v35 = vld [vmem:[%s1626_s5 + $0xf0] sm:$0xff]  ;;  %v1286_v39 = vld [vmem:[%s1626_s5 + $0xf8] sm:$0xff] }
  0x1d   : > { %508 = vmatpush.bf16.msra.mxu0 %v1290_v4  ;;  %1498 = vmatpush.bf16.msra.mxu1 %v1290_v4 }
  0x1e   : > { %1499 = vmatpush.bf16.msra.mxu2 %v1290_v4  ;;  %1500 = vmatpush.bf16.msra.mxu3 %v1290_v4 }
  0x21   : > { %509 = vmatpush.bf16.msra.mxu0 %v1289_v5  ;;  %1501 = vmatpush.bf16.msra.mxu1 %v1289_v5 }
  0x22   : > { %1502 = vmatpush.bf16.msra.mxu2 %v1289_v5  ;;  %1503 = vmatpush.bf16.msra.mxu3 %v1289_v5 }
  0x25   : > { %510 = vmatpush.bf16.msra.mxu0 %v1288_v6  ;;  %1504 = vmatpush.bf16.msra.mxu1 %v1288_v6 }
  0x26   : > { %1505 = vmatpush.bf16.msra.mxu2 %v1288_v6  ;;  %1506 = vmatpush.bf16.msra.mxu3 %v1288_v6 }
  0x29   : > { %511 = vmatpush.bf16.msra.mxu0 %v1287_v7  ;;  %1507 = vmatpush.bf16.msra.mxu1 %v1287_v7 }
  0x2a   : > { %1508 = vmatpush.bf16.msra.mxu2 %v1287_v7  ;;  %1509 = vmatpush.bf16.msra.mxu3 %v1287_v7 }
  0x2c   : > { %512 = vmatmul.bf16.vlgmr.msra.gmra.mxu0 %v1255_v8  ;;  %552 = vmatmul.bf16.vlgmr.msra.gmra.mxu1 %v1263_v9 }
  0x2d   : > { %592 = vmatmul.bf16.vlgmr.msra.gmra.mxu2 %v1271_v10  ;;  %632 = vmatmul.bf16.vlgmr.msra.gmra.mxu3 %v1279_v11 }
  0x3c   : > { %517 = vmatmul.bf16.gmra.mxu0 %v1256_v12  ;;  %557 = vmatmul.bf16.gmra.mxu1 %v1264_v13 }
  0x3d   : > { %597 = vmatmul.bf16.gmra.mxu2 %v1272_v14  ;;  %637 = vmatmul.bf16.gmra.mxu3 %v1280_v15 }
  0x4c   : > { %522 = vmatmul.bf16.gmra.mxu0 %v1257_v16  ;;  %562 = vmatmul.bf16.gmra.mxu1 %v1265_v17 }
  0x4d   : > { %602 = vmatmul.bf16.gmra.mxu2 %v1273_v18  ;;  %642 = vmatmul.bf16.gmra.mxu3 %v1281_v19 }
  0x5c   : > { %527 = vmatmul.bf16.gmra.mxu0 %v1258_v20  ;;  %567 = vmatmul.bf16.gmra.mxu1 %v1266_v21 }
  0x5d   : > { %607 = vmatmul.bf16.gmra.mxu2 %v1274_v22  ;;  %647 = vmatmul.bf16.gmra.mxu3 %v1282_v23 }
  0x6c   : > { %532 = vmatmul.bf16.gmra.mxu0 %v1259_v24  ;;  %572 = vmatmul.bf16.gmra.mxu1 %v1267_v25 }
  0x6d   : > { %612 = vmatmul.bf16.gmra.mxu2 %v1275_v26  ;;  %652 = vmatmul.bf16.gmra.mxu3 %v1283_v27 }
  0x7c   : > { %537 = vmatmul.bf16.gmra.mxu0 %v1260_v28  ;;  %577 = vmatmul.bf16.gmra.mxu1 %v1268_v29 }
  0x7d   : > { %617 = vmatmul.bf16.gmra.mxu2 %v1276_v30  ;;  %657 = vmatmul.bf16.gmra.mxu3 %v1284_v31 }
  0x8c   : > { %542 = vmatmul.bf16.gmra.mxu0 %v1261_v32  ;;  %582 = vmatmul.bf16.gmra.mxu1 %v1269_v33 }
  0x8d   : > { %622 = vmatmul.bf16.gmra.mxu2 %v1277_v34  ;;  %662 = vmatmul.bf16.gmra.mxu3 %v1285_v35 }
  0x9c   : > { %547 = vmatmul.bf16.gmra.mxu0 %v1262_v36  ;;  %587 = vmatmul.bf16.gmra.mxu1 %v1270_v37 }
  0x9d   : > { %627 = vmatmul.bf16.gmra.mxu2 %v1278_v38  ;;  %667 = vmatmul.bf16.gmra.mxu3 %v1286_v39 }
  0xa9   : > { %v513_v40 = vpop.f32.mrf.mxu0  ;;  %v553_v41 = vpop.f32.mrf.mxu1 }
  0xaa   : > { %v737_v42 = vmul.f32 0.2, %v513_v40  ;;  %v753_v43 = vmul.f32 0.2, %v553_v41  ;;  %vm673_vm0 = vcmp.gt.f32.partialorder %v513_v40, 0.0  ;;  %vm689_vm1 = vcmp.gt.f32.partialorder %v553_v41, 0.0 }
  0xac   : > { %v801_v50 = vsel %vm673_vm0, %v513_v40, %v737_v42  ;;  %v817_v51 = vsel %vm689_vm1, %v553_v41, %v753_v43 }
  0xb0   : > { %v593_v44 = vpop.f32.mrf.mxu2  ;;  %v633_v45 = vpop.f32.mrf.mxu3 }
  0xb1   : > { %v515_v46 = vpop.f32.mrf.mxu0  ;;  %v555_v47 = vpop.f32.mrf.mxu1  ;;  %v769_v56 = vmul.f32 0.2, %v593_v44  ;;  %v785_v57 = vmul.f32 0.2, %v633_v45  ;;  %vm705_vm4 = vcmp.gt.f32.partialorder %v593_v44, 0.0  ;;  %vm721_vm5 = vcmp.gt.f32.partialorder %v633_v45, 0.0 }
  0xb2   : > { %vm674_vm2 = vcmp.gt.f32.partialorder %v515_v46, 0.0  ;;  %v738_v48 = vmul.f32 0.2, %v515_v46  ;;  %vm690_vm3 = vcmp.gt.f32.partialorder %v555_v47, 0.0  ;;  %v754_v49 = vmul.f32 0.2, %v555_v47 }
  0xb3   : > { %v833_v0 = vsel %vm705_vm4, %v593_v44, %v769_v56  ;;  %v849_v1 = vsel %vm721_vm5, %v633_v45, %v785_v57 }
  0xb4   : > { %v802_v52 = vsel %vm674_vm2, %v515_v46, %v738_v48  ;;  %v818_v53 = vsel %vm690_vm3, %v555_v47, %v754_v49 }
  0xb5   : > { %v1298_v54 = vpack.c.bf16 %v802_v52, %v801_v50  ;;  %v1338_v55 = vpack.c.bf16 %v818_v53, %v817_v51 }
  0xb7   : > { %1299 = vst [vmem:[%s1665_s8] sm:$0xff] %v1298_v54  }
  0xb8   : > { %1462 = vst [vmem:[%s1665_s8 + $0x40] sm:$0xff] %v1338_v55   ;;  %v595_v58 = vpop.f32.mrf.mxu2  ;;  %v635_v59 = vpop.f32.mrf.mxu3 }
  0xb9   : > { %vm706_vm6 = vcmp.gt.f32.partialorder %v595_v58, 0.0  ;;  %v770_v60 = vmul.f32 0.2, %v595_v58  ;;  %vm722_vm7 = vcmp.gt.f32.partialorder %v635_v59, 0.0  ;;  %v786_v61 = vmul.f32 0.2, %v635_v59  ;;  %v518_v62 = vpop.f32.mrf.mxu0  ;;  %v558_v63 = vpop.f32.mrf.mxu1 }
  0xba   : > { %v739_v6 = vmul.f32 0.2, %v518_v62  ;;  %v755_v7 = vmul.f32 0.2, %v558_v63  ;;  %vm675_vm8 = vcmp.gt.f32.partialorder %v518_v62, 0.0  ;;  %vm691_vm9 = vcmp.gt.f32.partialorder %v558_v63, 0.0 }
  0xbb   : > { %v834_v2 = vsel %vm706_vm6, %v595_v58, %v770_v60  ;;  %v850_v3 = vsel %vm722_vm7, %v635_v59, %v786_v61 }
  0xbc   : > { %v1378_v4 = vpack.c.bf16 %v834_v2, %v833_v0  ;;  %v1418_v5 = vpack.c.bf16 %v850_v3, %v849_v1  ;;  %v803_v14 = vsel %vm675_vm8, %v518_v62, %v739_v6  ;;  %v819_v15 = vsel %vm691_vm9, %v558_v63, %v755_v7 }
  0xbe   : > { %1470 = vst [vmem:[%s1665_s8 + $0x80] sm:$0xff] %v1378_v4  }
  0xbf   : > { %1478 = vst [vmem:[%s1665_s8 + $0xc0] sm:$0xff] %v1418_v5  }
  0xc0   : > { %v598_v8 = vpop.f32.mrf.mxu2  ;;  %v638_v9 = vpop.f32.mrf.mxu3 }
  0xc1   : > { %v520_v10 = vpop.f32.mrf.mxu0  ;;  %v560_v11 = vpop.f32.mrf.mxu1  ;;  %v771_v20 = vmul.f32 0.2, %v598_v8  ;;  %v787_v21 = vmul.f32 0.2, %v638_v9  ;;  %vm707_vm12 = vcmp.gt.f32.partialorder %v598_v8, 0.0  ;;  %vm723_vm13 = vcmp.gt.f32.partialorder %v638_v9, 0.0 }
  0xc2   : > { %vm676_vm10 = vcmp.gt.f32.partialorder %v520_v10, 0.0  ;;  %v740_v12 = vmul.f32 0.2, %v520_v10  ;;  %vm692_vm11 = vcmp.gt.f32.partialorder %v560_v11, 0.0  ;;  %v756_v13 = vmul.f32 0.2, %v560_v11 }
  0xc3   : > { %v835_v28 = vsel %vm707_vm12, %v598_v8, %v771_v20  ;;  %v851_v29 = vsel %vm723_vm13, %v638_v9, %v787_v21 }
  0xc4   : > { %v804_v16 = vsel %vm676_vm10, %v520_v10, %v740_v12  ;;  %v820_v17 = vsel %vm692_vm11, %v560_v11, %v756_v13 }
  0xc5   : > { %v1303_v18 = vpack.c.bf16 %v804_v16, %v803_v14  ;;  %v1343_v19 = vpack.c.bf16 %v820_v17, %v819_v15 }
  0xc7   : > { %1455 = vst [vmem:[%s1665_s8 + $0x8] sm:$0xff] %v1303_v18  }
  0xc8   : > { %1463 = vst [vmem:[%s1665_s8 + $0x48] sm:$0xff] %v1343_v19   ;;  %v600_v22 = vpop.f32.mrf.mxu2  ;;  %v640_v23 = vpop.f32.mrf.mxu3 }
  0xc9   : > { %vm708_vm14 = vcmp.gt.f32.partialorder %v600_v22, 0.0  ;;  %v772_v24 = vmul.f32 0.2, %v600_v22  ;;  %vm724_vm15 = vcmp.gt.f32.partialorder %v640_v23, 0.0  ;;  %v788_v25 = vmul.f32 0.2, %v640_v23  ;;  %v523_v26 = vpop.f32.mrf.mxu0  ;;  %v563_v27 = vpop.f32.mrf.mxu1 }
  0xca   : > { %v741_v34 = vmul.f32 0.2, %v523_v26  ;;  %v757_v35 = vmul.f32 0.2, %v563_v27  ;;  %vm677_vm0 = vcmp.gt.f32.partialorder %v523_v26, 0.0  ;;  %vm693_vm1 = vcmp.gt.f32.partialorder %v563_v27, 0.0 }
  0xcb   : > { %v836_v30 = vsel %vm708_vm14, %v600_v22, %v772_v24  ;;  %v852_v31 = vsel %vm724_vm15, %v640_v23, %v788_v25 }
  0xcc   : > { %v1383_v32 = vpack.c.bf16 %v836_v30, %v835_v28  ;;  %v1423_v33 = vpack.c.bf16 %v852_v31, %v851_v29  ;;  %v805_v42 = vsel %vm677_vm0, %v523_v26, %v741_v34  ;;  %v821_v43 = vsel %vm693_vm1, %v563_v27, %v757_v35 }
  0xce   : > { %1471 = vst [vmem:[%s1665_s8 + $0x88] sm:$0xff] %v1383_v32  }
  0xcf   : > { %1479 = vst [vmem:[%s1665_s8 + $0xc8] sm:$0xff] %v1423_v33  }
  0xd0   : > { %v603_v36 = vpop.f32.mrf.mxu2  ;;  %v643_v37 = vpop.f32.mrf.mxu3 }
  0xd1   : > { %v525_v38 = vpop.f32.mrf.mxu0  ;;  %v565_v39 = vpop.f32.mrf.mxu1  ;;  %v773_v48 = vmul.f32 0.2, %v603_v36  ;;  %v789_v49 = vmul.f32 0.2, %v643_v37  ;;  %vm709_vm4 = vcmp.gt.f32.partialorder %v603_v36, 0.0  ;;  %vm725_vm5 = vcmp.gt.f32.partialorder %v643_v37, 0.0 }
  0xd2   : > { %vm678_vm2 = vcmp.gt.f32.partialorder %v525_v38, 0.0  ;;  %v742_v40 = vmul.f32 0.2, %v525_v38  ;;  %vm694_vm3 = vcmp.gt.f32.partialorder %v565_v39, 0.0  ;;  %v758_v41 = vmul.f32 0.2, %v565_v39 }
  0xd3   : > { %v837_v56 = vsel %vm709_vm4, %v603_v36, %v773_v48  ;;  %v853_v57 = vsel %vm725_vm5, %v643_v37, %v789_v49 }
  0xd4   : > { %v806_v44 = vsel %vm678_vm2, %v525_v38, %v742_v40  ;;  %v822_v45 = vsel %vm694_vm3, %v565_v39, %v758_v41 }
  0xd5   : > { %v1308_v46 = vpack.c.bf16 %v806_v44, %v805_v42  ;;  %v1348_v47 = vpack.c.bf16 %v822_v45, %v821_v43 }
  0xd7   : > { %1456 = vst [vmem:[%s1665_s8 + $0x10] sm:$0xff] %v1308_v46  }
  0xd8   : > { %1464 = vst [vmem:[%s1665_s8 + $0x50] sm:$0xff] %v1348_v47   ;;  %v605_v50 = vpop.f32.mrf.mxu2  ;;  %v645_v51 = vpop.f32.mrf.mxu3 }
  0xd9   : > { %vm710_vm6 = vcmp.gt.f32.partialorder %v605_v50, 0.0  ;;  %v774_v52 = vmul.f32 0.2, %v605_v50  ;;  %vm726_vm7 = vcmp.gt.f32.partialorder %v645_v51, 0.0  ;;  %v790_v53 = vmul.f32 0.2, %v645_v51  ;;  %v528_v54 = vpop.f32.mrf.mxu0  ;;  %v568_v55 = vpop.f32.mrf.mxu1 }
  0xda   : > { %v743_v62 = vmul.f32 0.2, %v528_v54  ;;  %v759_v63 = vmul.f32 0.2, %v568_v55  ;;  %vm679_vm8 = vcmp.gt.f32.partialorder %v528_v54, 0.0  ;;  %vm695_vm9 = vcmp.gt.f32.partialorder %v568_v55, 0.0 }
  0xdb   : > { %v838_v58 = vsel %vm710_vm6, %v605_v50, %v774_v52  ;;  %v854_v59 = vsel %vm726_vm7, %v645_v51, %v790_v53 }
  0xdc   : > { %v1388_v60 = vpack.c.bf16 %v838_v58, %v837_v56  ;;  %v1428_v61 = vpack.c.bf16 %v854_v59, %v853_v57  ;;  %v807_v6 = vsel %vm679_vm8, %v528_v54, %v743_v62  ;;  %v823_v7 = vsel %vm695_vm9, %v568_v55, %v759_v63 }
  0xde   : > { %1472 = vst [vmem:[%s1665_s8 + $0x90] sm:$0xff] %v1388_v60  }
  0xdf   : > { %1480 = vst [vmem:[%s1665_s8 + $0xd0] sm:$0xff] %v1428_v61  }
  0xe0   : > { %v608_v0 = vpop.f32.mrf.mxu2  ;;  %v648_v1 = vpop.f32.mrf.mxu3 }
  0xe1   : > { %v530_v2 = vpop.f32.mrf.mxu0  ;;  %v570_v3 = vpop.f32.mrf.mxu1  ;;  %v775_v12 = vmul.f32 0.2, %v608_v0  ;;  %v791_v13 = vmul.f32 0.2, %v648_v1  ;;  %vm711_vm12 = vcmp.gt.f32.partialorder %v608_v0, 0.0  ;;  %vm727_vm13 = vcmp.gt.f32.partialorder %v648_v1, 0.0 }
  0xe2   : > { %vm680_vm10 = vcmp.gt.f32.partialorder %v530_v2, 0.0  ;;  %v744_v4 = vmul.f32 0.2, %v530_v2  ;;  %vm696_vm11 = vcmp.gt.f32.partialorder %v570_v3, 0.0  ;;  %v760_v5 = vmul.f32 0.2, %v570_v3 }
  0xe3   : > { %v839_v20 = vsel %vm711_vm12, %v608_v0, %v775_v12  ;;  %v855_v21 = vsel %vm727_vm13, %v648_v1, %v791_v13 }
  0xe4   : > { %v808_v8 = vsel %vm680_vm10, %v530_v2, %v744_v4  ;;  %v824_v9 = vsel %vm696_vm11, %v570_v3, %v760_v5 }
  0xe5   : > { %v1313_v10 = vpack.c.bf16 %v808_v8, %v807_v6  ;;  %v1353_v11 = vpack.c.bf16 %v824_v9, %v823_v7 }
  0xe7   : > { %1457 = vst [vmem:[%s1665_s8 + $0x18] sm:$0xff] %v1313_v10  }
  0xe8   : > { %1465 = vst [vmem:[%s1665_s8 + $0x58] sm:$0xff] %v1353_v11   ;;  %v610_v14 = vpop.f32.mrf.mxu2  ;;  %v650_v15 = vpop.f32.mrf.mxu3 }
  0xe9   : > { %vm712_vm14 = vcmp.gt.f32.partialorder %v610_v14, 0.0  ;;  %v776_v16 = vmul.f32 0.2, %v610_v14  ;;  %vm728_vm15 = vcmp.gt.f32.partialorder %v650_v15, 0.0  ;;  %v792_v17 = vmul.f32 0.2, %v650_v15  ;;  %v533_v18 = vpop.f32.mrf.mxu0  ;;  %v573_v19 = vpop.f32.mrf.mxu1 }
  0xea   : > { %v745_v26 = vmul.f32 0.2, %v533_v18  ;;  %v761_v27 = vmul.f32 0.2, %v573_v19  ;;  %vm681_vm0 = vcmp.gt.f32.partialorder %v533_v18, 0.0  ;;  %vm697_vm1 = vcmp.gt.f32.partialorder %v573_v19, 0.0 }
  0xeb   : > { %v840_v22 = vsel %vm712_vm14, %v610_v14, %v776_v16  ;;  %v856_v23 = vsel %vm728_vm15, %v650_v15, %v792_v17 }
  0xec   : > { %v1393_v24 = vpack.c.bf16 %v840_v22, %v839_v20  ;;  %v1433_v25 = vpack.c.bf16 %v856_v23, %v855_v21  ;;  %v809_v34 = vsel %vm681_vm0, %v533_v18, %v745_v26  ;;  %v825_v35 = vsel %vm697_vm1, %v573_v19, %v761_v27 }
  0xee   : > { %1473 = vst [vmem:[%s1665_s8 + $0x98] sm:$0xff] %v1393_v24  }
  0xef   : > { %1481 = vst [vmem:[%s1665_s8 + $0xd8] sm:$0xff] %v1433_v25  }
  0xf0   : > { %v613_v28 = vpop.f32.mrf.mxu2  ;;  %v653_v29 = vpop.f32.mrf.mxu3 }
  0xf1   : > { %v535_v30 = vpop.f32.mrf.mxu0  ;;  %v575_v31 = vpop.f32.mrf.mxu1  ;;  %v777_v40 = vmul.f32 0.2, %v613_v28  ;;  %v793_v41 = vmul.f32 0.2, %v653_v29  ;;  %vm713_vm4 = vcmp.gt.f32.partialorder %v613_v28, 0.0  ;;  %vm729_vm5 = vcmp.gt.f32.partialorder %v653_v29, 0.0 }
  0xf2   : > { %vm682_vm2 = vcmp.gt.f32.partialorder %v535_v30, 0.0  ;;  %v746_v32 = vmul.f32 0.2, %v535_v30  ;;  %vm698_vm3 = vcmp.gt.f32.partialorder %v575_v31, 0.0  ;;  %v762_v33 = vmul.f32 0.2, %v575_v31 }
  0xf3   : > { %v841_v48 = vsel %vm713_vm4, %v613_v28, %v777_v40  ;;  %v857_v49 = vsel %vm729_vm5, %v653_v29, %v793_v41 }
  0xf4   : > { %v810_v36 = vsel %vm682_vm2, %v535_v30, %v746_v32  ;;  %v826_v37 = vsel %vm698_vm3, %v575_v31, %v762_v33 }
  0xf5   : > { %v1318_v38 = vpack.c.bf16 %v810_v36, %v809_v34  ;;  %v1358_v39 = vpack.c.bf16 %v826_v37, %v825_v35 }
  0xf7   : > { %1458 = vst [vmem:[%s1665_s8 + $0x20] sm:$0xff] %v1318_v38  }
  0xf8   : > { %1466 = vst [vmem:[%s1665_s8 + $0x60] sm:$0xff] %v1358_v39   ;;  %v615_v42 = vpop.f32.mrf.mxu2  ;;  %v655_v43 = vpop.f32.mrf.mxu3 }
  0xf9   : > { %vm714_vm6 = vcmp.gt.f32.partialorder %v615_v42, 0.0  ;;  %v778_v44 = vmul.f32 0.2, %v615_v42  ;;  %vm730_vm7 = vcmp.gt.f32.partialorder %v655_v43, 0.0  ;;  %v794_v45 = vmul.f32 0.2, %v655_v43  ;;  %v538_v46 = vpop.f32.mrf.mxu0  ;;  %v578_v47 = vpop.f32.mrf.mxu1 }
  0xfa   : > { %v747_v54 = vmul.f32 0.2, %v538_v46  ;;  %v763_v55 = vmul.f32 0.2, %v578_v47  ;;  %vm683_vm8 = vcmp.gt.f32.partialorder %v538_v46, 0.0  ;;  %vm699_vm9 = vcmp.gt.f32.partialorder %v578_v47, 0.0 }
  0xfb   : > { %v842_v50 = vsel %vm714_vm6, %v615_v42, %v778_v44  ;;  %v858_v51 = vsel %vm730_vm7, %v655_v43, %v794_v45 }
  0xfc   : > { %v1398_v52 = vpack.c.bf16 %v842_v50, %v841_v48  ;;  %v1438_v53 = vpack.c.bf16 %v858_v51, %v857_v49  ;;  %v811_v62 = vsel %vm683_vm8, %v538_v46, %v747_v54  ;;  %v827_v63 = vsel %vm699_vm9, %v578_v47, %v763_v55 }
  0xfe   : > { %1474 = vst [vmem:[%s1665_s8 + $0xa0] sm:$0xff] %v1398_v52  }
  0xff   : > { %1482 = vst [vmem:[%s1665_s8 + $0xe0] sm:$0xff] %v1438_v53  }
 0x100   : > { %v618_v56 = vpop.f32.mrf.mxu2  ;;  %v658_v57 = vpop.f32.mrf.mxu3 }
 0x101   : > { %v540_v58 = vpop.f32.mrf.mxu0  ;;  %v580_v59 = vpop.f32.mrf.mxu1  ;;  %v779_v4 = vmul.f32 0.2, %v618_v56  ;;  %v795_v5 = vmul.f32 0.2, %v658_v57  ;;  %vm715_vm12 = vcmp.gt.f32.partialorder %v618_v56, 0.0  ;;  %vm731_vm13 = vcmp.gt.f32.partialorder %v658_v57, 0.0 }
 0x102   : > { %vm684_vm10 = vcmp.gt.f32.partialorder %v540_v58, 0.0  ;;  %v748_v60 = vmul.f32 0.2, %v540_v58  ;;  %vm700_vm11 = vcmp.gt.f32.partialorder %v580_v59, 0.0  ;;  %v764_v61 = vmul.f32 0.2, %v580_v59 }
 0x103   : > { %v843_v12 = vsel %vm715_vm12, %v618_v56, %v779_v4  ;;  %v859_v13 = vsel %vm731_vm13, %v658_v57, %v795_v5 }
 0x104   : > { %v812_v0 = vsel %vm684_vm10, %v540_v58, %v748_v60  ;;  %v828_v1 = vsel %vm700_vm11, %v580_v59, %v764_v61 }
 0x105   : > { %v1323_v2 = vpack.c.bf16 %v812_v0, %v811_v62  ;;  %v1363_v3 = vpack.c.bf16 %v828_v1, %v827_v63 }
 0x107   : > { %1459 = vst [vmem:[%s1665_s8 + $0x28] sm:$0xff] %v1323_v2  }
 0x108   : > { %1467 = vst [vmem:[%s1665_s8 + $0x68] sm:$0xff] %v1363_v3   ;;  %v620_v6 = vpop.f32.mrf.mxu2  ;;  %v660_v7 = vpop.f32.mrf.mxu3 }
 0x109   : > { %vm716_vm14 = vcmp.gt.f32.partialorder %v620_v6, 0.0  ;;  %v780_v8 = vmul.f32 0.2, %v620_v6  ;;  %vm732_vm15 = vcmp.gt.f32.partialorder %v660_v7, 0.0  ;;  %v796_v9 = vmul.f32 0.2, %v660_v7  ;;  %v543_v10 = vpop.f32.mrf.mxu0  ;;  %v583_v11 = vpop.f32.mrf.mxu1 }
 0x10a   : > { %v749_v18 = vmul.f32 0.2, %v543_v10  ;;  %v765_v19 = vmul.f32 0.2, %v583_v11  ;;  %vm685_vm0 = vcmp.gt.f32.partialorder %v543_v10, 0.0  ;;  %vm701_vm1 = vcmp.gt.f32.partialorder %v583_v11, 0.0 }
 0x10b   : > { %v844_v14 = vsel %vm716_vm14, %v620_v6, %v780_v8  ;;  %v860_v15 = vsel %vm732_vm15, %v660_v7, %v796_v9 }
 0x10c   : > { %v1403_v16 = vpack.c.bf16 %v844_v14, %v843_v12  ;;  %v1443_v17 = vpack.c.bf16 %v860_v15, %v859_v13  ;;  %v813_v26 = vsel %vm685_vm0, %v543_v10, %v749_v18  ;;  %v829_v27 = vsel %vm701_vm1, %v583_v11, %v765_v19 }
 0x10e   : > { %1475 = vst [vmem:[%s1665_s8 + $0xa8] sm:$0xff] %v1403_v16  }
 0x10f   : > { %1483 = vst [vmem:[%s1665_s8 + $0xe8] sm:$0xff] %v1443_v17  }
 0x110   : > { %v623_v20 = vpop.f32.mrf.mxu2  ;;  %v663_v21 = vpop.f32.mrf.mxu3 }
 0x111   : > { %v545_v22 = vpop.f32.mrf.mxu0  ;;  %v585_v23 = vpop.f32.mrf.mxu1  ;;  %v781_v32 = vmul.f32 0.2, %v623_v20  ;;  %v797_v33 = vmul.f32 0.2, %v663_v21  ;;  %vm717_vm4 = vcmp.gt.f32.partialorder %v623_v20, 0.0  ;;  %vm733_vm5 = vcmp.gt.f32.partialorder %v663_v21, 0.0 }
 0x112   : > { %vm686_vm2 = vcmp.gt.f32.partialorder %v545_v22, 0.0  ;;  %v750_v24 = vmul.f32 0.2, %v545_v22  ;;  %vm702_vm3 = vcmp.gt.f32.partialorder %v585_v23, 0.0  ;;  %v766_v25 = vmul.f32 0.2, %v585_v23 }
 0x113   : > { %v845_v40 = vsel %vm717_vm4, %v623_v20, %v781_v32  ;;  %v861_v41 = vsel %vm733_vm5, %v663_v21, %v797_v33 }
 0x114   : > { %v814_v28 = vsel %vm686_vm2, %v545_v22, %v750_v24  ;;  %v830_v29 = vsel %vm702_vm3, %v585_v23, %v766_v25 }
 0x115   : > { %v1328_v30 = vpack.c.bf16 %v814_v28, %v813_v26  ;;  %v1368_v31 = vpack.c.bf16 %v830_v29, %v829_v27 }
 0x117   : > { %1460 = vst [vmem:[%s1665_s8 + $0x30] sm:$0xff] %v1328_v30  }
 0x118   : > { %1468 = vst [vmem:[%s1665_s8 + $0x70] sm:$0xff] %v1368_v31   ;;  %v625_v34 = vpop.f32.mrf.mxu2  ;;  %v665_v35 = vpop.f32.mrf.mxu3 }
 0x119   : > { %vm718_vm6 = vcmp.gt.f32.partialorder %v625_v34, 0.0  ;;  %v782_v36 = vmul.f32 0.2, %v625_v34  ;;  %vm734_vm7 = vcmp.gt.f32.partialorder %v665_v35, 0.0  ;;  %v798_v37 = vmul.f32 0.2, %v665_v35  ;;  %v548_v38 = vpop.f32.mrf.mxu0  ;;  %v588_v39 = vpop.f32.mrf.mxu1 }
 0x11a   : > { %v751_v46 = vmul.f32 0.2, %v548_v38  ;;  %v767_v47 = vmul.f32 0.2, %v588_v39  ;;  %vm687_vm8 = vcmp.gt.f32.partialorder %v548_v38, 0.0  ;;  %vm703_vm9 = vcmp.gt.f32.partialorder %v588_v39, 0.0 }
 0x11b   : > { %v846_v42 = vsel %vm718_vm6, %v625_v34, %v782_v36  ;;  %v862_v43 = vsel %vm734_vm7, %v665_v35, %v798_v37 }
 0x11c   : > { %v1408_v44 = vpack.c.bf16 %v846_v42, %v845_v40  ;;  %v1448_v45 = vpack.c.bf16 %v862_v43, %v861_v41  ;;  %v815_v54 = vsel %vm687_vm8, %v548_v38, %v751_v46  ;;  %v831_v55 = vsel %vm703_vm9, %v588_v39, %v767_v47 }
 0x11e   : > { %1476 = vst [vmem:[%s1665_s8 + $0xb0] sm:$0xff] %v1408_v44  }
 0x11f   : > { %1484 = vst [vmem:[%s1665_s8 + $0xf0] sm:$0xff] %v1448_v45  }
 0x120   : > { %v628_v48 = vpop.f32.mrf.mxu2  ;;  %v668_v49 = vpop.f32.mrf.mxu3 }
 0x121   : > { %v550_v50 = vpop.f32.mrf.mxu0  ;;  %v590_v51 = vpop.f32.mrf.mxu1  ;;  %v783_v60 = vmul.f32 0.2, %v628_v48  ;;  %v799_v61 = vmul.f32 0.2, %v668_v49  ;;  %vm719_vm12 = vcmp.gt.f32.partialorder %v628_v48, 0.0  ;;  %vm735_vm13 = vcmp.gt.f32.partialorder %v668_v49, 0.0 }
 0x122   : > { %vm688_vm10 = vcmp.gt.f32.partialorder %v550_v50, 0.0  ;;  %v752_v52 = vmul.f32 0.2, %v550_v50  ;;  %vm704_vm11 = vcmp.gt.f32.partialorder %v590_v51, 0.0  ;;  %v768_v53 = vmul.f32 0.2, %v590_v51 }
 0x123   : > { %v847_v2 = vsel %vm719_vm12, %v628_v48, %v783_v60  ;;  %v863_v3 = vsel %vm735_vm13, %v668_v49, %v799_v61 }
 0x124   : > { %v816_v56 = vsel %vm688_vm10, %v550_v50, %v752_v52  ;;  %v832_v57 = vsel %vm704_vm11, %v590_v51, %v768_v53 }
 0x125   : > { %v1333_v58 = vpack.c.bf16 %v816_v56, %v815_v54  ;;  %v1373_v59 = vpack.c.bf16 %v832_v57, %v831_v55 }
 0x127   : > { %1461 = vst [vmem:[%s1665_s8 + $0x38] sm:$0xff] %v1333_v58  }
 0x128   : > { %1469 = vst [vmem:[%s1665_s8 + $0x78] sm:$0xff] %v1373_v59   ;;  %v630_v62 = vpop.f32.mrf.mxu2  ;;  %v670_v63 = vpop.f32.mrf.mxu3 }
 0x129   : > { %vm720_vm14 = vcmp.gt.f32.partialorder %v630_v62, 0.0  ;;  %v784_v0 = vmul.f32 0.2, %v630_v62  ;;  %vm736_vm15 = vcmp.gt.f32.partialorder %v670_v63, 0.0  ;;  %v800_v1 = vmul.f32 0.2, %v670_v63 }
 0x12b   : > { %v848_v4 = vsel %vm720_vm14, %v630_v62, %v784_v0  ;;  %v864_v5 = vsel %vm736_vm15, %v670_v63, %v800_v1 }
 0x12c   : > { %v1413_v6 = vpack.c.bf16 %v848_v4, %v847_v2  ;;  %v1453_v7 = vpack.c.bf16 %v864_v5, %v863_v3 }
 0x12e   : > { %1477 = vst [vmem:[%s1665_s8 + $0xb8] sm:$0xff] %v1413_v6  }
 0x12f   : > { %1485 = vst [vmem:[%s1665_s8 + $0xf8] sm:$0xff] %v1453_v7  }
 0x130 PF: > { %s12_s11 = sadd.s32 1, %s1556_s11   ;;  %s1711_s9 = smov %s1552_s10 }
 0x131   : > { %p9_p5 = scmp.ge.s32.totalorder %s12_s11, 6   ;;  %s1712_s10 = smov %s1714_s12 }
 0x133   :  { %11 = sbr.rel (!%p9_p5) target bundleno = 2 (0x2), region = 61 }

// kernel: cond_dcgan_forward.30
= control target key start
LH: loop header
LB: loop body
LE: loop exit
PB: predicated region body
PF: predicated region fallthrough
CT: control target
= control target key end

     0   :  { %s1830_s1 = inlined_call_operand.vmem [shape: bf16[128,128], index: 1, kind: input, shape index: {}]   ;;  %s1831_s0 = inlined_call_operand.vmem [shape: bf16[512,128], index: 0, kind: input, shape index: {}]   ;;  %s1832_s2 = inlined_call_operand.vmem [shape: bf16[512,128], index: 2, kind: output, shape index: {0}]   ;;  %s1833_s3 = inlined_call_operand.vmem [shape: f32[8,128], index: 3, kind: output, shape index: {1}]   ;;  %s1834_s4 = inlined_call_operand.vmem [shape: f32[8,128], index: 4, kind: output, shape index: {2}]  }
   0x1   :  { %v1034_v0 = vld [vmem:[%s1830_s1 + $0x38] sm:$0xff]  ;;  %v1033_v1 = vld [vmem:[%s1830_s1 + $0x30] sm:$0xff]  ;;  %v1032_v2 = vld [vmem:[%s1830_s1 + $0x28] sm:$0xff] }
   0x2   :  { %334 = vmatpush.bf16.msra.mxu0 %v1034_v0  ;;  %1226 = vmatpush.bf16.msra.mxu1 %v1034_v0  ;;  %v1031_v3 = vld [vmem:[%s1830_s1 + $0x20] sm:$0xff]  ;;  %v1030_v4 = vld [vmem:[%s1830_s1 + $0x18] sm:$0xff]  ;;  %v1029_v5 = vld [vmem:[%s1830_s1 + $0x10] sm:$0xff] }
   0x3   :  { %1227 = vmatpush.bf16.msra.mxu2 %v1034_v0  ;;  %1228 = vmatpush.bf16.msra.mxu3 %v1034_v0  ;;  %v1028_v6 = vld [vmem:[%s1830_s1 + $0x8] sm:$0xff]  ;;  %v1027_v7 = vld [vmem:[%s1830_s1] sm:$0xff]  ;;  %v997_v16 = vld [vmem:[%s1831_s0 + $0x10] sm:$0xff] }
   0x4   :  { %v995_v8 = vld [vmem:[%s1831_s0] sm:$0xff]  ;;  %v996_v12 = vld [vmem:[%s1831_s0 + $0x8] sm:$0xff]  ;;  %v1005_v17 = vld [vmem:[%s1831_s0 + $0x50] sm:$0xff] }
   0x5   :  { %v1003_v9 = vld [vmem:[%s1831_s0 + $0x40] sm:$0xff]  ;;  %v1004_v13 = vld [vmem:[%s1831_s0 + $0x48] sm:$0xff]  ;;  %v1013_v18 = vld [vmem:[%s1831_s0 + $0x90] sm:$0xff] }
   0x6   :  { %335 = vmatpush.bf16.msra.mxu0 %v1033_v1  ;;  %1229 = vmatpush.bf16.msra.mxu1 %v1033_v1  ;;  %v1011_v10 = vld [vmem:[%s1831_s0 + $0x80] sm:$0xff]  ;;  %v1012_v14 = vld [vmem:[%s1831_s0 + $0x88] sm:$0xff]  ;;  %v1021_v19 = vld [vmem:[%s1831_s0 + $0xd0] sm:$0xff] }
   0x7   :  { %1230 = vmatpush.bf16.msra.mxu2 %v1033_v1  ;;  %1231 = vmatpush.bf16.msra.mxu3 %v1033_v1  ;;  %v1019_v11 = vld [vmem:[%s1831_s0 + $0xc0] sm:$0xff]  ;;  %v1020_v15 = vld [vmem:[%s1831_s0 + $0xc8] sm:$0xff]  ;;  %v998_v20 = vld [vmem:[%s1831_s0 + $0x18] sm:$0xff] }
   0x8   :  { %v1006_v21 = vld [vmem:[%s1831_s0 + $0x58] sm:$0xff]  ;;  %v999_v24 = vld [vmem:[%s1831_s0 + $0x20] sm:$0xff]  ;;  %v1000_v28 = vld [vmem:[%s1831_s0 + $0x28] sm:$0xff] }
   0x9   :  { %v1014_v22 = vld [vmem:[%s1831_s0 + $0x98] sm:$0xff]  ;;  %v1007_v25 = vld [vmem:[%s1831_s0 + $0x60] sm:$0xff]  ;;  %v1008_v29 = vld [vmem:[%s1831_s0 + $0x68] sm:$0xff] }
   0xa   :  { %336 = vmatpush.bf16.msra.mxu0 %v1032_v2  ;;  %1232 = vmatpush.bf16.msra.mxu1 %v1032_v2  ;;  %v1022_v23 = vld [vmem:[%s1831_s0 + $0xd8] sm:$0xff]  ;;  %v1015_v26 = vld [vmem:[%s1831_s0 + $0xa0] sm:$0xff]  ;;  %v1016_v30 = vld [vmem:[%s1831_s0 + $0xa8] sm:$0xff] }
   0xb   :  { %1233 = vmatpush.bf16.msra.mxu2 %v1032_v2  ;;  %1234 = vmatpush.bf16.msra.mxu3 %v1032_v2  ;;  %v1023_v27 = vld [vmem:[%s1831_s0 + $0xe0] sm:$0xff]  ;;  %v1024_v31 = vld [vmem:[%s1831_s0 + $0xe8] sm:$0xff]  ;;  %v1001_v32 = vld [vmem:[%s1831_s0 + $0x30] sm:$0xff] }
   0xc   :  { %v1009_v33 = vld [vmem:[%s1831_s0 + $0x70] sm:$0xff]  ;;  %v1002_v36 = vld [vmem:[%s1831_s0 + $0x38] sm:$0xff] }
   0xd   :  { %v1017_v34 = vld [vmem:[%s1831_s0 + $0xb0] sm:$0xff]  ;;  %v1010_v37 = vld [vmem:[%s1831_s0 + $0x78] sm:$0xff] }
   0xe   :  { %337 = vmatpush.bf16.msra.mxu0 %v1031_v3  ;;  %1235 = vmatpush.bf16.msra.mxu1 %v1031_v3  ;;  %v1025_v35 = vld [vmem:[%s1831_s0 + $0xf0] sm:$0xff]  ;;  %v1018_v38 = vld [vmem:[%s1831_s0 + $0xb8] sm:$0xff] }
   0xf   :  { %1236 = vmatpush.bf16.msra.mxu2 %v1031_v3  ;;  %1237 = vmatpush.bf16.msra.mxu3 %v1031_v3  ;;  %v1026_v39 = vld [vmem:[%s1831_s0 + $0xf8] sm:$0xff] }
  0x12   :  { %338 = vmatpush.bf16.msra.mxu0 %v1030_v4  ;;  %1238 = vmatpush.bf16.msra.mxu1 %v1030_v4 }
  0x13   :  { %1239 = vmatpush.bf16.msra.mxu2 %v1030_v4  ;;  %1240 = vmatpush.bf16.msra.mxu3 %v1030_v4 }
  0x16   :  { %339 = vmatpush.bf16.msra.mxu0 %v1029_v5  ;;  %1241 = vmatpush.bf16.msra.mxu1 %v1029_v5 }
  0x17   :  { %1242 = vmatpush.bf16.msra.mxu2 %v1029_v5  ;;  %1243 = vmatpush.bf16.msra.mxu3 %v1029_v5 }
  0x1a   :  { %340 = vmatpush.bf16.msra.mxu0 %v1028_v6  ;;  %1244 = vmatpush.bf16.msra.mxu1 %v1028_v6 }
  0x1b   :  { %1245 = vmatpush.bf16.msra.mxu2 %v1028_v6  ;;  %1246 = vmatpush.bf16.msra.mxu3 %v1028_v6 }
  0x1e   :  { %341 = vmatpush.bf16.msra.mxu0 %v1027_v7  ;;  %1247 = vmatpush.bf16.msra.mxu1 %v1027_v7 }
  0x1f   :  { %1248 = vmatpush.bf16.msra.mxu2 %v1027_v7  ;;  %1249 = vmatpush.bf16.msra.mxu3 %v1027_v7 }
  0x21   :  { %342 = vmatmul.bf16.vlgmr.msra.gmra.mxu0 %v995_v8  ;;  %382 = vmatmul.bf16.vlgmr.msra.gmra.mxu1 %v1003_v9 }
  0x22   :  { %422 = vmatmul.bf16.vlgmr.msra.gmra.mxu2 %v1011_v10  ;;  %462 = vmatmul.bf16.vlgmr.msra.gmra.mxu3 %v1019_v11 }
  0x31   :  { %347 = vmatmul.bf16.gmra.mxu0 %v996_v12  ;;  %387 = vmatmul.bf16.gmra.mxu1 %v1004_v13 }
  0x32   :  { %427 = vmatmul.bf16.gmra.mxu2 %v1012_v14  ;;  %467 = vmatmul.bf16.gmra.mxu3 %v1020_v15 }
  0x41   :  { %352 = vmatmul.bf16.gmra.mxu0 %v997_v16  ;;  %392 = vmatmul.bf16.gmra.mxu1 %v1005_v17 }
  0x42   :  { %432 = vmatmul.bf16.gmra.mxu2 %v1013_v18  ;;  %472 = vmatmul.bf16.gmra.mxu3 %v1021_v19 }
  0x51   :  { %357 = vmatmul.bf16.gmra.mxu0 %v998_v20  ;;  %397 = vmatmul.bf16.gmra.mxu1 %v1006_v21 }
  0x52   :  { %437 = vmatmul.bf16.gmra.mxu2 %v1014_v22  ;;  %477 = vmatmul.bf16.gmra.mxu3 %v1022_v23 }
  0x61   :  { %362 = vmatmul.bf16.gmra.mxu0 %v999_v24  ;;  %402 = vmatmul.bf16.gmra.mxu1 %v1007_v25 }
  0x62   :  { %442 = vmatmul.bf16.gmra.mxu2 %v1015_v26  ;;  %482 = vmatmul.bf16.gmra.mxu3 %v1023_v27 }
  0x71   :  { %367 = vmatmul.bf16.gmra.mxu0 %v1000_v28  ;;  %407 = vmatmul.bf16.gmra.mxu1 %v1008_v29 }
  0x72   :  { %447 = vmatmul.bf16.gmra.mxu2 %v1016_v30  ;;  %487 = vmatmul.bf16.gmra.mxu3 %v1024_v31 }
  0x81   :  { %372 = vmatmul.bf16.gmra.mxu0 %v1001_v32  ;;  %412 = vmatmul.bf16.gmra.mxu1 %v1009_v33 }
  0x82   :  { %452 = vmatmul.bf16.gmra.mxu2 %v1017_v34  ;;  %492 = vmatmul.bf16.gmra.mxu3 %v1025_v35 }
  0x91   :  { %377 = vmatmul.bf16.gmra.mxu0 %v1002_v36  ;;  %417 = vmatmul.bf16.gmra.mxu1 %v1010_v37 }
  0x92   :  { %457 = vmatmul.bf16.gmra.mxu2 %v1018_v38  ;;  %497 = vmatmul.bf16.gmra.mxu3 %v1026_v39 }
  0x9e   :  { %v343_v40 = vpop.f32.mrf.mxu0  ;;  %v1395_v41 = vpop.f32.mrf.mxu1 }
  0x9f   :  { %v631_v2 = vmul.f32 %v343_v40, %v343_v40 }
  0xa5   :  { %v1397_v42 = vpop.f32.mrf.mxu2  ;;  %v1399_v43 = vpop.f32.mrf.mxu3 }
  0xa6   :  { %v345_v44 = vpop.f32.mrf.mxu0  ;;  %v1401_v45 = vpop.f32.mrf.mxu1 }
  0xa7   :  { %v1038_v46 = vpack.c.bf16 %v345_v44, %v343_v40  ;;  %v1078_v47 = vpack.c.bf16 %v1401_v45, %v1395_v41  ;;  %v632_v8 = vmul.f32 %v345_v44, %v345_v44 }
  0xa9   :  { %1039 = vst [vmem:[%s1832_s2] sm:$0xff] %v1038_v46  }
  0xaa   :  { %1202 = vst [vmem:[%s1832_s2 + $0x40] sm:$0xff] %v1078_v47  }
  0xad   :  { %v1411_v48 = vpop.f32.mrf.mxu2  ;;  %v1413_v49 = vpop.f32.mrf.mxu3 }
  0xae   :  { %v348_v50 = vpop.f32.mrf.mxu0  ;;  %v1415_v51 = vpop.f32.mrf.mxu1  ;;  %v1118_v52 = vpack.c.bf16 %v1411_v48, %v1397_v42  ;;  %v1158_v53 = vpack.c.bf16 %v1413_v49, %v1399_v43 }
  0xaf   :  { %v633_v22 = vmul.f32 %v348_v50, %v348_v50 }
  0xb0   :  { %1210 = vst [vmem:[%s1832_s2 + $0x80] sm:$0xff] %v1118_v52  }
  0xb1   :  { %1218 = vst [vmem:[%s1832_s2 + $0xc0] sm:$0xff] %v1158_v53  }
  0xb5   :  { %v1427_v54 = vpop.f32.mrf.mxu2  ;;  %v1429_v55 = vpop.f32.mrf.mxu3 }
  0xb6   :  { %1854 = vst [vmem:[#allocation2_spill] sm:$0xff] %v1429_v55  ;;  %v1431_v56 = vpop.f32.mrf.mxu0  ;;  %v1433_v57 = vpop.f32.mrf.mxu1 }
  0xb7   :  { %1855 = vst [vmem:[#allocation3_spill] sm:$0xff] %v1433_v57  ;;  %v1043_v58 = vpack.c.bf16 %v1431_v56, %v348_v50  ;;  %v1083_v59 = vpack.c.bf16 %v1433_v57, %v1415_v51 }
  0xb9   :  { %1195 = vst [vmem:[%s1832_s2 + $0x8] sm:$0xff] %v1043_v58  }
  0xba   :  { %1203 = vst [vmem:[%s1832_s2 + $0x48] sm:$0xff] %v1083_v59  }
  0xbd   :  { %v1444_v60 = vpop.f32.mrf.mxu2  ;;  %v1446_v61 = vpop.f32.mrf.mxu3 }
  0xbe   :  { %1856 = vst [vmem:[#allocation4_spill] sm:$0xff] %v1444_v60  ;;  %v353_v62 = vpop.f32.mrf.mxu0  ;;  %v1448_v63 = vpop.f32.mrf.mxu1  ;;  %v1123_v0 = vpack.c.bf16 %v1444_v60, %v1427_v54  ;;  %v1163_v1 = vpack.c.bf16 %v1446_v61, %v1429_v55 }
  0xbf   :  { %1857 = vst [vmem:[#allocation5_spill] sm:$0xff] %v1446_v61  ;;  %v1454_v3 = vadd.f32 %v353_v62, %v343_v40  ;;  %v636_v4 = vmul.f32 %v353_v62, %v353_v62 }
  0xc0   :  { %1211 = vst [vmem:[%s1832_s2 + $0x88] sm:$0xff] %v1123_v0  }
  0xc1   :  { %v1459_v5 = vadd.f32 %v636_v4, %v631_v2  ;;  %1219 = vst [vmem:[%s1832_s2 + $0xc8] sm:$0xff] %v1163_v1  }
  0xc5   :  { %v1464_v6 = vpop.f32.mrf.mxu2  ;;  %v1466_v7 = vpop.f32.mrf.mxu3 }
  0xc6   :  { %v355_v9 = vpop.f32.mrf.mxu0  ;;  %v1468_v10 = vpop.f32.mrf.mxu1 }
  0xc7   :  { %v1048_v11 = vpack.c.bf16 %v355_v9, %v353_v62  ;;  %v1470_v12 = vadd.f32 %v355_v9, %v345_v44  ;;  %v639_v13 = vmul.f32 %v355_v9, %v355_v9  ;;  %v1088_v14 = vpack.c.bf16 %v1468_v10, %v1448_v63 }
  0xc9   :  { %1196 = vst [vmem:[%s1832_s2 + $0x10] sm:$0xff] %v1048_v11   ;;  %v1477_v15 = vadd.f32 %v639_v13, %v632_v8 }
  0xca   :  { %1204 = vst [vmem:[%s1832_s2 + $0x50] sm:$0xff] %v1088_v14  }
  0xcd   :  { %v1482_v16 = vpop.f32.mrf.mxu2  ;;  %v1484_v17 = vpop.f32.mrf.mxu3 }
  0xce   :  { %v358_v18 = vpop.f32.mrf.mxu0  ;;  %v1486_v19 = vpop.f32.mrf.mxu1  ;;  %v1128_v20 = vpack.c.bf16 %v1482_v16, %v1464_v6  ;;  %v1168_v21 = vpack.c.bf16 %v1484_v17, %v1466_v7 }
  0xcf   :  { %v1492_v23 = vadd.f32 %v358_v18, %v348_v50  ;;  %v642_v24 = vmul.f32 %v358_v18, %v358_v18 }
  0xd0   :  { %1212 = vst [vmem:[%s1832_s2 + $0x90] sm:$0xff] %v1128_v20   ;;  %v672_v20 = vmul.f32 %v1395_v41, %v1395_v41 }
  0xd1   :  { %v1497_v25 = vadd.f32 %v642_v24, %v633_v22  ;;  %1220 = vst [vmem:[%s1832_s2 + $0xd0] sm:$0xff] %v1168_v21  }
  0xd5   :  { %v1502_v26 = vpop.f32.mrf.mxu2  ;;  %v1504_v27 = vpop.f32.mrf.mxu3 }
  0xd6   :  { %1858 = vst [vmem:[#allocation6_spill] sm:$0xff] %v1502_v26  ;;  %v1506_v28 = vpop.f32.mrf.mxu0  ;;  %v1508_v29 = vpop.f32.mrf.mxu1  ;;  %v1667_v60 = vmul.f32 %v1502_v26, %v1502_v26 }
  0xd7   :  { %1859 = vst [vmem:[#allocation7_spill] sm:$0xff] %v1504_v27  ;;  %v1053_v30 = vpack.c.bf16 %v1506_v28, %v358_v18  ;;  %v1093_v31 = vpack.c.bf16 %v1508_v29, %v1486_v19 }
  0xd8   :  { %1869 = vst [vmem:[#allocation17_spill] sm:$0xff] %v1667_v60  ;;  %v1678_v60 = vmul.f32 %v1508_v29, %v1508_v29 }
  0xd9   :  { %1197 = vst [vmem:[%s1832_s2 + $0x18] sm:$0xff] %v1053_v30  }
  0xda   :  { %1205 = vst [vmem:[%s1832_s2 + $0x58] sm:$0xff] %v1093_v31   ;;  %v720_v31 = vmul.f32 %v1397_v42, %v1397_v42 }
  0xdd   :  { %v1519_v32 = vpop.f32.mrf.mxu2  ;;  %v1521_v33 = vpop.f32.mrf.mxu3 }
  0xde   :  { %1860 = vst [vmem:[#allocation8_spill] sm:$0xff] %v1519_v32  ;;  %v363_v34 = vpop.f32.mrf.mxu0  ;;  %v1523_v35 = vpop.f32.mrf.mxu1  ;;  %v1133_v36 = vpack.c.bf16 %v1519_v32, %v1502_v26  ;;  %v1173_v37 = vpack.c.bf16 %v1521_v33, %v1504_v27 }
  0xdf   :  { %1861 = vst [vmem:[#allocation9_spill] sm:$0xff] %v1521_v33  ;;  %v648_v11 = vmul.f32 %v363_v34, %v363_v34  ;;  %v647_v13 = vadd.f32 %v1454_v3, %v363_v34  ;;  %v1651_v33 = vmul.f32 %v1482_v16, %v1482_v16  ;;  %v696_v61 = vmul.f32 %v1523_v35, %v1523_v35 }
  0xe0   :  { %1213 = vst [vmem:[%s1832_s2 + $0x98] sm:$0xff] %v1133_v36  }
  0xe1   :  { %1221 = vst [vmem:[%s1832_s2 + $0xd8] sm:$0xff] %v1173_v37   ;;  %v649_v3 = vadd.f32 %v648_v11, %v1459_v5  ;;  %v675_v37 = vmul.f32 %v1401_v45, %v1401_v45  ;;  %v1618_v5 = vmul.f32 %v1415_v51, %v1415_v51  ;;  %v634_v11 = vmul.f32 %v1431_v56, %v1431_v56 }
  0xe5   :  { %v1535_v38 = vpop.f32.mrf.mxu2  ;;  %v1537_v39 = vpop.f32.mrf.mxu3 }
  0xe6   :  { %v365_v40 = vpop.f32.mrf.mxu0  ;;  %v1539_v44 = vpop.f32.mrf.mxu1 }
  0xe7   :  { %v1058_v46 = vpack.c.bf16 %v365_v40, %v363_v34  ;;  %v1098_v47 = vpack.c.bf16 %v1539_v44, %v1523_v35 }
  0xe9   :  { %1198 = vst [vmem:[%s1832_s2 + $0x20] sm:$0xff] %v1058_v46   ;;  %v1603_v46 = vmul.f32 %v1411_v48, %v1411_v48 }
  0xea   :  { %1206 = vst [vmem:[%s1832_s2 + $0x60] sm:$0xff] %v1098_v47   ;;  %v1607_v47 = vmul.f32 %v1399_v43, %v1399_v43 }
  0xed   :  { %v1549_v50 = vpop.f32.mrf.mxu2  ;;  %v1551_v52 = vpop.f32.mrf.mxu3 }
  0xee   :  { %v1553_v53 = vpop.f32.mrf.mxu0  ;;  %v1555_v58 = vpop.f32.mrf.mxu1  ;;  %v1138_v59 = vpack.c.bf16 %v1549_v50, %v1535_v38  ;;  %v1178_v62 = vpack.c.bf16 %v1551_v52, %v1537_v39 }
  0xf0   :  { %1214 = vst [vmem:[%s1832_s2 + $0xa0] sm:$0xff] %v1138_v59   ;;  %v1611_v59 = vmul.f32 %v1413_v49, %v1413_v49 }
  0xf1   :  { %1222 = vst [vmem:[%s1832_s2 + $0xe0] sm:$0xff] %v1178_v62   ;;  %v1622_v62 = vmul.f32 %v1427_v54, %v1427_v54 }
  0xf2   :  { %1865 = vst [vmem:[#allocation13_spill] sm:$0xff] %v1611_v59 }
  0xf3   :  { %1866 = vst [vmem:[#allocation14_spill] sm:$0xff] %v1622_v62 }
  0xf5   :  { %v1567_v0 = vpop.f32.mrf.mxu2  ;;  %v1569_v1 = vpop.f32.mrf.mxu3 }
  0xf6   :  { %1862 = vst [vmem:[#allocation10_spill] sm:$0xff] %v1569_v1  ;;  %v1571_v2 = vpop.f32.mrf.mxu0  ;;  %v1573_v4 = vpop.f32.mrf.mxu1 }
  0xf7   :  { %v1063_v8 = vpack.c.bf16 %v1571_v2, %v1553_v53  ;;  %v1103_v9 = vpack.c.bf16 %v1573_v4, %v1555_v58 }
  0xf9   :  { %1199 = vst [vmem:[%s1832_s2 + $0x28] sm:$0xff] %v1063_v8  }
  0xfa   :  { %1207 = vst [vmem:[%s1832_s2 + $0x68] sm:$0xff] %v1103_v9  }
  0xfd   :  { %v1586_v14 = vpop.f32.mrf.mxu2  ;;  %v1588_v18 = vpop.f32.mrf.mxu3 }
  0xfe   :  { %1863 = vst [vmem:[#allocation11_spill] sm:$0xff] %v1586_v14  ;;  %v373_v21 = vpop.f32.mrf.mxu0  ;;  %v413_v22 = vpop.f32.mrf.mxu1  ;;  %v1143_v24 = vpack.c.bf16 %v1586_v14, %v1567_v0  ;;  %v1183_v30 = vpack.c.bf16 %v1588_v18, %v1569_v1  ;;  %v651_v14 = vmul.f32 %v365_v40, %v365_v40  ;;  %v650_v1 = vadd.f32 %v1470_v12, %v365_v40 }
  0xff   :  { %1864 = vst [vmem:[#allocation12_spill] sm:$0xff] %v1588_v18  ;;  %v659_v34 = vadd.f32 %v647_v13, %v373_v21  ;;  %v660_v36 = vmul.f32 %v373_v21, %v373_v21  ;;  %v1632_v13 = vmul.f32 %v1433_v57, %v1433_v57  ;;  %v1638_v18 = vmul.f32 %v1429_v55, %v1429_v55 }
 0x100   :  { %1215 = vst [vmem:[%s1832_s2 + $0xa8] sm:$0xff] %v1143_v24   ;;  %v684_v24 = vmul.f32 %v1448_v63, %v1448_v63  ;;  %v708_v27 = vmul.f32 %v413_v22, %v413_v22  ;;  %v1671_v12 = vmul.f32 %v1484_v17, %v1484_v17  ;;  %v652_v59 = vadd.f32 %v651_v14, %v1477_v15 }
 0x101   :  { %v661_v8 = vadd.f32 %v660_v36, %v649_v3  ;;  %v671_v9 = vadd.f32 %v659_v34, %v1395_v41  ;;  %1223 = vst [vmem:[%s1832_s2 + $0xe8] sm:$0xff] %v1183_v30   ;;  %v732_v41 = vmul.f32 %v1464_v6, %v1464_v6  ;;  %v1644_v30 = vmul.f32 %v1466_v7, %v1466_v7 }
 0x102   :  { %1867 = vst [vmem:[#allocation15_spill] sm:$0xff] %v1632_v13  ;;  %v687_v36 = vmul.f32 %v1468_v10, %v1468_v10  ;;  %v644_v13 = vadd.f32 %v1506_v28, %v1431_v56  ;;  %v744_v56 = vmul.f32 %v1535_v38, %v1535_v38  ;;  %v1691_v15 = vmul.f32 %v1537_v39, %v1537_v39 }
 0x103   :  { %1868 = vst [vmem:[#allocation16_spill] sm:$0xff] %v1638_v18  ;;  %v673_v3 = vadd.f32 %v672_v20, %v661_v8  ;;  %v683_v34 = vadd.f32 %v671_v9, %v1448_v63  ;;  %v1661_v63 = vmul.f32 %v1486_v19, %v1486_v19  ;;  %v645_v9 = vmul.f32 %v1506_v28, %v1506_v28 }
 0x104   :  { %1870 = vst [vmem:[#allocation18_spill] sm:$0xff] %v1671_v12  ;;  %v654_v14 = vmul.f32 %v1553_v53, %v1553_v53 }
 0x105   :  { %v685_v32 = vadd.f32 %v684_v24, %v673_v3  ;;  %v695_v18 = vadd.f32 %v683_v34, %v1523_v35  ;;  %v453_v20 = vpop.f32.mrf.mxu2  ;;  %v1657_v8 = vpop.f32.mrf.mxu3 }
 0x106   :  { %v375_v35 = vpop.f32.mrf.mxu0  ;;  %v415_v40 = vpop.f32.mrf.mxu1 }
 0x107   :  { %v697_v24 = vadd.f32 %v696_v61, %v685_v32  ;;  %v707_v3 = vadd.f32 %v695_v18, %v413_v22  ;;  %v1068_v34 = vpack.c.bf16 %v375_v35, %v373_v21  ;;  %v662_v55 = vadd.f32 %v650_v1, %v375_v35 }
 0x108   :  { %v663_v62 = vmul.f32 %v375_v35, %v375_v35  ;;  %v1108_v57 = vpack.c.bf16 %v415_v40, %v413_v22  ;;  %v1685_v32 = vadd.f32 %v645_v9, %v634_v11  ;;  %v653_v1 = vadd.f32 %v1492_v23, %v1553_v53 }
 0x109   :  { %v709_v26 = vadd.f32 %v708_v27, %v697_v24  ;;  %v719_v12 = vadd.f32 %v707_v3, %v1397_v42  ;;  %1200 = vst [vmem:[%s1832_s2 + $0x30] sm:$0xff] %v1068_v34   ;;  %v674_v61 = vadd.f32 %v662_v55, %v1401_v45  ;;  %v699_v42 = vmul.f32 %v1539_v44, %v1539_v44 }
 0x10a   :  { %v664_v28 = vadd.f32 %v663_v62, %v652_v59  ;;  %1208 = vst [vmem:[%s1832_s2 + $0x70] sm:$0xff] %v1108_v57   ;;  %v747_v18 = vmul.f32 %v1549_v50, %v1549_v50  ;;  %v711_v24 = vmul.f32 %v415_v40, %v415_v40 }
 0x10b   :  { %v721_v27 = vadd.f32 %v720_v31, %v709_v26  ;;  %v686_v45 = vadd.f32 %v674_v61, %v1468_v10  ;;  %v731_v55 = vadd.f32 %v719_v12, %v1464_v6  ;;  %v756_v26 = vmul.f32 %v453_v20, %v453_v20 }
 0x10c   :  { %v676_v21 = vadd.f32 %v675_v37, %v664_v28  ;;  %v1712_v6 = vmul.f32 %v1551_v52, %v1551_v52  ;;  %v655_v12 = vadd.f32 %v654_v14, %v1497_v25  ;;  %v702_v25 = vmul.f32 %v1555_v58, %v1555_v58 }
 0x10d   :  { %v698_v57 = vadd.f32 %v686_v45, %v1539_v44  ;;  %v733_v22 = vadd.f32 %v732_v41, %v721_v27  ;;  %v743_v59 = vadd.f32 %v731_v55, %v1535_v38  ;;  %v455_v31 = vpop.f32.mrf.mxu2  ;;  %v1708_v10 = vpop.f32.mrf.mxu3  ;;  %v656_v27 = vadd.f32 %v644_v13, %v1571_v2 }
 0x10e   :  { %v688_v23 = vadd.f32 %v687_v36, %v676_v21  ;;  %v378_v62 = vpop.f32.mrf.mxu0  ;;  %v1714_v53 = vpop.f32.mrf.mxu1  ;;  %v1148_v11 = vpack.c.bf16 %v455_v31, %v453_v20  ;;  %v1188_v37 = vpack.c.bf16 %v1708_v10, %v1657_v8  ;;  %v657_v45 = vmul.f32 %v1571_v2, %v1571_v2 }
 0x10f   :  { %v710_v44 = vadd.f32 %v698_v57, %v415_v40  ;;  %v745_v41 = vadd.f32 %v744_v56, %v733_v22  ;;  %v755_v9 = vadd.f32 %v743_v59, %v453_v20  ;;  %v665_v38 = vadd.f32 %v653_v1, %v378_v62 }
 0x110   :  { %v700_v35 = vadd.f32 %v699_v42, %v688_v23  ;;  %v666_v3 = vmul.f32 %v378_v62, %v378_v62  ;;  %1216 = vst [vmem:[%s1832_s2 + $0xb0] sm:$0xff] %v1148_v11   ;;  %v1732_v20 = vmul.f32 %v1567_v0, %v1567_v0 }
 0x111   :  { %v722_v36 = vadd.f32 %v710_v44, %v1411_v48  ;;  %v757_v34 = vadd.f32 %v756_v26, %v745_v41  ;;  %v767_v61 = vadd.f32 %v755_v9, %v1399_v43  ;;  %v677_v28 = vadd.f32 %v665_v38, %v1415_v51  ;;  %1224 = vst [vmem:[%s1832_s2 + $0xf0] sm:$0xff] %v1188_v37  }
 0x112   :  { %v712_v40 = vadd.f32 %v711_v24, %v700_v35  ;;  %v667_v56 = vadd.f32 %v666_v3, %v655_v12  ;;  %v658_v37 = vadd.f32 %v657_v45, %v1685_v32  ;;  %v1872_v32 = vld [vmem:[#allocation6_spill] sm:$0xff]  ;;  %v1874_v24 = vld [vmem:[#allocation13_spill] sm:$0xff] }
 0x113   :  { %v769_v48 = vadd.f32 %v1607_v47, %v757_v34  ;;  %v689_v42 = vadd.f32 %v677_v28, %v1486_v19  ;;  %v734_v43 = vadd.f32 %v722_v36, %v1482_v16  ;;  %v779_v51 = vadd.f32 %v767_v61, %v1466_v7  ;;  %v1875_v34 = vld [vmem:[#allocation15_spill] sm:$0xff] }
 0x114   :  { %v724_v55 = vadd.f32 %v1603_v46, %v712_v40  ;;  %v679_v1 = vadd.f32 %v1618_v5, %v667_v56  ;;  %v705_v7 = vmul.f32 %v1573_v4, %v1573_v4  ;;  %v714_v46 = vmul.f32 %v1714_v53, %v1714_v53 }
 0x115   :  { %v701_v14 = vadd.f32 %v689_v42, %v1555_v58  ;;  %v746_v21 = vadd.f32 %v734_v43, %v1549_v50  ;;  %v781_v47 = vadd.f32 %v1644_v30, %v769_v48  ;;  %v791_v19 = vadd.f32 %v779_v51, %v1537_v39  ;;  %v458_v16 = vpop.f32.mrf.mxu2  ;;  %v1747_v57 = vpop.f32.mrf.mxu3  ;;  %v1876_v42 = vld [vmem:[#allocation17_spill] sm:$0xff]  ;;  %v1877_v51 = vld [vmem:[#allocation18_spill] sm:$0xff] }
 0x116   :  { %v691_v2 = vadd.f32 %v1661_v63, %v679_v1  ;;  %v736_v5 = vadd.f32 %v1651_v33, %v724_v55  ;;  %v380_v58 = vpop.f32.mrf.mxu0  ;;  %v759_v30 = vmul.f32 %v455_v31, %v455_v31  ;;  %v420_v22 = vpop.f32.mrf.mxu1 }
 0x117   :  { %v713_v50 = vadd.f32 %v701_v14, %v1714_v53  ;;  %v758_v13 = vadd.f32 %v746_v21, %v455_v31  ;;  %v793_v39 = vadd.f32 %v1691_v15, %v781_v47  ;;  %v1073_v23 = vpack.c.bf16 %v380_v58, %v378_v62  ;;  %v1871_v31 = vld [vmem:[#allocation3_spill] sm:$0xff] }
 0x118   :  { %v703_v59 = vadd.f32 %v702_v25, %v691_v2  ;;  %v748_v26 = vadd.f32 %v747_v18, %v736_v5  ;;  %v668_v11 = vadd.f32 %v656_v27, %v380_v58  ;;  %v669_v41 = vmul.f32 %v380_v58, %v380_v58 }
 0x119   :  { %v725_v63 = vadd.f32 %v713_v50, %v1427_v54  ;;  %v770_v44 = vadd.f32 %v758_v13, %v1413_v49  ;;  %1201 = vst [vmem:[%s1832_s2 + $0x38] sm:$0xff] %v1073_v23   ;;  %v1113_v38 = vpack.c.bf16 %v420_v22, %v1714_v53  ;;  %v804_v18 = vmul.f32 %v1657_v8, %v1657_v8  ;;  %v1873_v49 = vld [vmem:[#allocation14_spill] sm:$0xff]  ;;  %v1880_v50 = vld [vmem:[#allocation7_spill] sm:$0xff] }
 0x11a   :  { %v715_v33 = vadd.f32 %v714_v46, %v703_v59  ;;  %v760_v9 = vadd.f32 %v759_v30, %v748_v26  ;;  %v680_v15 = vadd.f32 %v668_v11, %v1871_v31  ;;  %v670_v62 = vadd.f32 %v669_v41, %v658_v37  ;;  %v1878_v46 = vld [vmem:[#allocation2_spill] sm:$0xff]  ;;  %v1881_v30 = vld [vmem:[#allocation16_spill] sm:$0xff]  ;;  %v1884_v41 = vld [vmem:[#allocation11_spill] sm:$0xff] }
 0x11b   :  { %v737_v12 = vadd.f32 %v725_v63, %v1872_v32  ;;  %v782_v54 = vadd.f32 %v770_v44, %v1484_v17  ;;  %1209 = vst [vmem:[%s1832_s2 + $0x78] sm:$0xff] %v1113_v38   ;;  %v807_v53 = vmul.f32 %v1708_v10, %v1708_v10  ;;  %v762_v25 = vmul.f32 %v458_v16, %v458_v16  ;;  %v1882_v59 = vld [vmem:[#allocation8_spill] sm:$0xff]  ;;  %v1883_v37 = vld [vmem:[#allocation10_spill] sm:$0xff] }
 0x11c   :  { %v727_v35 = vadd.f32 %v1873_v49, %v715_v33  ;;  %v772_v3 = vadd.f32 %v1874_v24, %v760_v9  ;;  %v692_v36 = vadd.f32 %v680_v15, %v1508_v29  ;;  %v682_v61 = vadd.f32 %v1875_v34, %v670_v62 }
 0x11d   :  { %v749_v28 = vadd.f32 %v737_v12, %v1567_v0  ;;  %v794_v17 = vadd.f32 %v782_v54, %v1551_v52  ;;  %v460_v40 = vpop.f32.mrf.mxu2  ;;  %v500_v56 = vpop.f32.mrf.mxu3  ;;  %v803_v29 = vadd.f32 %v791_v19, %v1657_v8  ;;  %v717_v2 = vmul.f32 %v420_v22, %v420_v22 }
 0x11e   :  { %v704_v48 = vadd.f32 %v692_v36, %v1573_v4  ;;  %v739_v43 = vadd.f32 %v1876_v42, %v727_v35  ;;  %v784_v27 = vadd.f32 %v1877_v51, %v772_v3  ;;  %v1153_v45 = vpack.c.bf16 %v460_v40, %v458_v16  ;;  %v1885_v35 = vld [vmem:[#allocation5_spill] sm:$0xff] }
 0x11f   :  { %v694_v55 = vadd.f32 %v1678_v60, %v682_v61  ;;  %v761_v1 = vadd.f32 %v749_v28, %v458_v16  ;;  %v806_v14 = vadd.f32 %v794_v17, %v1708_v10  ;;  %v1193_v4 = vpack.c.bf16 %v500_v56, %v1747_v57  ;;  %v1879_v16 = vld [vmem:[#allocation4_spill] sm:$0xff]  ;;  %v1886_v61 = vld [vmem:[#allocation9_spill] sm:$0xff] }
 0x120   :  { %v716_v0 = vadd.f32 %v704_v48, %v420_v22  ;;  %v751_v21 = vadd.f32 %v1732_v20, %v739_v43  ;;  %v796_v52 = vadd.f32 %v1712_v6, %v784_v27  ;;  %1217 = vst [vmem:[%s1832_s2 + $0xb8] sm:$0xff] %v1153_v45   ;;  %v805_v60 = vadd.f32 %v804_v18, %v793_v39 }
 0x121   :  { %v706_v47 = vadd.f32 %v705_v7, %v694_v55  ;;  %v773_v8 = vadd.f32 %v761_v1, %v1878_v46  ;;  %v815_v19 = vadd.f32 %v806_v14, %v803_v29  ;;  %1225 = vst [vmem:[%s1832_s2 + $0xf8] sm:$0xff] %v1193_v4   ;;  %v729_v6 = vmul.f32 %v1879_v16, %v1879_v16 }
 0x122   :  { %v728_v5 = vadd.f32 %v716_v0, %v1879_v16  ;;  %v763_v10 = vadd.f32 %v762_v25, %v751_v21  ;;  %v808_v58 = vadd.f32 %v807_v53, %v796_v52  ;;  %v786_v7 = vmul.f32 %v1880_v50, %v1880_v50 }
 0x123   :  { %v718_v20 = vadd.f32 %v717_v2, %v706_v47  ;;  %v785_v13 = vadd.f32 %v773_v8, %v1880_v50  ;;  %v741_v23 = vmul.f32 %v1882_v59, %v1882_v59  ;;  %v798_v44 = vmul.f32 %v1883_v37, %v1883_v37 }
 0x124   :  { %v775_v22 = vadd.f32 %v1881_v30, %v763_v10  ;;  %v816_v39 = vadd.f32 %v808_v58, %v805_v60  ;;  %v740_v26 = vadd.f32 %v728_v5, %v1882_v59  ;;  %v810_v31 = vmul.f32 %v1747_v57, %v1747_v57 }
 0x125   :  { %v730_v11 = vadd.f32 %v729_v6, %v718_v20  ;;  %v797_v63 = vadd.f32 %v785_v13, %v1883_v37  ;;  %v753_v15 = vmul.f32 %v1884_v41, %v1884_v41  ;;  %v765_v54 = vmul.f32 %v460_v40, %v460_v40 }
 0x126   :  { %v752_v33 = vadd.f32 %v740_v26, %v1884_v41  ;;  %v787_v9 = vadd.f32 %v786_v7, %v775_v22  ;;  %v777_v36 = vmul.f32 %v1885_v35, %v1885_v35  ;;  %v789_v25 = vmul.f32 %v1886_v61, %v1886_v61 }
 0x127   :  { %v742_v38 = vadd.f32 %v741_v23, %v730_v11  ;;  %v809_v18 = vadd.f32 %v797_v63, %v1747_v57  ;;  %v1887_v57 = vld [vmem:[#allocation12_spill] sm:$0xff]  ;;  %v813_v27 = vmul.f32 %v500_v56, %v500_v56 }
 0x128   :  { %v764_v62 = vadd.f32 %v752_v33, %v460_v40  ;;  %v799_v32 = vadd.f32 %v798_v44, %v787_v9  ;;  %v801_v40 = vmul.f32 %v1887_v57, %v1887_v57 }
 0x129   :  { %v754_v12 = vadd.f32 %v753_v15, %v742_v38  ;;  %v817_v49 = vadd.f32 %v815_v19, %v809_v18 }
 0x12a   :  { %v776_v24 = vadd.f32 %v764_v62, %v1885_v35  ;;  %v811_v3 = vadd.f32 %v810_v31, %v799_v32 }
 0x12b   :  { %v766_v53 = vadd.f32 %v765_v54, %v754_v12 }
 0x12c   :  { %v818_v34 = vadd.f32 %v816_v39, %v811_v3  ;;  %v788_v28 = vadd.f32 %v776_v24, %v1886_v61 }
 0x12d   :  { %v778_v17 = vadd.f32 %v777_v36, %v766_v53 }
 0x12e   :  { %v800_v48 = vadd.f32 %v788_v28, %v1887_v57 }
 0x12f   :  { %v790_v42 = vadd.f32 %v789_v25, %v778_v17 }
 0x130   :  { %v812_v43 = vadd.f32 %v800_v48, %v500_v56 }
 0x131   :  { %v802_v51 = vadd.f32 %v801_v40, %v790_v42 }
 0x132   :  { %v819_v45 = vadd.f32 %v817_v49, %v812_v43 }
 0x133   :  { %v814_v29 = vadd.f32 %v813_v27, %v802_v51 }
 0x134   :  { %821 = vst [vmem:[%s1833_s3] sm:$0xff] %v819_v45 }
 0x135   :  { %v820_v55 = vadd.f32 %v818_v34, %v814_v29 }
 0x137   :  { %822 = vst [vmem:[%s1834_s4] sm:$0xff] %v820_v55 }

// kernel: cond_dcgan_forward.31
= control target key start
LH: loop header
LB: loop body
LE: loop exit
PB: predicated region body
PF: predicated region fallthrough
CT: control target
= control target key end

     0   :  { %s1304_s0 = inlined_call_operand.vmem [shape: bf16[512,128], index: 0, kind: input, shape index: {}]   ;;  %s1305_s1 = inlined_call_operand.vmem [shape: f32[1,128], index: 1, kind: input, shape index: {}]   ;;  %s1306_s2 = inlined_call_operand.vmem [shape: f32[1,128], index: 2, kind: input, shape index: {}]   ;;  %s1307_s3 = inlined_call_operand.vmem [shape: bf16[512,128], index: 3, kind: output, shape index: {}]  }
   0x1   :  { %v603_v0 = vld [vmem:[%s1304_s0] sm:$0xff]   ;;  %v890_v5 = vld [vmem:[%s1304_s0 + $0x8] sm:$0xff]   ;;  %v891_v8 = vld [vmem:[%s1304_s0 + $0x10] sm:$0xff]  }
   0x2   :  { %v980_v1 = vld [vmem:[%s1305_s1] ss:$0 sm:$0xff]  ;;  %v604_v2 = vunpack.c.l.bf16 %v603_v0  ;;  %v605_v3 = vunpack.c.h.bf16 %v603_v0  ;;  %v608_v6 = vunpack.c.l.bf16 %v890_v5  ;;  %v609_v7 = vunpack.c.h.bf16 %v890_v5  ;;  %v892_v9 = vld [vmem:[%s1304_s0 + $0x18] sm:$0xff]   ;;  %v894_v39 = vld [vmem:[%s1304_s0 + $0x28] sm:$0xff]  }
   0x3   :  { %v985_v4 = vld [vmem:[%s1306_s2] ss:$0 sm:$0xff]  ;;  %v612_v12 = vunpack.c.l.bf16 %v891_v8  ;;  %v613_v13 = vunpack.c.h.bf16 %v891_v8  ;;  %v616_v16 = vunpack.c.l.bf16 %v892_v9  ;;  %v617_v17 = vunpack.c.h.bf16 %v892_v9  ;;  %v895_v49 = vld [vmem:[%s1304_s0 + $0x30] sm:$0xff]   ;;  %v896_v57 = vld [vmem:[%s1304_s0 + $0x38] sm:$0xff]  }
   0x4   :  { %v146_v10 = vmul.f32 %v980_v1, %v604_v2  ;;  %v147_v11 = vmul.f32 %v980_v1, %v605_v3  ;;  %v148_v14 = vmul.f32 %v980_v1, %v608_v6  ;;  %v149_v15 = vmul.f32 %v980_v1, %v609_v7  ;;  %v893_v38 = vld [vmem:[%s1304_s0 + $0x20] sm:$0xff]  }
   0x5   :  { %v150_v20 = vmul.f32 %v980_v1, %v612_v12  ;;  %v151_v21 = vmul.f32 %v980_v1, %v613_v13  ;;  %v152_v24 = vmul.f32 %v980_v1, %v616_v16  ;;  %v153_v25 = vmul.f32 %v980_v1, %v617_v17 }
   0x6   :  { %v214_v18 = vadd.f32 %v985_v4, %v146_v10  ;;  %v215_v19 = vadd.f32 %v985_v4, %v147_v11  ;;  %v216_v22 = vadd.f32 %v985_v4, %v148_v14  ;;  %v217_v23 = vadd.f32 %v985_v4, %v149_v15 }
   0x7   :  { %v218_v32 = vadd.f32 %v985_v4, %v150_v20  ;;  %v219_v33 = vadd.f32 %v985_v4, %v151_v21  ;;  %v220_v37 = vadd.f32 %v985_v4, %v152_v24  ;;  %v221_v43 = vadd.f32 %v985_v4, %v153_v25  ;;  %v898_v20 = vld [vmem:[%s1304_s0 + $0x48] sm:$0xff]  }
   0x8   :  { %vm278_vm0 = vcmp.gt.f32.partialorder %v214_v18, 0.0  ;;  %vm279_vm1 = vcmp.gt.f32.partialorder %v215_v19, 0.0  ;;  %v342_v26 = vmul.f32 0.2, %v214_v18  ;;  %v343_v27 = vmul.f32 0.2, %v215_v19 }
   0x9   :  { %vm280_vm2 = vcmp.gt.f32.partialorder %v216_v22, 0.0  ;;  %vm281_vm3 = vcmp.gt.f32.partialorder %v217_v23, 0.0  ;;  %v344_v28 = vmul.f32 0.2, %v216_v22  ;;  %v345_v29 = vmul.f32 0.2, %v217_v23 }
   0xa   :  { %v406_v30 = vsel %vm278_vm0, %v214_v18, %v342_v26  ;;  %v407_v31 = vsel %vm279_vm1, %v215_v19, %v343_v27  ;;  %vm282_vm4 = vcmp.gt.f32.partialorder %v218_v32, 0.0  ;;  %vm283_vm5 = vcmp.gt.f32.partialorder %v219_v33, 0.0  ;;  %v897_v19 = vld [vmem:[%s1304_s0 + $0x40] sm:$0xff]  }
   0xb   :  { %v733_v34 = vpack.c.bf16 %v407_v31, %v406_v30  ;;  %v408_v35 = vsel %vm280_vm2, %v216_v22, %v344_v28  ;;  %v409_v36 = vsel %vm281_vm3, %v217_v23, %v345_v29  ;;  %v346_v41 = vmul.f32 0.2, %v218_v32  ;;  %v899_v28 = vld [vmem:[%s1304_s0 + $0x50] sm:$0xff]  }
   0xc   :  { %v738_v40 = vpack.c.bf16 %v409_v36, %v408_v35  ;;  %v347_v42 = vmul.f32 0.2, %v219_v33  ;;  %vm284_vm6 = vcmp.gt.f32.partialorder %v220_v37, 0.0  ;;  %v348_v44 = vmul.f32 0.2, %v220_v37 }
   0xd   :  { %734 = vst [vmem:[%s1307_s3] sm:$0xff] %v733_v34   ;;  %v410_v45 = vsel %vm282_vm4, %v218_v32, %v346_v41  ;;  %v620_v46 = vunpack.c.l.bf16 %v893_v38  ;;  %v621_v47 = vunpack.c.h.bf16 %v893_v38  ;;  %v624_v48 = vunpack.c.l.bf16 %v894_v39 }
   0xe   :  { %921 = vst [vmem:[%s1307_s3 + $0x8] sm:$0xff] %v738_v40   ;;  %v411_v50 = vsel %vm283_vm5, %v219_v33, %v347_v42  ;;  %vm285_vm7 = vcmp.gt.f32.partialorder %v221_v43, 0.0  ;;  %v349_v51 = vmul.f32 0.2, %v221_v43  ;;  %v412_v52 = vsel %vm284_vm6, %v220_v37, %v348_v44 }
   0xf   :  { %v743_v53 = vpack.c.bf16 %v411_v50, %v410_v45  ;;  %v154_v54 = vmul.f32 %v980_v1, %v620_v46  ;;  %v155_v55 = vmul.f32 %v980_v1, %v621_v47  ;;  %v625_v56 = vunpack.c.h.bf16 %v894_v39 }
  0x10   :  { %v413_v58 = vsel %vm285_vm7, %v221_v43, %v349_v51  ;;  %v156_v59 = vmul.f32 %v980_v1, %v624_v48  ;;  %v628_v60 = vunpack.c.l.bf16 %v895_v49  ;;  %v629_v61 = vunpack.c.h.bf16 %v895_v49 }
  0x11   :  { %922 = vst [vmem:[%s1307_s3 + $0x10] sm:$0xff] %v743_v53   ;;  %v748_v62 = vpack.c.bf16 %v413_v58, %v412_v52  ;;  %v222_v63 = vadd.f32 %v985_v4, %v154_v54  ;;  %v223_v0 = vadd.f32 %v985_v4, %v155_v55  ;;  %v157_v2 = vmul.f32 %v980_v1, %v625_v56  ;;  %v900_v55 = vld [vmem:[%s1304_s0 + $0x58] sm:$0xff]   ;;  %v901_v56 = vld [vmem:[%s1304_s0 + $0x60] sm:$0xff]  }
  0x12   :  { %v224_v3 = vadd.f32 %v985_v4, %v156_v59  ;;  %v158_v5 = vmul.f32 %v980_v1, %v628_v60  ;;  %v159_v6 = vmul.f32 %v980_v1, %v629_v61  ;;  %v632_v7 = vunpack.c.l.bf16 %v896_v57 }
  0x13   :  { %923 = vst [vmem:[%s1307_s3 + $0x18] sm:$0xff] %v748_v62   ;;  %vm286_vm8 = vcmp.gt.f32.partialorder %v222_v63, 0.0  ;;  %vm287_vm9 = vcmp.gt.f32.partialorder %v223_v0, 0.0  ;;  %v350_v8 = vmul.f32 0.2, %v222_v63  ;;  %v225_v9 = vadd.f32 %v985_v4, %v157_v2  ;;  %v902_v2 = vld [vmem:[%s1304_s0 + $0x68] sm:$0xff]  }
  0x14   :  { %v351_v10 = vmul.f32 0.2, %v223_v0  ;;  %vm288_vm10 = vcmp.gt.f32.partialorder %v224_v3, 0.0  ;;  %v352_v11 = vmul.f32 0.2, %v224_v3  ;;  %v226_v12 = vadd.f32 %v985_v4, %v158_v5 }
  0x15   :  { %v414_v13 = vsel %vm286_vm8, %v222_v63, %v350_v8  ;;  %vm289_vm11 = vcmp.gt.f32.partialorder %v225_v9, 0.0  ;;  %v353_v14 = vmul.f32 0.2, %v225_v9  ;;  %v227_v15 = vadd.f32 %v985_v4, %v159_v6 }
  0x16   :  { %v415_v16 = vsel %vm287_vm9, %v223_v0, %v351_v10  ;;  %v416_v17 = vsel %vm288_vm10, %v224_v3, %v352_v11  ;;  %vm290_vm12 = vcmp.gt.f32.partialorder %v226_v12, 0.0  ;;  %v354_v18 = vmul.f32 0.2, %v226_v12 }
  0x17   :  { %v753_v21 = vpack.c.bf16 %v415_v16, %v414_v13  ;;  %v417_v22 = vsel %vm289_vm11, %v225_v9, %v353_v14  ;;  %vm291_vm13 = vcmp.gt.f32.partialorder %v227_v15, 0.0  ;;  %v355_v23 = vmul.f32 0.2, %v227_v15 }
  0x18   :  { %v758_v24 = vpack.c.bf16 %v417_v22, %v416_v17  ;;  %v418_v25 = vsel %vm290_vm12, %v226_v12, %v354_v18  ;;  %v633_v26 = vunpack.c.h.bf16 %v896_v57  ;;  %v160_v27 = vmul.f32 %v980_v1, %v632_v7 }
  0x19   :  { %924 = vst [vmem:[%s1307_s3 + $0x20] sm:$0xff] %v753_v21   ;;  %v419_v29 = vsel %vm291_vm13, %v227_v15, %v355_v23  ;;  %v636_v30 = vunpack.c.l.bf16 %v897_v19  ;;  %v637_v31 = vunpack.c.h.bf16 %v897_v19  ;;  %v640_v32 = vunpack.c.l.bf16 %v898_v20 }
  0x1a   :  { %925 = vst [vmem:[%s1307_s3 + $0x28] sm:$0xff] %v758_v24   ;;  %v763_v33 = vpack.c.bf16 %v419_v29, %v418_v25  ;;  %v161_v34 = vmul.f32 %v980_v1, %v633_v26  ;;  %v228_v35 = vadd.f32 %v985_v4, %v160_v27  ;;  %v641_v36 = vunpack.c.h.bf16 %v898_v20 }
  0x1b   :  { %v162_v37 = vmul.f32 %v980_v1, %v636_v30  ;;  %v163_v38 = vmul.f32 %v980_v1, %v637_v31  ;;  %v164_v39 = vmul.f32 %v980_v1, %v640_v32  ;;  %v644_v40 = vunpack.c.l.bf16 %v899_v28 }
  0x1c   :  { %926 = vst [vmem:[%s1307_s3 + $0x30] sm:$0xff] %v763_v33   ;;  %v229_v41 = vadd.f32 %v985_v4, %v161_v34  ;;  %vm292_vm14 = vcmp.gt.f32.partialorder %v228_v35, 0.0  ;;  %v356_v42 = vmul.f32 0.2, %v228_v35  ;;  %v165_v43 = vmul.f32 %v980_v1, %v641_v36 }
  0x1d   :  { %v230_v44 = vadd.f32 %v985_v4, %v162_v37  ;;  %v231_v45 = vadd.f32 %v985_v4, %v163_v38  ;;  %v232_v46 = vadd.f32 %v985_v4, %v164_v39  ;;  %v645_v47 = vunpack.c.h.bf16 %v899_v28  ;;  %v903_v28 = vld [vmem:[%s1304_s0 + $0x70] sm:$0xff]   ;;  %v904_v39 = vld [vmem:[%s1304_s0 + $0x78] sm:$0xff]  }
  0x1e   :  { %vm293_vm15 = vcmp.gt.f32.partialorder %v229_v41, 0.0  ;;  %v357_v48 = vmul.f32 0.2, %v229_v41  ;;  %v420_v49 = vsel %vm292_vm14, %v228_v35, %v356_v42  ;;  %v233_v50 = vadd.f32 %v985_v4, %v165_v43 }
  0x1f   :  { %vm294_vm0 = vcmp.gt.f32.partialorder %v230_v44, 0.0  ;;  %vm295_vm1 = vcmp.gt.f32.partialorder %v231_v45, 0.0  ;;  %v358_v51 = vmul.f32 0.2, %v230_v44  ;;  %v359_v52 = vmul.f32 0.2, %v231_v45 }
  0x20   :  { %v421_v53 = vsel %vm293_vm15, %v229_v41, %v357_v48  ;;  %vm296_vm2 = vcmp.gt.f32.partialorder %v232_v46, 0.0  ;;  %vm297_vm3 = vcmp.gt.f32.partialorder %v233_v50, 0.0  ;;  %v360_v54 = vmul.f32 0.2, %v232_v46 }
  0x21   :  { %v768_v57 = vpack.c.bf16 %v421_v53, %v420_v49  ;;  %v422_v58 = vsel %vm294_vm0, %v230_v44, %v358_v51  ;;  %v423_v59 = vsel %vm295_vm1, %v231_v45, %v359_v52  ;;  %v361_v60 = vmul.f32 0.2, %v233_v50  ;;  %v905_v44 = vld [vmem:[%s1304_s0 + $0x80] sm:$0xff]  }
  0x22   :  { %v773_v61 = vpack.c.bf16 %v423_v59, %v422_v58  ;;  %v424_v62 = vsel %vm296_vm2, %v232_v46, %v360_v54  ;;  %v166_v63 = vmul.f32 %v980_v1, %v644_v40  ;;  %v167_v0 = vmul.f32 %v980_v1, %v645_v47  ;;  %v906_v59 = vld [vmem:[%s1304_s0 + $0x88] sm:$0xff]  }
  0x23   :  { %927 = vst [vmem:[%s1307_s3 + $0x38] sm:$0xff] %v768_v57   ;;  %v425_v3 = vsel %vm297_vm3, %v233_v50, %v361_v60  ;;  %v648_v5 = vunpack.c.l.bf16 %v900_v55  ;;  %v649_v6 = vunpack.c.h.bf16 %v900_v55  ;;  %v652_v7 = vunpack.c.l.bf16 %v901_v56 }
  0x24   :  { %928 = vst [vmem:[%s1307_s3 + $0x40] sm:$0xff] %v773_v61   ;;  %v778_v8 = vpack.c.bf16 %v425_v3, %v424_v62  ;;  %v234_v9 = vadd.f32 %v985_v4, %v166_v63  ;;  %v235_v10 = vadd.f32 %v985_v4, %v167_v0  ;;  %v653_v11 = vunpack.c.h.bf16 %v901_v56 }
  0x25   :  { %v168_v12 = vmul.f32 %v980_v1, %v648_v5  ;;  %v169_v13 = vmul.f32 %v980_v1, %v649_v6  ;;  %v170_v14 = vmul.f32 %v980_v1, %v652_v7  ;;  %v656_v15 = vunpack.c.l.bf16 %v902_v2 }
  0x26   :  { %929 = vst [vmem:[%s1307_s3 + $0x48] sm:$0xff] %v778_v8   ;;  %vm298_vm4 = vcmp.gt.f32.partialorder %v234_v9, 0.0  ;;  %vm299_vm5 = vcmp.gt.f32.partialorder %v235_v10, 0.0  ;;  %v362_v16 = vmul.f32 0.2, %v234_v9  ;;  %v171_v17 = vmul.f32 %v980_v1, %v653_v11 }
  0x27   :  { %v363_v18 = vmul.f32 0.2, %v235_v10  ;;  %v236_v19 = vadd.f32 %v985_v4, %v168_v12  ;;  %v237_v20 = vadd.f32 %v985_v4, %v169_v13  ;;  %v238_v21 = vadd.f32 %v985_v4, %v170_v14  ;;  %v907_v14 = vld [vmem:[%s1304_s0 + $0x90] sm:$0xff]  }
  0x28   :  { %v426_v22 = vsel %vm298_vm4, %v234_v9, %v362_v16  ;;  %v239_v23 = vadd.f32 %v985_v4, %v171_v17  ;;  %v657_v24 = vunpack.c.h.bf16 %v902_v2  ;;  %v172_v25 = vmul.f32 %v980_v1, %v656_v15 }
  0x29   :  { %v427_v26 = vsel %vm299_vm5, %v235_v10, %v363_v18  ;;  %vm300_vm6 = vcmp.gt.f32.partialorder %v236_v19, 0.0  ;;  %vm301_vm7 = vcmp.gt.f32.partialorder %v237_v20, 0.0  ;;  %v364_v27 = vmul.f32 0.2, %v236_v19  ;;  %v908_v18 = vld [vmem:[%s1304_s0 + $0x98] sm:$0xff]  }
  0x2a   :  { %v783_v29 = vpack.c.bf16 %v427_v26, %v426_v22  ;;  %v365_v30 = vmul.f32 0.2, %v237_v20  ;;  %vm302_vm8 = vcmp.gt.f32.partialorder %v238_v21, 0.0  ;;  %vm303_vm9 = vcmp.gt.f32.partialorder %v239_v23, 0.0 }
  0x2b   :  { %v428_v31 = vsel %vm300_vm6, %v236_v19, %v364_v27  ;;  %v366_v32 = vmul.f32 0.2, %v238_v21  ;;  %v367_v33 = vmul.f32 0.2, %v239_v23  ;;  %v173_v34 = vmul.f32 %v980_v1, %v657_v24 }
  0x2c   :  { %930 = vst [vmem:[%s1307_s3 + $0x50] sm:$0xff] %v783_v29   ;;  %v429_v35 = vsel %vm301_vm7, %v237_v20, %v365_v30  ;;  %v240_v36 = vadd.f32 %v985_v4, %v172_v25  ;;  %v660_v37 = vunpack.c.l.bf16 %v903_v28  ;;  %v661_v38 = vunpack.c.h.bf16 %v903_v28 }
  0x2d   :  { %v788_v40 = vpack.c.bf16 %v429_v35, %v428_v31  ;;  %v430_v41 = vsel %vm302_vm8, %v238_v21, %v366_v32  ;;  %v431_v42 = vsel %vm303_vm9, %v239_v23, %v367_v33  ;;  %v241_v43 = vadd.f32 %v985_v4, %v173_v34  ;;  %v909_v34 = vld [vmem:[%s1304_s0 + $0xa0] sm:$0xff]  }
  0x2e   :  { %v793_v45 = vpack.c.bf16 %v431_v42, %v430_v41  ;;  %vm304_vm10 = vcmp.gt.f32.partialorder %v240_v36, 0.0  ;;  %v368_v46 = vmul.f32 0.2, %v240_v36  ;;  %v174_v47 = vmul.f32 %v980_v1, %v660_v37 }
  0x2f   :  { %931 = vst [vmem:[%s1307_s3 + $0x58] sm:$0xff] %v788_v40   ;;  %vm305_vm11 = vcmp.gt.f32.partialorder %v241_v43, 0.0  ;;  %v369_v48 = vmul.f32 0.2, %v241_v43  ;;  %v175_v49 = vmul.f32 %v980_v1, %v661_v38  ;;  %v664_v50 = vunpack.c.l.bf16 %v904_v39 }
  0x30   :  { %932 = vst [vmem:[%s1307_s3 + $0x60] sm:$0xff] %v793_v45   ;;  %v432_v51 = vsel %vm304_vm10, %v240_v36, %v368_v46  ;;  %v242_v52 = vadd.f32 %v985_v4, %v174_v47  ;;  %v665_v53 = vunpack.c.h.bf16 %v904_v39  ;;  %v668_v54 = vunpack.c.l.bf16 %v905_v44 }
  0x31   :  { %v433_v55 = vsel %vm305_vm11, %v241_v43, %v369_v48  ;;  %v243_v56 = vadd.f32 %v985_v4, %v175_v49  ;;  %v176_v57 = vmul.f32 %v980_v1, %v664_v50  ;;  %v669_v58 = vunpack.c.h.bf16 %v905_v44  ;;  %v910_v48 = vld [vmem:[%s1304_s0 + $0xa8] sm:$0xff]  }
  0x32   :  { %v798_v60 = vpack.c.bf16 %v433_v55, %v432_v51  ;;  %vm306_vm12 = vcmp.gt.f32.partialorder %v242_v52, 0.0  ;;  %v370_v61 = vmul.f32 0.2, %v242_v52  ;;  %v177_v62 = vmul.f32 %v980_v1, %v665_v53 }
  0x33   :  { %vm307_vm13 = vcmp.gt.f32.partialorder %v243_v56, 0.0  ;;  %v371_v63 = vmul.f32 0.2, %v243_v56  ;;  %v244_v0 = vadd.f32 %v985_v4, %v176_v57  ;;  %v178_v2 = vmul.f32 %v980_v1, %v668_v54 }
  0x34   :  { %933 = vst [vmem:[%s1307_s3 + $0x68] sm:$0xff] %v798_v60   ;;  %v434_v3 = vsel %vm306_vm12, %v242_v52, %v370_v61  ;;  %v245_v5 = vadd.f32 %v985_v4, %v177_v62  ;;  %v179_v6 = vmul.f32 %v980_v1, %v669_v58  ;;  %v672_v7 = vunpack.c.l.bf16 %v906_v59  ;;  %v911_v58 = vld [vmem:[%s1304_s0 + $0xb0] sm:$0xff]  }
  0x35   :  { %v435_v8 = vsel %vm307_vm13, %v243_v56, %v371_v63  ;;  %vm308_vm14 = vcmp.gt.f32.partialorder %v244_v0, 0.0  ;;  %v372_v9 = vmul.f32 0.2, %v244_v0  ;;  %v246_v10 = vadd.f32 %v985_v4, %v178_v2 }
  0x36   :  { %v803_v11 = vpack.c.bf16 %v435_v8, %v434_v3  ;;  %vm309_vm15 = vcmp.gt.f32.partialorder %v245_v5, 0.0  ;;  %v373_v12 = vmul.f32 0.2, %v245_v5  ;;  %v247_v13 = vadd.f32 %v985_v4, %v179_v6 }
  0x37   :  { %v436_v15 = vsel %vm308_vm14, %v244_v0, %v372_v9  ;;  %vm310_vm0 = vcmp.gt.f32.partialorder %v246_v10, 0.0  ;;  %v374_v16 = vmul.f32 0.2, %v246_v10  ;;  %v673_v17 = vunpack.c.h.bf16 %v906_v59  ;;  %v912_v59 = vld [vmem:[%s1304_s0 + $0xb8] sm:$0xff]  }
  0x38   :  { %934 = vst [vmem:[%s1307_s3 + $0x70] sm:$0xff] %v803_v11   ;;  %v437_v19 = vsel %vm309_vm15, %v245_v5, %v373_v12  ;;  %vm311_vm1 = vcmp.gt.f32.partialorder %v247_v13, 0.0  ;;  %v375_v20 = vmul.f32 0.2, %v247_v13  ;;  %v180_v21 = vmul.f32 %v980_v1, %v672_v7 }
  0x39   :  { %v808_v22 = vpack.c.bf16 %v437_v19, %v436_v15  ;;  %v438_v23 = vsel %vm310_vm0, %v246_v10, %v374_v16  ;;  %v181_v24 = vmul.f32 %v980_v1, %v673_v17  ;;  %v676_v25 = vunpack.c.l.bf16 %v907_v14 }
  0x3a   :  { %v439_v26 = vsel %vm311_vm1, %v247_v13, %v375_v20  ;;  %v248_v27 = vadd.f32 %v985_v4, %v180_v21  ;;  %v677_v28 = vunpack.c.h.bf16 %v907_v14  ;;  %v680_v29 = vunpack.c.l.bf16 %v908_v18 }
  0x3b   :  { %935 = vst [vmem:[%s1307_s3 + $0x78] sm:$0xff] %v808_v22   ;;  %v813_v30 = vpack.c.bf16 %v439_v26, %v438_v23  ;;  %v249_v31 = vadd.f32 %v985_v4, %v181_v24  ;;  %v182_v32 = vmul.f32 %v980_v1, %v676_v25  ;;  %v681_v33 = vunpack.c.h.bf16 %v908_v18  ;;  %v913_v26 = vld [vmem:[%s1304_s0 + $0xc0] sm:$0xff]  }
  0x3c   :  { %vm312_vm2 = vcmp.gt.f32.partialorder %v248_v27, 0.0  ;;  %v376_v35 = vmul.f32 0.2, %v248_v27  ;;  %v183_v36 = vmul.f32 %v980_v1, %v677_v28  ;;  %v184_v37 = vmul.f32 %v980_v1, %v680_v29 }
  0x3d   :  { %936 = vst [vmem:[%s1307_s3 + $0x80] sm:$0xff] %v813_v30   ;;  %vm313_vm3 = vcmp.gt.f32.partialorder %v249_v31, 0.0  ;;  %v377_v38 = vmul.f32 0.2, %v249_v31  ;;  %v250_v39 = vadd.f32 %v985_v4, %v182_v32  ;;  %v185_v40 = vmul.f32 %v980_v1, %v681_v33  ;;  %v914_v30 = vld [vmem:[%s1304_s0 + $0xc8] sm:$0xff]  }
  0x3e   :  { %v440_v41 = vsel %vm312_vm2, %v248_v27, %v376_v35  ;;  %v251_v42 = vadd.f32 %v985_v4, %v183_v36  ;;  %v252_v43 = vadd.f32 %v985_v4, %v184_v37  ;;  %v684_v44 = vunpack.c.l.bf16 %v909_v34 }
  0x3f   :  { %v441_v45 = vsel %vm313_vm3, %v249_v31, %v377_v38  ;;  %vm314_vm4 = vcmp.gt.f32.partialorder %v250_v39, 0.0  ;;  %v378_v46 = vmul.f32 0.2, %v250_v39  ;;  %v253_v47 = vadd.f32 %v985_v4, %v185_v40 }
  0x40   :  { %v818_v49 = vpack.c.bf16 %v441_v45, %v440_v41  ;;  %vm315_vm5 = vcmp.gt.f32.partialorder %v251_v42, 0.0  ;;  %v379_v50 = vmul.f32 0.2, %v251_v42  ;;  %vm316_vm6 = vcmp.gt.f32.partialorder %v252_v43, 0.0 }
  0x41   :  { %v442_v51 = vsel %vm314_vm4, %v250_v39, %v378_v46  ;;  %vm317_vm7 = vcmp.gt.f32.partialorder %v253_v47, 0.0  ;;  %v380_v52 = vmul.f32 0.2, %v252_v43  ;;  %v381_v53 = vmul.f32 0.2, %v253_v47 }
  0x42   :  { %937 = vst [vmem:[%s1307_s3 + $0x88] sm:$0xff] %v818_v49   ;;  %v443_v54 = vsel %vm315_vm5, %v251_v42, %v379_v50  ;;  %v685_v55 = vunpack.c.h.bf16 %v909_v34  ;;  %v186_v56 = vmul.f32 %v980_v1, %v684_v44  ;;  %v688_v57 = vunpack.c.l.bf16 %v910_v48  ;;  %v915_v42 = vld [vmem:[%s1304_s0 + $0xd0] sm:$0xff]  }
  0x43   :  { %v823_v60 = vpack.c.bf16 %v443_v54, %v442_v51  ;;  %v444_v61 = vsel %vm316_vm6, %v252_v43, %v380_v52  ;;  %v445_v62 = vsel %vm317_vm7, %v253_v47, %v381_v53  ;;  %v689_v63 = vunpack.c.h.bf16 %v910_v48 }
  0x44   :  { %v828_v0 = vpack.c.bf16 %v445_v62, %v444_v61  ;;  %v187_v2 = vmul.f32 %v980_v1, %v685_v55  ;;  %v254_v3 = vadd.f32 %v985_v4, %v186_v56  ;;  %v188_v5 = vmul.f32 %v980_v1, %v688_v57 }
  0x45   :  { %938 = vst [vmem:[%s1307_s3 + $0x90] sm:$0xff] %v823_v60   ;;  %v189_v6 = vmul.f32 %v980_v1, %v689_v63  ;;  %v692_v7 = vunpack.c.l.bf16 %v911_v58  ;;  %v693_v8 = vunpack.c.h.bf16 %v911_v58  ;;  %v696_v9 = vunpack.c.l.bf16 %v912_v59 }
  0x46   :  { %939 = vst [vmem:[%s1307_s3 + $0x98] sm:$0xff] %v828_v0   ;;  %v255_v10 = vadd.f32 %v985_v4, %v187_v2  ;;  %vm318_vm8 = vcmp.gt.f32.partialorder %v254_v3, 0.0  ;;  %v382_v11 = vmul.f32 0.2, %v254_v3  ;;  %v256_v12 = vadd.f32 %v985_v4, %v188_v5  ;;  %v916_v2 = vld [vmem:[%s1304_s0 + $0xd8] sm:$0xff]  }
  0x47   :  { %v257_v13 = vadd.f32 %v985_v4, %v189_v6  ;;  %v190_v14 = vmul.f32 %v980_v1, %v692_v7  ;;  %v191_v15 = vmul.f32 %v980_v1, %v693_v8  ;;  %v697_v16 = vunpack.c.h.bf16 %v912_v59  ;;  %v917_v8 = vld [vmem:[%s1304_s0 + $0xe0] sm:$0xff]  }
  0x48   :  { %vm319_vm9 = vcmp.gt.f32.partialorder %v255_v10, 0.0  ;;  %v383_v17 = vmul.f32 0.2, %v255_v10  ;;  %v446_v18 = vsel %vm318_vm8, %v254_v3, %v382_v11  ;;  %vm320_vm10 = vcmp.gt.f32.partialorder %v256_v12, 0.0 }
  0x49   :  { %vm321_vm11 = vcmp.gt.f32.partialorder %v257_v13, 0.0  ;;  %v384_v19 = vmul.f32 0.2, %v256_v12  ;;  %v385_v20 = vmul.f32 0.2, %v257_v13  ;;  %v258_v21 = vadd.f32 %v985_v4, %v190_v14 }
  0x4a   :  { %v447_v22 = vsel %vm319_vm9, %v255_v10, %v383_v17  ;;  %v259_v23 = vadd.f32 %v985_v4, %v191_v15  ;;  %v192_v24 = vmul.f32 %v980_v1, %v696_v9  ;;  %v193_v25 = vmul.f32 %v980_v1, %v697_v16 }
  0x4b   :  { %v833_v27 = vpack.c.bf16 %v447_v22, %v446_v18  ;;  %v448_v28 = vsel %vm320_vm10, %v256_v12, %v384_v19  ;;  %v449_v29 = vsel %vm321_vm11, %v257_v13, %v385_v20  ;;  %vm322_vm12 = vcmp.gt.f32.partialorder %v258_v21, 0.0  ;;  %v918_v12 = vld [vmem:[%s1304_s0 + $0xe8] sm:$0xff]   ;;  %v919_v20 = vld [vmem:[%s1304_s0 + $0xf0] sm:$0xff]  }
  0x4c   :  { %v838_v31 = vpack.c.bf16 %v449_v29, %v448_v28  ;;  %vm323_vm13 = vcmp.gt.f32.partialorder %v259_v23, 0.0  ;;  %v386_v32 = vmul.f32 0.2, %v258_v21  ;;  %v387_v33 = vmul.f32 0.2, %v259_v23 }
  0x4d   :  { %940 = vst [vmem:[%s1307_s3 + $0xa0] sm:$0xff] %v833_v27   ;;  %v260_v34 = vadd.f32 %v985_v4, %v192_v24  ;;  %v261_v35 = vadd.f32 %v985_v4, %v193_v25  ;;  %v700_v36 = vunpack.c.l.bf16 %v913_v26  ;;  %v701_v37 = vunpack.c.h.bf16 %v913_v26 }
  0x4e   :  { %941 = vst [vmem:[%s1307_s3 + $0xa8] sm:$0xff] %v838_v31   ;;  %v450_v38 = vsel %vm322_vm12, %v258_v21, %v386_v32  ;;  %v451_v39 = vsel %vm323_vm13, %v259_v23, %v387_v33  ;;  %v704_v40 = vunpack.c.l.bf16 %v914_v30  ;;  %v705_v41 = vunpack.c.h.bf16 %v914_v30 }
  0x4f   :  { %v843_v43 = vpack.c.bf16 %v451_v39, %v450_v38  ;;  %vm324_vm14 = vcmp.gt.f32.partialorder %v260_v34, 0.0  ;;  %vm325_vm15 = vcmp.gt.f32.partialorder %v261_v35, 0.0  ;;  %v388_v44 = vmul.f32 0.2, %v260_v34 }
  0x50   :  { %v389_v45 = vmul.f32 0.2, %v261_v35  ;;  %v194_v46 = vmul.f32 %v980_v1, %v700_v36  ;;  %v195_v47 = vmul.f32 %v980_v1, %v701_v37  ;;  %v196_v48 = vmul.f32 %v980_v1, %v704_v40 }
  0x51   :  { %942 = vst [vmem:[%s1307_s3 + $0xb0] sm:$0xff] %v843_v43   ;;  %v452_v49 = vsel %vm324_vm14, %v260_v34, %v388_v44  ;;  %v197_v50 = vmul.f32 %v980_v1, %v705_v41  ;;  %v708_v51 = vunpack.c.l.bf16 %v915_v42  ;;  %v709_v52 = vunpack.c.h.bf16 %v915_v42 }
  0x52   :  { %v453_v53 = vsel %vm325_vm15, %v261_v35, %v389_v45  ;;  %v262_v54 = vadd.f32 %v985_v4, %v194_v46  ;;  %v263_v55 = vadd.f32 %v985_v4, %v195_v47  ;;  %v264_v56 = vadd.f32 %v985_v4, %v196_v48  ;;  %v920_v48 = vld [vmem:[%s1304_s0 + $0xf8] sm:$0xff]  }
  0x53   :  { %v848_v57 = vpack.c.bf16 %v453_v53, %v452_v49  ;;  %v265_v58 = vadd.f32 %v985_v4, %v197_v50  ;;  %v198_v59 = vmul.f32 %v980_v1, %v708_v51  ;;  %v199_v60 = vmul.f32 %v980_v1, %v709_v52 }
  0x54   :  { %vm326_vm0 = vcmp.gt.f32.partialorder %v262_v54, 0.0  ;;  %vm327_vm1 = vcmp.gt.f32.partialorder %v263_v55, 0.0  ;;  %v390_v61 = vmul.f32 0.2, %v262_v54  ;;  %v391_v62 = vmul.f32 0.2, %v263_v55 }
  0x55   :  { %943 = vst [vmem:[%s1307_s3 + $0xb8] sm:$0xff] %v848_v57   ;;  %vm328_vm2 = vcmp.gt.f32.partialorder %v264_v56, 0.0  ;;  %vm329_vm3 = vcmp.gt.f32.partialorder %v265_v58, 0.0  ;;  %v392_v63 = vmul.f32 0.2, %v264_v56  ;;  %v266_v0 = vadd.f32 %v985_v4, %v198_v59 }
  0x56   :  { %v454_v3 = vsel %vm326_vm0, %v262_v54, %v390_v61  ;;  %v455_v5 = vsel %vm327_vm1, %v263_v55, %v391_v62  ;;  %v393_v6 = vmul.f32 0.2, %v265_v58  ;;  %v267_v7 = vadd.f32 %v985_v4, %v199_v60 }
  0x57   :  { %v853_v9 = vpack.c.bf16 %v455_v5, %v454_v3  ;;  %v456_v10 = vsel %vm328_vm2, %v264_v56, %v392_v63  ;;  %vm330_vm4 = vcmp.gt.f32.partialorder %v266_v0, 0.0  ;;  %v394_v11 = vmul.f32 0.2, %v266_v0 }
  0x58   :  { %v457_v13 = vsel %vm329_vm3, %v265_v58, %v393_v6  ;;  %vm331_vm5 = vcmp.gt.f32.partialorder %v267_v7, 0.0  ;;  %v395_v14 = vmul.f32 0.2, %v267_v7  ;;  %v712_v15 = vunpack.c.l.bf16 %v916_v2 }
  0x59   :  { %944 = vst [vmem:[%s1307_s3 + $0xc0] sm:$0xff] %v853_v9   ;;  %v858_v16 = vpack.c.bf16 %v457_v13, %v456_v10  ;;  %v458_v17 = vsel %vm330_vm4, %v266_v0, %v394_v11  ;;  %v713_v18 = vunpack.c.h.bf16 %v916_v2  ;;  %v716_v19 = vunpack.c.l.bf16 %v917_v8 }
  0x5a   :  { %v459_v21 = vsel %vm331_vm5, %v267_v7, %v395_v14  ;;  %v200_v22 = vmul.f32 %v980_v1, %v712_v15  ;;  %v717_v23 = vunpack.c.h.bf16 %v917_v8  ;;  %v720_v24 = vunpack.c.l.bf16 %v918_v12 }
  0x5b   :  { %945 = vst [vmem:[%s1307_s3 + $0xc8] sm:$0xff] %v858_v16   ;;  %v863_v25 = vpack.c.bf16 %v459_v21, %v458_v17  ;;  %v201_v26 = vmul.f32 %v980_v1, %v713_v18  ;;  %v202_v27 = vmul.f32 %v980_v1, %v716_v19  ;;  %v721_v28 = vunpack.c.h.bf16 %v918_v12 }
  0x5c   :  { %v268_v29 = vadd.f32 %v985_v4, %v200_v22  ;;  %v203_v30 = vmul.f32 %v980_v1, %v717_v23  ;;  %v204_v31 = vmul.f32 %v980_v1, %v720_v24  ;;  %v724_v32 = vunpack.c.l.bf16 %v919_v20 }
  0x5d   :  { %946 = vst [vmem:[%s1307_s3 + $0xd0] sm:$0xff] %v863_v25   ;;  %v269_v33 = vadd.f32 %v985_v4, %v201_v26  ;;  %v270_v34 = vadd.f32 %v985_v4, %v202_v27  ;;  %v205_v35 = vmul.f32 %v980_v1, %v721_v28  ;;  %v725_v36 = vunpack.c.h.bf16 %v919_v20 }
  0x5e   :  { %vm332_vm6 = vcmp.gt.f32.partialorder %v268_v29, 0.0  ;;  %v396_v37 = vmul.f32 0.2, %v268_v29  ;;  %v271_v38 = vadd.f32 %v985_v4, %v203_v30  ;;  %v272_v39 = vadd.f32 %v985_v4, %v204_v31 }
  0x5f   :  { %vm333_vm7 = vcmp.gt.f32.partialorder %v269_v33, 0.0  ;;  %v397_v40 = vmul.f32 0.2, %v269_v33  ;;  %vm334_vm8 = vcmp.gt.f32.partialorder %v270_v34, 0.0  ;;  %v398_v41 = vmul.f32 0.2, %v270_v34 }
  0x60   :  { %v460_v42 = vsel %vm332_vm6, %v268_v29, %v396_v37  ;;  %vm335_vm9 = vcmp.gt.f32.partialorder %v271_v38, 0.0  ;;  %v399_v43 = vmul.f32 0.2, %v271_v38  ;;  %v273_v44 = vadd.f32 %v985_v4, %v205_v35 }
  0x61   :  { %v461_v45 = vsel %vm333_vm7, %v269_v33, %v397_v40  ;;  %v462_v46 = vsel %vm334_vm8, %v270_v34, %v398_v41  ;;  %vm336_vm10 = vcmp.gt.f32.partialorder %v272_v39, 0.0  ;;  %v400_v47 = vmul.f32 0.2, %v272_v39 }
  0x62   :  { %v868_v49 = vpack.c.bf16 %v461_v45, %v460_v42  ;;  %v463_v50 = vsel %vm335_vm9, %v271_v38, %v399_v43  ;;  %vm337_vm11 = vcmp.gt.f32.partialorder %v273_v44, 0.0  ;;  %v401_v51 = vmul.f32 0.2, %v273_v44 }
  0x63   :  { %v873_v52 = vpack.c.bf16 %v463_v50, %v462_v46  ;;  %v464_v53 = vsel %vm336_vm10, %v272_v39, %v400_v47  ;;  %v206_v54 = vmul.f32 %v980_v1, %v724_v32  ;;  %v207_v55 = vmul.f32 %v980_v1, %v725_v36 }
  0x64   :  { %947 = vst [vmem:[%s1307_s3 + $0xd8] sm:$0xff] %v868_v49   ;;  %v465_v56 = vsel %vm337_vm11, %v273_v44, %v401_v51  ;;  %v728_v57 = vunpack.c.l.bf16 %v920_v48  ;;  %v729_v58 = vunpack.c.h.bf16 %v920_v48 }
  0x65   :  { %948 = vst [vmem:[%s1307_s3 + $0xe0] sm:$0xff] %v873_v52   ;;  %v878_v59 = vpack.c.bf16 %v465_v56, %v464_v53  ;;  %v274_v60 = vadd.f32 %v985_v4, %v206_v54  ;;  %v275_v61 = vadd.f32 %v985_v4, %v207_v55 }
  0x66   :  { %v208_v62 = vmul.f32 %v980_v1, %v728_v57  ;;  %v209_v63 = vmul.f32 %v980_v1, %v729_v58 }
  0x67   :  { %949 = vst [vmem:[%s1307_s3 + $0xe8] sm:$0xff] %v878_v59   ;;  %vm338_vm12 = vcmp.gt.f32.partialorder %v274_v60, 0.0  ;;  %vm339_vm13 = vcmp.gt.f32.partialorder %v275_v61, 0.0  ;;  %v402_v0 = vmul.f32 0.2, %v274_v60 }
  0x68   :  { %v403_v2 = vmul.f32 0.2, %v275_v61  ;;  %v276_v3 = vadd.f32 %v985_v4, %v208_v62  ;;  %v277_v5 = vadd.f32 %v985_v4, %v209_v63 }
  0x69   :  { %v466_v6 = vsel %vm338_vm12, %v274_v60, %v402_v0 }
  0x6a   :  { %v467_v7 = vsel %vm339_vm13, %v275_v61, %v403_v2  ;;  %vm340_vm14 = vcmp.gt.f32.partialorder %v276_v3, 0.0  ;;  %vm341_vm15 = vcmp.gt.f32.partialorder %v277_v5, 0.0  ;;  %v404_v8 = vmul.f32 0.2, %v276_v3 }
  0x6b   :  { %v883_v9 = vpack.c.bf16 %v467_v7, %v466_v6  ;;  %v405_v10 = vmul.f32 0.2, %v277_v5 }
  0x6c   :  { %v468_v1 = vsel %vm340_vm14, %v276_v3, %v404_v8 }
  0x6d   :  { %950 = vst [vmem:[%s1307_s3 + $0xf0] sm:$0xff] %v883_v9   ;;  %v469_v11 = vsel %vm341_vm15, %v277_v5, %v405_v10 }
  0x6e   :  { %v888_v12 = vpack.c.bf16 %v469_v11, %v468_v1 }
  0x70   :  { %951 = vst [vmem:[%s1307_s3 + $0xf8] sm:$0xff] %v888_v12  }

// kernel: cond_dcgan_forward.32
= control target key start
LH: loop header
LB: loop body
LE: loop exit
PB: predicated region body
PF: predicated region fallthrough
CT: control target
= control target key end

     0   :  { %s856_s1 = inlined_call_operand.vmem [shape: bf16[256,128], index: 1, kind: input, shape index: {}]   ;;  %s857_s0 = inlined_call_operand.vmem [shape: bf16[128,256], index: 0, kind: input, shape index: {}]   ;;  %s858_s2 = inlined_call_operand.vmem [shape: bf16[128,128], index: 2, kind: output, shape index: {0}]   ;;  %s859_s3 = inlined_call_operand.vmem [shape: f32[8,128], index: 3, kind: output, shape index: {1}]   ;;  %s860_s4 = inlined_call_operand.vmem [shape: f32[8,128], index: 4, kind: output, shape index: {2}]  }
   0x1   :  { %v579_v0 = vld [vmem:[%s856_s1 + $0x38] sm:$0xff]  ;;  %v578_v2 = vld [vmem:[%s856_s1 + $0x30] sm:$0xff]  ;;  %v577_v4 = vld [vmem:[%s856_s1 + $0x28] sm:$0xff] }
   0x2   :  { %v587_v1 = vld [vmem:[%s856_s1 + $0x78] sm:$0xff]  ;;  %238 = vmatpush.bf16.msra.mxu0 %v579_v0  ;;  %635 = vmatpush.bf16.msra.mxu2 %v579_v0  ;;  %v586_v3 = vld [vmem:[%s856_s1 + $0x70] sm:$0xff]  ;;  %v585_v5 = vld [vmem:[%s856_s1 + $0x68] sm:$0xff] }
   0x3   :  { %287 = vmatpush.bf16.msra.mxu1 %v587_v1  ;;  %643 = vmatpush.bf16.msra.mxu3 %v587_v1  ;;  %v576_v6 = vld [vmem:[%s856_s1 + $0x20] sm:$0xff]  ;;  %v575_v8 = vld [vmem:[%s856_s1 + $0x18] sm:$0xff]  ;;  %v574_v10 = vld [vmem:[%s856_s1 + $0x10] sm:$0xff] }
   0x4   :  { %v584_v7 = vld [vmem:[%s856_s1 + $0x60] sm:$0xff]  ;;  %v583_v9 = vld [vmem:[%s856_s1 + $0x58] sm:$0xff]  ;;  %v582_v11 = vld [vmem:[%s856_s1 + $0x50] sm:$0xff] }
   0x5   :  { %v573_v12 = vld [vmem:[%s856_s1 + $0x8] sm:$0xff]  ;;  %v572_v14 = vld [vmem:[%s856_s1] sm:$0xff]  ;;  %v438_v28 = vld [vmem:[%s857_s0 + $0x10] sm:$0xf] }
   0x6   :  { %239 = vmatpush.bf16.msra.mxu0 %v578_v2  ;;  %636 = vmatpush.bf16.msra.mxu2 %v578_v2  ;;  %v581_v13 = vld [vmem:[%s856_s1 + $0x48] sm:$0xff]  ;;  %v580_v15 = vld [vmem:[%s856_s1 + $0x40] sm:$0xff]  ;;  %v559_v29 = vld [vmem:[%s857_s0 + $0x14] sm:$0xf0] }
   0x7   :  { %288 = vmatpush.bf16.msra.mxu1 %v586_v3  ;;  %644 = vmatpush.bf16.msra.mxu3 %v586_v3  ;;  %v430_v16 = vld [vmem:[%s857_s0] sm:$0xf]  ;;  %v557_v17 = vld [vmem:[%s857_s0 + $0x4] sm:$0xf0]  ;;  %v556_v20 = vld [vmem:[%s857_s0 + $0x4] sm:$0xf]  ;;  %v439_v36 = vor.u32 %v559_v29, %v438_v28 }
   0x8   :  { %v462_v18 = vld [vmem:[%s857_s0 + $0x40] sm:$0xf]  ;;  %v565_v19 = vld [vmem:[%s857_s0 + $0x44] sm:$0xf0]  ;;  %v432_v21 = vld [vmem:[%s857_s0 + $0x8] sm:$0xf0]  ;;  %v431_v24 = vor.u32 %v557_v17, %v430_v16 }
   0x9   :  { %v564_v22 = vld [vmem:[%s857_s0 + $0x44] sm:$0xf]  ;;  %v464_v23 = vld [vmem:[%s857_s0 + $0x48] sm:$0xf0]  ;;  %v463_v25 = vor.u32 %v565_v19, %v462_v18  ;;  %v435_v26 = vor.u32 %v556_v20, %v432_v21  ;;  %v470_v30 = vld [vmem:[%s857_s0 + $0x50] sm:$0xf] }
   0xa   :  { %240 = vmatpush.bf16.msra.mxu0 %v577_v4  ;;  %637 = vmatpush.bf16.msra.mxu2 %v577_v4  ;;  %v467_v27 = vor.u32 %v564_v22, %v464_v23  ;;  %v567_v31 = vld [vmem:[%s857_s0 + $0x54] sm:$0xf0]  ;;  %v558_v32 = vld [vmem:[%s857_s0 + $0x14] sm:$0xf]  ;;  %v440_v33 = vld [vmem:[%s857_s0 + $0x18] sm:$0xf0] }
   0xb   :  { %289 = vmatpush.bf16.msra.mxu1 %v585_v5  ;;  %645 = vmatpush.bf16.msra.mxu3 %v585_v5  ;;  %v566_v34 = vld [vmem:[%s857_s0 + $0x54] sm:$0xf]  ;;  %v472_v35 = vld [vmem:[%s857_s0 + $0x58] sm:$0xf0]  ;;  %v471_v37 = vor.u32 %v567_v31, %v470_v30  ;;  %v443_v38 = vor.u32 %v558_v32, %v440_v33  ;;  %v446_v40 = vld [vmem:[%s857_s0 + $0x20] sm:$0xf] }
   0xc   :  { %v475_v39 = vor.u32 %v566_v34, %v472_v35  ;;  %v561_v41 = vld [vmem:[%s857_s0 + $0x24] sm:$0xf0]  ;;  %v478_v42 = vld [vmem:[%s857_s0 + $0x60] sm:$0xf]  ;;  %v560_v44 = vld [vmem:[%s857_s0 + $0x24] sm:$0xf] }
   0xd   :  { %v569_v43 = vld [vmem:[%s857_s0 + $0x64] sm:$0xf0]  ;;  %v448_v45 = vld [vmem:[%s857_s0 + $0x28] sm:$0xf0]  ;;  %v568_v46 = vld [vmem:[%s857_s0 + $0x64] sm:$0xf]  ;;  %v447_v48 = vor.u32 %v561_v41, %v446_v40 }
   0xe   :  { %241 = vmatpush.bf16.msra.mxu0 %v576_v6  ;;  %638 = vmatpush.bf16.msra.mxu2 %v576_v6  ;;  %v480_v47 = vld [vmem:[%s857_s0 + $0x68] sm:$0xf0]  ;;  %v479_v49 = vor.u32 %v569_v43, %v478_v42  ;;  %v451_v50 = vor.u32 %v560_v44, %v448_v45  ;;  %v454_v52 = vld [vmem:[%s857_s0 + $0x30] sm:$0xf]  ;;  %v563_v53 = vld [vmem:[%s857_s0 + $0x34] sm:$0xf0] }
   0xf   :  { %290 = vmatpush.bf16.msra.mxu1 %v584_v7  ;;  %646 = vmatpush.bf16.msra.mxu3 %v584_v7  ;;  %v483_v51 = vor.u32 %v568_v46, %v480_v47  ;;  %v486_v54 = vld [vmem:[%s857_s0 + $0x70] sm:$0xf]  ;;  %v571_v55 = vld [vmem:[%s857_s0 + $0x74] sm:$0xf0]  ;;  %v562_v56 = vld [vmem:[%s857_s0 + $0x34] sm:$0xf]  ;;  %v455_v60 = vor.u32 %v563_v53, %v454_v52 }
  0x10   :  { %v456_v57 = vld [vmem:[%s857_s0 + $0x38] sm:$0xf0]  ;;  %v570_v58 = vld [vmem:[%s857_s0 + $0x74] sm:$0xf]  ;;  %v487_v61 = vor.u32 %v571_v55, %v486_v54 }
  0x11   :  { %v488_v59 = vld [vmem:[%s857_s0 + $0x78] sm:$0xf0]  ;;  %v459_v62 = vor.u32 %v562_v56, %v456_v57 }
  0x12   :  { %242 = vmatpush.bf16.msra.mxu0 %v575_v8  ;;  %639 = vmatpush.bf16.msra.mxu2 %v575_v8  ;;  %v491_v63 = vor.u32 %v570_v58, %v488_v59 }
  0x13   :  { %291 = vmatpush.bf16.msra.mxu1 %v583_v9  ;;  %647 = vmatpush.bf16.msra.mxu3 %v583_v9 }
  0x16   :  { %243 = vmatpush.bf16.msra.mxu0 %v574_v10  ;;  %640 = vmatpush.bf16.msra.mxu2 %v574_v10 }
  0x17   :  { %292 = vmatpush.bf16.msra.mxu1 %v582_v11  ;;  %648 = vmatpush.bf16.msra.mxu3 %v582_v11 }
  0x1a   :  { %244 = vmatpush.bf16.msra.mxu0 %v573_v12  ;;  %641 = vmatpush.bf16.msra.mxu2 %v573_v12 }
  0x1b   :  { %293 = vmatpush.bf16.msra.mxu1 %v581_v13  ;;  %649 = vmatpush.bf16.msra.mxu3 %v581_v13 }
  0x1e   :  { %245 = vmatpush.bf16.msra.mxu0 %v572_v14  ;;  %642 = vmatpush.bf16.msra.mxu2 %v572_v14 }
  0x1f   :  { %294 = vmatpush.bf16.msra.mxu1 %v580_v15  ;;  %650 = vmatpush.bf16.msra.mxu3 %v580_v15 }
  0x21   :  { %246 = vmatmul.bf16.vlgmr.msra.gmra.mxu0 %v431_v24  ;;  %266 = vmatmul.bf16.vlgmr.msra.gmra.mxu2 %v463_v25 }
  0x22   :  { %295 = vmatmul.bf16.vlgmr.msra.gmra.mxu1 %v435_v26  ;;  %315 = vmatmul.bf16.vlgmr.msra.gmra.mxu3 %v467_v27 }
  0x31   :  { %251 = vmatmul.bf16.gmra.mxu0 %v439_v36  ;;  %271 = vmatmul.bf16.gmra.mxu2 %v471_v37 }
  0x32   :  { %300 = vmatmul.bf16.gmra.mxu1 %v443_v38  ;;  %320 = vmatmul.bf16.gmra.mxu3 %v475_v39 }
  0x41   :  { %256 = vmatmul.bf16.gmra.mxu0 %v447_v48  ;;  %276 = vmatmul.bf16.gmra.mxu2 %v479_v49 }
  0x42   :  { %305 = vmatmul.bf16.gmra.mxu1 %v451_v50  ;;  %325 = vmatmul.bf16.gmra.mxu3 %v483_v51 }
  0x51   :  { %261 = vmatmul.bf16.gmra.mxu0 %v455_v60  ;;  %281 = vmatmul.bf16.gmra.mxu2 %v487_v61 }
  0x52   :  { %310 = vmatmul.bf16.gmra.mxu1 %v459_v62  ;;  %330 = vmatmul.bf16.gmra.mxu3 %v491_v63 }
  0x9e   :  { %v247_v0 = vpop.f32.mrf.mxu0 }
  0x9f   :  { %v296_v1 = vpop.f32.mrf.mxu1 }
  0xa0   :  { %v297_v6 = vadd.f32 %v296_v1, %v247_v0 }
  0xa2   :  { %v368_v49 = vmul.f32 %v297_v6, %v297_v6 }
  0xa4   :  { %v267_v2 = vpop.f32.mrf.mxu2 }
  0xa5   :  { %v316_v3 = vpop.f32.mrf.mxu3 }
  0xa6   :  { %v249_v4 = vpop.f32.mrf.mxu0  ;;  %v317_v11 = vadd.f32 %v316_v3, %v267_v2 }
  0xa7   :  { %v298_v5 = vpop.f32.mrf.mxu1 }
  0xa8   :  { %v299_v7 = vadd.f32 %v298_v5, %v249_v4  ;;  %v385_v56 = vmul.f32 %v317_v11, %v317_v11 }
  0xaa   :  { %v591_v8 = vpack.c.bf16 %v299_v7, %v297_v6  ;;  %v369_v47 = vmul.f32 %v299_v7, %v299_v7 }
  0xac   :  { %592 = vst [vmem:[%s858_s2] sm:$0xff] %v591_v8   ;;  %v269_v9 = vpop.f32.mrf.mxu2 }
  0xad   :  { %v318_v10 = vpop.f32.mrf.mxu3 }
  0xae   :  { %v319_v12 = vadd.f32 %v318_v10, %v269_v9  ;;  %v252_v13 = vpop.f32.mrf.mxu0 }
  0xaf   :  { %v301_v14 = vpop.f32.mrf.mxu1 }
  0xb0   :  { %v611_v15 = vpack.c.bf16 %v319_v12, %v317_v11  ;;  %v302_v20 = vadd.f32 %v301_v14, %v252_v13  ;;  %v388_v61 = vmul.f32 %v319_v12, %v319_v12 }
  0xb2   :  { %631 = vst [vmem:[%s858_s2 + $0x20] sm:$0xff] %v611_v15   ;;  %v370_v57 = vmul.f32 %v302_v20, %v302_v20 }
  0xb4   :  { %v272_v16 = vpop.f32.mrf.mxu2 }
  0xb5   :  { %v321_v17 = vpop.f32.mrf.mxu3 }
  0xb6   :  { %v254_v18 = vpop.f32.mrf.mxu0  ;;  %v322_v25 = vadd.f32 %v321_v17, %v272_v16 }
  0xb7   :  { %v303_v19 = vpop.f32.mrf.mxu1 }
  0xb8   :  { %v304_v21 = vadd.f32 %v303_v19, %v254_v18  ;;  %v391_v62 = vmul.f32 %v322_v25, %v322_v25 }
  0xba   :  { %v596_v22 = vpack.c.bf16 %v304_v21, %v302_v20  ;;  %v371_v2 = vmul.f32 %v304_v21, %v304_v21 }
  0xbc   :  { %628 = vst [vmem:[%s858_s2 + $0x8] sm:$0xff] %v596_v22   ;;  %v274_v23 = vpop.f32.mrf.mxu2 }
  0xbd   :  { %v323_v24 = vpop.f32.mrf.mxu3 }
  0xbe   :  { %v829_v26 = vadd.f32 %v323_v24, %v274_v23  ;;  %v257_v27 = vpop.f32.mrf.mxu0 }
  0xbf   :  { %v306_v28 = vpop.f32.mrf.mxu1 }
  0xc0   :  { %v616_v29 = vpack.c.bf16 %v829_v26, %v322_v25  ;;  %v307_v34 = vadd.f32 %v306_v28, %v257_v27 }
  0xc2   :  { %632 = vst [vmem:[%s858_s2 + $0x28] sm:$0xff] %v616_v29   ;;  %v373_v46 = vmul.f32 %v307_v34, %v307_v34  ;;  %v372_v50 = vadd.f32 %v307_v34, %v297_v6 }
  0xc4   :  { %v277_v30 = vpop.f32.mrf.mxu2  ;;  %v374_v58 = vadd.f32 %v373_v46, %v368_v49  ;;  %v384_v3 = vadd.f32 %v372_v50, %v317_v11 }
  0xc5   :  { %v326_v31 = vpop.f32.mrf.mxu3 }
  0xc6   :  { %v259_v32 = vpop.f32.mrf.mxu0  ;;  %v327_v39 = vadd.f32 %v326_v31, %v277_v30  ;;  %v386_v10 = vadd.f32 %v385_v56, %v374_v58 }
  0xc7   :  { %v308_v33 = vpop.f32.mrf.mxu1 }
  0xc8   :  { %v309_v35 = vadd.f32 %v308_v33, %v259_v32  ;;  %v397_v6 = vmul.f32 %v327_v39, %v327_v39  ;;  %v396_v16 = vadd.f32 %v384_v3, %v327_v39 }
  0xca   :  { %v601_v36 = vpack.c.bf16 %v309_v35, %v307_v34  ;;  %v376_v45 = vmul.f32 %v309_v35, %v309_v35  ;;  %v375_v48 = vadd.f32 %v309_v35, %v299_v7 }
  0xcc   :  { %629 = vst [vmem:[%s858_s2 + $0x10] sm:$0xff] %v601_v36   ;;  %v279_v37 = vpop.f32.mrf.mxu2  ;;  %v377_v53 = vadd.f32 %v376_v45, %v369_v47  ;;  %v387_v63 = vadd.f32 %v375_v48, %v319_v12  ;;  %v398_v12 = vadd.f32 %v397_v6, %v386_v10 }
  0xcd   :  { %v328_v38 = vpop.f32.mrf.mxu3 }
  0xce   :  { %v329_v40 = vadd.f32 %v328_v38, %v279_v37  ;;  %v262_v41 = vpop.f32.mrf.mxu0  ;;  %v389_v7 = vadd.f32 %v388_v61, %v377_v53 }
  0xcf   :  { %v311_v42 = vpop.f32.mrf.mxu1 }
  0xd0   :  { %v621_v43 = vpack.c.bf16 %v329_v40, %v327_v39  ;;  %v312_v44 = vadd.f32 %v311_v42, %v262_v41  ;;  %v400_v0 = vmul.f32 %v329_v40, %v329_v40  ;;  %v399_v8 = vadd.f32 %v387_v63, %v329_v40 }
  0xd2   :  { %633 = vst [vmem:[%s858_s2 + $0x30] sm:$0xff] %v621_v43   ;;  %v379_v51 = vmul.f32 %v312_v44, %v312_v44  ;;  %v378_v54 = vadd.f32 %v312_v44, %v302_v20  ;;  %v401_v17 = vadd.f32 %v400_v0, %v389_v7  ;;  %v408_v22 = vadd.f32 %v399_v8, %v396_v16 }
  0xd4   :  { %v282_v52 = vpop.f32.mrf.mxu2  ;;  %v380_v4 = vadd.f32 %v379_v51, %v370_v57  ;;  %v390_v9 = vadd.f32 %v378_v54, %v322_v25  ;;  %v394_v25 = vmul.f32 %v829_v26, %v829_v26  ;;  %v409_v29 = vadd.f32 %v401_v17, %v398_v12 }
  0xd5   :  { %v331_v55 = vpop.f32.mrf.mxu3 }
  0xd6   :  { %v332_v59 = vadd.f32 %v331_v55, %v282_v52  ;;  %v264_v60 = vpop.f32.mrf.mxu0  ;;  %v392_v20 = vadd.f32 %v391_v62, %v380_v4 }
  0xd7   :  { %v313_v1 = vpop.f32.mrf.mxu1 }
  0xd8   :  { %v314_v5 = vadd.f32 %v313_v1, %v264_v60  ;;  %v403_v13 = vmul.f32 %v332_v59, %v332_v59  ;;  %v402_v18 = vadd.f32 %v390_v9, %v332_v59 }
  0xda   :  { %v606_v14 = vpack.c.bf16 %v314_v5, %v312_v44  ;;  %v381_v15 = vadd.f32 %v314_v5, %v304_v21  ;;  %v382_v19 = vmul.f32 %v314_v5, %v314_v5  ;;  %v404_v27 = vadd.f32 %v403_v13, %v392_v20 }
  0xdb   :  { %v410_v30 = vadd.f32 %v408_v22, %v402_v18 }
  0xdc   :  { %630 = vst [vmem:[%s858_s2 + $0x18] sm:$0xff] %v606_v14   ;;  %v284_v11 = vpop.f32.mrf.mxu2  ;;  %v383_v23 = vadd.f32 %v382_v19, %v371_v2  ;;  %v393_v21 = vadd.f32 %v381_v15, %v829_v26  ;;  %v411_v35 = vadd.f32 %v409_v29, %v404_v27 }
  0xdd   :  { %v333_v24 = vpop.f32.mrf.mxu3 }
  0xde   :  { %v334_v28 = vadd.f32 %v333_v24, %v284_v11  ;;  %v395_v32 = vadd.f32 %v394_v25, %v383_v23 }
  0xe0   :  { %v626_v31 = vpack.c.bf16 %v334_v28, %v332_v59  ;;  %v405_v33 = vadd.f32 %v393_v21, %v334_v28  ;;  %v406_v34 = vmul.f32 %v334_v28, %v334_v28 }
  0xe2   :  { %634 = vst [vmem:[%s858_s2 + $0x38] sm:$0xff] %v626_v31   ;;  %v407_v36 = vadd.f32 %v406_v34, %v395_v32  ;;  %v412_v37 = vadd.f32 %v410_v30, %v405_v33 }
  0xe4   :  { %v413_v38 = vadd.f32 %v411_v35, %v407_v36  ;;  %414 = vst [vmem:[%s859_s3] sm:$0xff] %v412_v37 }
  0xe6   :  { %415 = vst [vmem:[%s860_s4] sm:$0xff] %v413_v38 }

// kernel: cond_dcgan_forward.33
= control target key start
LH: loop header
LB: loop body
LE: loop exit
PB: predicated region body
PF: predicated region fallthrough
CT: control target
= control target key end

     0   :  { %s368_s0 = inlined_call_operand.vmem [shape: bf16[128,128], index: 0, kind: input, shape index: {}]   ;;  %s369_s1 = inlined_call_operand.vmem [shape: f32[1,128], index: 1, kind: input, shape index: {}]   ;;  %s370_s2 = inlined_call_operand.vmem [shape: f32[1,128], index: 2, kind: input, shape index: {}]   ;;  %s371_s3 = inlined_call_operand.vmem [shape: bf16[128,128], index: 3, kind: output, shape index: {}]  }
   0x1   :  { %v171_v0 = vld [vmem:[%s368_s0] sm:$0xff]   ;;  %v242_v5 = vld [vmem:[%s368_s0 + $0x8] sm:$0xff]   ;;  %v243_v8 = vld [vmem:[%s368_s0 + $0x10] sm:$0xff]  }
   0x2   :  { %v284_v1 = vld [vmem:[%s369_s1] ss:$0 sm:$0xff]  ;;  %v172_v2 = vunpack.c.l.bf16 %v171_v0  ;;  %v173_v3 = vunpack.c.h.bf16 %v171_v0  ;;  %v176_v6 = vunpack.c.l.bf16 %v242_v5  ;;  %v177_v7 = vunpack.c.h.bf16 %v242_v5  ;;  %v244_v9 = vld [vmem:[%s368_s0 + $0x18] sm:$0xff]   ;;  %v246_v39 = vld [vmem:[%s368_s0 + $0x28] sm:$0xff]  }
   0x3   :  { %v289_v4 = vld [vmem:[%s370_s2] ss:$0 sm:$0xff]  ;;  %v180_v12 = vunpack.c.l.bf16 %v243_v8  ;;  %v181_v13 = vunpack.c.h.bf16 %v243_v8  ;;  %v184_v16 = vunpack.c.l.bf16 %v244_v9  ;;  %v185_v17 = vunpack.c.h.bf16 %v244_v9  ;;  %v247_v49 = vld [vmem:[%s368_s0 + $0x30] sm:$0xff]   ;;  %v248_v57 = vld [vmem:[%s368_s0 + $0x38] sm:$0xff]  }
   0x4   :  { %v50_v10 = vmul.f32 %v284_v1, %v172_v2  ;;  %v51_v11 = vmul.f32 %v284_v1, %v173_v3  ;;  %v52_v14 = vmul.f32 %v284_v1, %v176_v6  ;;  %v53_v15 = vmul.f32 %v284_v1, %v177_v7  ;;  %v245_v38 = vld [vmem:[%s368_s0 + $0x20] sm:$0xff]  }
   0x5   :  { %v54_v20 = vmul.f32 %v284_v1, %v180_v12  ;;  %v55_v21 = vmul.f32 %v284_v1, %v181_v13  ;;  %v56_v24 = vmul.f32 %v284_v1, %v184_v16  ;;  %v57_v25 = vmul.f32 %v284_v1, %v185_v17 }
   0x6   :  { %v70_v18 = vadd.f32 %v289_v4, %v50_v10  ;;  %v71_v19 = vadd.f32 %v289_v4, %v51_v11  ;;  %v72_v22 = vadd.f32 %v289_v4, %v52_v14  ;;  %v73_v23 = vadd.f32 %v289_v4, %v53_v15 }
   0x7   :  { %v74_v32 = vadd.f32 %v289_v4, %v54_v20  ;;  %v75_v33 = vadd.f32 %v289_v4, %v55_v21  ;;  %v76_v37 = vadd.f32 %v289_v4, %v56_v24  ;;  %v77_v43 = vadd.f32 %v289_v4, %v57_v25 }
   0x8   :  { %vm86_vm0 = vcmp.gt.f32.partialorder %v70_v18, 0.0  ;;  %vm87_vm1 = vcmp.gt.f32.partialorder %v71_v19, 0.0  ;;  %v102_v26 = vmul.f32 0.2, %v70_v18  ;;  %v103_v27 = vmul.f32 0.2, %v71_v19 }
   0x9   :  { %vm88_vm2 = vcmp.gt.f32.partialorder %v72_v22, 0.0  ;;  %vm89_vm3 = vcmp.gt.f32.partialorder %v73_v23, 0.0  ;;  %v104_v28 = vmul.f32 0.2, %v72_v22  ;;  %v105_v29 = vmul.f32 0.2, %v73_v23 }
   0xa   :  { %v118_v30 = vsel %vm86_vm0, %v70_v18, %v102_v26  ;;  %v119_v31 = vsel %vm87_vm1, %v71_v19, %v103_v27  ;;  %vm90_vm4 = vcmp.gt.f32.partialorder %v74_v32, 0.0  ;;  %vm91_vm5 = vcmp.gt.f32.partialorder %v75_v33, 0.0 }
   0xb   :  { %v205_v34 = vpack.c.bf16 %v119_v31, %v118_v30  ;;  %v120_v35 = vsel %vm88_vm2, %v72_v22, %v104_v28  ;;  %v121_v36 = vsel %vm89_vm3, %v73_v23, %v105_v29  ;;  %v106_v41 = vmul.f32 0.2, %v74_v32 }
   0xc   :  { %v210_v40 = vpack.c.bf16 %v121_v36, %v120_v35  ;;  %v107_v42 = vmul.f32 0.2, %v75_v33  ;;  %vm92_vm6 = vcmp.gt.f32.partialorder %v76_v37, 0.0  ;;  %v108_v44 = vmul.f32 0.2, %v76_v37 }
   0xd   :  { %206 = vst [vmem:[%s371_s3] sm:$0xff] %v205_v34   ;;  %v122_v45 = vsel %vm90_vm4, %v74_v32, %v106_v41  ;;  %v188_v46 = vunpack.c.l.bf16 %v245_v38  ;;  %v189_v47 = vunpack.c.h.bf16 %v245_v38  ;;  %v192_v48 = vunpack.c.l.bf16 %v246_v39 }
   0xe   :  { %249 = vst [vmem:[%s371_s3 + $0x8] sm:$0xff] %v210_v40   ;;  %v123_v50 = vsel %vm91_vm5, %v75_v33, %v107_v42  ;;  %vm93_vm7 = vcmp.gt.f32.partialorder %v77_v43, 0.0  ;;  %v109_v51 = vmul.f32 0.2, %v77_v43  ;;  %v124_v52 = vsel %vm92_vm6, %v76_v37, %v108_v44 }
   0xf   :  { %v215_v53 = vpack.c.bf16 %v123_v50, %v122_v45  ;;  %v58_v54 = vmul.f32 %v284_v1, %v188_v46  ;;  %v59_v55 = vmul.f32 %v284_v1, %v189_v47  ;;  %v193_v56 = vunpack.c.h.bf16 %v246_v39 }
  0x10   :  { %v125_v58 = vsel %vm93_vm7, %v77_v43, %v109_v51  ;;  %v60_v59 = vmul.f32 %v284_v1, %v192_v48  ;;  %v196_v60 = vunpack.c.l.bf16 %v247_v49  ;;  %v197_v61 = vunpack.c.h.bf16 %v247_v49 }
  0x11   :  { %250 = vst [vmem:[%s371_s3 + $0x10] sm:$0xff] %v215_v53   ;;  %v220_v62 = vpack.c.bf16 %v125_v58, %v124_v52  ;;  %v78_v63 = vadd.f32 %v289_v4, %v58_v54  ;;  %v79_v0 = vadd.f32 %v289_v4, %v59_v55  ;;  %v61_v2 = vmul.f32 %v284_v1, %v193_v56 }
  0x12   :  { %v80_v3 = vadd.f32 %v289_v4, %v60_v59  ;;  %v62_v5 = vmul.f32 %v284_v1, %v196_v60  ;;  %v63_v6 = vmul.f32 %v284_v1, %v197_v61  ;;  %v200_v7 = vunpack.c.l.bf16 %v248_v57 }
  0x13   :  { %251 = vst [vmem:[%s371_s3 + $0x18] sm:$0xff] %v220_v62   ;;  %vm94_vm8 = vcmp.gt.f32.partialorder %v78_v63, 0.0  ;;  %vm95_vm9 = vcmp.gt.f32.partialorder %v79_v0, 0.0  ;;  %v110_v8 = vmul.f32 0.2, %v78_v63  ;;  %v81_v9 = vadd.f32 %v289_v4, %v61_v2 }
  0x14   :  { %v111_v10 = vmul.f32 0.2, %v79_v0  ;;  %vm96_vm10 = vcmp.gt.f32.partialorder %v80_v3, 0.0  ;;  %v112_v11 = vmul.f32 0.2, %v80_v3  ;;  %v82_v12 = vadd.f32 %v289_v4, %v62_v5 }
  0x15   :  { %v126_v13 = vsel %vm94_vm8, %v78_v63, %v110_v8  ;;  %vm97_vm11 = vcmp.gt.f32.partialorder %v81_v9, 0.0  ;;  %v113_v14 = vmul.f32 0.2, %v81_v9  ;;  %v83_v15 = vadd.f32 %v289_v4, %v63_v6 }
  0x16   :  { %v127_v16 = vsel %vm95_vm9, %v79_v0, %v111_v10  ;;  %v128_v17 = vsel %vm96_vm10, %v80_v3, %v112_v11  ;;  %vm98_vm12 = vcmp.gt.f32.partialorder %v82_v12, 0.0  ;;  %v114_v18 = vmul.f32 0.2, %v82_v12 }
  0x17   :  { %v225_v19 = vpack.c.bf16 %v127_v16, %v126_v13  ;;  %v129_v20 = vsel %vm97_vm11, %v81_v9, %v113_v14  ;;  %vm99_vm13 = vcmp.gt.f32.partialorder %v83_v15, 0.0  ;;  %v115_v21 = vmul.f32 0.2, %v83_v15 }
  0x18   :  { %v230_v22 = vpack.c.bf16 %v129_v20, %v128_v17  ;;  %v130_v23 = vsel %vm98_vm12, %v82_v12, %v114_v18  ;;  %v201_v24 = vunpack.c.h.bf16 %v248_v57  ;;  %v64_v25 = vmul.f32 %v284_v1, %v200_v7 }
  0x19   :  { %252 = vst [vmem:[%s371_s3 + $0x20] sm:$0xff] %v225_v19   ;;  %v131_v26 = vsel %vm99_vm13, %v83_v15, %v115_v21 }
  0x1a   :  { %253 = vst [vmem:[%s371_s3 + $0x28] sm:$0xff] %v230_v22   ;;  %v235_v27 = vpack.c.bf16 %v131_v26, %v130_v23  ;;  %v65_v28 = vmul.f32 %v284_v1, %v201_v24  ;;  %v84_v29 = vadd.f32 %v289_v4, %v64_v25 }
  0x1c   :  { %254 = vst [vmem:[%s371_s3 + $0x30] sm:$0xff] %v235_v27   ;;  %v85_v30 = vadd.f32 %v289_v4, %v65_v28  ;;  %vm100_vm14 = vcmp.gt.f32.partialorder %v84_v29, 0.0  ;;  %v116_v31 = vmul.f32 0.2, %v84_v29 }
  0x1e   :  { %vm101_vm15 = vcmp.gt.f32.partialorder %v85_v30, 0.0  ;;  %v117_v32 = vmul.f32 0.2, %v85_v30  ;;  %v132_v33 = vsel %vm100_vm14, %v84_v29, %v116_v31 }
  0x20   :  { %v133_v34 = vsel %vm101_vm15, %v85_v30, %v117_v32 }
  0x21   :  { %v240_v35 = vpack.c.bf16 %v133_v34, %v132_v33 }
  0x23   :  { %255 = vst [vmem:[%s371_s3 + $0x38] sm:$0xff] %v240_v35  }

// kernel: cond_dcgan_forward.34
= control target key start
LH: loop header
LB: loop body
LE: loop exit
PB: predicated region body
PF: predicated region fallthrough
CT: control target
= control target key end

     0   :  { %s818_s1 = inlined_call_operand.vmem [shape: bf16[512,128], index: 1, kind: input, shape index: {}]   ;;  %s819_s0 = inlined_call_operand.vmem [shape: bf16[32,512], index: 0, kind: input, shape index: {}]   ;;  %s820_s2 = inlined_call_operand.vmem [shape: bf16[32,128], index: 2, kind: output, shape index: {0}]   ;;  %s821_s3 = inlined_call_operand.vmem [shape: f32[8,128], index: 3, kind: output, shape index: {1}]   ;;  %s822_s4 = inlined_call_operand.vmem [shape: f32[8,128], index: 4, kind: output, shape index: {2}]  }
   0x1   :  { %v601_v0 = vld [vmem:[%s818_s1 + $0x38] sm:$0xff]  ;;  %v600_v4 = vld [vmem:[%s818_s1 + $0x30] sm:$0xff]  ;;  %v599_v8 = vld [vmem:[%s818_s1 + $0x28] sm:$0xff] }
   0x2   :  { %v609_v1 = vld [vmem:[%s818_s1 + $0x78] sm:$0xff]  ;;  %318 = vmatpush.bf16.msra.mxu0 %v601_v0  ;;  %v608_v5 = vld [vmem:[%s818_s1 + $0x70] sm:$0xff]  ;;  %v607_v9 = vld [vmem:[%s818_s1 + $0x68] sm:$0xff] }
   0x3   :  { %v617_v2 = vld [vmem:[%s818_s1 + $0xb8] sm:$0xff]  ;;  %337 = vmatpush.bf16.msra.mxu1 %v609_v1  ;;  %v616_v6 = vld [vmem:[%s818_s1 + $0xb0] sm:$0xff]  ;;  %v615_v10 = vld [vmem:[%s818_s1 + $0xa8] sm:$0xff] }
   0x4   :  { %v625_v3 = vld [vmem:[%s818_s1 + $0xf8] sm:$0xff]  ;;  %356 = vmatpush.bf16.msra.mxu2 %v617_v2  ;;  %v624_v7 = vld [vmem:[%s818_s1 + $0xf0] sm:$0xff]  ;;  %v623_v11 = vld [vmem:[%s818_s1 + $0xe8] sm:$0xff] }
   0x5   :  { %375 = vmatpush.bf16.msra.mxu3 %v625_v3  ;;  %v598_v12 = vld [vmem:[%s818_s1 + $0x20] sm:$0xff]  ;;  %v597_v16 = vld [vmem:[%s818_s1 + $0x18] sm:$0xff]  ;;  %v596_v20 = vld [vmem:[%s818_s1 + $0x10] sm:$0xff] }
   0x6   :  { %319 = vmatpush.bf16.msra.mxu0 %v600_v4  ;;  %v606_v13 = vld [vmem:[%s818_s1 + $0x60] sm:$0xff]  ;;  %v605_v17 = vld [vmem:[%s818_s1 + $0x58] sm:$0xff]  ;;  %v604_v21 = vld [vmem:[%s818_s1 + $0x50] sm:$0xff] }
   0x7   :  { %338 = vmatpush.bf16.msra.mxu1 %v608_v5  ;;  %v614_v14 = vld [vmem:[%s818_s1 + $0xa0] sm:$0xff]  ;;  %v613_v18 = vld [vmem:[%s818_s1 + $0x98] sm:$0xff]  ;;  %v612_v22 = vld [vmem:[%s818_s1 + $0x90] sm:$0xff] }
   0x8   :  { %357 = vmatpush.bf16.msra.mxu2 %v616_v6  ;;  %v622_v15 = vld [vmem:[%s818_s1 + $0xe0] sm:$0xff]  ;;  %v621_v19 = vld [vmem:[%s818_s1 + $0xd8] sm:$0xff]  ;;  %v620_v23 = vld [vmem:[%s818_s1 + $0xd0] sm:$0xff] }
   0x9   :  { %376 = vmatpush.bf16.msra.mxu3 %v624_v7  ;;  %v595_v24 = vld [vmem:[%s818_s1 + $0x8] sm:$0xff]  ;;  %v594_v28 = vld [vmem:[%s818_s1] sm:$0xff]  ;;  %v588_v33 = vld [vmem:[%s819_s0 + $0xc] sm:$0xf0] }
   0xa   :  { %320 = vmatpush.bf16.msra.mxu0 %v599_v8  ;;  %v603_v25 = vld [vmem:[%s818_s1 + $0x48] sm:$0xff]  ;;  %v602_v29 = vld [vmem:[%s818_s1 + $0x40] sm:$0xff]  ;;  %v430_v35 = vld [vmem:[%s819_s0 + $0x10] sm:$0xf0] }
   0xb   :  { %339 = vmatpush.bf16.msra.mxu1 %v607_v9  ;;  %v611_v26 = vld [vmem:[%s818_s1 + $0x88] sm:$0xff]  ;;  %v610_v30 = vld [vmem:[%s818_s1 + $0x80] sm:$0xff]  ;;  %v589_v37 = vld [vmem:[%s819_s0 + $0x14] sm:$0xf0] }
   0xc   :  { %358 = vmatpush.bf16.msra.mxu2 %v615_v10  ;;  %v619_v27 = vld [vmem:[%s818_s1 + $0xc8] sm:$0xff]  ;;  %v618_v31 = vld [vmem:[%s818_s1 + $0xc0] sm:$0xff]  ;;  %v438_v39 = vld [vmem:[%s819_s0 + $0x18] sm:$0xf0] }
   0xd   :  { %377 = vmatpush.bf16.msra.mxu3 %v623_v11  ;;  %v428_v32 = vld [vmem:[%s819_s0] sm:$0xf]  ;;  %v586_v34 = vld [vmem:[%s819_s0 + $0x4] sm:$0xf]  ;;  %v436_v36 = vld [vmem:[%s819_s0 + $0x8] sm:$0xf] }
   0xe   :  { %321 = vmatpush.bf16.msra.mxu0 %v598_v12  ;;  %v587_v38 = vld [vmem:[%s819_s0 + $0xc] sm:$0xf]  ;;  %v429_v40 = vor.u32 %v588_v33, %v428_v32  ;;  %v433_v41 = vor.u32 %v586_v34, %v430_v35  ;;  %v437_v42 = vor.u32 %v589_v37, %v436_v36  ;;  %v444_v44 = vld [vmem:[%s819_s0 + $0x20] sm:$0xf]  ;;  %v592_v45 = vld [vmem:[%s819_s0 + $0x2c] sm:$0xf0] }
   0xf   :  { %340 = vmatpush.bf16.msra.mxu1 %v606_v13  ;;  %v441_v43 = vor.u32 %v587_v38, %v438_v39  ;;  %v590_v46 = vld [vmem:[%s819_s0 + $0x24] sm:$0xf]  ;;  %v446_v47 = vld [vmem:[%s819_s0 + $0x30] sm:$0xf0]  ;;  %v452_v48 = vld [vmem:[%s819_s0 + $0x28] sm:$0xf]  ;;  %v445_v52 = vor.u32 %v592_v45, %v444_v44 }
  0x10   :  { %359 = vmatpush.bf16.msra.mxu2 %v614_v14  ;;  %v593_v49 = vld [vmem:[%s819_s0 + $0x34] sm:$0xf0]  ;;  %v591_v50 = vld [vmem:[%s819_s0 + $0x2c] sm:$0xf]  ;;  %v454_v51 = vld [vmem:[%s819_s0 + $0x38] sm:$0xf0]  ;;  %v449_v53 = vor.u32 %v590_v46, %v446_v47 }
  0x11   :  { %378 = vmatpush.bf16.msra.mxu3 %v622_v15  ;;  %v453_v54 = vor.u32 %v593_v49, %v452_v48  ;;  %v457_v55 = vor.u32 %v591_v50, %v454_v51 }
  0x12   :  { %322 = vmatpush.bf16.msra.mxu0 %v597_v16 }
  0x13   :  { %341 = vmatpush.bf16.msra.mxu1 %v605_v17 }
  0x14   :  { %360 = vmatpush.bf16.msra.mxu2 %v613_v18 }
  0x15   :  { %379 = vmatpush.bf16.msra.mxu3 %v621_v19 }
  0x16   :  { %323 = vmatpush.bf16.msra.mxu0 %v596_v20 }
  0x17   :  { %342 = vmatpush.bf16.msra.mxu1 %v604_v21 }
  0x18   :  { %361 = vmatpush.bf16.msra.mxu2 %v612_v22 }
  0x19   :  { %380 = vmatpush.bf16.msra.mxu3 %v620_v23 }
  0x1a   :  { %324 = vmatpush.bf16.msra.mxu0 %v595_v24 }
  0x1b   :  { %343 = vmatpush.bf16.msra.mxu1 %v603_v25 }
  0x1c   :  { %362 = vmatpush.bf16.msra.mxu2 %v611_v26 }
  0x1d   :  { %381 = vmatpush.bf16.msra.mxu3 %v619_v27 }
  0x1e   :  { %325 = vmatpush.bf16.msra.mxu0 %v594_v28 }
  0x1f   :  { %344 = vmatpush.bf16.msra.mxu1 %v602_v29 }
  0x20   :  { %363 = vmatpush.bf16.msra.mxu2 %v610_v30 }
  0x21   :  { %382 = vmatpush.bf16.msra.mxu3 %v618_v31  ;;  %326 = vmatmul.bf16.vlgmr.msra.gmra.mxu0 %v429_v40 }
  0x22   :  { %345 = vmatmul.bf16.vlgmr.msra.gmra.mxu1 %v433_v41 }
  0x23   :  { %364 = vmatmul.bf16.vlgmr.msra.gmra.mxu2 %v437_v42 }
  0x24   :  { %383 = vmatmul.bf16.vlgmr.msra.gmra.mxu3 %v441_v43 }
  0x31   :  { %331 = vmatmul.bf16.gmra.mxu0 %v445_v52 }
  0x32   :  { %350 = vmatmul.bf16.gmra.mxu1 %v449_v53 }
  0x33   :  { %369 = vmatmul.bf16.gmra.mxu2 %v453_v54 }
  0x34   :  { %388 = vmatmul.bf16.gmra.mxu3 %v457_v55 }
  0x9e   :  { %v327_v56 = vpop.f32.mrf.mxu0 }
  0x9f   :  { %v346_v57 = vpop.f32.mrf.mxu1 }
  0xa0   :  { %v347_v62 = vadd.f32 %v346_v57, %v327_v56 }
  0xa6   :  { %v365_v58 = vpop.f32.mrf.mxu2  ;;  %v329_v60 = vpop.f32.mrf.mxu0 }
  0xa7   :  { %v384_v59 = vpop.f32.mrf.mxu3  ;;  %v348_v61 = vpop.f32.mrf.mxu1  ;;  %v366_v63 = vadd.f32 %v365_v58, %v347_v62 }
  0xa8   :  { %v349_v0 = vadd.f32 %v348_v61, %v329_v60 }
  0xa9   :  { %v385_v6 = vadd.f32 %v384_v59, %v366_v63 }
  0xab   :  { %v402_v19 = vmul.f32 %v385_v6, %v385_v6 }
  0xae   :  { %v367_v1 = vpop.f32.mrf.mxu2  ;;  %v332_v4 = vpop.f32.mrf.mxu0 }
  0xaf   :  { %v386_v2 = vpop.f32.mrf.mxu3  ;;  %v368_v3 = vadd.f32 %v367_v1, %v349_v0  ;;  %v351_v5 = vpop.f32.mrf.mxu1 }
  0xb0   :  { %v352_v9 = vadd.f32 %v351_v5, %v332_v4 }
  0xb1   :  { %v387_v7 = vadd.f32 %v386_v2, %v368_v3 }
  0xb3   :  { %v629_v8 = vpack.c.bf16 %v387_v7, %v385_v6  ;;  %v403_v16 = vmul.f32 %v387_v7, %v387_v7  ;;  %v406_v20 = vadd.f32 %v387_v7, %v385_v6 }
  0xb5   :  { %630 = vst [vmem:[%s820_s2] sm:$0xff] %v629_v8   ;;  %v407_v24 = vadd.f32 %v403_v16, %v402_v19 }
  0xb6   :  { %v370_v10 = vpop.f32.mrf.mxu2  ;;  %v334_v13 = vpop.f32.mrf.mxu0 }
  0xb7   :  { %v389_v11 = vpop.f32.mrf.mxu3  ;;  %v371_v12 = vadd.f32 %v370_v10, %v352_v9  ;;  %v353_v14 = vpop.f32.mrf.mxu1 }
  0xb8   :  { %v354_v17 = vadd.f32 %v353_v14, %v334_v13 }
  0xb9   :  { %v390_v15 = vadd.f32 %v389_v11, %v371_v12 }
  0xbb   :  { %v404_v21 = vmul.f32 %v390_v15, %v390_v15  ;;  %v408_v25 = vadd.f32 %v406_v20, %v390_v15 }
  0xbd   :  { %v409_v27 = vadd.f32 %v407_v24, %v404_v21 }
  0xbe   :  { %v372_v18 = vpop.f32.mrf.mxu2 }
  0xbf   :  { %v373_v22 = vadd.f32 %v372_v18, %v354_v17  ;;  %v391_v23 = vpop.f32.mrf.mxu3 }
  0xc1   :  { %v392_v26 = vadd.f32 %v391_v23, %v373_v22 }
  0xc3   :  { %v634_v28 = vpack.c.bf16 %v392_v26, %v390_v15  ;;  %v405_v29 = vmul.f32 %v392_v26, %v392_v26  ;;  %v410_v30 = vadd.f32 %v408_v25, %v392_v26 }
  0xc5   :  { %636 = vst [vmem:[%s820_s2 + $0x8] sm:$0xff] %v634_v28   ;;  %v411_v31 = vadd.f32 %v409_v27, %v405_v29 }
  0xc6   :  { %412 = vst [vmem:[%s821_s3] sm:$0xff] %v410_v30 }
  0xc7   :  { %413 = vst [vmem:[%s822_s4] sm:$0xff] %v411_v31 }

// kernel: cond_dcgan_forward.35
= control target key start
LH: loop header
LB: loop body
LE: loop exit
PB: predicated region body
PF: predicated region fallthrough
CT: control target
= control target key end

     0   :  { %s122_s0 = inlined_call_operand.vmem [shape: bf16[32,128], index: 0, kind: input, shape index: {}]   ;;  %s123_s1 = inlined_call_operand.vmem [shape: f32[1,128], index: 1, kind: input, shape index: {}]   ;;  %s124_s2 = inlined_call_operand.vmem [shape: f32[1,128], index: 2, kind: input, shape index: {}]   ;;  %s125_s3 = inlined_call_operand.vmem [shape: bf16[32,128], index: 3, kind: output, shape index: {}]  }
   0x1   :  { %v63_v0 = vld [vmem:[%s122_s0] sm:$0xff]   ;;  %v80_v5 = vld [vmem:[%s122_s0 + $0x8] sm:$0xff]  }
   0x2   :  { %v82_v1 = vld [vmem:[%s123_s1] ss:$0 sm:$0xff]  ;;  %v64_v2 = vunpack.c.l.bf16 %v63_v0  ;;  %v65_v3 = vunpack.c.h.bf16 %v63_v0  ;;  %v68_v6 = vunpack.c.l.bf16 %v80_v5  ;;  %v69_v7 = vunpack.c.h.bf16 %v80_v5 }
   0x3   :  { %v83_v4 = vld [vmem:[%s124_s2] ss:$0 sm:$0xff] }
   0x4   :  { %v26_v8 = vmul.f32 %v82_v1, %v64_v2  ;;  %v27_v9 = vmul.f32 %v82_v1, %v65_v3  ;;  %v28_v10 = vmul.f32 %v82_v1, %v68_v6  ;;  %v29_v11 = vmul.f32 %v82_v1, %v69_v7 }
   0x6   :  { %v34_v12 = vadd.f32 %v83_v4, %v26_v8  ;;  %v35_v13 = vadd.f32 %v83_v4, %v27_v9  ;;  %v36_v14 = vadd.f32 %v83_v4, %v28_v10  ;;  %v37_v15 = vadd.f32 %v83_v4, %v29_v11 }
   0x8   :  { %vm38_vm0 = vcmp.gt.f32.partialorder %v34_v12, 0.0  ;;  %vm39_vm1 = vcmp.gt.f32.partialorder %v35_v13, 0.0  ;;  %v42_v16 = vmul.f32 0.2, %v34_v12  ;;  %v43_v17 = vmul.f32 0.2, %v35_v13 }
   0x9   :  { %vm40_vm2 = vcmp.gt.f32.partialorder %v36_v14, 0.0  ;;  %vm41_vm3 = vcmp.gt.f32.partialorder %v37_v15, 0.0  ;;  %v44_v18 = vmul.f32 0.2, %v36_v14  ;;  %v45_v19 = vmul.f32 0.2, %v37_v15 }
   0xa   :  { %v46_v20 = vsel %vm38_vm0, %v34_v12, %v42_v16  ;;  %v47_v21 = vsel %vm39_vm1, %v35_v13, %v43_v17 }
   0xb   :  { %v73_v22 = vpack.c.bf16 %v47_v21, %v46_v20  ;;  %v48_v23 = vsel %vm40_vm2, %v36_v14, %v44_v18  ;;  %v49_v24 = vsel %vm41_vm3, %v37_v15, %v45_v19 }
   0xc   :  { %v78_v25 = vpack.c.bf16 %v49_v24, %v48_v23 }
   0xd   :  { %74 = vst [vmem:[%s125_s3] sm:$0xff] %v73_v22  }
   0xe   :  { %81 = vst [vmem:[%s125_s3 + $0x8] sm:$0xff] %v78_v25  }

// kernel: cond_dcgan_forward.37
= control target key start
LH: loop header
LB: loop body
LE: loop exit
PB: predicated region body
PF: predicated region fallthrough
CT: control target
= control target key end

     0   :  { %s195_s1 = inlined_call_operand.vmem [shape: bf16[128,128], index: 1, kind: input, shape index: {}]   ;;  %s196_s2 = inlined_call_operand.vmem [shape: f32[1,128], index: 2, kind: input, shape index: {}]   ;;  %s197_s0 = inlined_call_operand.vmem [shape: bf16[8,128], index: 0, kind: input, shape index: {}]   ;;  %s198_s3 = inlined_call_operand.vmem [shape: f32[8,128], index: 3, kind: output, shape index: {}]  }
   0x1   :  { %v140_v0 = vld [vmem:[%s195_s1 + $0x38] sm:$0xff]  ;;  %v139_v1 = vld [vmem:[%s195_s1 + $0x30] sm:$0xff]  ;;  %v138_v2 = vld [vmem:[%s195_s1 + $0x28] sm:$0xff] }
   0x2   :  { %83 = vmatpush.bf16.msra.mxu0 %v140_v0  ;;  %v137_v3 = vld [vmem:[%s195_s1 + $0x20] sm:$0xff]  ;;  %v136_v4 = vld [vmem:[%s195_s1 + $0x18] sm:$0xff]  ;;  %v135_v5 = vld [vmem:[%s195_s1 + $0x10] sm:$0xff] }
   0x3   :  { %v134_v6 = vld [vmem:[%s195_s1 + $0x8] sm:$0xff]  ;;  %v133_v7 = vld [vmem:[%s195_s1] sm:$0xff] }
   0x4   :  { %v14_v8 = vld [vmem:[%s197_s0] sm:$0xf] }
   0x5   :  { %v141_v9 = vld [vmem:[%s196_s2] ss:$0 sm:$0xff] }
   0x6   :  { %84 = vmatpush.bf16.msra.mxu0 %v139_v1 }
   0xa   :  { %85 = vmatpush.bf16.msra.mxu0 %v138_v2 }
   0xe   :  { %86 = vmatpush.bf16.msra.mxu0 %v137_v3 }
  0x12   :  { %87 = vmatpush.bf16.msra.mxu0 %v136_v4 }
  0x16   :  { %88 = vmatpush.bf16.msra.mxu0 %v135_v5 }
  0x1a   :  { %89 = vmatpush.bf16.msra.mxu0 %v134_v6 }
  0x1e   :  { %90 = vmatpush.bf16.msra.mxu0 %v133_v7 }
  0x21   :  { %91 = vmatmul.bf16.vlgmr.msra.gmra.mxu0 %v14_v8 }
  0x9e   :  { %v92_v10 = vpop.f32.mrf.mxu0 }
  0x9f   :  { %v93_v11 = vadd.f32 %v141_v9, %v92_v10 }
  0xa1   :  { %96 = vst [vmem:[%s198_s3] sm:$0xff] %v93_v11 }
  0xa6   :  { %v94_v12 = vpop.f32.mrf.mxu0 }

// kernel: cond_dcgan_forward.36
= control target key start
LH: loop header
LB: loop body
LE: loop exit
PB: predicated region body
PF: predicated region fallthrough
CT: control target
= control target key end

     0   :  { %s1207_s1 = inlined_call_operand.vmem [shape: bf16[1024,128], index: 1, kind: input, shape index: {}]   ;;  %s1208_s0 = inlined_call_operand.vmem [shape: bf16[8,1024], index: 0, kind: input, shape index: {}]   ;;  %s1209_s2 = inlined_call_operand.vmem [shape: bf16[8,128], index: 2, kind: output, shape index: {}]  }
   0x1   :  { %v928_v0 = vld [vmem:[%s1207_s1 + $0x38] sm:$0xff]  ;;  %v927_v4 = vld [vmem:[%s1207_s1 + $0x30] sm:$0xff]  ;;  %v926_v8 = vld [vmem:[%s1207_s1 + $0x28] sm:$0xff] }
   0x2   :  { %v936_v1 = vld [vmem:[%s1207_s1 + $0x78] sm:$0xff]  ;;  %555 = vmatpush.bf16.msra.mxu0 %v928_v0  ;;  %v935_v5 = vld [vmem:[%s1207_s1 + $0x70] sm:$0xff]  ;;  %v934_v9 = vld [vmem:[%s1207_s1 + $0x68] sm:$0xff] }
   0x3   :  { %v944_v2 = vld [vmem:[%s1207_s1 + $0xb8] sm:$0xff]  ;;  %568 = vmatpush.bf16.msra.mxu1 %v936_v1  ;;  %v943_v6 = vld [vmem:[%s1207_s1 + $0xb0] sm:$0xff]  ;;  %v942_v10 = vld [vmem:[%s1207_s1 + $0xa8] sm:$0xff] }
   0x4   :  { %v952_v3 = vld [vmem:[%s1207_s1 + $0xf8] sm:$0xff]  ;;  %581 = vmatpush.bf16.msra.mxu2 %v944_v2  ;;  %v951_v7 = vld [vmem:[%s1207_s1 + $0xf0] sm:$0xff]  ;;  %v950_v11 = vld [vmem:[%s1207_s1 + $0xe8] sm:$0xff] }
   0x5   :  { %594 = vmatpush.bf16.msra.mxu3 %v952_v3  ;;  %v925_v12 = vld [vmem:[%s1207_s1 + $0x20] sm:$0xff]  ;;  %v924_v16 = vld [vmem:[%s1207_s1 + $0x18] sm:$0xff]  ;;  %v923_v20 = vld [vmem:[%s1207_s1 + $0x10] sm:$0xff] }
   0x6   :  { %556 = vmatpush.bf16.msra.mxu0 %v927_v4  ;;  %v933_v13 = vld [vmem:[%s1207_s1 + $0x60] sm:$0xff]  ;;  %v932_v17 = vld [vmem:[%s1207_s1 + $0x58] sm:$0xff]  ;;  %v931_v21 = vld [vmem:[%s1207_s1 + $0x50] sm:$0xff] }
   0x7   :  { %569 = vmatpush.bf16.msra.mxu1 %v935_v5  ;;  %v941_v14 = vld [vmem:[%s1207_s1 + $0xa0] sm:$0xff]  ;;  %v940_v18 = vld [vmem:[%s1207_s1 + $0x98] sm:$0xff]  ;;  %v939_v22 = vld [vmem:[%s1207_s1 + $0x90] sm:$0xff] }
   0x8   :  { %582 = vmatpush.bf16.msra.mxu2 %v943_v6  ;;  %v949_v15 = vld [vmem:[%s1207_s1 + $0xe0] sm:$0xff]  ;;  %v948_v19 = vld [vmem:[%s1207_s1 + $0xd8] sm:$0xff]  ;;  %v947_v23 = vld [vmem:[%s1207_s1 + $0xd0] sm:$0xff] }
   0x9   :  { %595 = vmatpush.bf16.msra.mxu3 %v951_v7  ;;  %v922_v24 = vld [vmem:[%s1207_s1 + $0x8] sm:$0xff]  ;;  %v11_v29 = vld [vmem:[%s1208_s0] sm:$0xff]  ;;  %v960_v38 = vld [vmem:[%s1207_s1 + $0x138] sm:$0xff] }
   0xa   :  { %557 = vmatpush.bf16.msra.mxu0 %v926_v8  ;;  %v930_v25 = vld [vmem:[%s1207_s1 + $0x48] sm:$0xff]  ;;  %v921_v30 = vld [vmem:[%s1207_s1] sm:$0xff]  ;;  %v147_v36 = vunpack.c.l.b16 %v11_v29  ;;  %v148_v37 = vunpack.c.h.b16 %v11_v29  ;;  %v968_v39 = vld [vmem:[%s1207_s1 + $0x178] sm:$0xff] }
   0xb   :  { %570 = vmatpush.bf16.msra.mxu1 %v934_v9  ;;  %v938_v26 = vld [vmem:[%s1207_s1 + $0x88] sm:$0xff]  ;;  %v929_v31 = vld [vmem:[%s1207_s1 + $0x40] sm:$0xff]  ;;  %v976_v40 = vld [vmem:[%s1207_s1 + $0x1b8] sm:$0xff] }
   0xc   :  { %583 = vmatpush.bf16.msra.mxu2 %v942_v10  ;;  %v946_v27 = vld [vmem:[%s1207_s1 + $0xc8] sm:$0xff]  ;;  %v937_v34 = vld [vmem:[%s1207_s1 + $0x80] sm:$0xff]  ;;  %v984_v41 = vld [vmem:[%s1207_s1 + $0x1f8] sm:$0xff]  ;;  %v155_v44 = vpack.c.b16 %v147_v36, %v147_v36  ;;  %v156_v45 = vpack.c.b16 %v148_v37, %v148_v37 }
   0xd   :  { %596 = vmatpush.bf16.msra.mxu3 %v950_v11  ;;  %v12_v28 = vld [vmem:[%s1208_s0 + $0x8] sm:$0xff]  ;;  %v945_v35 = vld [vmem:[%s1207_s1 + $0xc0] sm:$0xff]  ;;  %v959_v46 = vld [vmem:[%s1207_s1 + $0x130] sm:$0xff] }
   0xe   :  { %558 = vmatpush.bf16.msra.mxu0 %v925_v12  ;;  %v149_v32 = vunpack.c.l.b16 %v12_v28  ;;  %v150_v33 = vunpack.c.h.b16 %v12_v28  ;;  %v967_v47 = vld [vmem:[%s1207_s1 + $0x170] sm:$0xff]  ;;  %v958_v50 = vld [vmem:[%s1207_s1 + $0x128] sm:$0xff]  ;;  %v957_v54 = vld [vmem:[%s1207_s1 + $0x120] sm:$0xff] }
   0xf   :  { %571 = vmatpush.bf16.msra.mxu1 %v933_v13  ;;  %v975_v48 = vld [vmem:[%s1207_s1 + $0x1b0] sm:$0xff]  ;;  %v966_v51 = vld [vmem:[%s1207_s1 + $0x168] sm:$0xff]  ;;  %v965_v55 = vld [vmem:[%s1207_s1 + $0x160] sm:$0xff] }
  0x10   :  { %584 = vmatpush.bf16.msra.mxu2 %v941_v14  ;;  %v157_v42 = vpack.c.b16 %v149_v32, %v149_v32  ;;  %v158_v43 = vpack.c.b16 %v150_v33, %v150_v33  ;;  %v983_v49 = vld [vmem:[%s1207_s1 + $0x1f0] sm:$0xff]  ;;  %v974_v52 = vld [vmem:[%s1207_s1 + $0x1a8] sm:$0xff]  ;;  %v973_v56 = vld [vmem:[%s1207_s1 + $0x1a0] sm:$0xff] }
  0x11   :  { %597 = vmatpush.bf16.msra.mxu3 %v949_v15  ;;  %v982_v53 = vld [vmem:[%s1207_s1 + $0x1e8] sm:$0xff]  ;;  %v981_v57 = vld [vmem:[%s1207_s1 + $0x1e0] sm:$0xff]  ;;  %v956_v58 = vld [vmem:[%s1207_s1 + $0x118] sm:$0xff] }
  0x12   :  { %559 = vmatpush.bf16.msra.mxu0 %v924_v16  ;;  %v964_v59 = vld [vmem:[%s1207_s1 + $0x158] sm:$0xff]  ;;  %v955_v62 = vld [vmem:[%s1207_s1 + $0x110] sm:$0xff]  ;;  %v954_v2 = vld [vmem:[%s1207_s1 + $0x108] sm:$0xff] }
  0x13   :  { %572 = vmatpush.bf16.msra.mxu1 %v932_v17  ;;  %v972_v60 = vld [vmem:[%s1207_s1 + $0x198] sm:$0xff]  ;;  %v963_v63 = vld [vmem:[%s1207_s1 + $0x150] sm:$0xff]  ;;  %v962_v3 = vld [vmem:[%s1207_s1 + $0x148] sm:$0xff] }
  0x14   :  { %585 = vmatpush.bf16.msra.mxu2 %v940_v18  ;;  %v980_v61 = vld [vmem:[%s1207_s1 + $0x1d8] sm:$0xff]  ;;  %v971_v0 = vld [vmem:[%s1207_s1 + $0x190] sm:$0xff]  ;;  %v970_v5 = vld [vmem:[%s1207_s1 + $0x188] sm:$0xff] }
  0x15   :  { %598 = vmatpush.bf16.msra.mxu3 %v948_v19  ;;  %v979_v1 = vld [vmem:[%s1207_s1 + $0x1d0] sm:$0xff]  ;;  %v978_v6 = vld [vmem:[%s1207_s1 + $0x1c8] sm:$0xff]  ;;  %v14_v7 = vld [vmem:[%s1208_s0 + $0x18] sm:$0xff] }
  0x16   :  { %560 = vmatpush.bf16.msra.mxu0 %v923_v20  ;;  %v13_v4 = vld [vmem:[%s1208_s0 + $0x10] sm:$0xff]  ;;  %v953_v10 = vld [vmem:[%s1207_s1 + $0x100] sm:$0xff]  ;;  %v153_v12 = vunpack.c.l.b16 %v14_v7  ;;  %v154_v13 = vunpack.c.h.b16 %v14_v7 }
  0x17   :  { %573 = vmatpush.bf16.msra.mxu1 %v931_v21  ;;  %v151_v8 = vunpack.c.l.b16 %v13_v4  ;;  %v152_v9 = vunpack.c.h.b16 %v13_v4  ;;  %v961_v11 = vld [vmem:[%s1207_s1 + $0x140] sm:$0xff] }
  0x18   :  { %586 = vmatpush.bf16.msra.mxu2 %v939_v22  ;;  %v969_v14 = vld [vmem:[%s1207_s1 + $0x180] sm:$0xff]  ;;  %v161_v18 = vpack.c.b16 %v153_v12, %v153_v12  ;;  %v162_v19 = vpack.c.b16 %v154_v13, %v154_v13 }
  0x19   :  { %599 = vmatpush.bf16.msra.mxu3 %v947_v23  ;;  %v977_v15 = vld [vmem:[%s1207_s1 + $0x1c0] sm:$0xff]  ;;  %v159_v16 = vpack.c.b16 %v151_v8, %v151_v8  ;;  %v160_v17 = vpack.c.b16 %v152_v9, %v152_v9 }
  0x1a   :  { %561 = vmatpush.bf16.msra.mxu0 %v922_v24 }
  0x1b   :  { %574 = vmatpush.bf16.msra.mxu1 %v930_v25 }
  0x1c   :  { %587 = vmatpush.bf16.msra.mxu2 %v938_v26 }
  0x1d   :  { %600 = vmatpush.bf16.msra.mxu3 %v946_v27 }
  0x1e   :  { %562 = vmatpush.bf16.msra.mxu0 %v921_v30 }
  0x1f   :  { %575 = vmatpush.bf16.msra.mxu1 %v929_v31 }
  0x20   :  { %588 = vmatpush.bf16.msra.mxu2 %v937_v34 }
  0x21   :  { %601 = vmatpush.bf16.msra.mxu3 %v945_v35  ;;  %563 = vmatmul.bf16.vlgmr.msra.gmra.mxu0 %v155_v44 }
  0x22   :  { %607 = vmatpush.bf16.msrb.mxu0 %v960_v38  ;;  %576 = vmatmul.bf16.vlgmr.msra.gmra.mxu1 %v156_v45 }
  0x23   :  { %620 = vmatpush.bf16.msrb.mxu1 %v968_v39  ;;  %589 = vmatmul.bf16.vlgmr.msra.gmra.mxu2 %v157_v42 }
  0x24   :  { %633 = vmatpush.bf16.msrb.mxu2 %v976_v40  ;;  %602 = vmatmul.bf16.vlgmr.msra.gmra.mxu3 %v158_v43 }
  0x25   :  { %646 = vmatpush.bf16.msrb.mxu3 %v984_v41 }
  0x26   :  { %608 = vmatpush.bf16.msrb.mxu0 %v959_v46 }
  0x27   :  { %621 = vmatpush.bf16.msrb.mxu1 %v967_v47 }
  0x28   :  { %634 = vmatpush.bf16.msrb.mxu2 %v975_v48 }
  0x29   :  { %647 = vmatpush.bf16.msrb.mxu3 %v983_v49 }
  0x2a   :  { %609 = vmatpush.bf16.msrb.mxu0 %v958_v50 }
  0x2b   :  { %622 = vmatpush.bf16.msrb.mxu1 %v966_v51 }
  0x2c   :  { %635 = vmatpush.bf16.msrb.mxu2 %v974_v52 }
  0x2d   :  { %648 = vmatpush.bf16.msrb.mxu3 %v982_v53 }
  0x2e   :  { %610 = vmatpush.bf16.msrb.mxu0 %v957_v54 }
  0x2f   :  { %623 = vmatpush.bf16.msrb.mxu1 %v965_v55 }
  0x30   :  { %636 = vmatpush.bf16.msrb.mxu2 %v973_v56 }
  0x31   :  { %649 = vmatpush.bf16.msrb.mxu3 %v981_v57 }
  0x32   :  { %611 = vmatpush.bf16.msrb.mxu0 %v956_v58 }
  0x33   :  { %624 = vmatpush.bf16.msrb.mxu1 %v964_v59 }
  0x34   :  { %637 = vmatpush.bf16.msrb.mxu2 %v972_v60 }
  0x35   :  { %650 = vmatpush.bf16.msrb.mxu3 %v980_v61 }
  0x36   :  { %612 = vmatpush.bf16.msrb.mxu0 %v955_v62 }
  0x37   :  { %625 = vmatpush.bf16.msrb.mxu1 %v963_v63 }
  0x38   :  { %638 = vmatpush.bf16.msrb.mxu2 %v971_v0 }
  0x39   :  { %651 = vmatpush.bf16.msrb.mxu3 %v979_v1 }
  0x3a   :  { %613 = vmatpush.bf16.msrb.mxu0 %v954_v2 }
  0x3b   :  { %626 = vmatpush.bf16.msrb.mxu1 %v962_v3 }
  0x3c   :  { %639 = vmatpush.bf16.msrb.mxu2 %v970_v5 }
  0x3d   :  { %652 = vmatpush.bf16.msrb.mxu3 %v978_v6 }
  0x3e   :  { %614 = vmatpush.bf16.msrb.mxu0 %v953_v10 }
  0x3f   :  { %627 = vmatpush.bf16.msrb.mxu1 %v961_v11 }
  0x40   :  { %640 = vmatpush.bf16.msrb.mxu2 %v969_v14 }
  0x41   :  { %653 = vmatpush.bf16.msrb.mxu3 %v977_v15  ;;  %615 = vmatmul.bf16.vlgmr.msrb.gmra.mxu0 %v159_v16 }
  0x42   :  { %628 = vmatmul.bf16.vlgmr.msrb.gmra.mxu1 %v160_v17 }
  0x43   :  { %641 = vmatmul.bf16.vlgmr.msrb.gmra.mxu2 %v161_v18 }
  0x44   :  { %654 = vmatmul.bf16.vlgmr.msrb.gmra.mxu3 %v162_v19 }
  0x9e   :  { %v564_v20 = vpop.f32.mrf.mxu0 }
  0x9f   :  { %v577_v21 = vpop.f32.mrf.mxu1 }
  0xa0   :  { %v578_v28 = vadd.f32 %v577_v21, %v564_v20 }
  0xa6   :  { %v590_v22 = vpop.f32.mrf.mxu2  ;;  %v566_v24 = vpop.f32.mrf.mxu0 }
  0xa7   :  { %v603_v23 = vpop.f32.mrf.mxu3  ;;  %v579_v25 = vpop.f32.mrf.mxu1  ;;  %v591_v29 = vadd.f32 %v590_v22, %v578_v28 }
  0xa9   :  { %v604_v30 = vadd.f32 %v603_v23, %v591_v29 }
  0xae   :  { %v592_v26 = vpop.f32.mrf.mxu2 }
  0xaf   :  { %v605_v27 = vpop.f32.mrf.mxu3 }
  0xbe   :  { %v616_v31 = vpop.f32.mrf.mxu0 }
  0xbf   :  { %v629_v32 = vpop.f32.mrf.mxu1  ;;  %v617_v33 = vadd.f32 %v616_v31, %v604_v30 }
  0xc1   :  { %v630_v34 = vadd.f32 %v629_v32, %v617_v33 }
  0xc6   :  { %v642_v35 = vpop.f32.mrf.mxu2  ;;  %v618_v38 = vpop.f32.mrf.mxu0 }
  0xc7   :  { %v655_v36 = vpop.f32.mrf.mxu3  ;;  %v643_v37 = vadd.f32 %v642_v35, %v630_v34  ;;  %v631_v39 = vpop.f32.mrf.mxu1 }
  0xc9   :  { %v656_v40 = vadd.f32 %v655_v36, %v643_v37 }
  0xcb   :  { %v659_v41 = vpack.c.bf16 %v656_v40, %v656_v40 }
  0xcd   :  { %660 = vst [vmem:[%s1209_s2] sm:$0xf] %v659_v41 }
  0xce   :  { %v644_v42 = vpop.f32.mrf.mxu2 }
  0xcf   :  { %v657_v43 = vpop.f32.mrf.mxu3 }

</bundles_post_ra>
